<compile_context>
chip_gen: v5e
topology: v5e:2x2
jax: 0.10.0
libtpu: 0.0.40
codegen_flags: <defaults>
</compile_context>

<pallas_src>
import functools

import jax
import jax.numpy as jnp
from jax import lax
from jax.experimental import pallas as pl
from jax.experimental.pallas import tpu as pltpu


# ----------------------------------------------------------------------------
# Fused 2-layer bidirectional GRU kernel.
#
# PyTorch GRU cell semantics (gate order r, z, n):
#   r = sigmoid(x W_ir + b_ir + h W_hr + b_hr)
#   z = sigmoid(x W_iz + b_iz + h W_hz + b_hz)
#   n = tanh  (x W_in + b_in + r * (h W_hn + b_hn))
#   h' = (1 - z) * n + z * h
# ----------------------------------------------------------------------------
def _bigru_stack_kernel(x_ref, wih0_ref, bih0_ref, whh0_ref, bhh0_ref,
                        wih1_ref, bih1_ref, whh1_ref, bhh1_ref,
                        out_ref, gi_ref, y1_ref, *, seq_len, batch_p, hidden):
    """x_ref   : (T*Bp, D)        time-major, batch-flattened embeddings.
       wih0_ref: (2, 3, D, H)     layer-0 input weights per (direction, gate).
       bih0_ref: (2, 3, 1, H)     layer-0 input biases.
       whh*_ref: (2, 3, H, H)     recurrent weights per (direction, gate).
       bhh*_ref: (2, 3, Bp, H)    recurrent biases (pre-broadcast over batch).
       wih1_ref: (2, 2, 3, H, H)  layer-1 input weights, axis0 = input half (fwd y / bwd y).
       bih1_ref: (2, 3, 1, H)     layer-1 input biases.
       out_ref : (2, Bp, H)       final hidden states of the last layer (fwd, bwd).
       gi_ref  : (2, 3, T*Bp, H)  VMEM scratch: input projections, reused by both layers.
       y1_ref  : (2, T*Bp, H)     VMEM scratch: layer-0 outputs per direction (orig time order).
    """
    Bp, H = batch_p, hidden

    def cell(gi_r, gi_z, gi_n, h, w, b):
        # gi_*: (Bp,H) input-side pre-activations; w: (3,H,H); b: (3,Bp,H).
        gh_r = jnp.dot(h, w[0], preferred_element_type=jnp.float32) + b[0]
        gh_z = jnp.dot(h, w[1], preferred_element_type=jnp.float32) + b[1]
        gh_n = jnp.dot(h, w[2], preferred_element_type=jnp.float32) + b[2]
        r = jax.nn.sigmoid(gi_r + gh_r)
        z = jax.nn.sigmoid(gi_z + gh_z)
        n = jnp.tanh(gi_n + r * gh_n)
        return (1.0 - z) * n + z * h

    def recurrence(whh, bhh, y_out_ref):
        # Serial loop over time, both directions fused; gi_ref holds the full
        # (already hoisted) input projections for the current layer.
        h0 = jnp.zeros((Bp, H), jnp.float32)

        def step(s, carry):
            h_f, h_b = carry
            sb = seq_len - 1 - s
            row_f = pl.multiple_of(s * Bp, 8)
            row_b = pl.multiple_of(sb * Bp, 8)
            gf = [gi_ref[0, g, pl.ds(row_f, Bp), :] for g in range(3)]
            gb = [gi_ref[1, g, pl.ds(row_b, Bp), :] for g in range(3)]
            h_f = cell(gf[0], gf[1], gf[2], h_f, whh[0], bhh[0])
            h_b = cell(gb[0], gb[1], gb[2], h_b, whh[1], bhh[1])
            if y_out_ref is not None:
                y_out_ref[0, pl.ds(row_f, Bp), :] = h_f   # fwd output at time s
                y_out_ref[1, pl.ds(row_b, Bp), :] = h_b   # bwd output at time T-1-s
            return h_f, h_b

        # Fully unrolled so the scheduler sees the whole recurrence as one block.
        return lax.fori_loop(0, seq_len, step, (h0, h0), unroll=True)

    # ---- layer 0: input projection hoisted over all timesteps / dirs / gates.
    x2d = x_ref[...]                                              # (T*Bp, D)
    for d in range(2):
        for g in range(3):
            gi_ref[d, g] = (
                jnp.dot(x2d, wih0_ref[d, g], preferred_element_type=jnp.float32)
                + bih0_ref[d, g])
    recurrence(whh0_ref[...], bhh0_ref[...], y1_ref)

    # ---- layer 1: input projection directly from VMEM-resident layer-0 outputs
    # (the fwd/bwd feature concat is folded into two split matmuls — free).
    y1f = y1_ref[0]                                               # (T*Bp, H)
    y1b = y1_ref[1]
    for d in range(2):
        for g in range(3):
            gi_ref[d, g] = (
                jnp.dot(y1f, wih1_ref[0, d, g], preferred_element_type=jnp.float32)
                + jnp.dot(y1b, wih1_ref[1, d, g], preferred_element_type=jnp.float32)
                + bih1_ref[d, g])
    h_f, h_b = recurrence(whh1_ref[...], bhh1_ref[...], None)

    out_ref[0] = h_f      # final hidden, last layer, forward direction
    out_ref[1] = h_b      # final hidden, last layer, backward direction


# ----------------------------------------------------------------------------
# Parameter helpers (PyTorch-style layout -> per-(direction, gate) stacks).
# ----------------------------------------------------------------------------
def _gate_major(w, d_in, hidden_dim):
    # (d_in, 3H) -> (3, d_in, H), gate order r, z, n.
    return w.reshape(d_in, 3, hidden_dim).transpose(1, 0, 2)


def init_params(key, vocab_size, emb_dim, hidden_dim, output_dim, n_layers):
    keys = iter(jax.random.split(key, 64))
    p = {"emb": jax.random.normal(next(keys), (vocab_size, emb_dim), jnp.float32) * 0.1}
    p["gru"] = []
    for layer in range(n_layers):
        d_in = emb_dim if layer == 0 else 2 * hidden_dim
        layer_p = []
        for _ in range(2):  # forward, backward
            layer_p.append(dict(
                w_ih=jax.random.normal(next(keys), (d_in, 3 * hidden_dim), jnp.float32) * 0.1,
                w_hh=jax.random.normal(next(keys), (hidden_dim, 3 * hidden_dim), jnp.float32) * 0.1,
                b_ih=jax.random.normal(next(keys), (1, 3 * hidden_dim), jnp.float32) * 0.1,
                b_hh=jax.random.normal(next(keys), (1, 3 * hidden_dim), jnp.float32) * 0.1,
            ))
        p["gru"].append(layer_p)
    p["out_w"] = jax.random.normal(next(keys), (2 * hidden_dim, output_dim), jnp.float32) * 0.1
    p["out_b"] = jax.random.normal(next(keys), (1, output_dim), jnp.float32) * 0.1
    return p


def _full_spec(a):
    zeros = (0,) * a.ndim
    return pl.BlockSpec(a.shape, lambda: zeros)


# ----------------------------------------------------------------------------
# Full model (BERT stand-in + bidirectional 2-layer GRU + Linear).
# ----------------------------------------------------------------------------
def bert_gru_sentiment_forward(params, text):
    B, T = text.shape
    H = params["gru"][0][0]["w_hh"].shape[0]
    assert len(params["gru"]) == 2, "fused kernel is specialized to n_layers=2"

    # "BERT" stand-in: frozen embedding lookup, (B, T) -> (B, T, D)   [glue]
    embedded = jnp.take(params["emb"], text, axis=0)              # (B, T, D)
    x = jnp.transpose(embedded, (1, 0, 2))                        # (T, B, D) time-major
    D = x.shape[-1]

    # Pad batch to a sublane multiple (8); padded rows evolve independently and
    # are stripped at the end.
    pad_b = (-B) % 8
    if pad_b:
        x = jnp.pad(x, ((0, 0), (0, pad_b), (0, 0)))
    Bp = B + pad_b
    x2d = x.reshape(T * Bp, D)                                    # batch-flattened, tile-aligned

    l0, l1 = params["gru"]
    wih0 = jnp.stack([_gate_major(p["w_ih"], D, H) for p in l0])           # (2,3,D,H)
    bih0 = jnp.stack([p["b_ih"].reshape(3, 1, H) for p in l0])             # (2,3,1,H)
    whh0 = jnp.stack([_gate_major(p["w_hh"], H, H) for p in l0])           # (2,3,H,H)
    bhh0 = jnp.broadcast_to(
        jnp.stack([p["b_hh"].reshape(3, 1, H) for p in l0]), (2, 3, Bp, H))
    w1 = jnp.stack([_gate_major(p["w_ih"], 2 * H, H) for p in l1])         # (2,3,2H,H)
    wih1 = jnp.stack([w1[:, :, :H, :], w1[:, :, H:, :]])                   # (2,2,3,H,H)
    bih1 = jnp.stack([p["b_ih"].reshape(3, 1, H) for p in l1])             # (2,3,1,H)
    whh1 = jnp.stack([_gate_major(p["w_hh"], H, H) for p in l1])           # (2,3,H,H)
    bhh1 = jnp.broadcast_to(
        jnp.stack([p["b_hh"].reshape(3, 1, H) for p in l1]), (2, 3, Bp, H))

    operands = (x2d, wih0, bih0, whh0, bhh0, wih1, bih1, whh1, bhh1)
    hid = pl.pallas_call(
        functools.partial(_bigru_stack_kernel, seq_len=T, batch_p=Bp, hidden=H),
        out_shape=jax.ShapeDtypeStruct((2, Bp, H), jnp.float32),
        in_specs=[_full_spec(a) for a in operands],
        out_specs=pl.BlockSpec((2, Bp, H), lambda: (0, 0, 0)),
        scratch_shapes=[pltpu.VMEM((2, 3, T * Bp, H), jnp.float32),   # gi (reused per layer)
                        pltpu.VMEM((2, T * Bp, H), jnp.float32)],     # layer-0 outputs
    )(*operands)

    # hidden = dropout(cat(hidden[-2], hidden[-1]))  — dropout is identity (eval).
    hidden = jnp.concatenate([hid[0, :B], hid[1, :B]], axis=-1)   # (B, 2H)
    # Final Linear head in plain JAX: a (B,2H)@(2H,1) matmul as its own Pallas
    # call is pure launch overhead.
    return hidden @ params["out_w"] + params["out_b"]             # (B, output_dim)


# ----------------------------------------------------------------------------
# Pure-JAX reference for correctness checking.
# ----------------------------------------------------------------------------
def _gru_dir_ref(x_tbd, w_ih, w_hh, b_ih, b_hh, reverse):
    H = w_hh.shape[0]

    def step(h, x_t):
        gi = x_t @ w_ih + b_ih
        gh = h @ w_hh + b_hh
        r = jax.nn.sigmoid(gi[:, :H] + gh[:, :H])
        z = jax.nn.sigmoid(gi[:, H:2 * H] + gh[:, H:2 * H])
        n = jnp.tanh(gi[:, 2 * H:] + r * gh[:, 2 * H:])
        h_new = (1.0 - z) * n + z * h
        return h_new, h_new

    xs = x_tbd[::-1] if reverse else x_tbd
    h0 = jnp.zeros((x_tbd.shape[1], H), jnp.float32)
    _, ys = lax.scan(step, h0, xs)
    return ys[::-1] if reverse else ys


def forward_ref(params, text):
    embedded = jnp.take(params["emb"], text, axis=0)
    x = jnp.transpose(embedded, (1, 0, 2))
    h_f = h_b = None
    for layer_p in params["gru"]:
        y_f = _gru_dir_ref(x, layer_p[0]["w_ih"], layer_p[0]["w_hh"],
                           layer_p[0]["b_ih"], layer_p[0]["b_hh"], reverse=False)
        y_b = _gru_dir_ref(x, layer_p[1]["w_ih"], layer_p[1]["w_hh"],
                           layer_p[1]["b_ih"], layer_p[1]["b_hh"], reverse=True)
        x = jnp.concatenate([y_f, y_b], axis=-1)
        h_f, h_b = y_f[-1], y_b[0]
    hidden = jnp.concatenate([h_f, h_b], axis=-1)
    return hidden @ params["out_w"] + params["out_b"]


if __name__ == "__main__":
    B, T = 2, 8              # batch, sequence length
    VOCAB = 100
    EMB_DIM = 32             # bert.config hidden_size stand-in
    HIDDEN_DIM = 32
    OUTPUT_DIM = 1
    N_LAYERS = 2             # bidirectional=True, dropout inactive (eval)

    key = jax.random.PRNGKey(0)
    k_param, k_text = jax.random.split(key)
    params = init_params(k_param, VOCAB, EMB_DIM, HIDDEN_DIM, OUTPUT_DIM, N_LAYERS)
    text = jax.random.randint(k_text, (B, T), 0, VOCAB, dtype=jnp.int32)

    out = jax.block_until_ready(bert_gru_sentiment_forward(params, text))
    ref = jax.block_until_ready(forward_ref(params, text))

    assert out.shape == (B, OUTPUT_DIM), out.shape
    assert jnp.allclose(out, ref, atol=2e-4, rtol=2e-4), (out, ref)

    print("KERNEL_OK")
</pallas_src>

<mosaic_0001>
module attributes {stable_mosaic.version = 11 : i64} {
  func.func @_bigru_stack_kernel(%arg0: memref<64x32xf32, #tpu.memory_space<vmem>>, %arg1: memref<2x3x32x32xf32, #tpu.memory_space<vmem>>, %arg2: memref<2x3x1x32xf32, #tpu.memory_space<vmem>>, %arg3: memref<2x3x32x32xf32, #tpu.memory_space<vmem>>, %arg4: memref<2x3x8x32xf32, #tpu.memory_space<vmem>>, %arg5: memref<2x2x3x32x32xf32, #tpu.memory_space<vmem>>, %arg6: memref<2x3x1x32xf32, #tpu.memory_space<vmem>>, %arg7: memref<2x3x32x32xf32, #tpu.memory_space<vmem>>, %arg8: memref<2x3x8x32xf32, #tpu.memory_space<vmem>>, %arg9: memref<2x8x32xf32, #tpu.memory_space<vmem>>, %arg10: memref<2x3x64x32xf32, #tpu.memory_space<vmem>>, %arg11: memref<2x64x32xf32, #tpu.memory_space<vmem>>) attributes {dimension_semantics = [], scalar_prefetch = 0 : i64, scratch_operands = 2 : i64, tpu.core_type = #tpu.core_type<tc>} {
    %c0 = arith.constant 0 : index
    %c0_0 = arith.constant 0 : index
    %0 = vector.load %arg0[%c0, %c0_0] : memref<64x32xf32, #tpu.memory_space<vmem>>, vector<64x32xf32>
    %c0_1 = arith.constant 0 : index
    %c0_2 = arith.constant 0 : index
    %c0_3 = arith.constant 0 : index
    %c0_4 = arith.constant 0 : index
    %1 = vector.load %arg1[%c0_1, %c0_2, %c0_3, %c0_4] : memref<2x3x32x32xf32, #tpu.memory_space<vmem>>, vector<1x1x32x32xf32>
    %2 = vector.shape_cast %1 : vector<1x1x32x32xf32> to vector<32x32xf32>
    %cst = arith.constant dense<0.000000e+00> : vector<64x32xf32>
    %3 = tpu.matmul %0, %2, %cst {dimension_numbers = #tpu.dot_dimension_numbers<[1], [0], [0], [1], [0, 0, 1, 1], [], []>} : vector<64x32xf32>, vector<32x32xf32>, vector<64x32xf32> -> vector<64x32xf32>
    %c0_5 = arith.constant 0 : index
    %c0_6 = arith.constant 0 : index
    %c0_7 = arith.constant 0 : index
    %c0_8 = arith.constant 0 : index
    %4 = vector.load %arg2[%c0_5, %c0_6, %c0_7, %c0_8] : memref<2x3x1x32xf32, #tpu.memory_space<vmem>>, vector<1x1x1x32xf32>
    %5 = vector.shape_cast %4 : vector<1x1x1x32xf32> to vector<1x32xf32>
    %6 = vector.broadcast %5 : vector<1x32xf32> to vector<64x32xf32>
    %7 = arith.addf %3, %6 : vector<64x32xf32>
    %c0_9 = arith.constant 0 : index
    %c0_10 = arith.constant 0 : index
    %c0_11 = arith.constant 0 : index
    %c0_12 = arith.constant 0 : index
    %8 = vector.load %arg10[%c0_9, %c0_10, %c0_11, %c0_12] : memref<2x3x64x32xf32, #tpu.memory_space<vmem>>, vector<1x1x64x32xf32>
    %9 = vector.shape_cast %8 : vector<1x1x64x32xf32> to vector<64x32xf32>
    %10 = vector.shape_cast %7 : vector<64x32xf32> to vector<1x1x64x32xf32>
    tpu.vector_store %arg10[%c0_9, %c0_10, %c0_11, %c0_12], %10 {strides = array<i32>} : memref<2x3x64x32xf32, #tpu.memory_space<vmem>>, vector<1x1x64x32xf32>,
    %c0_13 = arith.constant 0 : index
    %c1 = arith.constant 1 : index
    %c0_14 = arith.constant 0 : index
    %c0_15 = arith.constant 0 : index
    %11 = vector.load %arg1[%c0_13, %c1, %c0_14, %c0_15] : memref<2x3x32x32xf32, #tpu.memory_space<vmem>>, vector<1x1x32x32xf32>
    %12 = vector.shape_cast %11 : vector<1x1x32x32xf32> to vector<32x32xf32>
    %cst_16 = arith.constant dense<0.000000e+00> : vector<64x32xf32>
    %13 = tpu.matmul %0, %12, %cst_16 {dimension_numbers = #tpu.dot_dimension_numbers<[1], [0], [0], [1], [0, 0, 1, 1], [], []>} : vector<64x32xf32>, vector<32x32xf32>, vector<64x32xf32> -> vector<64x32xf32>
    %c0_17 = arith.constant 0 : index
    %c1_18 = arith.constant 1 : index
    %c0_19 = arith.constant 0 : index
    %c0_20 = arith.constant 0 : index
    %14 = vector.load %arg2[%c0_17, %c1_18, %c0_19, %c0_20] : memref<2x3x1x32xf32, #tpu.memory_space<vmem>>, vector<1x1x1x32xf32>
    %15 = vector.shape_cast %14 : vector<1x1x1x32xf32> to vector<1x32xf32>
    %16 = vector.broadcast %15 : vector<1x32xf32> to vector<64x32xf32>
    %17 = arith.addf %13, %16 : vector<64x32xf32>
    %c0_21 = arith.constant 0 : index
    %c1_22 = arith.constant 1 : index
    %c0_23 = arith.constant 0 : index
    %c0_24 = arith.constant 0 : index
    %18 = vector.load %arg10[%c0_21, %c1_22, %c0_23, %c0_24] : memref<2x3x64x32xf32, #tpu.memory_space<vmem>>, vector<1x1x64x32xf32>
    %19 = vector.shape_cast %18 : vector<1x1x64x32xf32> to vector<64x32xf32>
    %20 = vector.shape_cast %17 : vector<64x32xf32> to vector<1x1x64x32xf32>
    tpu.vector_store %arg10[%c0_21, %c1_22, %c0_23, %c0_24], %20 {strides = array<i32>} : memref<2x3x64x32xf32, #tpu.memory_space<vmem>>, vector<1x1x64x32xf32>,
    %c0_25 = arith.constant 0 : index
    %c2 = arith.constant 2 : index
    %c0_26 = arith.constant 0 : index
    %c0_27 = arith.constant 0 : index
    %21 = vector.load %arg1[%c0_25, %c2, %c0_26, %c0_27] : memref<2x3x32x32xf32, #tpu.memory_space<vmem>>, vector<1x1x32x32xf32>
    %22 = vector.shape_cast %21 : vector<1x1x32x32xf32> to vector<32x32xf32>
    %cst_28 = arith.constant dense<0.000000e+00> : vector<64x32xf32>
    %23 = tpu.matmul %0, %22, %cst_28 {dimension_numbers = #tpu.dot_dimension_numbers<[1], [0], [0], [1], [0, 0, 1, 1], [], []>} : vector<64x32xf32>, vector<32x32xf32>, vector<64x32xf32> -> vector<64x32xf32>
    %c0_29 = arith.constant 0 : index
    %c2_30 = arith.constant 2 : index
    %c0_31 = arith.constant 0 : index
    %c0_32 = arith.constant 0 : index
    %24 = vector.load %arg2[%c0_29, %c2_30, %c0_31, %c0_32] : memref<2x3x1x32xf32, #tpu.memory_space<vmem>>, vector<1x1x1x32xf32>
    %25 = vector.shape_cast %24 : vector<1x1x1x32xf32> to vector<1x32xf32>
    %26 = vector.broadcast %25 : vector<1x32xf32> to vector<64x32xf32>
    %27 = arith.addf %23, %26 : vector<64x32xf32>
    %c0_33 = arith.constant 0 : index
    %c2_34 = arith.constant 2 : index
    %c0_35 = arith.constant 0 : index
    %c0_36 = arith.constant 0 : index
    %28 = vector.load %arg10[%c0_33, %c2_34, %c0_35, %c0_36] : memref<2x3x64x32xf32, #tpu.memory_space<vmem>>, vector<1x1x64x32xf32>
    %29 = vector.shape_cast %28 : vector<1x1x64x32xf32> to vector<64x32xf32>
    %30 = vector.shape_cast %27 : vector<64x32xf32> to vector<1x1x64x32xf32>
    tpu.vector_store %arg10[%c0_33, %c2_34, %c0_35, %c0_36], %30 {strides = array<i32>} : memref<2x3x64x32xf32, #tpu.memory_space<vmem>>, vector<1x1x64x32xf32>,
    %c1_37 = arith.constant 1 : index
    %c0_38 = arith.constant 0 : index
    %c0_39 = arith.constant 0 : index
    %c0_40 = arith.constant 0 : index
    %31 = vector.load %arg1[%c1_37, %c0_38, %c0_39, %c0_40] : memref<2x3x32x32xf32, #tpu.memory_space<vmem>>, vector<1x1x32x32xf32>
    %32 = vector.shape_cast %31 : vector<1x1x32x32xf32> to vector<32x32xf32>
    %cst_41 = arith.constant dense<0.000000e+00> : vector<64x32xf32>
    %33 = tpu.matmul %0, %32, %cst_41 {dimension_numbers = #tpu.dot_dimension_numbers<[1], [0], [0], [1], [0, 0, 1, 1], [], []>} : vector<64x32xf32>, vector<32x32xf32>, vector<64x32xf32> -> vector<64x32xf32>
    %c1_42 = arith.constant 1 : index
    %c0_43 = arith.constant 0 : index
    %c0_44 = arith.constant 0 : index
    %c0_45 = arith.constant 0 : index
    %34 = vector.load %arg2[%c1_42, %c0_43, %c0_44, %c0_45] : memref<2x3x1x32xf32, #tpu.memory_space<vmem>>, vector<1x1x1x32xf32>
    %35 = vector.shape_cast %34 : vector<1x1x1x32xf32> to vector<1x32xf32>
    %36 = vector.broadcast %35 : vector<1x32xf32> to vector<64x32xf32>
    %37 = arith.addf %33, %36 : vector<64x32xf32>
    %c1_46 = arith.constant 1 : index
    %c0_47 = arith.constant 0 : index
    %c0_48 = arith.constant 0 : index
    %c0_49 = arith.constant 0 : index
    %38 = vector.load %arg10[%c1_46, %c0_47, %c0_48, %c0_49] : memref<2x3x64x32xf32, #tpu.memory_space<vmem>>, vector<1x1x64x32xf32>
    %39 = vector.shape_cast %38 : vector<1x1x64x32xf32> to vector<64x32xf32>
    %40 = vector.shape_cast %37 : vector<64x32xf32> to vector<1x1x64x32xf32>
    tpu.vector_store %arg10[%c1_46, %c0_47, %c0_48, %c0_49], %40 {strides = array<i32>} : memref<2x3x64x32xf32, #tpu.memory_space<vmem>>, vector<1x1x64x32xf32>,
    %c1_50 = arith.constant 1 : index
    %c1_51 = arith.constant 1 : index
    %c0_52 = arith.constant 0 : index
    %c0_53 = arith.constant 0 : index
    %41 = vector.load %arg1[%c1_50, %c1_51, %c0_52, %c0_53] : memref<2x3x32x32xf32, #tpu.memory_space<vmem>>, vector<1x1x32x32xf32>
    %42 = vector.shape_cast %41 : vector<1x1x32x32xf32> to vector<32x32xf32>
    %cst_54 = arith.constant dense<0.000000e+00> : vector<64x32xf32>
    %43 = tpu.matmul %0, %42, %cst_54 {dimension_numbers = #tpu.dot_dimension_numbers<[1], [0], [0], [1], [0, 0, 1, 1], [], []>} : vector<64x32xf32>, vector<32x32xf32>, vector<64x32xf32> -> vector<64x32xf32>
    %c1_55 = arith.constant 1 : index
    %c1_56 = arith.constant 1 : index
    %c0_57 = arith.constant 0 : index
    %c0_58 = arith.constant 0 : index
    %44 = vector.load %arg2[%c1_55, %c1_56, %c0_57, %c0_58] : memref<2x3x1x32xf32, #tpu.memory_space<vmem>>, vector<1x1x1x32xf32>
    %45 = vector.shape_cast %44 : vector<1x1x1x32xf32> to vector<1x32xf32>
    %46 = vector.broadcast %45 : vector<1x32xf32> to vector<64x32xf32>
    %47 = arith.addf %43, %46 : vector<64x32xf32>
    %c1_59 = arith.constant 1 : index
    %c1_60 = arith.constant 1 : index
    %c0_61 = arith.constant 0 : index
    %c0_62 = arith.constant 0 : index
    %48 = vector.load %arg10[%c1_59, %c1_60, %c0_61, %c0_62] : memref<2x3x64x32xf32, #tpu.memory_space<vmem>>, vector<1x1x64x32xf32>
    %49 = vector.shape_cast %48 : vector<1x1x64x32xf32> to vector<64x32xf32>
    %50 = vector.shape_cast %47 : vector<64x32xf32> to vector<1x1x64x32xf32>
    tpu.vector_store %arg10[%c1_59, %c1_60, %c0_61, %c0_62], %50 {strides = array<i32>} : memref<2x3x64x32xf32, #tpu.memory_space<vmem>>, vector<1x1x64x32xf32>,
    %c1_63 = arith.constant 1 : index
    %c2_64 = arith.constant 2 : index
    %c0_65 = arith.constant 0 : index
    %c0_66 = arith.constant 0 : index
    %51 = vector.load %arg1[%c1_63, %c2_64, %c0_65, %c0_66] : memref<2x3x32x32xf32, #tpu.memory_space<vmem>>, vector<1x1x32x32xf32>
    %52 = vector.shape_cast %51 : vector<1x1x32x32xf32> to vector<32x32xf32>
    %cst_67 = arith.constant dense<0.000000e+00> : vector<64x32xf32>
    %53 = tpu.matmul %0, %52, %cst_67 {dimension_numbers = #tpu.dot_dimension_numbers<[1], [0], [0], [1], [0, 0, 1, 1], [], []>} : vector<64x32xf32>, vector<32x32xf32>, vector<64x32xf32> -> vector<64x32xf32>
    %c1_68 = arith.constant 1 : index
    %c2_69 = arith.constant 2 : index
    %c0_70 = arith.constant 0 : index
    %c0_71 = arith.constant 0 : index
    %54 = vector.load %arg2[%c1_68, %c2_69, %c0_70, %c0_71] : memref<2x3x1x32xf32, #tpu.memory_space<vmem>>, vector<1x1x1x32xf32>
    %55 = vector.shape_cast %54 : vector<1x1x1x32xf32> to vector<1x32xf32>
    %56 = vector.broadcast %55 : vector<1x32xf32> to vector<64x32xf32>
    %57 = arith.addf %53, %56 : vector<64x32xf32>
    %c1_72 = arith.constant 1 : index
    %c2_73 = arith.constant 2 : index
    %c0_74 = arith.constant 0 : index
    %c0_75 = arith.constant 0 : index
    %58 = vector.load %arg10[%c1_72, %c2_73, %c0_74, %c0_75] : memref<2x3x64x32xf32, #tpu.memory_space<vmem>>, vector<1x1x64x32xf32>
    %59 = vector.shape_cast %58 : vector<1x1x64x32xf32> to vector<64x32xf32>
    %60 = vector.shape_cast %57 : vector<64x32xf32> to vector<1x1x64x32xf32>
    tpu.vector_store %arg10[%c1_72, %c2_73, %c0_74, %c0_75], %60 {strides = array<i32>} : memref<2x3x64x32xf32, #tpu.memory_space<vmem>>, vector<1x1x64x32xf32>,
    %c0_76 = arith.constant 0 : index
    %c0_77 = arith.constant 0 : index
    %c0_78 = arith.constant 0 : index
    %c0_79 = arith.constant 0 : index
    %61 = vector.load %arg3[%c0_76, %c0_77, %c0_78, %c0_79] : memref<2x3x32x32xf32, #tpu.memory_space<vmem>>, vector<2x3x32x32xf32>
    %c0_80 = arith.constant 0 : index
    %c0_81 = arith.constant 0 : index
    %c0_82 = arith.constant 0 : index
    %c0_83 = arith.constant 0 : index
    %62 = vector.load %arg4[%c0_80, %c0_81, %c0_82, %c0_83] : memref<2x3x8x32xf32, #tpu.memory_space<vmem>>, vector<2x3x8x32xf32>
    %cst_84 = arith.constant 0.000000e+00 : f32
    %63 = vector.broadcast %cst_84 : f32 to vector<8x32xf32>
    %c0_i32 = arith.constant 0 : i32
    %c7_i32 = arith.constant 7 : i32
    %64 = arith.subi %c7_i32, %c0_i32 : i32
    %c8_i32 = arith.constant 8 : i32
    %65 = arith.muli %c0_i32, %c8_i32 : i32
    %66 = tpu.assume_multiple %65, 8 : i32
    %c8_i32_85 = arith.constant 8 : i32
    %67 = arith.muli %64, %c8_i32_85 : i32
    %68 = tpu.assume_multiple %67, 8 : i32
    %c0_86 = arith.constant 0 : index
    %c0_87 = arith.constant 0 : index
    %69 = arith.index_cast %66 : i32 to index
    %c0_88 = arith.constant 0 : index
    %70 = vector.load %arg10[%c0_86, %c0_87, %69, %c0_88] : memref<2x3x64x32xf32, #tpu.memory_space<vmem>>, vector<1x1x8x32xf32>
    %71 = vector.shape_cast %70 : vector<1x1x8x32xf32> to vector<8x32xf32>
    %c0_89 = arith.constant 0 : index
    %c1_90 = arith.constant 1 : index
    %72 = arith.index_cast %66 : i32 to index
    %c0_91 = arith.constant 0 : index
    %73 = vector.load %arg10[%c0_89, %c1_90, %72, %c0_91] : memref<2x3x64x32xf32, #tpu.memory_space<vmem>>, vector<1x1x8x32xf32>
    %74 = vector.shape_cast %73 : vector<1x1x8x32xf32> to vector<8x32xf32>
    %c0_92 = arith.constant 0 : index
    %c2_93 = arith.constant 2 : index
    %75 = arith.index_cast %66 : i32 to index
    %c0_94 = arith.constant 0 : index
    %76 = vector.load %arg10[%c0_92, %c2_93, %75, %c0_94] : memref<2x3x64x32xf32, #tpu.memory_space<vmem>>, vector<1x1x8x32xf32>
    %77 = vector.shape_cast %76 : vector<1x1x8x32xf32> to vector<8x32xf32>
    %c1_95 = arith.constant 1 : index
    %c0_96 = arith.constant 0 : index
    %78 = arith.index_cast %68 : i32 to index
    %c0_97 = arith.constant 0 : index
    %79 = vector.load %arg10[%c1_95, %c0_96, %78, %c0_97] : memref<2x3x64x32xf32, #tpu.memory_space<vmem>>, vector<1x1x8x32xf32>
    %80 = vector.shape_cast %79 : vector<1x1x8x32xf32> to vector<8x32xf32>
    %c1_98 = arith.constant 1 : index
    %c1_99 = arith.constant 1 : index
    %81 = arith.index_cast %68 : i32 to index
    %c0_100 = arith.constant 0 : index
    %82 = vector.load %arg10[%c1_98, %c1_99, %81, %c0_100] : memref<2x3x64x32xf32, #tpu.memory_space<vmem>>, vector<1x1x8x32xf32>
    %83 = vector.shape_cast %82 : vector<1x1x8x32xf32> to vector<8x32xf32>
    %c1_101 = arith.constant 1 : index
    %c2_102 = arith.constant 2 : index
    %84 = arith.index_cast %68 : i32 to index
    %c0_103 = arith.constant 0 : index
    %85 = vector.load %arg10[%c1_101, %c2_102, %84, %c0_103] : memref<2x3x64x32xf32, #tpu.memory_space<vmem>>, vector<1x1x8x32xf32>
    %86 = vector.shape_cast %85 : vector<1x1x8x32xf32> to vector<8x32xf32>
    %87 = vector.extract_strided_slice %61 {offsets = [0, 0, 0, 0], sizes = [1, 3, 32, 32], strides = [1, 1, 1, 1]} : vector<2x3x32x32xf32> to vector<1x3x32x32xf32>
    %88 = vector.shape_cast %87 : vector<1x3x32x32xf32> to vector<3x32x32xf32>
    %89 = vector.extract_strided_slice %62 {offsets = [0, 0, 0, 0], sizes = [1, 3, 8, 32], strides = [1, 1, 1, 1]} : vector<2x3x8x32xf32> to vector<1x3x8x32xf32>
    %90 = vector.shape_cast %89 : vector<1x3x8x32xf32> to vector<3x8x32xf32>
    %91 = vector.extract_strided_slice %88 {offsets = [0, 0, 0], sizes = [1, 32, 32], strides = [1, 1, 1]} : vector<3x32x32xf32> to vector<1x32x32xf32>
    %92 = vector.shape_cast %91 : vector<1x32x32xf32> to vector<32x32xf32>
    %cst_104 = arith.constant dense<0.000000e+00> : vector<8x32xf32>
    %93 = tpu.matmul %63, %92, %cst_104 {dimension_numbers = #tpu.dot_dimension_numbers<[1], [0], [0], [1], [0, 0, 1, 1], [], []>} : vector<8x32xf32>, vector<32x32xf32>, vector<8x32xf32> -> vector<8x32xf32>
    %94 = vector.extract_strided_slice %90 {offsets = [0, 0, 0], sizes = [1, 8, 32], strides = [1, 1, 1]} : vector<3x8x32xf32> to vector<1x8x32xf32>
    %95 = vector.shape_cast %94 : vector<1x8x32xf32> to vector<8x32xf32>
    %96 = arith.addf %93, %95 : vector<8x32xf32>
    %97 = vector.extract_strided_slice %88 {offsets = [1, 0, 0], sizes = [1, 32, 32], strides = [1, 1, 1]} : vector<3x32x32xf32> to vector<1x32x32xf32>
    %98 = vector.shape_cast %97 : vector<1x32x32xf32> to vector<32x32xf32>
    %cst_105 = arith.constant dense<0.000000e+00> : vector<8x32xf32>
    %99 = tpu.matmul %63, %98, %cst_105 {dimension_numbers = #tpu.dot_dimension_numbers<[1], [0], [0], [1], [0, 0, 1, 1], [], []>} : vector<8x32xf32>, vector<32x32xf32>, vector<8x32xf32> -> vector<8x32xf32>
    %100 = vector.extract_strided_slice %90 {offsets = [1, 0, 0], sizes = [1, 8, 32], strides = [1, 1, 1]} : vector<3x8x32xf32> to vector<1x8x32xf32>
    %101 = vector.shape_cast %100 : vector<1x8x32xf32> to vector<8x32xf32>
    %102 = arith.addf %99, %101 : vector<8x32xf32>
    %103 = vector.extract_strided_slice %88 {offsets = [2, 0, 0], sizes = [1, 32, 32], strides = [1, 1, 1]} : vector<3x32x32xf32> to vector<1x32x32xf32>
    %104 = vector.shape_cast %103 : vector<1x32x32xf32> to vector<32x32xf32>
    %cst_106 = arith.constant dense<0.000000e+00> : vector<8x32xf32>
    %105 = tpu.matmul %63, %104, %cst_106 {dimension_numbers = #tpu.dot_dimension_numbers<[1], [0], [0], [1], [0, 0, 1, 1], [], []>} : vector<8x32xf32>, vector<32x32xf32>, vector<8x32xf32> -> vector<8x32xf32>
    %106 = vector.extract_strided_slice %90 {offsets = [2, 0, 0], sizes = [1, 8, 32], strides = [1, 1, 1]} : vector<3x8x32xf32> to vector<1x8x32xf32>
    %107 = vector.shape_cast %106 : vector<1x8x32xf32> to vector<8x32xf32>
    %108 = arith.addf %105, %107 : vector<8x32xf32>
    %109 = arith.addf %71, %96 : vector<8x32xf32>
    %110 = arith.negf %109 : vector<8x32xf32>
    %111 = math.exp %110 : vector<8x32xf32>
    %cst_107 = arith.constant 1.000000e+00 : f32
    %112 = vector.broadcast %cst_107 : f32 to vector<8x32xf32>
    %113 = arith.addf %112, %111 : vector<8x32xf32>
    %114 = arith.divf %112, %113 : vector<8x32xf32>
    %115 = arith.addf %74, %102 : vector<8x32xf32>
    %116 = arith.negf %115 : vector<8x32xf32>
    %117 = math.exp %116 : vector<8x32xf32>
    %cst_108 = arith.constant 1.000000e+00 : f32
    %118 = vector.broadcast %cst_108 : f32 to vector<8x32xf32>
    %119 = arith.addf %118, %117 : vector<8x32xf32>
    %120 = arith.divf %118, %119 : vector<8x32xf32>
    %121 = arith.mulf %114, %108 : vector<8x32xf32>
    %122 = arith.addf %77, %121 : vector<8x32xf32>
    %123 = math.tanh %122 : vector<8x32xf32>
    %cst_109 = arith.constant 1.000000e+00 : f32
    %124 = vector.broadcast %cst_109 : f32 to vector<8x32xf32>
    %125 = arith.subf %124, %120 : vector<8x32xf32>
    %126 = arith.mulf %125, %123 : vector<8x32xf32>
    %127 = arith.mulf %120, %63 : vector<8x32xf32>
    %128 = arith.addf %126, %127 : vector<8x32xf32>
    %129 = vector.extract_strided_slice %61 {offsets = [1, 0, 0, 0], sizes = [1, 3, 32, 32], strides = [1, 1, 1, 1]} : vector<2x3x32x32xf32> to vector<1x3x32x32xf32>
    %130 = vector.shape_cast %129 : vector<1x3x32x32xf32> to vector<3x32x32xf32>
    %131 = vector.extract_strided_slice %62 {offsets = [1, 0, 0, 0], sizes = [1, 3, 8, 32], strides = [1, 1, 1, 1]} : vector<2x3x8x32xf32> to vector<1x3x8x32xf32>
    %132 = vector.shape_cast %131 : vector<1x3x8x32xf32> to vector<3x8x32xf32>
    %133 = vector.extract_strided_slice %130 {offsets = [0, 0, 0], sizes = [1, 32, 32], strides = [1, 1, 1]} : vector<3x32x32xf32> to vector<1x32x32xf32>
    %134 = vector.shape_cast %133 : vector<1x32x32xf32> to vector<32x32xf32>
    %cst_110 = arith.constant dense<0.000000e+00> : vector<8x32xf32>
    %135 = tpu.matmul %63, %134, %cst_110 {dimension_numbers = #tpu.dot_dimension_numbers<[1], [0], [0], [1], [0, 0, 1, 1], [], []>} : vector<8x32xf32>, vector<32x32xf32>, vector<8x32xf32> -> vector<8x32xf32>
    %136 = vector.extract_strided_slice %132 {offsets = [0, 0, 0], sizes = [1, 8, 32], strides = [1, 1, 1]} : vector<3x8x32xf32> to vector<1x8x32xf32>
    %137 = vector.shape_cast %136 : vector<1x8x32xf32> to vector<8x32xf32>
    %138 = arith.addf %135, %137 : vector<8x32xf32>
    %139 = vector.extract_strided_slice %130 {offsets = [1, 0, 0], sizes = [1, 32, 32], strides = [1, 1, 1]} : vector<3x32x32xf32> to vector<1x32x32xf32>
    %140 = vector.shape_cast %139 : vector<1x32x32xf32> to vector<32x32xf32>
    %cst_111 = arith.constant dense<0.000000e+00> : vector<8x32xf32>
    %141 = tpu.matmul %63, %140, %cst_111 {dimension_numbers = #tpu.dot_dimension_numbers<[1], [0], [0], [1], [0, 0, 1, 1], [], []>} : vector<8x32xf32>, vector<32x32xf32>, vector<8x32xf32> -> vector<8x32xf32>
    %142 = vector.extract_strided_slice %132 {offsets = [1, 0, 0], sizes = [1, 8, 32], strides = [1, 1, 1]} : vector<3x8x32xf32> to vector<1x8x32xf32>
    %143 = vector.shape_cast %142 : vector<1x8x32xf32> to vector<8x32xf32>
    %144 = arith.addf %141, %143 : vector<8x32xf32>
    %145 = vector.extract_strided_slice %130 {offsets = [2, 0, 0], sizes = [1, 32, 32], strides = [1, 1, 1]} : vector<3x32x32xf32> to vector<1x32x32xf32>
    %146 = vector.shape_cast %145 : vector<1x32x32xf32> to vector<32x32xf32>
    %cst_112 = arith.constant dense<0.000000e+00> : vector<8x32xf32>
    %147 = tpu.matmul %63, %146, %cst_112 {dimension_numbers = #tpu.dot_dimension_numbers<[1], [0], [0], [1], [0, 0, 1, 1], [], []>} : vector<8x32xf32>, vector<32x32xf32>, vector<8x32xf32> -> vector<8x32xf32>
    %148 = vector.extract_strided_slice %132 {offsets = [2, 0, 0], sizes = [1, 8, 32], strides = [1, 1, 1]} : vector<3x8x32xf32> to vector<1x8x32xf32>
    %149 = vector.shape_cast %148 : vector<1x8x32xf32> to vector<8x32xf32>
    %150 = arith.addf %147, %149 : vector<8x32xf32>
    %151 = arith.addf %80, %138 : vector<8x32xf32>
    %152 = arith.negf %151 : vector<8x32xf32>
    %153 = math.exp %152 : vector<8x32xf32>
    %cst_113 = arith.constant 1.000000e+00 : f32
    %154 = vector.broadcast %cst_113 : f32 to vector<8x32xf32>
    %155 = arith.addf %154, %153 : vector<8x32xf32>
    %156 = arith.divf %154, %155 : vector<8x32xf32>
    %157 = arith.addf %83, %144 : vector<8x32xf32>
    %158 = arith.negf %157 : vector<8x32xf32>
    %159 = math.exp %158 : vector<8x32xf32>
    %cst_114 = arith.constant 1.000000e+00 : f32
    %160 = vector.broadcast %cst_114 : f32 to vector<8x32xf32>
    %161 = arith.addf %160, %159 : vector<8x32xf32>
    %162 = arith.divf %160, %161 : vector<8x32xf32>
    %163 = arith.mulf %156, %150 : vector<8x32xf32>
    %164 = arith.addf %86, %163 : vector<8x32xf32>
    %165 = math.tanh %164 : vector<8x32xf32>
    %cst_115 = arith.constant 1.000000e+00 : f32
    %166 = vector.broadcast %cst_115 : f32 to vector<8x32xf32>
    %167 = arith.subf %166, %162 : vector<8x32xf32>
    %168 = arith.mulf %167, %165 : vector<8x32xf32>
    %169 = arith.mulf %162, %63 : vector<8x32xf32>
    %170 = arith.addf %168, %169 : vector<8x32xf32>
    %c0_116 = arith.constant 0 : index
    %171 = arith.index_cast %66 : i32 to index
    %c0_117 = arith.constant 0 : index
    %172 = vector.load %arg11[%c0_116, %171, %c0_117] : memref<2x64x32xf32, #tpu.memory_space<vmem>>, vector<1x8x32xf32>
    %173 = vector.shape_cast %172 : vector<1x8x32xf32> to vector<8x32xf32>
    %174 = vector.shape_cast %128 : vector<8x32xf32> to vector<1x8x32xf32>
    tpu.vector_store %arg11[%c0_116, %171, %c0_117], %174 {strides = array<i32>} : memref<2x64x32xf32, #tpu.memory_space<vmem>>, vector<1x8x32xf32>,
    %c1_118 = arith.constant 1 : index
    %175 = arith.index_cast %68 : i32 to index
    %c0_119 = arith.constant 0 : index
    %176 = vector.load %arg11[%c1_118, %175, %c0_119] : memref<2x64x32xf32, #tpu.memory_space<vmem>>, vector<1x8x32xf32>
    %177 = vector.shape_cast %176 : vector<1x8x32xf32> to vector<8x32xf32>
    %178 = vector.shape_cast %170 : vector<8x32xf32> to vector<1x8x32xf32>
    tpu.vector_store %arg11[%c1_118, %175, %c0_119], %178 {strides = array<i32>} : memref<2x64x32xf32, #tpu.memory_space<vmem>>, vector<1x8x32xf32>,
    %c1_i32 = arith.constant 1 : i32
    %c7_i32_120 = arith.constant 7 : i32
    %179 = arith.subi %c7_i32_120, %c1_i32 : i32
    %c8_i32_121 = arith.constant 8 : i32
    %180 = arith.muli %c1_i32, %c8_i32_121 : i32
    %181 = tpu.assume_multiple %180, 8 : i32
    %c8_i32_122 = arith.constant 8 : i32
    %182 = arith.muli %179, %c8_i32_122 : i32
    %183 = tpu.assume_multiple %182, 8 : i32
    %c0_123 = arith.constant 0 : index
    %c0_124 = arith.constant 0 : index
    %184 = arith.index_cast %181 : i32 to index
    %c0_125 = arith.constant 0 : index
    %185 = vector.load %arg10[%c0_123, %c0_124, %184, %c0_125] : memref<2x3x64x32xf32, #tpu.memory_space<vmem>>, vector<1x1x8x32xf32>
    %186 = vector.shape_cast %185 : vector<1x1x8x32xf32> to vector<8x32xf32>
    %c0_126 = arith.constant 0 : index
    %c1_127 = arith.constant 1 : index
    %187 = arith.index_cast %181 : i32 to index
    %c0_128 = arith.constant 0 : index
    %188 = vector.load %arg10[%c0_126, %c1_127, %187, %c0_128] : memref<2x3x64x32xf32, #tpu.memory_space<vmem>>, vector<1x1x8x32xf32>
    %189 = vector.shape_cast %188 : vector<1x1x8x32xf32> to vector<8x32xf32>
    %c0_129 = arith.constant 0 : index
    %c2_130 = arith.constant 2 : index
    %190 = arith.index_cast %181 : i32 to index
    %c0_131 = arith.constant 0 : index
    %191 = vector.load %arg10[%c0_129, %c2_130, %190, %c0_131] : memref<2x3x64x32xf32, #tpu.memory_space<vmem>>, vector<1x1x8x32xf32>
    %192 = vector.shape_cast %191 : vector<1x1x8x32xf32> to vector<8x32xf32>
    %c1_132 = arith.constant 1 : index
    %c0_133 = arith.constant 0 : index
    %193 = arith.index_cast %183 : i32 to index
    %c0_134 = arith.constant 0 : index
    %194 = vector.load %arg10[%c1_132, %c0_133, %193, %c0_134] : memref<2x3x64x32xf32, #tpu.memory_space<vmem>>, vector<1x1x8x32xf32>
    %195 = vector.shape_cast %194 : vector<1x1x8x32xf32> to vector<8x32xf32>
    %c1_135 = arith.constant 1 : index
    %c1_136 = arith.constant 1 : index
    %196 = arith.index_cast %183 : i32 to index
    %c0_137 = arith.constant 0 : index
    %197 = vector.load %arg10[%c1_135, %c1_136, %196, %c0_137] : memref<2x3x64x32xf32, #tpu.memory_space<vmem>>, vector<1x1x8x32xf32>
    %198 = vector.shape_cast %197 : vector<1x1x8x32xf32> to vector<8x32xf32>
    %c1_138 = arith.constant 1 : index
    %c2_139 = arith.constant 2 : index
    %199 = arith.index_cast %183 : i32 to index
    %c0_140 = arith.constant 0 : index
    %200 = vector.load %arg10[%c1_138, %c2_139, %199, %c0_140] : memref<2x3x64x32xf32, #tpu.memory_space<vmem>>, vector<1x1x8x32xf32>
    %201 = vector.shape_cast %200 : vector<1x1x8x32xf32> to vector<8x32xf32>
    %202 = vector.extract_strided_slice %61 {offsets = [0, 0, 0, 0], sizes = [1, 3, 32, 32], strides = [1, 1, 1, 1]} : vector<2x3x32x32xf32> to vector<1x3x32x32xf32>
    %203 = vector.shape_cast %202 : vector<1x3x32x32xf32> to vector<3x32x32xf32>
    %204 = vector.extract_strided_slice %62 {offsets = [0, 0, 0, 0], sizes = [1, 3, 8, 32], strides = [1, 1, 1, 1]} : vector<2x3x8x32xf32> to vector<1x3x8x32xf32>
    %205 = vector.shape_cast %204 : vector<1x3x8x32xf32> to vector<3x8x32xf32>
    %206 = vector.extract_strided_slice %203 {offsets = [0, 0, 0], sizes = [1, 32, 32], strides = [1, 1, 1]} : vector<3x32x32xf32> to vector<1x32x32xf32>
    %207 = vector.shape_cast %206 : vector<1x32x32xf32> to vector<32x32xf32>
    %cst_141 = arith.constant dense<0.000000e+00> : vector<8x32xf32>
    %208 = tpu.matmul %128, %207, %cst_141 {dimension_numbers = #tpu.dot_dimension_numbers<[1], [0], [0], [1], [0, 0, 1, 1], [], []>} : vector<8x32xf32>, vector<32x32xf32>, vector<8x32xf32> -> vector<8x32xf32>
    %209 = vector.extract_strided_slice %205 {offsets = [0, 0, 0], sizes = [1, 8, 32], strides = [1, 1, 1]} : vector<3x8x32xf32> to vector<1x8x32xf32>
    %210 = vector.shape_cast %209 : vector<1x8x32xf32> to vector<8x32xf32>
    %211 = arith.addf %208, %210 : vector<8x32xf32>
    %212 = vector.extract_strided_slice %203 {offsets = [1, 0, 0], sizes = [1, 32, 32], strides = [1, 1, 1]} : vector<3x32x32xf32> to vector<1x32x32xf32>
    %213 = vector.shape_cast %212 : vector<1x32x32xf32> to vector<32x32xf32>
    %cst_142 = arith.constant dense<0.000000e+00> : vector<8x32xf32>
    %214 = tpu.matmul %128, %213, %cst_142 {dimension_numbers = #tpu.dot_dimension_numbers<[1], [0], [0], [1], [0, 0, 1, 1], [], []>} : vector<8x32xf32>, vector<32x32xf32>, vector<8x32xf32> -> vector<8x32xf32>
    %215 = vector.extract_strided_slice %205 {offsets = [1, 0, 0], sizes = [1, 8, 32], strides = [1, 1, 1]} : vector<3x8x32xf32> to vector<1x8x32xf32>
    %216 = vector.shape_cast %215 : vector<1x8x32xf32> to vector<8x32xf32>
    %217 = arith.addf %214, %216 : vector<8x32xf32>
    %218 = vector.extract_strided_slice %203 {offsets = [2, 0, 0], sizes = [1, 32, 32], strides = [1, 1, 1]} : vector<3x32x32xf32> to vector<1x32x32xf32>
    %219 = vector.shape_cast %218 : vector<1x32x32xf32> to vector<32x32xf32>
    %cst_143 = arith.constant dense<0.000000e+00> : vector<8x32xf32>
    %220 = tpu.matmul %128, %219, %cst_143 {dimension_numbers = #tpu.dot_dimension_numbers<[1], [0], [0], [1], [0, 0, 1, 1], [], []>} : vector<8x32xf32>, vector<32x32xf32>, vector<8x32xf32> -> vector<8x32xf32>
    %221 = vector.extract_strided_slice %205 {offsets = [2, 0, 0], sizes = [1, 8, 32], strides = [1, 1, 1]} : vector<3x8x32xf32> to vector<1x8x32xf32>
    %222 = vector.shape_cast %221 : vector<1x8x32xf32> to vector<8x32xf32>
    %223 = arith.addf %220, %222 : vector<8x32xf32>
    %224 = arith.addf %186, %211 : vector<8x32xf32>
    %225 = arith.negf %224 : vector<8x32xf32>
    %226 = math.exp %225 : vector<8x32xf32>
    %cst_144 = arith.constant 1.000000e+00 : f32
    %227 = vector.broadcast %cst_144 : f32 to vector<8x32xf32>
    %228 = arith.addf %227, %226 : vector<8x32xf32>
    %229 = arith.divf %227, %228 : vector<8x32xf32>
    %230 = arith.addf %189, %217 : vector<8x32xf32>
    %231 = arith.negf %230 : vector<8x32xf32>
    %232 = math.exp %231 : vector<8x32xf32>
    %cst_145 = arith.constant 1.000000e+00 : f32
    %233 = vector.broadcast %cst_145 : f32 to vector<8x32xf32>
    %234 = arith.addf %233, %232 : vector<8x32xf32>
    %235 = arith.divf %233, %234 : vector<8x32xf32>
    %236 = arith.mulf %229, %223 : vector<8x32xf32>
    %237 = arith.addf %192, %236 : vector<8x32xf32>
    %238 = math.tanh %237 : vector<8x32xf32>
    %cst_146 = arith.constant 1.000000e+00 : f32
    %239 = vector.broadcast %cst_146 : f32 to vector<8x32xf32>
    %240 = arith.subf %239, %235 : vector<8x32xf32>
    %241 = arith.mulf %240, %238 : vector<8x32xf32>
    %242 = arith.mulf %235, %128 : vector<8x32xf32>
    %243 = arith.addf %241, %242 : vector<8x32xf32>
    %244 = vector.extract_strided_slice %61 {offsets = [1, 0, 0, 0], sizes = [1, 3, 32, 32], strides = [1, 1, 1, 1]} : vector<2x3x32x32xf32> to vector<1x3x32x32xf32>
    %245 = vector.shape_cast %244 : vector<1x3x32x32xf32> to vector<3x32x32xf32>
    %246 = vector.extract_strided_slice %62 {offsets = [1, 0, 0, 0], sizes = [1, 3, 8, 32], strides = [1, 1, 1, 1]} : vector<2x3x8x32xf32> to vector<1x3x8x32xf32>
    %247 = vector.shape_cast %246 : vector<1x3x8x32xf32> to vector<3x8x32xf32>
    %248 = vector.extract_strided_slice %245 {offsets = [0, 0, 0], sizes = [1, 32, 32], strides = [1, 1, 1]} : vector<3x32x32xf32> to vector<1x32x32xf32>
    %249 = vector.shape_cast %248 : vector<1x32x32xf32> to vector<32x32xf32>
    %cst_147 = arith.constant dense<0.000000e+00> : vector<8x32xf32>
    %250 = tpu.matmul %170, %249, %cst_147 {dimension_numbers = #tpu.dot_dimension_numbers<[1], [0], [0], [1], [0, 0, 1, 1], [], []>} : vector<8x32xf32>, vector<32x32xf32>, vector<8x32xf32> -> vector<8x32xf32>
    %251 = vector.extract_strided_slice %247 {offsets = [0, 0, 0], sizes = [1, 8, 32], strides = [1, 1, 1]} : vector<3x8x32xf32> to vector<1x8x32xf32>
    %252 = vector.shape_cast %251 : vector<1x8x32xf32> to vector<8x32xf32>
    %253 = arith.addf %250, %252 : vector<8x32xf32>
    %254 = vector.extract_strided_slice %245 {offsets = [1, 0, 0], sizes = [1, 32, 32], strides = [1, 1, 1]} : vector<3x32x32xf32> to vector<1x32x32xf32>
    %255 = vector.shape_cast %254 : vector<1x32x32xf32> to vector<32x32xf32>
    %cst_148 = arith.constant dense<0.000000e+00> : vector<8x32xf32>
    %256 = tpu.matmul %170, %255, %cst_148 {dimension_numbers = #tpu.dot_dimension_numbers<[1], [0], [0], [1], [0, 0, 1, 1], [], []>} : vector<8x32xf32>, vector<32x32xf32>, vector<8x32xf32> -> vector<8x32xf32>
    %257 = vector.extract_strided_slice %247 {offsets = [1, 0, 0], sizes = [1, 8, 32], strides = [1, 1, 1]} : vector<3x8x32xf32> to vector<1x8x32xf32>
    %258 = vector.shape_cast %257 : vector<1x8x32xf32> to vector<8x32xf32>
    %259 = arith.addf %256, %258 : vector<8x32xf32>
    %260 = vector.extract_strided_slice %245 {offsets = [2, 0, 0], sizes = [1, 32, 32], strides = [1, 1, 1]} : vector<3x32x32xf32> to vector<1x32x32xf32>
    %261 = vector.shape_cast %260 : vector<1x32x32xf32> to vector<32x32xf32>
    %cst_149 = arith.constant dense<0.000000e+00> : vector<8x32xf32>
    %262 = tpu.matmul %170, %261, %cst_149 {dimension_numbers = #tpu.dot_dimension_numbers<[1], [0], [0], [1], [0, 0, 1, 1], [], []>} : vector<8x32xf32>, vector<32x32xf32>, vector<8x32xf32> -> vector<8x32xf32>
    %263 = vector.extract_strided_slice %247 {offsets = [2, 0, 0], sizes = [1, 8, 32], strides = [1, 1, 1]} : vector<3x8x32xf32> to vector<1x8x32xf32>
    %264 = vector.shape_cast %263 : vector<1x8x32xf32> to vector<8x32xf32>
    %265 = arith.addf %262, %264 : vector<8x32xf32>
    %266 = arith.addf %195, %253 : vector<8x32xf32>
    %267 = arith.negf %266 : vector<8x32xf32>
    %268 = math.exp %267 : vector<8x32xf32>
    %cst_150 = arith.constant 1.000000e+00 : f32
    %269 = vector.broadcast %cst_150 : f32 to vector<8x32xf32>
    %270 = arith.addf %269, %268 : vector<8x32xf32>
    %271 = arith.divf %269, %270 : vector<8x32xf32>
    %272 = arith.addf %198, %259 : vector<8x32xf32>
    %273 = arith.negf %272 : vector<8x32xf32>
    %274 = math.exp %273 : vector<8x32xf32>
    %cst_151 = arith.constant 1.000000e+00 : f32
    %275 = vector.broadcast %cst_151 : f32 to vector<8x32xf32>
    %276 = arith.addf %275, %274 : vector<8x32xf32>
    %277 = arith.divf %275, %276 : vector<8x32xf32>
    %278 = arith.mulf %271, %265 : vector<8x32xf32>
    %279 = arith.addf %201, %278 : vector<8x32xf32>
    %280 = math.tanh %279 : vector<8x32xf32>
    %cst_152 = arith.constant 1.000000e+00 : f32
    %281 = vector.broadcast %cst_152 : f32 to vector<8x32xf32>
    %282 = arith.subf %281, %277 : vector<8x32xf32>
    %283 = arith.mulf %282, %280 : vector<8x32xf32>
    %284 = arith.mulf %277, %170 : vector<8x32xf32>
    %285 = arith.addf %283, %284 : vector<8x32xf32>
    %c0_153 = arith.constant 0 : index
    %286 = arith.index_cast %181 : i32 to index
    %c0_154 = arith.constant 0 : index
    %287 = vector.load %arg11[%c0_153, %286, %c0_154] : memref<2x64x32xf32, #tpu.memory_space<vmem>>, vector<1x8x32xf32>
    %288 = vector.shape_cast %287 : vector<1x8x32xf32> to vector<8x32xf32>
    %289 = vector.shape_cast %243 : vector<8x32xf32> to vector<1x8x32xf32>
    tpu.vector_store %arg11[%c0_153, %286, %c0_154], %289 {strides = array<i32>} : memref<2x64x32xf32, #tpu.memory_space<vmem>>, vector<1x8x32xf32>,
    %c1_155 = arith.constant 1 : index
    %290 = arith.index_cast %183 : i32 to index
    %c0_156 = arith.constant 0 : index
    %291 = vector.load %arg11[%c1_155, %290, %c0_156] : memref<2x64x32xf32, #tpu.memory_space<vmem>>, vector<1x8x32xf32>
    %292 = vector.shape_cast %291 : vector<1x8x32xf32> to vector<8x32xf32>
    %293 = vector.shape_cast %285 : vector<8x32xf32> to vector<1x8x32xf32>
    tpu.vector_store %arg11[%c1_155, %290, %c0_156], %293 {strides = array<i32>} : memref<2x64x32xf32, #tpu.memory_space<vmem>>, vector<1x8x32xf32>,
    %c2_i32 = arith.constant 2 : i32
    %c7_i32_157 = arith.constant 7 : i32
    %294 = arith.subi %c7_i32_157, %c2_i32 : i32
    %c8_i32_158 = arith.constant 8 : i32
    %295 = arith.muli %c2_i32, %c8_i32_158 : i32
    %296 = tpu.assume_multiple %295, 8 : i32
    %c8_i32_159 = arith.constant 8 : i32
    %297 = arith.muli %294, %c8_i32_159 : i32
    %298 = tpu.assume_multiple %297, 8 : i32
    %c0_160 = arith.constant 0 : index
    %c0_161 = arith.constant 0 : index
    %299 = arith.index_cast %296 : i32 to index
    %c0_162 = arith.constant 0 : index
    %300 = vector.load %arg10[%c0_160, %c0_161, %299, %c0_162] : memref<2x3x64x32xf32, #tpu.memory_space<vmem>>, vector<1x1x8x32xf32>
    %301 = vector.shape_cast %300 : vector<1x1x8x32xf32> to vector<8x32xf32>
    %c0_163 = arith.constant 0 : index
    %c1_164 = arith.constant 1 : index
    %302 = arith.index_cast %296 : i32 to index
    %c0_165 = arith.constant 0 : index
    %303 = vector.load %arg10[%c0_163, %c1_164, %302, %c0_165] : memref<2x3x64x32xf32, #tpu.memory_space<vmem>>, vector<1x1x8x32xf32>
    %304 = vector.shape_cast %303 : vector<1x1x8x32xf32> to vector<8x32xf32>
    %c0_166 = arith.constant 0 : index
    %c2_167 = arith.constant 2 : index
    %305 = arith.index_cast %296 : i32 to index
    %c0_168 = arith.constant 0 : index
    %306 = vector.load %arg10[%c0_166, %c2_167, %305, %c0_168] : memref<2x3x64x32xf32, #tpu.memory_space<vmem>>, vector<1x1x8x32xf32>
    %307 = vector.shape_cast %306 : vector<1x1x8x32xf32> to vector<8x32xf32>
    %c1_169 = arith.constant 1 : index
    %c0_170 = arith.constant 0 : index
    %308 = arith.index_cast %298 : i32 to index
    %c0_171 = arith.constant 0 : index
    %309 = vector.load %arg10[%c1_169, %c0_170, %308, %c0_171] : memref<2x3x64x32xf32, #tpu.memory_space<vmem>>, vector<1x1x8x32xf32>
    %310 = vector.shape_cast %309 : vector<1x1x8x32xf32> to vector<8x32xf32>
    %c1_172 = arith.constant 1 : index
    %c1_173 = arith.constant 1 : index
    %311 = arith.index_cast %298 : i32 to index
    %c0_174 = arith.constant 0 : index
    %312 = vector.load %arg10[%c1_172, %c1_173, %311, %c0_174] : memref<2x3x64x32xf32, #tpu.memory_space<vmem>>, vector<1x1x8x32xf32>
    %313 = vector.shape_cast %312 : vector<1x1x8x32xf32> to vector<8x32xf32>
    %c1_175 = arith.constant 1 : index
    %c2_176 = arith.constant 2 : index
    %314 = arith.index_cast %298 : i32 to index
    %c0_177 = arith.constant 0 : index
    %315 = vector.load %arg10[%c1_175, %c2_176, %314, %c0_177] : memref<2x3x64x32xf32, #tpu.memory_space<vmem>>, vector<1x1x8x32xf32>
    %316 = vector.shape_cast %315 : vector<1x1x8x32xf32> to vector<8x32xf32>
    %317 = vector.extract_strided_slice %61 {offsets = [0, 0, 0, 0], sizes = [1, 3, 32, 32], strides = [1, 1, 1, 1]} : vector<2x3x32x32xf32> to vector<1x3x32x32xf32>
    %318 = vector.shape_cast %317 : vector<1x3x32x32xf32> to vector<3x32x32xf32>
    %319 = vector.extract_strided_slice %62 {offsets = [0, 0, 0, 0], sizes = [1, 3, 8, 32], strides = [1, 1, 1, 1]} : vector<2x3x8x32xf32> to vector<1x3x8x32xf32>
    %320 = vector.shape_cast %319 : vector<1x3x8x32xf32> to vector<3x8x32xf32>
    %321 = vector.extract_strided_slice %318 {offsets = [0, 0, 0], sizes = [1, 32, 32], strides = [1, 1, 1]} : vector<3x32x32xf32> to vector<1x32x32xf32>
    %322 = vector.shape_cast %321 : vector<1x32x32xf32> to vector<32x32xf32>
    %cst_178 = arith.constant dense<0.000000e+00> : vector<8x32xf32>
    %323 = tpu.matmul %243, %322, %cst_178 {dimension_numbers = #tpu.dot_dimension_numbers<[1], [0], [0], [1], [0, 0, 1, 1], [], []>} : vector<8x32xf32>, vector<32x32xf32>, vector<8x32xf32> -> vector<8x32xf32>
    %324 = vector.extract_strided_slice %320 {offsets = [0, 0, 0], sizes = [1, 8, 32], strides = [1, 1, 1]} : vector<3x8x32xf32> to vector<1x8x32xf32>
    %325 = vector.shape_cast %324 : vector<1x8x32xf32> to vector<8x32xf32>
    %326 = arith.addf %323, %325 : vector<8x32xf32>
    %327 = vector.extract_strided_slice %318 {offsets = [1, 0, 0], sizes = [1, 32, 32], strides = [1, 1, 1]} : vector<3x32x32xf32> to vector<1x32x32xf32>
    %328 = vector.shape_cast %327 : vector<1x32x32xf32> to vector<32x32xf32>
    %cst_179 = arith.constant dense<0.000000e+00> : vector<8x32xf32>
    %329 = tpu.matmul %243, %328, %cst_179 {dimension_numbers = #tpu.dot_dimension_numbers<[1], [0], [0], [1], [0, 0, 1, 1], [], []>} : vector<8x32xf32>, vector<32x32xf32>, vector<8x32xf32> -> vector<8x32xf32>
    %330 = vector.extract_strided_slice %320 {offsets = [1, 0, 0], sizes = [1, 8, 32], strides = [1, 1, 1]} : vector<3x8x32xf32> to vector<1x8x32xf32>
    %331 = vector.shape_cast %330 : vector<1x8x32xf32> to vector<8x32xf32>
    %332 = arith.addf %329, %331 : vector<8x32xf32>
    %333 = vector.extract_strided_slice %318 {offsets = [2, 0, 0], sizes = [1, 32, 32], strides = [1, 1, 1]} : vector<3x32x32xf32> to vector<1x32x32xf32>
    %334 = vector.shape_cast %333 : vector<1x32x32xf32> to vector<32x32xf32>
    %cst_180 = arith.constant dense<0.000000e+00> : vector<8x32xf32>
    %335 = tpu.matmul %243, %334, %cst_180 {dimension_numbers = #tpu.dot_dimension_numbers<[1], [0], [0], [1], [0, 0, 1, 1], [], []>} : vector<8x32xf32>, vector<32x32xf32>, vector<8x32xf32> -> vector<8x32xf32>
    %336 = vector.extract_strided_slice %320 {offsets = [2, 0, 0], sizes = [1, 8, 32], strides = [1, 1, 1]} : vector<3x8x32xf32> to vector<1x8x32xf32>
    %337 = vector.shape_cast %336 : vector<1x8x32xf32> to vector<8x32xf32>
    %338 = arith.addf %335, %337 : vector<8x32xf32>
    %339 = arith.addf %301, %326 : vector<8x32xf32>
    %340 = arith.negf %339 : vector<8x32xf32>
    %341 = math.exp %340 : vector<8x32xf32>
    %cst_181 = arith.constant 1.000000e+00 : f32
    %342 = vector.broadcast %cst_181 : f32 to vector<8x32xf32>
    %343 = arith.addf %342, %341 : vector<8x32xf32>
    %344 = arith.divf %342, %343 : vector<8x32xf32>
    %345 = arith.addf %304, %332 : vector<8x32xf32>
    %346 = arith.negf %345 : vector<8x32xf32>
    %347 = math.exp %346 : vector<8x32xf32>
    %cst_182 = arith.constant 1.000000e+00 : f32
    %348 = vector.broadcast %cst_182 : f32 to vector<8x32xf32>
    %349 = arith.addf %348, %347 : vector<8x32xf32>
    %350 = arith.divf %348, %349 : vector<8x32xf32>
    %351 = arith.mulf %344, %338 : vector<8x32xf32>
    %352 = arith.addf %307, %351 : vector<8x32xf32>
    %353 = math.tanh %352 : vector<8x32xf32>
    %cst_183 = arith.constant 1.000000e+00 : f32
    %354 = vector.broadcast %cst_183 : f32 to vector<8x32xf32>
    %355 = arith.subf %354, %350 : vector<8x32xf32>
    %356 = arith.mulf %355, %353 : vector<8x32xf32>
    %357 = arith.mulf %350, %243 : vector<8x32xf32>
    %358 = arith.addf %356, %357 : vector<8x32xf32>
    %359 = vector.extract_strided_slice %61 {offsets = [1, 0, 0, 0], sizes = [1, 3, 32, 32], strides = [1, 1, 1, 1]} : vector<2x3x32x32xf32> to vector<1x3x32x32xf32>
    %360 = vector.shape_cast %359 : vector<1x3x32x32xf32> to vector<3x32x32xf32>
    %361 = vector.extract_strided_slice %62 {offsets = [1, 0, 0, 0], sizes = [1, 3, 8, 32], strides = [1, 1, 1, 1]} : vector<2x3x8x32xf32> to vector<1x3x8x32xf32>
    %362 = vector.shape_cast %361 : vector<1x3x8x32xf32> to vector<3x8x32xf32>
    %363 = vector.extract_strided_slice %360 {offsets = [0, 0, 0], sizes = [1, 32, 32], strides = [1, 1, 1]} : vector<3x32x32xf32> to vector<1x32x32xf32>
    %364 = vector.shape_cast %363 : vector<1x32x32xf32> to vector<32x32xf32>
    %cst_184 = arith.constant dense<0.000000e+00> : vector<8x32xf32>
    %365 = tpu.matmul %285, %364, %cst_184 {dimension_numbers = #tpu.dot_dimension_numbers<[1], [0], [0], [1], [0, 0, 1, 1], [], []>} : vector<8x32xf32>, vector<32x32xf32>, vector<8x32xf32> -> vector<8x32xf32>
    %366 = vector.extract_strided_slice %362 {offsets = [0, 0, 0], sizes = [1, 8, 32], strides = [1, 1, 1]} : vector<3x8x32xf32> to vector<1x8x32xf32>
    %367 = vector.shape_cast %366 : vector<1x8x32xf32> to vector<8x32xf32>
    %368 = arith.addf %365, %367 : vector<8x32xf32>
    %369 = vector.extract_strided_slice %360 {offsets = [1, 0, 0], sizes = [1, 32, 32], strides = [1, 1, 1]} : vector<3x32x32xf32> to vector<1x32x32xf32>
    %370 = vector.shape_cast %369 : vector<1x32x32xf32> to vector<32x32xf32>
    %cst_185 = arith.constant dense<0.000000e+00> : vector<8x32xf32>
    %371 = tpu.matmul %285, %370, %cst_185 {dimension_numbers = #tpu.dot_dimension_numbers<[1], [0], [0], [1], [0, 0, 1, 1], [], []>} : vector<8x32xf32>, vector<32x32xf32>, vector<8x32xf32> -> vector<8x32xf32>
    %372 = vector.extract_strided_slice %362 {offsets = [1, 0, 0], sizes = [1, 8, 32], strides = [1, 1, 1]} : vector<3x8x32xf32> to vector<1x8x32xf32>
    %373 = vector.shape_cast %372 : vector<1x8x32xf32> to vector<8x32xf32>
    %374 = arith.addf %371, %373 : vector<8x32xf32>
    %375 = vector.extract_strided_slice %360 {offsets = [2, 0, 0], sizes = [1, 32, 32], strides = [1, 1, 1]} : vector<3x32x32xf32> to vector<1x32x32xf32>
    %376 = vector.shape_cast %375 : vector<1x32x32xf32> to vector<32x32xf32>
    %cst_186 = arith.constant dense<0.000000e+00> : vector<8x32xf32>
    %377 = tpu.matmul %285, %376, %cst_186 {dimension_numbers = #tpu.dot_dimension_numbers<[1], [0], [0], [1], [0, 0, 1, 1], [], []>} : vector<8x32xf32>, vector<32x32xf32>, vector<8x32xf32> -> vector<8x32xf32>
    %378 = vector.extract_strided_slice %362 {offsets = [2, 0, 0], sizes = [1, 8, 32], strides = [1, 1, 1]} : vector<3x8x32xf32> to vector<1x8x32xf32>
    %379 = vector.shape_cast %378 : vector<1x8x32xf32> to vector<8x32xf32>
    %380 = arith.addf %377, %379 : vector<8x32xf32>
    %381 = arith.addf %310, %368 : vector<8x32xf32>
    %382 = arith.negf %381 : vector<8x32xf32>
    %383 = math.exp %382 : vector<8x32xf32>
    %cst_187 = arith.constant 1.000000e+00 : f32
    %384 = vector.broadcast %cst_187 : f32 to vector<8x32xf32>
    %385 = arith.addf %384, %383 : vector<8x32xf32>
    %386 = arith.divf %384, %385 : vector<8x32xf32>
    %387 = arith.addf %313, %374 : vector<8x32xf32>
    %388 = arith.negf %387 : vector<8x32xf32>
    %389 = math.exp %388 : vector<8x32xf32>
    %cst_188 = arith.constant 1.000000e+00 : f32
    %390 = vector.broadcast %cst_188 : f32 to vector<8x32xf32>
    %391 = arith.addf %390, %389 : vector<8x32xf32>
    %392 = arith.divf %390, %391 : vector<8x32xf32>
    %393 = arith.mulf %386, %380 : vector<8x32xf32>
    %394 = arith.addf %316, %393 : vector<8x32xf32>
    %395 = math.tanh %394 : vector<8x32xf32>
    %cst_189 = arith.constant 1.000000e+00 : f32
    %396 = vector.broadcast %cst_189 : f32 to vector<8x32xf32>
    %397 = arith.subf %396, %392 : vector<8x32xf32>
    %398 = arith.mulf %397, %395 : vector<8x32xf32>
    %399 = arith.mulf %392, %285 : vector<8x32xf32>
    %400 = arith.addf %398, %399 : vector<8x32xf32>
    %c0_190 = arith.constant 0 : index
    %401 = arith.index_cast %296 : i32 to index
    %c0_191 = arith.constant 0 : index
    %402 = vector.load %arg11[%c0_190, %401, %c0_191] : memref<2x64x32xf32, #tpu.memory_space<vmem>>, vector<1x8x32xf32>
    %403 = vector.shape_cast %402 : vector<1x8x32xf32> to vector<8x32xf32>
    %404 = vector.shape_cast %358 : vector<8x32xf32> to vector<1x8x32xf32>
    tpu.vector_store %arg11[%c0_190, %401, %c0_191], %404 {strides = array<i32>} : memref<2x64x32xf32, #tpu.memory_space<vmem>>, vector<1x8x32xf32>,
    %c1_192 = arith.constant 1 : index
    %405 = arith.index_cast %298 : i32 to index
    %c0_193 = arith.constant 0 : index
    %406 = vector.load %arg11[%c1_192, %405, %c0_193] : memref<2x64x32xf32, #tpu.memory_space<vmem>>, vector<1x8x32xf32>
    %407 = vector.shape_cast %406 : vector<1x8x32xf32> to vector<8x32xf32>
    %408 = vector.shape_cast %400 : vector<8x32xf32> to vector<1x8x32xf32>
    tpu.vector_store %arg11[%c1_192, %405, %c0_193], %408 {strides = array<i32>} : memref<2x64x32xf32, #tpu.memory_space<vmem>>, vector<1x8x32xf32>,
    %c3_i32 = arith.constant 3 : i32
    %c7_i32_194 = arith.constant 7 : i32
    %409 = arith.subi %c7_i32_194, %c3_i32 : i32
    %c8_i32_195 = arith.constant 8 : i32
    %410 = arith.muli %c3_i32, %c8_i32_195 : i32
    %411 = tpu.assume_multiple %410, 8 : i32
    %c8_i32_196 = arith.constant 8 : i32
    %412 = arith.muli %409, %c8_i32_196 : i32
    %413 = tpu.assume_multiple %412, 8 : i32
    %c0_197 = arith.constant 0 : index
    %c0_198 = arith.constant 0 : index
    %414 = arith.index_cast %411 : i32 to index
    %c0_199 = arith.constant 0 : index
    %415 = vector.load %arg10[%c0_197, %c0_198, %414, %c0_199] : memref<2x3x64x32xf32, #tpu.memory_space<vmem>>, vector<1x1x8x32xf32>
    %416 = vector.shape_cast %415 : vector<1x1x8x32xf32> to vector<8x32xf32>
    %c0_200 = arith.constant 0 : index
    %c1_201 = arith.constant 1 : index
    %417 = arith.index_cast %411 : i32 to index
    %c0_202 = arith.constant 0 : index
    %418 = vector.load %arg10[%c0_200, %c1_201, %417, %c0_202] : memref<2x3x64x32xf32, #tpu.memory_space<vmem>>, vector<1x1x8x32xf32>
    %419 = vector.shape_cast %418 : vector<1x1x8x32xf32> to vector<8x32xf32>
    %c0_203 = arith.constant 0 : index
    %c2_204 = arith.constant 2 : index
    %420 = arith.index_cast %411 : i32 to index
    %c0_205 = arith.constant 0 : index
    %421 = vector.load %arg10[%c0_203, %c2_204, %420, %c0_205] : memref<2x3x64x32xf32, #tpu.memory_space<vmem>>, vector<1x1x8x32xf32>
    %422 = vector.shape_cast %421 : vector<1x1x8x32xf32> to vector<8x32xf32>
    %c1_206 = arith.constant 1 : index
    %c0_207 = arith.constant 0 : index
    %423 = arith.index_cast %413 : i32 to index
    %c0_208 = arith.constant 0 : index
    %424 = vector.load %arg10[%c1_206, %c0_207, %423, %c0_208] : memref<2x3x64x32xf32, #tpu.memory_space<vmem>>, vector<1x1x8x32xf32>
    %425 = vector.shape_cast %424 : vector<1x1x8x32xf32> to vector<8x32xf32>
    %c1_209 = arith.constant 1 : index
    %c1_210 = arith.constant 1 : index
    %426 = arith.index_cast %413 : i32 to index
    %c0_211 = arith.constant 0 : index
    %427 = vector.load %arg10[%c1_209, %c1_210, %426, %c0_211] : memref<2x3x64x32xf32, #tpu.memory_space<vmem>>, vector<1x1x8x32xf32>
    %428 = vector.shape_cast %427 : vector<1x1x8x32xf32> to vector<8x32xf32>
    %c1_212 = arith.constant 1 : index
    %c2_213 = arith.constant 2 : index
    %429 = arith.index_cast %413 : i32 to index
    %c0_214 = arith.constant 0 : index
    %430 = vector.load %arg10[%c1_212, %c2_213, %429, %c0_214] : memref<2x3x64x32xf32, #tpu.memory_space<vmem>>, vector<1x1x8x32xf32>
    %431 = vector.shape_cast %430 : vector<1x1x8x32xf32> to vector<8x32xf32>
    %432 = vector.extract_strided_slice %61 {offsets = [0, 0, 0, 0], sizes = [1, 3, 32, 32], strides = [1, 1, 1, 1]} : vector<2x3x32x32xf32> to vector<1x3x32x32xf32>
    %433 = vector.shape_cast %432 : vector<1x3x32x32xf32> to vector<3x32x32xf32>
    %434 = vector.extract_strided_slice %62 {offsets = [0, 0, 0, 0], sizes = [1, 3, 8, 32], strides = [1, 1, 1, 1]} : vector<2x3x8x32xf32> to vector<1x3x8x32xf32>
    %435 = vector.shape_cast %434 : vector<1x3x8x32xf32> to vector<3x8x32xf32>
    %436 = vector.extract_strided_slice %433 {offsets = [0, 0, 0], sizes = [1, 32, 32], strides = [1, 1, 1]} : vector<3x32x32xf32> to vector<1x32x32xf32>
    %437 = vector.shape_cast %436 : vector<1x32x32xf32> to vector<32x32xf32>
    %cst_215 = arith.constant dense<0.000000e+00> : vector<8x32xf32>
    %438 = tpu.matmul %358, %437, %cst_215 {dimension_numbers = #tpu.dot_dimension_numbers<[1], [0], [0], [1], [0, 0, 1, 1], [], []>} : vector<8x32xf32>, vector<32x32xf32>, vector<8x32xf32> -> vector<8x32xf32>
    %439 = vector.extract_strided_slice %435 {offsets = [0, 0, 0], sizes = [1, 8, 32], strides = [1, 1, 1]} : vector<3x8x32xf32> to vector<1x8x32xf32>
    %440 = vector.shape_cast %439 : vector<1x8x32xf32> to vector<8x32xf32>
    %441 = arith.addf %438, %440 : vector<8x32xf32>
    %442 = vector.extract_strided_slice %433 {offsets = [1, 0, 0], sizes = [1, 32, 32], strides = [1, 1, 1]} : vector<3x32x32xf32> to vector<1x32x32xf32>
    %443 = vector.shape_cast %442 : vector<1x32x32xf32> to vector<32x32xf32>
    %cst_216 = arith.constant dense<0.000000e+00> : vector<8x32xf32>
    %444 = tpu.matmul %358, %443, %cst_216 {dimension_numbers = #tpu.dot_dimension_numbers<[1], [0], [0], [1], [0, 0, 1, 1], [], []>} : vector<8x32xf32>, vector<32x32xf32>, vector<8x32xf32> -> vector<8x32xf32>
    %445 = vector.extract_strided_slice %435 {offsets = [1, 0, 0], sizes = [1, 8, 32], strides = [1, 1, 1]} : vector<3x8x32xf32> to vector<1x8x32xf32>
    %446 = vector.shape_cast %445 : vector<1x8x32xf32> to vector<8x32xf32>
    %447 = arith.addf %444, %446 : vector<8x32xf32>
    %448 = vector.extract_strided_slice %433 {offsets = [2, 0, 0], sizes = [1, 32, 32], strides = [1, 1, 1]} : vector<3x32x32xf32> to vector<1x32x32xf32>
    %449 = vector.shape_cast %448 : vector<1x32x32xf32> to vector<32x32xf32>
    %cst_217 = arith.constant dense<0.000000e+00> : vector<8x32xf32>
    %450 = tpu.matmul %358, %449, %cst_217 {dimension_numbers = #tpu.dot_dimension_numbers<[1], [0], [0], [1], [0, 0, 1, 1], [], []>} : vector<8x32xf32>, vector<32x32xf32>, vector<8x32xf32> -> vector<8x32xf32>
    %451 = vector.extract_strided_slice %435 {offsets = [2, 0, 0], sizes = [1, 8, 32], strides = [1, 1, 1]} : vector<3x8x32xf32> to vector<1x8x32xf32>
    %452 = vector.shape_cast %451 : vector<1x8x32xf32> to vector<8x32xf32>
    %453 = arith.addf %450, %452 : vector<8x32xf32>
    %454 = arith.addf %416, %441 : vector<8x32xf32>
    %455 = arith.negf %454 : vector<8x32xf32>
    %456 = math.exp %455 : vector<8x32xf32>
    %cst_218 = arith.constant 1.000000e+00 : f32
    %457 = vector.broadcast %cst_218 : f32 to vector<8x32xf32>
    %458 = arith.addf %457, %456 : vector<8x32xf32>
    %459 = arith.divf %457, %458 : vector<8x32xf32>
    %460 = arith.addf %419, %447 : vector<8x32xf32>
    %461 = arith.negf %460 : vector<8x32xf32>
    %462 = math.exp %461 : vector<8x32xf32>
    %cst_219 = arith.constant 1.000000e+00 : f32
    %463 = vector.broadcast %cst_219 : f32 to vector<8x32xf32>
    %464 = arith.addf %463, %462 : vector<8x32xf32>
    %465 = arith.divf %463, %464 : vector<8x32xf32>
    %466 = arith.mulf %459, %453 : vector<8x32xf32>
    %467 = arith.addf %422, %466 : vector<8x32xf32>
    %468 = math.tanh %467 : vector<8x32xf32>
    %cst_220 = arith.constant 1.000000e+00 : f32
    %469 = vector.broadcast %cst_220 : f32 to vector<8x32xf32>
    %470 = arith.subf %469, %465 : vector<8x32xf32>
    %471 = arith.mulf %470, %468 : vector<8x32xf32>
    %472 = arith.mulf %465, %358 : vector<8x32xf32>
    %473 = arith.addf %471, %472 : vector<8x32xf32>
    %474 = vector.extract_strided_slice %61 {offsets = [1, 0, 0, 0], sizes = [1, 3, 32, 32], strides = [1, 1, 1, 1]} : vector<2x3x32x32xf32> to vector<1x3x32x32xf32>
    %475 = vector.shape_cast %474 : vector<1x3x32x32xf32> to vector<3x32x32xf32>
    %476 = vector.extract_strided_slice %62 {offsets = [1, 0, 0, 0], sizes = [1, 3, 8, 32], strides = [1, 1, 1, 1]} : vector<2x3x8x32xf32> to vector<1x3x8x32xf32>
    %477 = vector.shape_cast %476 : vector<1x3x8x32xf32> to vector<3x8x32xf32>
    %478 = vector.extract_strided_slice %475 {offsets = [0, 0, 0], sizes = [1, 32, 32], strides = [1, 1, 1]} : vector<3x32x32xf32> to vector<1x32x32xf32>
    %479 = vector.shape_cast %478 : vector<1x32x32xf32> to vector<32x32xf32>
    %cst_221 = arith.constant dense<0.000000e+00> : vector<8x32xf32>
    %480 = tpu.matmul %400, %479, %cst_221 {dimension_numbers = #tpu.dot_dimension_numbers<[1], [0], [0], [1], [0, 0, 1, 1], [], []>} : vector<8x32xf32>, vector<32x32xf32>, vector<8x32xf32> -> vector<8x32xf32>
    %481 = vector.extract_strided_slice %477 {offsets = [0, 0, 0], sizes = [1, 8, 32], strides = [1, 1, 1]} : vector<3x8x32xf32> to vector<1x8x32xf32>
    %482 = vector.shape_cast %481 : vector<1x8x32xf32> to vector<8x32xf32>
    %483 = arith.addf %480, %482 : vector<8x32xf32>
    %484 = vector.extract_strided_slice %475 {offsets = [1, 0, 0], sizes = [1, 32, 32], strides = [1, 1, 1]} : vector<3x32x32xf32> to vector<1x32x32xf32>
    %485 = vector.shape_cast %484 : vector<1x32x32xf32> to vector<32x32xf32>
    %cst_222 = arith.constant dense<0.000000e+00> : vector<8x32xf32>
    %486 = tpu.matmul %400, %485, %cst_222 {dimension_numbers = #tpu.dot_dimension_numbers<[1], [0], [0], [1], [0, 0, 1, 1], [], []>} : vector<8x32xf32>, vector<32x32xf32>, vector<8x32xf32> -> vector<8x32xf32>
    %487 = vector.extract_strided_slice %477 {offsets = [1, 0, 0], sizes = [1, 8, 32], strides = [1, 1, 1]} : vector<3x8x32xf32> to vector<1x8x32xf32>
    %488 = vector.shape_cast %487 : vector<1x8x32xf32> to vector<8x32xf32>
    %489 = arith.addf %486, %488 : vector<8x32xf32>
    %490 = vector.extract_strided_slice %475 {offsets = [2, 0, 0], sizes = [1, 32, 32], strides = [1, 1, 1]} : vector<3x32x32xf32> to vector<1x32x32xf32>
    %491 = vector.shape_cast %490 : vector<1x32x32xf32> to vector<32x32xf32>
    %cst_223 = arith.constant dense<0.000000e+00> : vector<8x32xf32>
    %492 = tpu.matmul %400, %491, %cst_223 {dimension_numbers = #tpu.dot_dimension_numbers<[1], [0], [0], [1], [0, 0, 1, 1], [], []>} : vector<8x32xf32>, vector<32x32xf32>, vector<8x32xf32> -> vector<8x32xf32>
    %493 = vector.extract_strided_slice %477 {offsets = [2, 0, 0], sizes = [1, 8, 32], strides = [1, 1, 1]} : vector<3x8x32xf32> to vector<1x8x32xf32>
    %494 = vector.shape_cast %493 : vector<1x8x32xf32> to vector<8x32xf32>
    %495 = arith.addf %492, %494 : vector<8x32xf32>
    %496 = arith.addf %425, %483 : vector<8x32xf32>
    %497 = arith.negf %496 : vector<8x32xf32>
    %498 = math.exp %497 : vector<8x32xf32>
    %cst_224 = arith.constant 1.000000e+00 : f32
    %499 = vector.broadcast %cst_224 : f32 to vector<8x32xf32>
    %500 = arith.addf %499, %498 : vector<8x32xf32>
    %501 = arith.divf %499, %500 : vector<8x32xf32>
    %502 = arith.addf %428, %489 : vector<8x32xf32>
    %503 = arith.negf %502 : vector<8x32xf32>
    %504 = math.exp %503 : vector<8x32xf32>
    %cst_225 = arith.constant 1.000000e+00 : f32
    %505 = vector.broadcast %cst_225 : f32 to vector<8x32xf32>
    %506 = arith.addf %505, %504 : vector<8x32xf32>
    %507 = arith.divf %505, %506 : vector<8x32xf32>
    %508 = arith.mulf %501, %495 : vector<8x32xf32>
    %509 = arith.addf %431, %508 : vector<8x32xf32>
    %510 = math.tanh %509 : vector<8x32xf32>
    %cst_226 = arith.constant 1.000000e+00 : f32
    %511 = vector.broadcast %cst_226 : f32 to vector<8x32xf32>
    %512 = arith.subf %511, %507 : vector<8x32xf32>
    %513 = arith.mulf %512, %510 : vector<8x32xf32>
    %514 = arith.mulf %507, %400 : vector<8x32xf32>
    %515 = arith.addf %513, %514 : vector<8x32xf32>
    %c0_227 = arith.constant 0 : index
    %516 = arith.index_cast %411 : i32 to index
    %c0_228 = arith.constant 0 : index
    %517 = vector.load %arg11[%c0_227, %516, %c0_228] : memref<2x64x32xf32, #tpu.memory_space<vmem>>, vector<1x8x32xf32>
    %518 = vector.shape_cast %517 : vector<1x8x32xf32> to vector<8x32xf32>
    %519 = vector.shape_cast %473 : vector<8x32xf32> to vector<1x8x32xf32>
    tpu.vector_store %arg11[%c0_227, %516, %c0_228], %519 {strides = array<i32>} : memref<2x64x32xf32, #tpu.memory_space<vmem>>, vector<1x8x32xf32>,
    %c1_229 = arith.constant 1 : index
    %520 = arith.index_cast %413 : i32 to index
    %c0_230 = arith.constant 0 : index
    %521 = vector.load %arg11[%c1_229, %520, %c0_230] : memref<2x64x32xf32, #tpu.memory_space<vmem>>, vector<1x8x32xf32>
    %522 = vector.shape_cast %521 : vector<1x8x32xf32> to vector<8x32xf32>
    %523 = vector.shape_cast %515 : vector<8x32xf32> to vector<1x8x32xf32>
    tpu.vector_store %arg11[%c1_229, %520, %c0_230], %523 {strides = array<i32>} : memref<2x64x32xf32, #tpu.memory_space<vmem>>, vector<1x8x32xf32>,
    %c4_i32 = arith.constant 4 : i32
    %c7_i32_231 = arith.constant 7 : i32
    %524 = arith.subi %c7_i32_231, %c4_i32 : i32
    %c8_i32_232 = arith.constant 8 : i32
    %525 = arith.muli %c4_i32, %c8_i32_232 : i32
    %526 = tpu.assume_multiple %525, 8 : i32
    %c8_i32_233 = arith.constant 8 : i32
    %527 = arith.muli %524, %c8_i32_233 : i32
    %528 = tpu.assume_multiple %527, 8 : i32
    %c0_234 = arith.constant 0 : index
    %c0_235 = arith.constant 0 : index
    %529 = arith.index_cast %526 : i32 to index
    %c0_236 = arith.constant 0 : index
    %530 = vector.load %arg10[%c0_234, %c0_235, %529, %c0_236] : memref<2x3x64x32xf32, #tpu.memory_space<vmem>>, vector<1x1x8x32xf32>
    %531 = vector.shape_cast %530 : vector<1x1x8x32xf32> to vector<8x32xf32>
    %c0_237 = arith.constant 0 : index
    %c1_238 = arith.constant 1 : index
    %532 = arith.index_cast %526 : i32 to index
    %c0_239 = arith.constant 0 : index
    %533 = vector.load %arg10[%c0_237, %c1_238, %532, %c0_239] : memref<2x3x64x32xf32, #tpu.memory_space<vmem>>, vector<1x1x8x32xf32>
    %534 = vector.shape_cast %533 : vector<1x1x8x32xf32> to vector<8x32xf32>
    %c0_240 = arith.constant 0 : index
    %c2_241 = arith.constant 2 : index
    %535 = arith.index_cast %526 : i32 to index
    %c0_242 = arith.constant 0 : index
    %536 = vector.load %arg10[%c0_240, %c2_241, %535, %c0_242] : memref<2x3x64x32xf32, #tpu.memory_space<vmem>>, vector<1x1x8x32xf32>
    %537 = vector.shape_cast %536 : vector<1x1x8x32xf32> to vector<8x32xf32>
    %c1_243 = arith.constant 1 : index
    %c0_244 = arith.constant 0 : index
    %538 = arith.index_cast %528 : i32 to index
    %c0_245 = arith.constant 0 : index
    %539 = vector.load %arg10[%c1_243, %c0_244, %538, %c0_245] : memref<2x3x64x32xf32, #tpu.memory_space<vmem>>, vector<1x1x8x32xf32>
    %540 = vector.shape_cast %539 : vector<1x1x8x32xf32> to vector<8x32xf32>
    %c1_246 = arith.constant 1 : index
    %c1_247 = arith.constant 1 : index
    %541 = arith.index_cast %528 : i32 to index
    %c0_248 = arith.constant 0 : index
    %542 = vector.load %arg10[%c1_246, %c1_247, %541, %c0_248] : memref<2x3x64x32xf32, #tpu.memory_space<vmem>>, vector<1x1x8x32xf32>
    %543 = vector.shape_cast %542 : vector<1x1x8x32xf32> to vector<8x32xf32>
    %c1_249 = arith.constant 1 : index
    %c2_250 = arith.constant 2 : index
    %544 = arith.index_cast %528 : i32 to index
    %c0_251 = arith.constant 0 : index
    %545 = vector.load %arg10[%c1_249, %c2_250, %544, %c0_251] : memref<2x3x64x32xf32, #tpu.memory_space<vmem>>, vector<1x1x8x32xf32>
    %546 = vector.shape_cast %545 : vector<1x1x8x32xf32> to vector<8x32xf32>
    %547 = vector.extract_strided_slice %61 {offsets = [0, 0, 0, 0], sizes = [1, 3, 32, 32], strides = [1, 1, 1, 1]} : vector<2x3x32x32xf32> to vector<1x3x32x32xf32>
    %548 = vector.shape_cast %547 : vector<1x3x32x32xf32> to vector<3x32x32xf32>
    %549 = vector.extract_strided_slice %62 {offsets = [0, 0, 0, 0], sizes = [1, 3, 8, 32], strides = [1, 1, 1, 1]} : vector<2x3x8x32xf32> to vector<1x3x8x32xf32>
    %550 = vector.shape_cast %549 : vector<1x3x8x32xf32> to vector<3x8x32xf32>
    %551 = vector.extract_strided_slice %548 {offsets = [0, 0, 0], sizes = [1, 32, 32], strides = [1, 1, 1]} : vector<3x32x32xf32> to vector<1x32x32xf32>
    %552 = vector.shape_cast %551 : vector<1x32x32xf32> to vector<32x32xf32>
    %cst_252 = arith.constant dense<0.000000e+00> : vector<8x32xf32>
    %553 = tpu.matmul %473, %552, %cst_252 {dimension_numbers = #tpu.dot_dimension_numbers<[1], [0], [0], [1], [0, 0, 1, 1], [], []>} : vector<8x32xf32>, vector<32x32xf32>, vector<8x32xf32> -> vector<8x32xf32>
    %554 = vector.extract_strided_slice %550 {offsets = [0, 0, 0], sizes = [1, 8, 32], strides = [1, 1, 1]} : vector<3x8x32xf32> to vector<1x8x32xf32>
    %555 = vector.shape_cast %554 : vector<1x8x32xf32> to vector<8x32xf32>
    %556 = arith.addf %553, %555 : vector<8x32xf32>
    %557 = vector.extract_strided_slice %548 {offsets = [1, 0, 0], sizes = [1, 32, 32], strides = [1, 1, 1]} : vector<3x32x32xf32> to vector<1x32x32xf32>
    %558 = vector.shape_cast %557 : vector<1x32x32xf32> to vector<32x32xf32>
    %cst_253 = arith.constant dense<0.000000e+00> : vector<8x32xf32>
    %559 = tpu.matmul %473, %558, %cst_253 {dimension_numbers = #tpu.dot_dimension_numbers<[1], [0], [0], [1], [0, 0, 1, 1], [], []>} : vector<8x32xf32>, vector<32x32xf32>, vector<8x32xf32> -> vector<8x32xf32>
    %560 = vector.extract_strided_slice %550 {offsets = [1, 0, 0], sizes = [1, 8, 32], strides = [1, 1, 1]} : vector<3x8x32xf32> to vector<1x8x32xf32>
    %561 = vector.shape_cast %560 : vector<1x8x32xf32> to vector<8x32xf32>
    %562 = arith.addf %559, %561 : vector<8x32xf32>
    %563 = vector.extract_strided_slice %548 {offsets = [2, 0, 0], sizes = [1, 32, 32], strides = [1, 1, 1]} : vector<3x32x32xf32> to vector<1x32x32xf32>
    %564 = vector.shape_cast %563 : vector<1x32x32xf32> to vector<32x32xf32>
    %cst_254 = arith.constant dense<0.000000e+00> : vector<8x32xf32>
    %565 = tpu.matmul %473, %564, %cst_254 {dimension_numbers = #tpu.dot_dimension_numbers<[1], [0], [0], [1], [0, 0, 1, 1], [], []>} : vector<8x32xf32>, vector<32x32xf32>, vector<8x32xf32> -> vector<8x32xf32>
    %566 = vector.extract_strided_slice %550 {offsets = [2, 0, 0], sizes = [1, 8, 32], strides = [1, 1, 1]} : vector<3x8x32xf32> to vector<1x8x32xf32>
    %567 = vector.shape_cast %566 : vector<1x8x32xf32> to vector<8x32xf32>
    %568 = arith.addf %565, %567 : vector<8x32xf32>
    %569 = arith.addf %531, %556 : vector<8x32xf32>
    %570 = arith.negf %569 : vector<8x32xf32>
    %571 = math.exp %570 : vector<8x32xf32>
    %cst_255 = arith.constant 1.000000e+00 : f32
    %572 = vector.broadcast %cst_255 : f32 to vector<8x32xf32>
    %573 = arith.addf %572, %571 : vector<8x32xf32>
    %574 = arith.divf %572, %573 : vector<8x32xf32>
    %575 = arith.addf %534, %562 : vector<8x32xf32>
    %576 = arith.negf %575 : vector<8x32xf32>
    %577 = math.exp %576 : vector<8x32xf32>
    %cst_256 = arith.constant 1.000000e+00 : f32
    %578 = vector.broadcast %cst_256 : f32 to vector<8x32xf32>
    %579 = arith.addf %578, %577 : vector<8x32xf32>
    %580 = arith.divf %578, %579 : vector<8x32xf32>
    %581 = arith.mulf %574, %568 : vector<8x32xf32>
    %582 = arith.addf %537, %581 : vector<8x32xf32>
    %583 = math.tanh %582 : vector<8x32xf32>
    %cst_257 = arith.constant 1.000000e+00 : f32
    %584 = vector.broadcast %cst_257 : f32 to vector<8x32xf32>
    %585 = arith.subf %584, %580 : vector<8x32xf32>
    %586 = arith.mulf %585, %583 : vector<8x32xf32>
    %587 = arith.mulf %580, %473 : vector<8x32xf32>
    %588 = arith.addf %586, %587 : vector<8x32xf32>
    %589 = vector.extract_strided_slice %61 {offsets = [1, 0, 0, 0], sizes = [1, 3, 32, 32], strides = [1, 1, 1, 1]} : vector<2x3x32x32xf32> to vector<1x3x32x32xf32>
    %590 = vector.shape_cast %589 : vector<1x3x32x32xf32> to vector<3x32x32xf32>
    %591 = vector.extract_strided_slice %62 {offsets = [1, 0, 0, 0], sizes = [1, 3, 8, 32], strides = [1, 1, 1, 1]} : vector<2x3x8x32xf32> to vector<1x3x8x32xf32>
    %592 = vector.shape_cast %591 : vector<1x3x8x32xf32> to vector<3x8x32xf32>
    %593 = vector.extract_strided_slice %590 {offsets = [0, 0, 0], sizes = [1, 32, 32], strides = [1, 1, 1]} : vector<3x32x32xf32> to vector<1x32x32xf32>
    %594 = vector.shape_cast %593 : vector<1x32x32xf32> to vector<32x32xf32>
    %cst_258 = arith.constant dense<0.000000e+00> : vector<8x32xf32>
    %595 = tpu.matmul %515, %594, %cst_258 {dimension_numbers = #tpu.dot_dimension_numbers<[1], [0], [0], [1], [0, 0, 1, 1], [], []>} : vector<8x32xf32>, vector<32x32xf32>, vector<8x32xf32> -> vector<8x32xf32>
    %596 = vector.extract_strided_slice %592 {offsets = [0, 0, 0], sizes = [1, 8, 32], strides = [1, 1, 1]} : vector<3x8x32xf32> to vector<1x8x32xf32>
    %597 = vector.shape_cast %596 : vector<1x8x32xf32> to vector<8x32xf32>
    %598 = arith.addf %595, %597 : vector<8x32xf32>
    %599 = vector.extract_strided_slice %590 {offsets = [1, 0, 0], sizes = [1, 32, 32], strides = [1, 1, 1]} : vector<3x32x32xf32> to vector<1x32x32xf32>
    %600 = vector.shape_cast %599 : vector<1x32x32xf32> to vector<32x32xf32>
    %cst_259 = arith.constant dense<0.000000e+00> : vector<8x32xf32>
    %601 = tpu.matmul %515, %600, %cst_259 {dimension_numbers = #tpu.dot_dimension_numbers<[1], [0], [0], [1], [0, 0, 1, 1], [], []>} : vector<8x32xf32>, vector<32x32xf32>, vector<8x32xf32> -> vector<8x32xf32>
    %602 = vector.extract_strided_slice %592 {offsets = [1, 0, 0], sizes = [1, 8, 32], strides = [1, 1, 1]} : vector<3x8x32xf32> to vector<1x8x32xf32>
    %603 = vector.shape_cast %602 : vector<1x8x32xf32> to vector<8x32xf32>
    %604 = arith.addf %601, %603 : vector<8x32xf32>
    %605 = vector.extract_strided_slice %590 {offsets = [2, 0, 0], sizes = [1, 32, 32], strides = [1, 1, 1]} : vector<3x32x32xf32> to vector<1x32x32xf32>
    %606 = vector.shape_cast %605 : vector<1x32x32xf32> to vector<32x32xf32>
    %cst_260 = arith.constant dense<0.000000e+00> : vector<8x32xf32>
    %607 = tpu.matmul %515, %606, %cst_260 {dimension_numbers = #tpu.dot_dimension_numbers<[1], [0], [0], [1], [0, 0, 1, 1], [], []>} : vector<8x32xf32>, vector<32x32xf32>, vector<8x32xf32> -> vector<8x32xf32>
    %608 = vector.extract_strided_slice %592 {offsets = [2, 0, 0], sizes = [1, 8, 32], strides = [1, 1, 1]} : vector<3x8x32xf32> to vector<1x8x32xf32>
    %609 = vector.shape_cast %608 : vector<1x8x32xf32> to vector<8x32xf32>
    %610 = arith.addf %607, %609 : vector<8x32xf32>
    %611 = arith.addf %540, %598 : vector<8x32xf32>
    %612 = arith.negf %611 : vector<8x32xf32>
    %613 = math.exp %612 : vector<8x32xf32>
    %cst_261 = arith.constant 1.000000e+00 : f32
    %614 = vector.broadcast %cst_261 : f32 to vector<8x32xf32>
    %615 = arith.addf %614, %613 : vector<8x32xf32>
    %616 = arith.divf %614, %615 : vector<8x32xf32>
    %617 = arith.addf %543, %604 : vector<8x32xf32>
    %618 = arith.negf %617 : vector<8x32xf32>
    %619 = math.exp %618 : vector<8x32xf32>
    %cst_262 = arith.constant 1.000000e+00 : f32
    %620 = vector.broadcast %cst_262 : f32 to vector<8x32xf32>
    %621 = arith.addf %620, %619 : vector<8x32xf32>
    %622 = arith.divf %620, %621 : vector<8x32xf32>
    %623 = arith.mulf %616, %610 : vector<8x32xf32>
    %624 = arith.addf %546, %623 : vector<8x32xf32>
    %625 = math.tanh %624 : vector<8x32xf32>
    %cst_263 = arith.constant 1.000000e+00 : f32
    %626 = vector.broadcast %cst_263 : f32 to vector<8x32xf32>
    %627 = arith.subf %626, %622 : vector<8x32xf32>
    %628 = arith.mulf %627, %625 : vector<8x32xf32>
    %629 = arith.mulf %622, %515 : vector<8x32xf32>
    %630 = arith.addf %628, %629 : vector<8x32xf32>
    %c0_264 = arith.constant 0 : index
    %631 = arith.index_cast %526 : i32 to index
    %c0_265 = arith.constant 0 : index
    %632 = vector.load %arg11[%c0_264, %631, %c0_265] : memref<2x64x32xf32, #tpu.memory_space<vmem>>, vector<1x8x32xf32>
    %633 = vector.shape_cast %632 : vector<1x8x32xf32> to vector<8x32xf32>
    %634 = vector.shape_cast %588 : vector<8x32xf32> to vector<1x8x32xf32>
    tpu.vector_store %arg11[%c0_264, %631, %c0_265], %634 {strides = array<i32>} : memref<2x64x32xf32, #tpu.memory_space<vmem>>, vector<1x8x32xf32>,
    %c1_266 = arith.constant 1 : index
    %635 = arith.index_cast %528 : i32 to index
    %c0_267 = arith.constant 0 : index
    %636 = vector.load %arg11[%c1_266, %635, %c0_267] : memref<2x64x32xf32, #tpu.memory_space<vmem>>, vector<1x8x32xf32>
    %637 = vector.shape_cast %636 : vector<1x8x32xf32> to vector<8x32xf32>
    %638 = vector.shape_cast %630 : vector<8x32xf32> to vector<1x8x32xf32>
    tpu.vector_store %arg11[%c1_266, %635, %c0_267], %638 {strides = array<i32>} : memref<2x64x32xf32, #tpu.memory_space<vmem>>, vector<1x8x32xf32>,
    %c5_i32 = arith.constant 5 : i32
    %c7_i32_268 = arith.constant 7 : i32
    %639 = arith.subi %c7_i32_268, %c5_i32 : i32
    %c8_i32_269 = arith.constant 8 : i32
    %640 = arith.muli %c5_i32, %c8_i32_269 : i32
    %641 = tpu.assume_multiple %640, 8 : i32
    %c8_i32_270 = arith.constant 8 : i32
    %642 = arith.muli %639, %c8_i32_270 : i32
    %643 = tpu.assume_multiple %642, 8 : i32
    %c0_271 = arith.constant 0 : index
    %c0_272 = arith.constant 0 : index
    %644 = arith.index_cast %641 : i32 to index
    %c0_273 = arith.constant 0 : index
    %645 = vector.load %arg10[%c0_271, %c0_272, %644, %c0_273] : memref<2x3x64x32xf32, #tpu.memory_space<vmem>>, vector<1x1x8x32xf32>
    %646 = vector.shape_cast %645 : vector<1x1x8x32xf32> to vector<8x32xf32>
    %c0_274 = arith.constant 0 : index
    %c1_275 = arith.constant 1 : index
    %647 = arith.index_cast %641 : i32 to index
    %c0_276 = arith.constant 0 : index
    %648 = vector.load %arg10[%c0_274, %c1_275, %647, %c0_276] : memref<2x3x64x32xf32, #tpu.memory_space<vmem>>, vector<1x1x8x32xf32>
    %649 = vector.shape_cast %648 : vector<1x1x8x32xf32> to vector<8x32xf32>
    %c0_277 = arith.constant 0 : index
    %c2_278 = arith.constant 2 : index
    %650 = arith.index_cast %641 : i32 to index
    %c0_279 = arith.constant 0 : index
    %651 = vector.load %arg10[%c0_277, %c2_278, %650, %c0_279] : memref<2x3x64x32xf32, #tpu.memory_space<vmem>>, vector<1x1x8x32xf32>
    %652 = vector.shape_cast %651 : vector<1x1x8x32xf32> to vector<8x32xf32>
    %c1_280 = arith.constant 1 : index
    %c0_281 = arith.constant 0 : index
    %653 = arith.index_cast %643 : i32 to index
    %c0_282 = arith.constant 0 : index
    %654 = vector.load %arg10[%c1_280, %c0_281, %653, %c0_282] : memref<2x3x64x32xf32, #tpu.memory_space<vmem>>, vector<1x1x8x32xf32>
    %655 = vector.shape_cast %654 : vector<1x1x8x32xf32> to vector<8x32xf32>
    %c1_283 = arith.constant 1 : index
    %c1_284 = arith.constant 1 : index
    %656 = arith.index_cast %643 : i32 to index
    %c0_285 = arith.constant 0 : index
    %657 = vector.load %arg10[%c1_283, %c1_284, %656, %c0_285] : memref<2x3x64x32xf32, #tpu.memory_space<vmem>>, vector<1x1x8x32xf32>
    %658 = vector.shape_cast %657 : vector<1x1x8x32xf32> to vector<8x32xf32>
    %c1_286 = arith.constant 1 : index
    %c2_287 = arith.constant 2 : index
    %659 = arith.index_cast %643 : i32 to index
    %c0_288 = arith.constant 0 : index
    %660 = vector.load %arg10[%c1_286, %c2_287, %659, %c0_288] : memref<2x3x64x32xf32, #tpu.memory_space<vmem>>, vector<1x1x8x32xf32>
    %661 = vector.shape_cast %660 : vector<1x1x8x32xf32> to vector<8x32xf32>
    %662 = vector.extract_strided_slice %61 {offsets = [0, 0, 0, 0], sizes = [1, 3, 32, 32], strides = [1, 1, 1, 1]} : vector<2x3x32x32xf32> to vector<1x3x32x32xf32>
    %663 = vector.shape_cast %662 : vector<1x3x32x32xf32> to vector<3x32x32xf32>
    %664 = vector.extract_strided_slice %62 {offsets = [0, 0, 0, 0], sizes = [1, 3, 8, 32], strides = [1, 1, 1, 1]} : vector<2x3x8x32xf32> to vector<1x3x8x32xf32>
    %665 = vector.shape_cast %664 : vector<1x3x8x32xf32> to vector<3x8x32xf32>
    %666 = vector.extract_strided_slice %663 {offsets = [0, 0, 0], sizes = [1, 32, 32], strides = [1, 1, 1]} : vector<3x32x32xf32> to vector<1x32x32xf32>
    %667 = vector.shape_cast %666 : vector<1x32x32xf32> to vector<32x32xf32>
    %cst_289 = arith.constant dense<0.000000e+00> : vector<8x32xf32>
    %668 = tpu.matmul %588, %667, %cst_289 {dimension_numbers = #tpu.dot_dimension_numbers<[1], [0], [0], [1], [0, 0, 1, 1], [], []>} : vector<8x32xf32>, vector<32x32xf32>, vector<8x32xf32> -> vector<8x32xf32>
    %669 = vector.extract_strided_slice %665 {offsets = [0, 0, 0], sizes = [1, 8, 32], strides = [1, 1, 1]} : vector<3x8x32xf32> to vector<1x8x32xf32>
    %670 = vector.shape_cast %669 : vector<1x8x32xf32> to vector<8x32xf32>
    %671 = arith.addf %668, %670 : vector<8x32xf32>
    %672 = vector.extract_strided_slice %663 {offsets = [1, 0, 0], sizes = [1, 32, 32], strides = [1, 1, 1]} : vector<3x32x32xf32> to vector<1x32x32xf32>
    %673 = vector.shape_cast %672 : vector<1x32x32xf32> to vector<32x32xf32>
    %cst_290 = arith.constant dense<0.000000e+00> : vector<8x32xf32>
    %674 = tpu.matmul %588, %673, %cst_290 {dimension_numbers = #tpu.dot_dimension_numbers<[1], [0], [0], [1], [0, 0, 1, 1], [], []>} : vector<8x32xf32>, vector<32x32xf32>, vector<8x32xf32> -> vector<8x32xf32>
    %675 = vector.extract_strided_slice %665 {offsets = [1, 0, 0], sizes = [1, 8, 32], strides = [1, 1, 1]} : vector<3x8x32xf32> to vector<1x8x32xf32>
    %676 = vector.shape_cast %675 : vector<1x8x32xf32> to vector<8x32xf32>
    %677 = arith.addf %674, %676 : vector<8x32xf32>
    %678 = vector.extract_strided_slice %663 {offsets = [2, 0, 0], sizes = [1, 32, 32], strides = [1, 1, 1]} : vector<3x32x32xf32> to vector<1x32x32xf32>
    %679 = vector.shape_cast %678 : vector<1x32x32xf32> to vector<32x32xf32>
    %cst_291 = arith.constant dense<0.000000e+00> : vector<8x32xf32>
    %680 = tpu.matmul %588, %679, %cst_291 {dimension_numbers = #tpu.dot_dimension_numbers<[1], [0], [0], [1], [0, 0, 1, 1], [], []>} : vector<8x32xf32>, vector<32x32xf32>, vector<8x32xf32> -> vector<8x32xf32>
    %681 = vector.extract_strided_slice %665 {offsets = [2, 0, 0], sizes = [1, 8, 32], strides = [1, 1, 1]} : vector<3x8x32xf32> to vector<1x8x32xf32>
    %682 = vector.shape_cast %681 : vector<1x8x32xf32> to vector<8x32xf32>
    %683 = arith.addf %680, %682 : vector<8x32xf32>
    %684 = arith.addf %646, %671 : vector<8x32xf32>
    %685 = arith.negf %684 : vector<8x32xf32>
    %686 = math.exp %685 : vector<8x32xf32>
    %cst_292 = arith.constant 1.000000e+00 : f32
    %687 = vector.broadcast %cst_292 : f32 to vector<8x32xf32>
    %688 = arith.addf %687, %686 : vector<8x32xf32>
    %689 = arith.divf %687, %688 : vector<8x32xf32>
    %690 = arith.addf %649, %677 : vector<8x32xf32>
    %691 = arith.negf %690 : vector<8x32xf32>
    %692 = math.exp %691 : vector<8x32xf32>
    %cst_293 = arith.constant 1.000000e+00 : f32
    %693 = vector.broadcast %cst_293 : f32 to vector<8x32xf32>
    %694 = arith.addf %693, %692 : vector<8x32xf32>
    %695 = arith.divf %693, %694 : vector<8x32xf32>
    %696 = arith.mulf %689, %683 : vector<8x32xf32>
    %697 = arith.addf %652, %696 : vector<8x32xf32>
    %698 = math.tanh %697 : vector<8x32xf32>
    %cst_294 = arith.constant 1.000000e+00 : f32
    %699 = vector.broadcast %cst_294 : f32 to vector<8x32xf32>
    %700 = arith.subf %699, %695 : vector<8x32xf32>
    %701 = arith.mulf %700, %698 : vector<8x32xf32>
    %702 = arith.mulf %695, %588 : vector<8x32xf32>
    %703 = arith.addf %701, %702 : vector<8x32xf32>
    %704 = vector.extract_strided_slice %61 {offsets = [1, 0, 0, 0], sizes = [1, 3, 32, 32], strides = [1, 1, 1, 1]} : vector<2x3x32x32xf32> to vector<1x3x32x32xf32>
    %705 = vector.shape_cast %704 : vector<1x3x32x32xf32> to vector<3x32x32xf32>
    %706 = vector.extract_strided_slice %62 {offsets = [1, 0, 0, 0], sizes = [1, 3, 8, 32], strides = [1, 1, 1, 1]} : vector<2x3x8x32xf32> to vector<1x3x8x32xf32>
    %707 = vector.shape_cast %706 : vector<1x3x8x32xf32> to vector<3x8x32xf32>
    %708 = vector.extract_strided_slice %705 {offsets = [0, 0, 0], sizes = [1, 32, 32], strides = [1, 1, 1]} : vector<3x32x32xf32> to vector<1x32x32xf32>
    %709 = vector.shape_cast %708 : vector<1x32x32xf32> to vector<32x32xf32>
    %cst_295 = arith.constant dense<0.000000e+00> : vector<8x32xf32>
    %710 = tpu.matmul %630, %709, %cst_295 {dimension_numbers = #tpu.dot_dimension_numbers<[1], [0], [0], [1], [0, 0, 1, 1], [], []>} : vector<8x32xf32>, vector<32x32xf32>, vector<8x32xf32> -> vector<8x32xf32>
    %711 = vector.extract_strided_slice %707 {offsets = [0, 0, 0], sizes = [1, 8, 32], strides = [1, 1, 1]} : vector<3x8x32xf32> to vector<1x8x32xf32>
    %712 = vector.shape_cast %711 : vector<1x8x32xf32> to vector<8x32xf32>
    %713 = arith.addf %710, %712 : vector<8x32xf32>
    %714 = vector.extract_strided_slice %705 {offsets = [1, 0, 0], sizes = [1, 32, 32], strides = [1, 1, 1]} : vector<3x32x32xf32> to vector<1x32x32xf32>
    %715 = vector.shape_cast %714 : vector<1x32x32xf32> to vector<32x32xf32>
    %cst_296 = arith.constant dense<0.000000e+00> : vector<8x32xf32>
    %716 = tpu.matmul %630, %715, %cst_296 {dimension_numbers = #tpu.dot_dimension_numbers<[1], [0], [0], [1], [0, 0, 1, 1], [], []>} : vector<8x32xf32>, vector<32x32xf32>, vector<8x32xf32> -> vector<8x32xf32>
    %717 = vector.extract_strided_slice %707 {offsets = [1, 0, 0], sizes = [1, 8, 32], strides = [1, 1, 1]} : vector<3x8x32xf32> to vector<1x8x32xf32>
    %718 = vector.shape_cast %717 : vector<1x8x32xf32> to vector<8x32xf32>
    %719 = arith.addf %716, %718 : vector<8x32xf32>
    %720 = vector.extract_strided_slice %705 {offsets = [2, 0, 0], sizes = [1, 32, 32], strides = [1, 1, 1]} : vector<3x32x32xf32> to vector<1x32x32xf32>
    %721 = vector.shape_cast %720 : vector<1x32x32xf32> to vector<32x32xf32>
    %cst_297 = arith.constant dense<0.000000e+00> : vector<8x32xf32>
    %722 = tpu.matmul %630, %721, %cst_297 {dimension_numbers = #tpu.dot_dimension_numbers<[1], [0], [0], [1], [0, 0, 1, 1], [], []>} : vector<8x32xf32>, vector<32x32xf32>, vector<8x32xf32> -> vector<8x32xf32>
    %723 = vector.extract_strided_slice %707 {offsets = [2, 0, 0], sizes = [1, 8, 32], strides = [1, 1, 1]} : vector<3x8x32xf32> to vector<1x8x32xf32>
    %724 = vector.shape_cast %723 : vector<1x8x32xf32> to vector<8x32xf32>
    %725 = arith.addf %722, %724 : vector<8x32xf32>
    %726 = arith.addf %655, %713 : vector<8x32xf32>
    %727 = arith.negf %726 : vector<8x32xf32>
    %728 = math.exp %727 : vector<8x32xf32>
    %cst_298 = arith.constant 1.000000e+00 : f32
    %729 = vector.broadcast %cst_298 : f32 to vector<8x32xf32>
    %730 = arith.addf %729, %728 : vector<8x32xf32>
    %731 = arith.divf %729, %730 : vector<8x32xf32>
    %732 = arith.addf %658, %719 : vector<8x32xf32>
    %733 = arith.negf %732 : vector<8x32xf32>
    %734 = math.exp %733 : vector<8x32xf32>
    %cst_299 = arith.constant 1.000000e+00 : f32
    %735 = vector.broadcast %cst_299 : f32 to vector<8x32xf32>
    %736 = arith.addf %735, %734 : vector<8x32xf32>
    %737 = arith.divf %735, %736 : vector<8x32xf32>
    %738 = arith.mulf %731, %725 : vector<8x32xf32>
    %739 = arith.addf %661, %738 : vector<8x32xf32>
    %740 = math.tanh %739 : vector<8x32xf32>
    %cst_300 = arith.constant 1.000000e+00 : f32
    %741 = vector.broadcast %cst_300 : f32 to vector<8x32xf32>
    %742 = arith.subf %741, %737 : vector<8x32xf32>
    %743 = arith.mulf %742, %740 : vector<8x32xf32>
    %744 = arith.mulf %737, %630 : vector<8x32xf32>
    %745 = arith.addf %743, %744 : vector<8x32xf32>
    %c0_301 = arith.constant 0 : index
    %746 = arith.index_cast %641 : i32 to index
    %c0_302 = arith.constant 0 : index
    %747 = vector.load %arg11[%c0_301, %746, %c0_302] : memref<2x64x32xf32, #tpu.memory_space<vmem>>, vector<1x8x32xf32>
    %748 = vector.shape_cast %747 : vector<1x8x32xf32> to vector<8x32xf32>
    %749 = vector.shape_cast %703 : vector<8x32xf32> to vector<1x8x32xf32>
    tpu.vector_store %arg11[%c0_301, %746, %c0_302], %749 {strides = array<i32>} : memref<2x64x32xf32, #tpu.memory_space<vmem>>, vector<1x8x32xf32>,
    %c1_303 = arith.constant 1 : index
    %750 = arith.index_cast %643 : i32 to index
    %c0_304 = arith.constant 0 : index
    %751 = vector.load %arg11[%c1_303, %750, %c0_304] : memref<2x64x32xf32, #tpu.memory_space<vmem>>, vector<1x8x32xf32>
    %752 = vector.shape_cast %751 : vector<1x8x32xf32> to vector<8x32xf32>
    %753 = vector.shape_cast %745 : vector<8x32xf32> to vector<1x8x32xf32>
    tpu.vector_store %arg11[%c1_303, %750, %c0_304], %753 {strides = array<i32>} : memref<2x64x32xf32, #tpu.memory_space<vmem>>, vector<1x8x32xf32>,
    %c6_i32 = arith.constant 6 : i32
    %c7_i32_305 = arith.constant 7 : i32
    %754 = arith.subi %c7_i32_305, %c6_i32 : i32
    %c8_i32_306 = arith.constant 8 : i32
    %755 = arith.muli %c6_i32, %c8_i32_306 : i32
    %756 = tpu.assume_multiple %755, 8 : i32
    %c8_i32_307 = arith.constant 8 : i32
    %757 = arith.muli %754, %c8_i32_307 : i32
    %758 = tpu.assume_multiple %757, 8 : i32
    %c0_308 = arith.constant 0 : index
    %c0_309 = arith.constant 0 : index
    %759 = arith.index_cast %756 : i32 to index
    %c0_310 = arith.constant 0 : index
    %760 = vector.load %arg10[%c0_308, %c0_309, %759, %c0_310] : memref<2x3x64x32xf32, #tpu.memory_space<vmem>>, vector<1x1x8x32xf32>
    %761 = vector.shape_cast %760 : vector<1x1x8x32xf32> to vector<8x32xf32>
    %c0_311 = arith.constant 0 : index
    %c1_312 = arith.constant 1 : index
    %762 = arith.index_cast %756 : i32 to index
    %c0_313 = arith.constant 0 : index
    %763 = vector.load %arg10[%c0_311, %c1_312, %762, %c0_313] : memref<2x3x64x32xf32, #tpu.memory_space<vmem>>, vector<1x1x8x32xf32>
    %764 = vector.shape_cast %763 : vector<1x1x8x32xf32> to vector<8x32xf32>
    %c0_314 = arith.constant 0 : index
    %c2_315 = arith.constant 2 : index
    %765 = arith.index_cast %756 : i32 to index
    %c0_316 = arith.constant 0 : index
    %766 = vector.load %arg10[%c0_314, %c2_315, %765, %c0_316] : memref<2x3x64x32xf32, #tpu.memory_space<vmem>>, vector<1x1x8x32xf32>
    %767 = vector.shape_cast %766 : vector<1x1x8x32xf32> to vector<8x32xf32>
    %c1_317 = arith.constant 1 : index
    %c0_318 = arith.constant 0 : index
    %768 = arith.index_cast %758 : i32 to index
    %c0_319 = arith.constant 0 : index
    %769 = vector.load %arg10[%c1_317, %c0_318, %768, %c0_319] : memref<2x3x64x32xf32, #tpu.memory_space<vmem>>, vector<1x1x8x32xf32>
    %770 = vector.shape_cast %769 : vector<1x1x8x32xf32> to vector<8x32xf32>
    %c1_320 = arith.constant 1 : index
    %c1_321 = arith.constant 1 : index
    %771 = arith.index_cast %758 : i32 to index
    %c0_322 = arith.constant 0 : index
    %772 = vector.load %arg10[%c1_320, %c1_321, %771, %c0_322] : memref<2x3x64x32xf32, #tpu.memory_space<vmem>>, vector<1x1x8x32xf32>
    %773 = vector.shape_cast %772 : vector<1x1x8x32xf32> to vector<8x32xf32>
    %c1_323 = arith.constant 1 : index
    %c2_324 = arith.constant 2 : index
    %774 = arith.index_cast %758 : i32 to index
    %c0_325 = arith.constant 0 : index
    %775 = vector.load %arg10[%c1_323, %c2_324, %774, %c0_325] : memref<2x3x64x32xf32, #tpu.memory_space<vmem>>, vector<1x1x8x32xf32>
    %776 = vector.shape_cast %775 : vector<1x1x8x32xf32> to vector<8x32xf32>
    %777 = vector.extract_strided_slice %61 {offsets = [0, 0, 0, 0], sizes = [1, 3, 32, 32], strides = [1, 1, 1, 1]} : vector<2x3x32x32xf32> to vector<1x3x32x32xf32>
    %778 = vector.shape_cast %777 : vector<1x3x32x32xf32> to vector<3x32x32xf32>
    %779 = vector.extract_strided_slice %62 {offsets = [0, 0, 0, 0], sizes = [1, 3, 8, 32], strides = [1, 1, 1, 1]} : vector<2x3x8x32xf32> to vector<1x3x8x32xf32>
    %780 = vector.shape_cast %779 : vector<1x3x8x32xf32> to vector<3x8x32xf32>
    %781 = vector.extract_strided_slice %778 {offsets = [0, 0, 0], sizes = [1, 32, 32], strides = [1, 1, 1]} : vector<3x32x32xf32> to vector<1x32x32xf32>
    %782 = vector.shape_cast %781 : vector<1x32x32xf32> to vector<32x32xf32>
    %cst_326 = arith.constant dense<0.000000e+00> : vector<8x32xf32>
    %783 = tpu.matmul %703, %782, %cst_326 {dimension_numbers = #tpu.dot_dimension_numbers<[1], [0], [0], [1], [0, 0, 1, 1], [], []>} : vector<8x32xf32>, vector<32x32xf32>, vector<8x32xf32> -> vector<8x32xf32>
    %784 = vector.extract_strided_slice %780 {offsets = [0, 0, 0], sizes = [1, 8, 32], strides = [1, 1, 1]} : vector<3x8x32xf32> to vector<1x8x32xf32>
    %785 = vector.shape_cast %784 : vector<1x8x32xf32> to vector<8x32xf32>
    %786 = arith.addf %783, %785 : vector<8x32xf32>
    %787 = vector.extract_strided_slice %778 {offsets = [1, 0, 0], sizes = [1, 32, 32], strides = [1, 1, 1]} : vector<3x32x32xf32> to vector<1x32x32xf32>
    %788 = vector.shape_cast %787 : vector<1x32x32xf32> to vector<32x32xf32>
    %cst_327 = arith.constant dense<0.000000e+00> : vector<8x32xf32>
    %789 = tpu.matmul %703, %788, %cst_327 {dimension_numbers = #tpu.dot_dimension_numbers<[1], [0], [0], [1], [0, 0, 1, 1], [], []>} : vector<8x32xf32>, vector<32x32xf32>, vector<8x32xf32> -> vector<8x32xf32>
    %790 = vector.extract_strided_slice %780 {offsets = [1, 0, 0], sizes = [1, 8, 32], strides = [1, 1, 1]} : vector<3x8x32xf32> to vector<1x8x32xf32>
    %791 = vector.shape_cast %790 : vector<1x8x32xf32> to vector<8x32xf32>
    %792 = arith.addf %789, %791 : vector<8x32xf32>
    %793 = vector.extract_strided_slice %778 {offsets = [2, 0, 0], sizes = [1, 32, 32], strides = [1, 1, 1]} : vector<3x32x32xf32> to vector<1x32x32xf32>
    %794 = vector.shape_cast %793 : vector<1x32x32xf32> to vector<32x32xf32>
    %cst_328 = arith.constant dense<0.000000e+00> : vector<8x32xf32>
    %795 = tpu.matmul %703, %794, %cst_328 {dimension_numbers = #tpu.dot_dimension_numbers<[1], [0], [0], [1], [0, 0, 1, 1], [], []>} : vector<8x32xf32>, vector<32x32xf32>, vector<8x32xf32> -> vector<8x32xf32>
    %796 = vector.extract_strided_slice %780 {offsets = [2, 0, 0], sizes = [1, 8, 32], strides = [1, 1, 1]} : vector<3x8x32xf32> to vector<1x8x32xf32>
    %797 = vector.shape_cast %796 : vector<1x8x32xf32> to vector<8x32xf32>
    %798 = arith.addf %795, %797 : vector<8x32xf32>
    %799 = arith.addf %761, %786 : vector<8x32xf32>
    %800 = arith.negf %799 : vector<8x32xf32>
    %801 = math.exp %800 : vector<8x32xf32>
    %cst_329 = arith.constant 1.000000e+00 : f32
    %802 = vector.broadcast %cst_329 : f32 to vector<8x32xf32>
    %803 = arith.addf %802, %801 : vector<8x32xf32>
    %804 = arith.divf %802, %803 : vector<8x32xf32>
    %805 = arith.addf %764, %792 : vector<8x32xf32>
    %806 = arith.negf %805 : vector<8x32xf32>
    %807 = math.exp %806 : vector<8x32xf32>
    %cst_330 = arith.constant 1.000000e+00 : f32
    %808 = vector.broadcast %cst_330 : f32 to vector<8x32xf32>
    %809 = arith.addf %808, %807 : vector<8x32xf32>
    %810 = arith.divf %808, %809 : vector<8x32xf32>
    %811 = arith.mulf %804, %798 : vector<8x32xf32>
    %812 = arith.addf %767, %811 : vector<8x32xf32>
    %813 = math.tanh %812 : vector<8x32xf32>
    %cst_331 = arith.constant 1.000000e+00 : f32
    %814 = vector.broadcast %cst_331 : f32 to vector<8x32xf32>
    %815 = arith.subf %814, %810 : vector<8x32xf32>
    %816 = arith.mulf %815, %813 : vector<8x32xf32>
    %817 = arith.mulf %810, %703 : vector<8x32xf32>
    %818 = arith.addf %816, %817 : vector<8x32xf32>
    %819 = vector.extract_strided_slice %61 {offsets = [1, 0, 0, 0], sizes = [1, 3, 32, 32], strides = [1, 1, 1, 1]} : vector<2x3x32x32xf32> to vector<1x3x32x32xf32>
    %820 = vector.shape_cast %819 : vector<1x3x32x32xf32> to vector<3x32x32xf32>
    %821 = vector.extract_strided_slice %62 {offsets = [1, 0, 0, 0], sizes = [1, 3, 8, 32], strides = [1, 1, 1, 1]} : vector<2x3x8x32xf32> to vector<1x3x8x32xf32>
    %822 = vector.shape_cast %821 : vector<1x3x8x32xf32> to vector<3x8x32xf32>
    %823 = vector.extract_strided_slice %820 {offsets = [0, 0, 0], sizes = [1, 32, 32], strides = [1, 1, 1]} : vector<3x32x32xf32> to vector<1x32x32xf32>
    %824 = vector.shape_cast %823 : vector<1x32x32xf32> to vector<32x32xf32>
    %cst_332 = arith.constant dense<0.000000e+00> : vector<8x32xf32>
    %825 = tpu.matmul %745, %824, %cst_332 {dimension_numbers = #tpu.dot_dimension_numbers<[1], [0], [0], [1], [0, 0, 1, 1], [], []>} : vector<8x32xf32>, vector<32x32xf32>, vector<8x32xf32> -> vector<8x32xf32>
    %826 = vector.extract_strided_slice %822 {offsets = [0, 0, 0], sizes = [1, 8, 32], strides = [1, 1, 1]} : vector<3x8x32xf32> to vector<1x8x32xf32>
    %827 = vector.shape_cast %826 : vector<1x8x32xf32> to vector<8x32xf32>
    %828 = arith.addf %825, %827 : vector<8x32xf32>
    %829 = vector.extract_strided_slice %820 {offsets = [1, 0, 0], sizes = [1, 32, 32], strides = [1, 1, 1]} : vector<3x32x32xf32> to vector<1x32x32xf32>
    %830 = vector.shape_cast %829 : vector<1x32x32xf32> to vector<32x32xf32>
    %cst_333 = arith.constant dense<0.000000e+00> : vector<8x32xf32>
    %831 = tpu.matmul %745, %830, %cst_333 {dimension_numbers = #tpu.dot_dimension_numbers<[1], [0], [0], [1], [0, 0, 1, 1], [], []>} : vector<8x32xf32>, vector<32x32xf32>, vector<8x32xf32> -> vector<8x32xf32>
    %832 = vector.extract_strided_slice %822 {offsets = [1, 0, 0], sizes = [1, 8, 32], strides = [1, 1, 1]} : vector<3x8x32xf32> to vector<1x8x32xf32>
    %833 = vector.shape_cast %832 : vector<1x8x32xf32> to vector<8x32xf32>
    %834 = arith.addf %831, %833 : vector<8x32xf32>
    %835 = vector.extract_strided_slice %820 {offsets = [2, 0, 0], sizes = [1, 32, 32], strides = [1, 1, 1]} : vector<3x32x32xf32> to vector<1x32x32xf32>
    %836 = vector.shape_cast %835 : vector<1x32x32xf32> to vector<32x32xf32>
    %cst_334 = arith.constant dense<0.000000e+00> : vector<8x32xf32>
    %837 = tpu.matmul %745, %836, %cst_334 {dimension_numbers = #tpu.dot_dimension_numbers<[1], [0], [0], [1], [0, 0, 1, 1], [], []>} : vector<8x32xf32>, vector<32x32xf32>, vector<8x32xf32> -> vector<8x32xf32>
    %838 = vector.extract_strided_slice %822 {offsets = [2, 0, 0], sizes = [1, 8, 32], strides = [1, 1, 1]} : vector<3x8x32xf32> to vector<1x8x32xf32>
    %839 = vector.shape_cast %838 : vector<1x8x32xf32> to vector<8x32xf32>
    %840 = arith.addf %837, %839 : vector<8x32xf32>
    %841 = arith.addf %770, %828 : vector<8x32xf32>
    %842 = arith.negf %841 : vector<8x32xf32>
    %843 = math.exp %842 : vector<8x32xf32>
    %cst_335 = arith.constant 1.000000e+00 : f32
    %844 = vector.broadcast %cst_335 : f32 to vector<8x32xf32>
    %845 = arith.addf %844, %843 : vector<8x32xf32>
    %846 = arith.divf %844, %845 : vector<8x32xf32>
    %847 = arith.addf %773, %834 : vector<8x32xf32>
    %848 = arith.negf %847 : vector<8x32xf32>
    %849 = math.exp %848 : vector<8x32xf32>
    %cst_336 = arith.constant 1.000000e+00 : f32
    %850 = vector.broadcast %cst_336 : f32 to vector<8x32xf32>
    %851 = arith.addf %850, %849 : vector<8x32xf32>
    %852 = arith.divf %850, %851 : vector<8x32xf32>
    %853 = arith.mulf %846, %840 : vector<8x32xf32>
    %854 = arith.addf %776, %853 : vector<8x32xf32>
    %855 = math.tanh %854 : vector<8x32xf32>
    %cst_337 = arith.constant 1.000000e+00 : f32
    %856 = vector.broadcast %cst_337 : f32 to vector<8x32xf32>
    %857 = arith.subf %856, %852 : vector<8x32xf32>
    %858 = arith.mulf %857, %855 : vector<8x32xf32>
    %859 = arith.mulf %852, %745 : vector<8x32xf32>
    %860 = arith.addf %858, %859 : vector<8x32xf32>
    %c0_338 = arith.constant 0 : index
    %861 = arith.index_cast %756 : i32 to index
    %c0_339 = arith.constant 0 : index
    %862 = vector.load %arg11[%c0_338, %861, %c0_339] : memref<2x64x32xf32, #tpu.memory_space<vmem>>, vector<1x8x32xf32>
    %863 = vector.shape_cast %862 : vector<1x8x32xf32> to vector<8x32xf32>
    %864 = vector.shape_cast %818 : vector<8x32xf32> to vector<1x8x32xf32>
    tpu.vector_store %arg11[%c0_338, %861, %c0_339], %864 {strides = array<i32>} : memref<2x64x32xf32, #tpu.memory_space<vmem>>, vector<1x8x32xf32>,
    %c1_340 = arith.constant 1 : index
    %865 = arith.index_cast %758 : i32 to index
    %c0_341 = arith.constant 0 : index
    %866 = vector.load %arg11[%c1_340, %865, %c0_341] : memref<2x64x32xf32, #tpu.memory_space<vmem>>, vector<1x8x32xf32>
    %867 = vector.shape_cast %866 : vector<1x8x32xf32> to vector<8x32xf32>
    %868 = vector.shape_cast %860 : vector<8x32xf32> to vector<1x8x32xf32>
    tpu.vector_store %arg11[%c1_340, %865, %c0_341], %868 {strides = array<i32>} : memref<2x64x32xf32, #tpu.memory_space<vmem>>, vector<1x8x32xf32>,
    %c7_i32_342 = arith.constant 7 : i32
    %c7_i32_343 = arith.constant 7 : i32
    %869 = arith.subi %c7_i32_343, %c7_i32_342 : i32
    %c8_i32_344 = arith.constant 8 : i32
    %870 = arith.muli %c7_i32_342, %c8_i32_344 : i32
    %871 = tpu.assume_multiple %870, 8 : i32
    %c8_i32_345 = arith.constant 8 : i32
    %872 = arith.muli %869, %c8_i32_345 : i32
    %873 = tpu.assume_multiple %872, 8 : i32
    %c0_346 = arith.constant 0 : index
    %c0_347 = arith.constant 0 : index
    %874 = arith.index_cast %871 : i32 to index
    %c0_348 = arith.constant 0 : index
    %875 = vector.load %arg10[%c0_346, %c0_347, %874, %c0_348] : memref<2x3x64x32xf32, #tpu.memory_space<vmem>>, vector<1x1x8x32xf32>
    %876 = vector.shape_cast %875 : vector<1x1x8x32xf32> to vector<8x32xf32>
    %c0_349 = arith.constant 0 : index
    %c1_350 = arith.constant 1 : index
    %877 = arith.index_cast %871 : i32 to index
    %c0_351 = arith.constant 0 : index
    %878 = vector.load %arg10[%c0_349, %c1_350, %877, %c0_351] : memref<2x3x64x32xf32, #tpu.memory_space<vmem>>, vector<1x1x8x32xf32>
    %879 = vector.shape_cast %878 : vector<1x1x8x32xf32> to vector<8x32xf32>
    %c0_352 = arith.constant 0 : index
    %c2_353 = arith.constant 2 : index
    %880 = arith.index_cast %871 : i32 to index
    %c0_354 = arith.constant 0 : index
    %881 = vector.load %arg10[%c0_352, %c2_353, %880, %c0_354] : memref<2x3x64x32xf32, #tpu.memory_space<vmem>>, vector<1x1x8x32xf32>
    %882 = vector.shape_cast %881 : vector<1x1x8x32xf32> to vector<8x32xf32>
    %c1_355 = arith.constant 1 : index
    %c0_356 = arith.constant 0 : index
    %883 = arith.index_cast %873 : i32 to index
    %c0_357 = arith.constant 0 : index
    %884 = vector.load %arg10[%c1_355, %c0_356, %883, %c0_357] : memref<2x3x64x32xf32, #tpu.memory_space<vmem>>, vector<1x1x8x32xf32>
    %885 = vector.shape_cast %884 : vector<1x1x8x32xf32> to vector<8x32xf32>
    %c1_358 = arith.constant 1 : index
    %c1_359 = arith.constant 1 : index
    %886 = arith.index_cast %873 : i32 to index
    %c0_360 = arith.constant 0 : index
    %887 = vector.load %arg10[%c1_358, %c1_359, %886, %c0_360] : memref<2x3x64x32xf32, #tpu.memory_space<vmem>>, vector<1x1x8x32xf32>
    %888 = vector.shape_cast %887 : vector<1x1x8x32xf32> to vector<8x32xf32>
    %c1_361 = arith.constant 1 : index
    %c2_362 = arith.constant 2 : index
    %889 = arith.index_cast %873 : i32 to index
    %c0_363 = arith.constant 0 : index
    %890 = vector.load %arg10[%c1_361, %c2_362, %889, %c0_363] : memref<2x3x64x32xf32, #tpu.memory_space<vmem>>, vector<1x1x8x32xf32>
    %891 = vector.shape_cast %890 : vector<1x1x8x32xf32> to vector<8x32xf32>
    %892 = vector.extract_strided_slice %61 {offsets = [0, 0, 0, 0], sizes = [1, 3, 32, 32], strides = [1, 1, 1, 1]} : vector<2x3x32x32xf32> to vector<1x3x32x32xf32>
    %893 = vector.shape_cast %892 : vector<1x3x32x32xf32> to vector<3x32x32xf32>
    %894 = vector.extract_strided_slice %62 {offsets = [0, 0, 0, 0], sizes = [1, 3, 8, 32], strides = [1, 1, 1, 1]} : vector<2x3x8x32xf32> to vector<1x3x8x32xf32>
    %895 = vector.shape_cast %894 : vector<1x3x8x32xf32> to vector<3x8x32xf32>
    %896 = vector.extract_strided_slice %893 {offsets = [0, 0, 0], sizes = [1, 32, 32], strides = [1, 1, 1]} : vector<3x32x32xf32> to vector<1x32x32xf32>
    %897 = vector.shape_cast %896 : vector<1x32x32xf32> to vector<32x32xf32>
    %cst_364 = arith.constant dense<0.000000e+00> : vector<8x32xf32>
    %898 = tpu.matmul %818, %897, %cst_364 {dimension_numbers = #tpu.dot_dimension_numbers<[1], [0], [0], [1], [0, 0, 1, 1], [], []>} : vector<8x32xf32>, vector<32x32xf32>, vector<8x32xf32> -> vector<8x32xf32>
    %899 = vector.extract_strided_slice %895 {offsets = [0, 0, 0], sizes = [1, 8, 32], strides = [1, 1, 1]} : vector<3x8x32xf32> to vector<1x8x32xf32>
    %900 = vector.shape_cast %899 : vector<1x8x32xf32> to vector<8x32xf32>
    %901 = arith.addf %898, %900 : vector<8x32xf32>
    %902 = vector.extract_strided_slice %893 {offsets = [1, 0, 0], sizes = [1, 32, 32], strides = [1, 1, 1]} : vector<3x32x32xf32> to vector<1x32x32xf32>
    %903 = vector.shape_cast %902 : vector<1x32x32xf32> to vector<32x32xf32>
    %cst_365 = arith.constant dense<0.000000e+00> : vector<8x32xf32>
    %904 = tpu.matmul %818, %903, %cst_365 {dimension_numbers = #tpu.dot_dimension_numbers<[1], [0], [0], [1], [0, 0, 1, 1], [], []>} : vector<8x32xf32>, vector<32x32xf32>, vector<8x32xf32> -> vector<8x32xf32>
    %905 = vector.extract_strided_slice %895 {offsets = [1, 0, 0], sizes = [1, 8, 32], strides = [1, 1, 1]} : vector<3x8x32xf32> to vector<1x8x32xf32>
    %906 = vector.shape_cast %905 : vector<1x8x32xf32> to vector<8x32xf32>
    %907 = arith.addf %904, %906 : vector<8x32xf32>
    %908 = vector.extract_strided_slice %893 {offsets = [2, 0, 0], sizes = [1, 32, 32], strides = [1, 1, 1]} : vector<3x32x32xf32> to vector<1x32x32xf32>
    %909 = vector.shape_cast %908 : vector<1x32x32xf32> to vector<32x32xf32>
    %cst_366 = arith.constant dense<0.000000e+00> : vector<8x32xf32>
    %910 = tpu.matmul %818, %909, %cst_366 {dimension_numbers = #tpu.dot_dimension_numbers<[1], [0], [0], [1], [0, 0, 1, 1], [], []>} : vector<8x32xf32>, vector<32x32xf32>, vector<8x32xf32> -> vector<8x32xf32>
    %911 = vector.extract_strided_slice %895 {offsets = [2, 0, 0], sizes = [1, 8, 32], strides = [1, 1, 1]} : vector<3x8x32xf32> to vector<1x8x32xf32>
    %912 = vector.shape_cast %911 : vector<1x8x32xf32> to vector<8x32xf32>
    %913 = arith.addf %910, %912 : vector<8x32xf32>
    %914 = arith.addf %876, %901 : vector<8x32xf32>
    %915 = arith.negf %914 : vector<8x32xf32>
    %916 = math.exp %915 : vector<8x32xf32>
    %cst_367 = arith.constant 1.000000e+00 : f32
    %917 = vector.broadcast %cst_367 : f32 to vector<8x32xf32>
    %918 = arith.addf %917, %916 : vector<8x32xf32>
    %919 = arith.divf %917, %918 : vector<8x32xf32>
    %920 = arith.addf %879, %907 : vector<8x32xf32>
    %921 = arith.negf %920 : vector<8x32xf32>
    %922 = math.exp %921 : vector<8x32xf32>
    %cst_368 = arith.constant 1.000000e+00 : f32
    %923 = vector.broadcast %cst_368 : f32 to vector<8x32xf32>
    %924 = arith.addf %923, %922 : vector<8x32xf32>
    %925 = arith.divf %923, %924 : vector<8x32xf32>
    %926 = arith.mulf %919, %913 : vector<8x32xf32>
    %927 = arith.addf %882, %926 : vector<8x32xf32>
    %928 = math.tanh %927 : vector<8x32xf32>
    %cst_369 = arith.constant 1.000000e+00 : f32
    %929 = vector.broadcast %cst_369 : f32 to vector<8x32xf32>
    %930 = arith.subf %929, %925 : vector<8x32xf32>
    %931 = arith.mulf %930, %928 : vector<8x32xf32>
    %932 = arith.mulf %925, %818 : vector<8x32xf32>
    %933 = arith.addf %931, %932 : vector<8x32xf32>
    %934 = vector.extract_strided_slice %61 {offsets = [1, 0, 0, 0], sizes = [1, 3, 32, 32], strides = [1, 1, 1, 1]} : vector<2x3x32x32xf32> to vector<1x3x32x32xf32>
    %935 = vector.shape_cast %934 : vector<1x3x32x32xf32> to vector<3x32x32xf32>
    %936 = vector.extract_strided_slice %62 {offsets = [1, 0, 0, 0], sizes = [1, 3, 8, 32], strides = [1, 1, 1, 1]} : vector<2x3x8x32xf32> to vector<1x3x8x32xf32>
    %937 = vector.shape_cast %936 : vector<1x3x8x32xf32> to vector<3x8x32xf32>
    %938 = vector.extract_strided_slice %935 {offsets = [0, 0, 0], sizes = [1, 32, 32], strides = [1, 1, 1]} : vector<3x32x32xf32> to vector<1x32x32xf32>
    %939 = vector.shape_cast %938 : vector<1x32x32xf32> to vector<32x32xf32>
    %cst_370 = arith.constant dense<0.000000e+00> : vector<8x32xf32>
    %940 = tpu.matmul %860, %939, %cst_370 {dimension_numbers = #tpu.dot_dimension_numbers<[1], [0], [0], [1], [0, 0, 1, 1], [], []>} : vector<8x32xf32>, vector<32x32xf32>, vector<8x32xf32> -> vector<8x32xf32>
    %941 = vector.extract_strided_slice %937 {offsets = [0, 0, 0], sizes = [1, 8, 32], strides = [1, 1, 1]} : vector<3x8x32xf32> to vector<1x8x32xf32>
    %942 = vector.shape_cast %941 : vector<1x8x32xf32> to vector<8x32xf32>
    %943 = arith.addf %940, %942 : vector<8x32xf32>
    %944 = vector.extract_strided_slice %935 {offsets = [1, 0, 0], sizes = [1, 32, 32], strides = [1, 1, 1]} : vector<3x32x32xf32> to vector<1x32x32xf32>
    %945 = vector.shape_cast %944 : vector<1x32x32xf32> to vector<32x32xf32>
    %cst_371 = arith.constant dense<0.000000e+00> : vector<8x32xf32>
    %946 = tpu.matmul %860, %945, %cst_371 {dimension_numbers = #tpu.dot_dimension_numbers<[1], [0], [0], [1], [0, 0, 1, 1], [], []>} : vector<8x32xf32>, vector<32x32xf32>, vector<8x32xf32> -> vector<8x32xf32>
    %947 = vector.extract_strided_slice %937 {offsets = [1, 0, 0], sizes = [1, 8, 32], strides = [1, 1, 1]} : vector<3x8x32xf32> to vector<1x8x32xf32>
    %948 = vector.shape_cast %947 : vector<1x8x32xf32> to vector<8x32xf32>
    %949 = arith.addf %946, %948 : vector<8x32xf32>
    %950 = vector.extract_strided_slice %935 {offsets = [2, 0, 0], sizes = [1, 32, 32], strides = [1, 1, 1]} : vector<3x32x32xf32> to vector<1x32x32xf32>
    %951 = vector.shape_cast %950 : vector<1x32x32xf32> to vector<32x32xf32>
    %cst_372 = arith.constant dense<0.000000e+00> : vector<8x32xf32>
    %952 = tpu.matmul %860, %951, %cst_372 {dimension_numbers = #tpu.dot_dimension_numbers<[1], [0], [0], [1], [0, 0, 1, 1], [], []>} : vector<8x32xf32>, vector<32x32xf32>, vector<8x32xf32> -> vector<8x32xf32>
    %953 = vector.extract_strided_slice %937 {offsets = [2, 0, 0], sizes = [1, 8, 32], strides = [1, 1, 1]} : vector<3x8x32xf32> to vector<1x8x32xf32>
    %954 = vector.shape_cast %953 : vector<1x8x32xf32> to vector<8x32xf32>
    %955 = arith.addf %952, %954 : vector<8x32xf32>
    %956 = arith.addf %885, %943 : vector<8x32xf32>
    %957 = arith.negf %956 : vector<8x32xf32>
    %958 = math.exp %957 : vector<8x32xf32>
    %cst_373 = arith.constant 1.000000e+00 : f32
    %959 = vector.broadcast %cst_373 : f32 to vector<8x32xf32>
    %960 = arith.addf %959, %958 : vector<8x32xf32>
    %961 = arith.divf %959, %960 : vector<8x32xf32>
    %962 = arith.addf %888, %949 : vector<8x32xf32>
    %963 = arith.negf %962 : vector<8x32xf32>
    %964 = math.exp %963 : vector<8x32xf32>
    %cst_374 = arith.constant 1.000000e+00 : f32
    %965 = vector.broadcast %cst_374 : f32 to vector<8x32xf32>
    %966 = arith.addf %965, %964 : vector<8x32xf32>
    %967 = arith.divf %965, %966 : vector<8x32xf32>
    %968 = arith.mulf %961, %955 : vector<8x32xf32>
    %969 = arith.addf %891, %968 : vector<8x32xf32>
    %970 = math.tanh %969 : vector<8x32xf32>
    %cst_375 = arith.constant 1.000000e+00 : f32
    %971 = vector.broadcast %cst_375 : f32 to vector<8x32xf32>
    %972 = arith.subf %971, %967 : vector<8x32xf32>
    %973 = arith.mulf %972, %970 : vector<8x32xf32>
    %974 = arith.mulf %967, %860 : vector<8x32xf32>
    %975 = arith.addf %973, %974 : vector<8x32xf32>
    %c0_376 = arith.constant 0 : index
    %976 = arith.index_cast %871 : i32 to index
    %c0_377 = arith.constant 0 : index
    %977 = vector.load %arg11[%c0_376, %976, %c0_377] : memref<2x64x32xf32, #tpu.memory_space<vmem>>, vector<1x8x32xf32>
    %978 = vector.shape_cast %977 : vector<1x8x32xf32> to vector<8x32xf32>
    %979 = vector.shape_cast %933 : vector<8x32xf32> to vector<1x8x32xf32>
    tpu.vector_store %arg11[%c0_376, %976, %c0_377], %979 {strides = array<i32>} : memref<2x64x32xf32, #tpu.memory_space<vmem>>, vector<1x8x32xf32>,
    %c1_378 = arith.constant 1 : index
    %980 = arith.index_cast %873 : i32 to index
    %c0_379 = arith.constant 0 : index
    %981 = vector.load %arg11[%c1_378, %980, %c0_379] : memref<2x64x32xf32, #tpu.memory_space<vmem>>, vector<1x8x32xf32>
    %982 = vector.shape_cast %981 : vector<1x8x32xf32> to vector<8x32xf32>
    %983 = vector.shape_cast %975 : vector<8x32xf32> to vector<1x8x32xf32>
    tpu.vector_store %arg11[%c1_378, %980, %c0_379], %983 {strides = array<i32>} : memref<2x64x32xf32, #tpu.memory_space<vmem>>, vector<1x8x32xf32>,
    %c8_i32_380 = arith.constant 8 : i32
    %c0_381 = arith.constant 0 : index
    %c0_382 = arith.constant 0 : index
    %c0_383 = arith.constant 0 : index
    %984 = vector.load %arg11[%c0_381, %c0_382, %c0_383] : memref<2x64x32xf32, #tpu.memory_space<vmem>>, vector<1x64x32xf32>
    %985 = vector.shape_cast %984 : vector<1x64x32xf32> to vector<64x32xf32>
    %c1_384 = arith.constant 1 : index
    %c0_385 = arith.constant 0 : index
    %c0_386 = arith.constant 0 : index
    %986 = vector.load %arg11[%c1_384, %c0_385, %c0_386] : memref<2x64x32xf32, #tpu.memory_space<vmem>>, vector<1x64x32xf32>
    %987 = vector.shape_cast %986 : vector<1x64x32xf32> to vector<64x32xf32>
    %c0_387 = arith.constant 0 : index
    %c0_388 = arith.constant 0 : index
    %c0_389 = arith.constant 0 : index
    %c0_390 = arith.constant 0 : index
    %c0_391 = arith.constant 0 : index
    %988 = vector.load %arg5[%c0_387, %c0_388, %c0_389, %c0_390, %c0_391] : memref<2x2x3x32x32xf32, #tpu.memory_space<vmem>>, vector<1x1x1x32x32xf32>
    %989 = vector.shape_cast %988 : vector<1x1x1x32x32xf32> to vector<32x32xf32>
    %cst_392 = arith.constant dense<0.000000e+00> : vector<64x32xf32>
    %990 = tpu.matmul %985, %989, %cst_392 {dimension_numbers = #tpu.dot_dimension_numbers<[1], [0], [0], [1], [0, 0, 1, 1], [], []>} : vector<64x32xf32>, vector<32x32xf32>, vector<64x32xf32> -> vector<64x32xf32>
    %c1_393 = arith.constant 1 : index
    %c0_394 = arith.constant 0 : index
    %c0_395 = arith.constant 0 : index
    %c0_396 = arith.constant 0 : index
    %c0_397 = arith.constant 0 : index
    %991 = vector.load %arg5[%c1_393, %c0_394, %c0_395, %c0_396, %c0_397] : memref<2x2x3x32x32xf32, #tpu.memory_space<vmem>>, vector<1x1x1x32x32xf32>
    %992 = vector.shape_cast %991 : vector<1x1x1x32x32xf32> to vector<32x32xf32>
    %cst_398 = arith.constant dense<0.000000e+00> : vector<64x32xf32>
    %993 = tpu.matmul %987, %992, %cst_398 {dimension_numbers = #tpu.dot_dimension_numbers<[1], [0], [0], [1], [0, 0, 1, 1], [], []>} : vector<64x32xf32>, vector<32x32xf32>, vector<64x32xf32> -> vector<64x32xf32>
    %994 = arith.addf %990, %993 : vector<64x32xf32>
    %c0_399 = arith.constant 0 : index
    %c0_400 = arith.constant 0 : index
    %c0_401 = arith.constant 0 : index
    %c0_402 = arith.constant 0 : index
    %995 = vector.load %arg6[%c0_399, %c0_400, %c0_401, %c0_402] : memref<2x3x1x32xf32, #tpu.memory_space<vmem>>, vector<1x1x1x32xf32>
    %996 = vector.shape_cast %995 : vector<1x1x1x32xf32> to vector<1x32xf32>
    %997 = vector.broadcast %996 : vector<1x32xf32> to vector<64x32xf32>
    %998 = arith.addf %994, %997 : vector<64x32xf32>
    %c0_403 = arith.constant 0 : index
    %c0_404 = arith.constant 0 : index
    %c0_405 = arith.constant 0 : index
    %c0_406 = arith.constant 0 : index
    %999 = vector.load %arg10[%c0_403, %c0_404, %c0_405, %c0_406] : memref<2x3x64x32xf32, #tpu.memory_space<vmem>>, vector<1x1x64x32xf32>
    %1000 = vector.shape_cast %999 : vector<1x1x64x32xf32> to vector<64x32xf32>
    %1001 = vector.shape_cast %998 : vector<64x32xf32> to vector<1x1x64x32xf32>
    tpu.vector_store %arg10[%c0_403, %c0_404, %c0_405, %c0_406], %1001 {strides = array<i32>} : memref<2x3x64x32xf32, #tpu.memory_space<vmem>>, vector<1x1x64x32xf32>,
    %c0_407 = arith.constant 0 : index
    %c0_408 = arith.constant 0 : index
    %c1_409 = arith.constant 1 : index
    %c0_410 = arith.constant 0 : index
    %c0_411 = arith.constant 0 : index
    %1002 = vector.load %arg5[%c0_407, %c0_408, %c1_409, %c0_410, %c0_411] : memref<2x2x3x32x32xf32, #tpu.memory_space<vmem>>, vector<1x1x1x32x32xf32>
    %1003 = vector.shape_cast %1002 : vector<1x1x1x32x32xf32> to vector<32x32xf32>
    %cst_412 = arith.constant dense<0.000000e+00> : vector<64x32xf32>
    %1004 = tpu.matmul %985, %1003, %cst_412 {dimension_numbers = #tpu.dot_dimension_numbers<[1], [0], [0], [1], [0, 0, 1, 1], [], []>} : vector<64x32xf32>, vector<32x32xf32>, vector<64x32xf32> -> vector<64x32xf32>
    %c1_413 = arith.constant 1 : index
    %c0_414 = arith.constant 0 : index
    %c1_415 = arith.constant 1 : index
    %c0_416 = arith.constant 0 : index
    %c0_417 = arith.constant 0 : index
    %1005 = vector.load %arg5[%c1_413, %c0_414, %c1_415, %c0_416, %c0_417] : memref<2x2x3x32x32xf32, #tpu.memory_space<vmem>>, vector<1x1x1x32x32xf32>
    %1006 = vector.shape_cast %1005 : vector<1x1x1x32x32xf32> to vector<32x32xf32>
    %cst_418 = arith.constant dense<0.000000e+00> : vector<64x32xf32>
    %1007 = tpu.matmul %987, %1006, %cst_418 {dimension_numbers = #tpu.dot_dimension_numbers<[1], [0], [0], [1], [0, 0, 1, 1], [], []>} : vector<64x32xf32>, vector<32x32xf32>, vector<64x32xf32> -> vector<64x32xf32>
    %1008 = arith.addf %1004, %1007 : vector<64x32xf32>
    %c0_419 = arith.constant 0 : index
    %c1_420 = arith.constant 1 : index
    %c0_421 = arith.constant 0 : index
    %c0_422 = arith.constant 0 : index
    %1009 = vector.load %arg6[%c0_419, %c1_420, %c0_421, %c0_422] : memref<2x3x1x32xf32, #tpu.memory_space<vmem>>, vector<1x1x1x32xf32>
    %1010 = vector.shape_cast %1009 : vector<1x1x1x32xf32> to vector<1x32xf32>
    %1011 = vector.broadcast %1010 : vector<1x32xf32> to vector<64x32xf32>
    %1012 = arith.addf %1008, %1011 : vector<64x32xf32>
    %c0_423 = arith.constant 0 : index
    %c1_424 = arith.constant 1 : index
    %c0_425 = arith.constant 0 : index
    %c0_426 = arith.constant 0 : index
    %1013 = vector.load %arg10[%c0_423, %c1_424, %c0_425, %c0_426] : memref<2x3x64x32xf32, #tpu.memory_space<vmem>>, vector<1x1x64x32xf32>
    %1014 = vector.shape_cast %1013 : vector<1x1x64x32xf32> to vector<64x32xf32>
    %1015 = vector.shape_cast %1012 : vector<64x32xf32> to vector<1x1x64x32xf32>
    tpu.vector_store %arg10[%c0_423, %c1_424, %c0_425, %c0_426], %1015 {strides = array<i32>} : memref<2x3x64x32xf32, #tpu.memory_space<vmem>>, vector<1x1x64x32xf32>,
    %c0_427 = arith.constant 0 : index
    %c0_428 = arith.constant 0 : index
    %c2_429 = arith.constant 2 : index
    %c0_430 = arith.constant 0 : index
    %c0_431 = arith.constant 0 : index
    %1016 = vector.load %arg5[%c0_427, %c0_428, %c2_429, %c0_430, %c0_431] : memref<2x2x3x32x32xf32, #tpu.memory_space<vmem>>, vector<1x1x1x32x32xf32>
    %1017 = vector.shape_cast %1016 : vector<1x1x1x32x32xf32> to vector<32x32xf32>
    %cst_432 = arith.constant dense<0.000000e+00> : vector<64x32xf32>
    %1018 = tpu.matmul %985, %1017, %cst_432 {dimension_numbers = #tpu.dot_dimension_numbers<[1], [0], [0], [1], [0, 0, 1, 1], [], []>} : vector<64x32xf32>, vector<32x32xf32>, vector<64x32xf32> -> vector<64x32xf32>
    %c1_433 = arith.constant 1 : index
    %c0_434 = arith.constant 0 : index
    %c2_435 = arith.constant 2 : index
    %c0_436 = arith.constant 0 : index
    %c0_437 = arith.constant 0 : index
    %1019 = vector.load %arg5[%c1_433, %c0_434, %c2_435, %c0_436, %c0_437] : memref<2x2x3x32x32xf32, #tpu.memory_space<vmem>>, vector<1x1x1x32x32xf32>
    %1020 = vector.shape_cast %1019 : vector<1x1x1x32x32xf32> to vector<32x32xf32>
    %cst_438 = arith.constant dense<0.000000e+00> : vector<64x32xf32>
    %1021 = tpu.matmul %987, %1020, %cst_438 {dimension_numbers = #tpu.dot_dimension_numbers<[1], [0], [0], [1], [0, 0, 1, 1], [], []>} : vector<64x32xf32>, vector<32x32xf32>, vector<64x32xf32> -> vector<64x32xf32>
    %1022 = arith.addf %1018, %1021 : vector<64x32xf32>
    %c0_439 = arith.constant 0 : index
    %c2_440 = arith.constant 2 : index
    %c0_441 = arith.constant 0 : index
    %c0_442 = arith.constant 0 : index
    %1023 = vector.load %arg6[%c0_439, %c2_440, %c0_441, %c0_442] : memref<2x3x1x32xf32, #tpu.memory_space<vmem>>, vector<1x1x1x32xf32>
    %1024 = vector.shape_cast %1023 : vector<1x1x1x32xf32> to vector<1x32xf32>
    %1025 = vector.broadcast %1024 : vector<1x32xf32> to vector<64x32xf32>
    %1026 = arith.addf %1022, %1025 : vector<64x32xf32>
    %c0_443 = arith.constant 0 : index
    %c2_444 = arith.constant 2 : index
    %c0_445 = arith.constant 0 : index
    %c0_446 = arith.constant 0 : index
    %1027 = vector.load %arg10[%c0_443, %c2_444, %c0_445, %c0_446] : memref<2x3x64x32xf32, #tpu.memory_space<vmem>>, vector<1x1x64x32xf32>
    %1028 = vector.shape_cast %1027 : vector<1x1x64x32xf32> to vector<64x32xf32>
    %1029 = vector.shape_cast %1026 : vector<64x32xf32> to vector<1x1x64x32xf32>
    tpu.vector_store %arg10[%c0_443, %c2_444, %c0_445, %c0_446], %1029 {strides = array<i32>} : memref<2x3x64x32xf32, #tpu.memory_space<vmem>>, vector<1x1x64x32xf32>,
    %c0_447 = arith.constant 0 : index
    %c1_448 = arith.constant 1 : index
    %c0_449 = arith.constant 0 : index
    %c0_450 = arith.constant 0 : index
    %c0_451 = arith.constant 0 : index
    %1030 = vector.load %arg5[%c0_447, %c1_448, %c0_449, %c0_450, %c0_451] : memref<2x2x3x32x32xf32, #tpu.memory_space<vmem>>, vector<1x1x1x32x32xf32>
    %1031 = vector.shape_cast %1030 : vector<1x1x1x32x32xf32> to vector<32x32xf32>
    %cst_452 = arith.constant dense<0.000000e+00> : vector<64x32xf32>
    %1032 = tpu.matmul %985, %1031, %cst_452 {dimension_numbers = #tpu.dot_dimension_numbers<[1], [0], [0], [1], [0, 0, 1, 1], [], []>} : vector<64x32xf32>, vector<32x32xf32>, vector<64x32xf32> -> vector<64x32xf32>
    %c1_453 = arith.constant 1 : index
    %c1_454 = arith.constant 1 : index
    %c0_455 = arith.constant 0 : index
    %c0_456 = arith.constant 0 : index
    %c0_457 = arith.constant 0 : index
    %1033 = vector.load %arg5[%c1_453, %c1_454, %c0_455, %c0_456, %c0_457] : memref<2x2x3x32x32xf32, #tpu.memory_space<vmem>>, vector<1x1x1x32x32xf32>
    %1034 = vector.shape_cast %1033 : vector<1x1x1x32x32xf32> to vector<32x32xf32>
    %cst_458 = arith.constant dense<0.000000e+00> : vector<64x32xf32>
    %1035 = tpu.matmul %987, %1034, %cst_458 {dimension_numbers = #tpu.dot_dimension_numbers<[1], [0], [0], [1], [0, 0, 1, 1], [], []>} : vector<64x32xf32>, vector<32x32xf32>, vector<64x32xf32> -> vector<64x32xf32>
    %1036 = arith.addf %1032, %1035 : vector<64x32xf32>
    %c1_459 = arith.constant 1 : index
    %c0_460 = arith.constant 0 : index
    %c0_461 = arith.constant 0 : index
    %c0_462 = arith.constant 0 : index
    %1037 = vector.load %arg6[%c1_459, %c0_460, %c0_461, %c0_462] : memref<2x3x1x32xf32, #tpu.memory_space<vmem>>, vector<1x1x1x32xf32>
    %1038 = vector.shape_cast %1037 : vector<1x1x1x32xf32> to vector<1x32xf32>
    %1039 = vector.broadcast %1038 : vector<1x32xf32> to vector<64x32xf32>
    %1040 = arith.addf %1036, %1039 : vector<64x32xf32>
    %c1_463 = arith.constant 1 : index
    %c0_464 = arith.constant 0 : index
    %c0_465 = arith.constant 0 : index
    %c0_466 = arith.constant 0 : index
    %1041 = vector.load %arg10[%c1_463, %c0_464, %c0_465, %c0_466] : memref<2x3x64x32xf32, #tpu.memory_space<vmem>>, vector<1x1x64x32xf32>
    %1042 = vector.shape_cast %1041 : vector<1x1x64x32xf32> to vector<64x32xf32>
    %1043 = vector.shape_cast %1040 : vector<64x32xf32> to vector<1x1x64x32xf32>
    tpu.vector_store %arg10[%c1_463, %c0_464, %c0_465, %c0_466], %1043 {strides = array<i32>} : memref<2x3x64x32xf32, #tpu.memory_space<vmem>>, vector<1x1x64x32xf32>,
    %c0_467 = arith.constant 0 : index
    %c1_468 = arith.constant 1 : index
    %c1_469 = arith.constant 1 : index
    %c0_470 = arith.constant 0 : index
    %c0_471 = arith.constant 0 : index
    %1044 = vector.load %arg5[%c0_467, %c1_468, %c1_469, %c0_470, %c0_471] : memref<2x2x3x32x32xf32, #tpu.memory_space<vmem>>, vector<1x1x1x32x32xf32>
    %1045 = vector.shape_cast %1044 : vector<1x1x1x32x32xf32> to vector<32x32xf32>
    %cst_472 = arith.constant dense<0.000000e+00> : vector<64x32xf32>
    %1046 = tpu.matmul %985, %1045, %cst_472 {dimension_numbers = #tpu.dot_dimension_numbers<[1], [0], [0], [1], [0, 0, 1, 1], [], []>} : vector<64x32xf32>, vector<32x32xf32>, vector<64x32xf32> -> vector<64x32xf32>
    %c1_473 = arith.constant 1 : index
    %c1_474 = arith.constant 1 : index
    %c1_475 = arith.constant 1 : index
    %c0_476 = arith.constant 0 : index
    %c0_477 = arith.constant 0 : index
    %1047 = vector.load %arg5[%c1_473, %c1_474, %c1_475, %c0_476, %c0_477] : memref<2x2x3x32x32xf32, #tpu.memory_space<vmem>>, vector<1x1x1x32x32xf32>
    %1048 = vector.shape_cast %1047 : vector<1x1x1x32x32xf32> to vector<32x32xf32>
    %cst_478 = arith.constant dense<0.000000e+00> : vector<64x32xf32>
    %1049 = tpu.matmul %987, %1048, %cst_478 {dimension_numbers = #tpu.dot_dimension_numbers<[1], [0], [0], [1], [0, 0, 1, 1], [], []>} : vector<64x32xf32>, vector<32x32xf32>, vector<64x32xf32> -> vector<64x32xf32>
    %1050 = arith.addf %1046, %1049 : vector<64x32xf32>
    %c1_479 = arith.constant 1 : index
    %c1_480 = arith.constant 1 : index
    %c0_481 = arith.constant 0 : index
    %c0_482 = arith.constant 0 : index
    %1051 = vector.load %arg6[%c1_479, %c1_480, %c0_481, %c0_482] : memref<2x3x1x32xf32, #tpu.memory_space<vmem>>, vector<1x1x1x32xf32>
    %1052 = vector.shape_cast %1051 : vector<1x1x1x32xf32> to vector<1x32xf32>
    %1053 = vector.broadcast %1052 : vector<1x32xf32> to vector<64x32xf32>
    %1054 = arith.addf %1050, %1053 : vector<64x32xf32>
    %c1_483 = arith.constant 1 : index
    %c1_484 = arith.constant 1 : index
    %c0_485 = arith.constant 0 : index
    %c0_486 = arith.constant 0 : index
    %1055 = vector.load %arg10[%c1_483, %c1_484, %c0_485, %c0_486] : memref<2x3x64x32xf32, #tpu.memory_space<vmem>>, vector<1x1x64x32xf32>
    %1056 = vector.shape_cast %1055 : vector<1x1x64x32xf32> to vector<64x32xf32>
    %1057 = vector.shape_cast %1054 : vector<64x32xf32> to vector<1x1x64x32xf32>
    tpu.vector_store %arg10[%c1_483, %c1_484, %c0_485, %c0_486], %1057 {strides = array<i32>} : memref<2x3x64x32xf32, #tpu.memory_space<vmem>>, vector<1x1x64x32xf32>,
    %c0_487 = arith.constant 0 : index
    %c1_488 = arith.constant 1 : index
    %c2_489 = arith.constant 2 : index
    %c0_490 = arith.constant 0 : index
    %c0_491 = arith.constant 0 : index
    %1058 = vector.load %arg5[%c0_487, %c1_488, %c2_489, %c0_490, %c0_491] : memref<2x2x3x32x32xf32, #tpu.memory_space<vmem>>, vector<1x1x1x32x32xf32>
    %1059 = vector.shape_cast %1058 : vector<1x1x1x32x32xf32> to vector<32x32xf32>
    %cst_492 = arith.constant dense<0.000000e+00> : vector<64x32xf32>
    %1060 = tpu.matmul %985, %1059, %cst_492 {dimension_numbers = #tpu.dot_dimension_numbers<[1], [0], [0], [1], [0, 0, 1, 1], [], []>} : vector<64x32xf32>, vector<32x32xf32>, vector<64x32xf32> -> vector<64x32xf32>
    %c1_493 = arith.constant 1 : index
    %c1_494 = arith.constant 1 : index
    %c2_495 = arith.constant 2 : index
    %c0_496 = arith.constant 0 : index
    %c0_497 = arith.constant 0 : index
    %1061 = vector.load %arg5[%c1_493, %c1_494, %c2_495, %c0_496, %c0_497] : memref<2x2x3x32x32xf32, #tpu.memory_space<vmem>>, vector<1x1x1x32x32xf32>
    %1062 = vector.shape_cast %1061 : vector<1x1x1x32x32xf32> to vector<32x32xf32>
    %cst_498 = arith.constant dense<0.000000e+00> : vector<64x32xf32>
    %1063 = tpu.matmul %987, %1062, %cst_498 {dimension_numbers = #tpu.dot_dimension_numbers<[1], [0], [0], [1], [0, 0, 1, 1], [], []>} : vector<64x32xf32>, vector<32x32xf32>, vector<64x32xf32> -> vector<64x32xf32>
    %1064 = arith.addf %1060, %1063 : vector<64x32xf32>
    %c1_499 = arith.constant 1 : index
    %c2_500 = arith.constant 2 : index
    %c0_501 = arith.constant 0 : index
    %c0_502 = arith.constant 0 : index
    %1065 = vector.load %arg6[%c1_499, %c2_500, %c0_501, %c0_502] : memref<2x3x1x32xf32, #tpu.memory_space<vmem>>, vector<1x1x1x32xf32>
    %1066 = vector.shape_cast %1065 : vector<1x1x1x32xf32> to vector<1x32xf32>
    %1067 = vector.broadcast %1066 : vector<1x32xf32> to vector<64x32xf32>
    %1068 = arith.addf %1064, %1067 : vector<64x32xf32>
    %c1_503 = arith.constant 1 : index
    %c2_504 = arith.constant 2 : index
    %c0_505 = arith.constant 0 : index
    %c0_506 = arith.constant 0 : index
    %1069 = vector.load %arg10[%c1_503, %c2_504, %c0_505, %c0_506] : memref<2x3x64x32xf32, #tpu.memory_space<vmem>>, vector<1x1x64x32xf32>
    %1070 = vector.shape_cast %1069 : vector<1x1x64x32xf32> to vector<64x32xf32>
    %1071 = vector.shape_cast %1068 : vector<64x32xf32> to vector<1x1x64x32xf32>
    tpu.vector_store %arg10[%c1_503, %c2_504, %c0_505, %c0_506], %1071 {strides = array<i32>} : memref<2x3x64x32xf32, #tpu.memory_space<vmem>>, vector<1x1x64x32xf32>,
    %c0_507 = arith.constant 0 : index
    %c0_508 = arith.constant 0 : index
    %c0_509 = arith.constant 0 : index
    %c0_510 = arith.constant 0 : index
    %1072 = vector.load %arg7[%c0_507, %c0_508, %c0_509, %c0_510] : memref<2x3x32x32xf32, #tpu.memory_space<vmem>>, vector<2x3x32x32xf32>
    %c0_511 = arith.constant 0 : index
    %c0_512 = arith.constant 0 : index
    %c0_513 = arith.constant 0 : index
    %c0_514 = arith.constant 0 : index
    %1073 = vector.load %arg8[%c0_511, %c0_512, %c0_513, %c0_514] : memref<2x3x8x32xf32, #tpu.memory_space<vmem>>, vector<2x3x8x32xf32>
    %cst_515 = arith.constant 0.000000e+00 : f32
    %1074 = vector.broadcast %cst_515 : f32 to vector<8x32xf32>
    %c0_i32_516 = arith.constant 0 : i32
    %c7_i32_517 = arith.constant 7 : i32
    %1075 = arith.subi %c7_i32_517, %c0_i32_516 : i32
    %c8_i32_518 = arith.constant 8 : i32
    %1076 = arith.muli %c0_i32_516, %c8_i32_518 : i32
    %1077 = tpu.assume_multiple %1076, 8 : i32
    %c8_i32_519 = arith.constant 8 : i32
    %1078 = arith.muli %1075, %c8_i32_519 : i32
    %1079 = tpu.assume_multiple %1078, 8 : i32
    %c0_520 = arith.constant 0 : index
    %c0_521 = arith.constant 0 : index
    %1080 = arith.index_cast %1077 : i32 to index
    %c0_522 = arith.constant 0 : index
    %1081 = vector.load %arg10[%c0_520, %c0_521, %1080, %c0_522] : memref<2x3x64x32xf32, #tpu.memory_space<vmem>>, vector<1x1x8x32xf32>
    %1082 = vector.shape_cast %1081 : vector<1x1x8x32xf32> to vector<8x32xf32>
    %c0_523 = arith.constant 0 : index
    %c1_524 = arith.constant 1 : index
    %1083 = arith.index_cast %1077 : i32 to index
    %c0_525 = arith.constant 0 : index
    %1084 = vector.load %arg10[%c0_523, %c1_524, %1083, %c0_525] : memref<2x3x64x32xf32, #tpu.memory_space<vmem>>, vector<1x1x8x32xf32>
    %1085 = vector.shape_cast %1084 : vector<1x1x8x32xf32> to vector<8x32xf32>
    %c0_526 = arith.constant 0 : index
    %c2_527 = arith.constant 2 : index
    %1086 = arith.index_cast %1077 : i32 to index
    %c0_528 = arith.constant 0 : index
    %1087 = vector.load %arg10[%c0_526, %c2_527, %1086, %c0_528] : memref<2x3x64x32xf32, #tpu.memory_space<vmem>>, vector<1x1x8x32xf32>
    %1088 = vector.shape_cast %1087 : vector<1x1x8x32xf32> to vector<8x32xf32>
    %c1_529 = arith.constant 1 : index
    %c0_530 = arith.constant 0 : index
    %1089 = arith.index_cast %1079 : i32 to index
    %c0_531 = arith.constant 0 : index
    %1090 = vector.load %arg10[%c1_529, %c0_530, %1089, %c0_531] : memref<2x3x64x32xf32, #tpu.memory_space<vmem>>, vector<1x1x8x32xf32>
    %1091 = vector.shape_cast %1090 : vector<1x1x8x32xf32> to vector<8x32xf32>
    %c1_532 = arith.constant 1 : index
    %c1_533 = arith.constant 1 : index
    %1092 = arith.index_cast %1079 : i32 to index
    %c0_534 = arith.constant 0 : index
    %1093 = vector.load %arg10[%c1_532, %c1_533, %1092, %c0_534] : memref<2x3x64x32xf32, #tpu.memory_space<vmem>>, vector<1x1x8x32xf32>
    %1094 = vector.shape_cast %1093 : vector<1x1x8x32xf32> to vector<8x32xf32>
    %c1_535 = arith.constant 1 : index
    %c2_536 = arith.constant 2 : index
    %1095 = arith.index_cast %1079 : i32 to index
    %c0_537 = arith.constant 0 : index
    %1096 = vector.load %arg10[%c1_535, %c2_536, %1095, %c0_537] : memref<2x3x64x32xf32, #tpu.memory_space<vmem>>, vector<1x1x8x32xf32>
    %1097 = vector.shape_cast %1096 : vector<1x1x8x32xf32> to vector<8x32xf32>
    %1098 = vector.extract_strided_slice %1072 {offsets = [0, 0, 0, 0], sizes = [1, 3, 32, 32], strides = [1, 1, 1, 1]} : vector<2x3x32x32xf32> to vector<1x3x32x32xf32>
    %1099 = vector.shape_cast %1098 : vector<1x3x32x32xf32> to vector<3x32x32xf32>
    %1100 = vector.extract_strided_slice %1073 {offsets = [0, 0, 0, 0], sizes = [1, 3, 8, 32], strides = [1, 1, 1, 1]} : vector<2x3x8x32xf32> to vector<1x3x8x32xf32>
    %1101 = vector.shape_cast %1100 : vector<1x3x8x32xf32> to vector<3x8x32xf32>
    %1102 = vector.extract_strided_slice %1099 {offsets = [0, 0, 0], sizes = [1, 32, 32], strides = [1, 1, 1]} : vector<3x32x32xf32> to vector<1x32x32xf32>
    %1103 = vector.shape_cast %1102 : vector<1x32x32xf32> to vector<32x32xf32>
    %cst_538 = arith.constant dense<0.000000e+00> : vector<8x32xf32>
    %1104 = tpu.matmul %1074, %1103, %cst_538 {dimension_numbers = #tpu.dot_dimension_numbers<[1], [0], [0], [1], [0, 0, 1, 1], [], []>} : vector<8x32xf32>, vector<32x32xf32>, vector<8x32xf32> -> vector<8x32xf32>
    %1105 = vector.extract_strided_slice %1101 {offsets = [0, 0, 0], sizes = [1, 8, 32], strides = [1, 1, 1]} : vector<3x8x32xf32> to vector<1x8x32xf32>
    %1106 = vector.shape_cast %1105 : vector<1x8x32xf32> to vector<8x32xf32>
    %1107 = arith.addf %1104, %1106 : vector<8x32xf32>
    %1108 = vector.extract_strided_slice %1099 {offsets = [1, 0, 0], sizes = [1, 32, 32], strides = [1, 1, 1]} : vector<3x32x32xf32> to vector<1x32x32xf32>
    %1109 = vector.shape_cast %1108 : vector<1x32x32xf32> to vector<32x32xf32>
    %cst_539 = arith.constant dense<0.000000e+00> : vector<8x32xf32>
    %1110 = tpu.matmul %1074, %1109, %cst_539 {dimension_numbers = #tpu.dot_dimension_numbers<[1], [0], [0], [1], [0, 0, 1, 1], [], []>} : vector<8x32xf32>, vector<32x32xf32>, vector<8x32xf32> -> vector<8x32xf32>
    %1111 = vector.extract_strided_slice %1101 {offsets = [1, 0, 0], sizes = [1, 8, 32], strides = [1, 1, 1]} : vector<3x8x32xf32> to vector<1x8x32xf32>
    %1112 = vector.shape_cast %1111 : vector<1x8x32xf32> to vector<8x32xf32>
    %1113 = arith.addf %1110, %1112 : vector<8x32xf32>
    %1114 = vector.extract_strided_slice %1099 {offsets = [2, 0, 0], sizes = [1, 32, 32], strides = [1, 1, 1]} : vector<3x32x32xf32> to vector<1x32x32xf32>
    %1115 = vector.shape_cast %1114 : vector<1x32x32xf32> to vector<32x32xf32>
    %cst_540 = arith.constant dense<0.000000e+00> : vector<8x32xf32>
    %1116 = tpu.matmul %1074, %1115, %cst_540 {dimension_numbers = #tpu.dot_dimension_numbers<[1], [0], [0], [1], [0, 0, 1, 1], [], []>} : vector<8x32xf32>, vector<32x32xf32>, vector<8x32xf32> -> vector<8x32xf32>
    %1117 = vector.extract_strided_slice %1101 {offsets = [2, 0, 0], sizes = [1, 8, 32], strides = [1, 1, 1]} : vector<3x8x32xf32> to vector<1x8x32xf32>
    %1118 = vector.shape_cast %1117 : vector<1x8x32xf32> to vector<8x32xf32>
    %1119 = arith.addf %1116, %1118 : vector<8x32xf32>
    %1120 = arith.addf %1082, %1107 : vector<8x32xf32>
    %1121 = arith.negf %1120 : vector<8x32xf32>
    %1122 = math.exp %1121 : vector<8x32xf32>
    %cst_541 = arith.constant 1.000000e+00 : f32
    %1123 = vector.broadcast %cst_541 : f32 to vector<8x32xf32>
    %1124 = arith.addf %1123, %1122 : vector<8x32xf32>
    %1125 = arith.divf %1123, %1124 : vector<8x32xf32>
    %1126 = arith.addf %1085, %1113 : vector<8x32xf32>
    %1127 = arith.negf %1126 : vector<8x32xf32>
    %1128 = math.exp %1127 : vector<8x32xf32>
    %cst_542 = arith.constant 1.000000e+00 : f32
    %1129 = vector.broadcast %cst_542 : f32 to vector<8x32xf32>
    %1130 = arith.addf %1129, %1128 : vector<8x32xf32>
    %1131 = arith.divf %1129, %1130 : vector<8x32xf32>
    %1132 = arith.mulf %1125, %1119 : vector<8x32xf32>
    %1133 = arith.addf %1088, %1132 : vector<8x32xf32>
    %1134 = math.tanh %1133 : vector<8x32xf32>
    %cst_543 = arith.constant 1.000000e+00 : f32
    %1135 = vector.broadcast %cst_543 : f32 to vector<8x32xf32>
    %1136 = arith.subf %1135, %1131 : vector<8x32xf32>
    %1137 = arith.mulf %1136, %1134 : vector<8x32xf32>
    %1138 = arith.mulf %1131, %1074 : vector<8x32xf32>
    %1139 = arith.addf %1137, %1138 : vector<8x32xf32>
    %1140 = vector.extract_strided_slice %1072 {offsets = [1, 0, 0, 0], sizes = [1, 3, 32, 32], strides = [1, 1, 1, 1]} : vector<2x3x32x32xf32> to vector<1x3x32x32xf32>
    %1141 = vector.shape_cast %1140 : vector<1x3x32x32xf32> to vector<3x32x32xf32>
    %1142 = vector.extract_strided_slice %1073 {offsets = [1, 0, 0, 0], sizes = [1, 3, 8, 32], strides = [1, 1, 1, 1]} : vector<2x3x8x32xf32> to vector<1x3x8x32xf32>
    %1143 = vector.shape_cast %1142 : vector<1x3x8x32xf32> to vector<3x8x32xf32>
    %1144 = vector.extract_strided_slice %1141 {offsets = [0, 0, 0], sizes = [1, 32, 32], strides = [1, 1, 1]} : vector<3x32x32xf32> to vector<1x32x32xf32>
    %1145 = vector.shape_cast %1144 : vector<1x32x32xf32> to vector<32x32xf32>
    %cst_544 = arith.constant dense<0.000000e+00> : vector<8x32xf32>
    %1146 = tpu.matmul %1074, %1145, %cst_544 {dimension_numbers = #tpu.dot_dimension_numbers<[1], [0], [0], [1], [0, 0, 1, 1], [], []>} : vector<8x32xf32>, vector<32x32xf32>, vector<8x32xf32> -> vector<8x32xf32>
    %1147 = vector.extract_strided_slice %1143 {offsets = [0, 0, 0], sizes = [1, 8, 32], strides = [1, 1, 1]} : vector<3x8x32xf32> to vector<1x8x32xf32>
    %1148 = vector.shape_cast %1147 : vector<1x8x32xf32> to vector<8x32xf32>
    %1149 = arith.addf %1146, %1148 : vector<8x32xf32>
    %1150 = vector.extract_strided_slice %1141 {offsets = [1, 0, 0], sizes = [1, 32, 32], strides = [1, 1, 1]} : vector<3x32x32xf32> to vector<1x32x32xf32>
    %1151 = vector.shape_cast %1150 : vector<1x32x32xf32> to vector<32x32xf32>
    %cst_545 = arith.constant dense<0.000000e+00> : vector<8x32xf32>
    %1152 = tpu.matmul %1074, %1151, %cst_545 {dimension_numbers = #tpu.dot_dimension_numbers<[1], [0], [0], [1], [0, 0, 1, 1], [], []>} : vector<8x32xf32>, vector<32x32xf32>, vector<8x32xf32> -> vector<8x32xf32>
    %1153 = vector.extract_strided_slice %1143 {offsets = [1, 0, 0], sizes = [1, 8, 32], strides = [1, 1, 1]} : vector<3x8x32xf32> to vector<1x8x32xf32>
    %1154 = vector.shape_cast %1153 : vector<1x8x32xf32> to vector<8x32xf32>
    %1155 = arith.addf %1152, %1154 : vector<8x32xf32>
    %1156 = vector.extract_strided_slice %1141 {offsets = [2, 0, 0], sizes = [1, 32, 32], strides = [1, 1, 1]} : vector<3x32x32xf32> to vector<1x32x32xf32>
    %1157 = vector.shape_cast %1156 : vector<1x32x32xf32> to vector<32x32xf32>
    %cst_546 = arith.constant dense<0.000000e+00> : vector<8x32xf32>
    %1158 = tpu.matmul %1074, %1157, %cst_546 {dimension_numbers = #tpu.dot_dimension_numbers<[1], [0], [0], [1], [0, 0, 1, 1], [], []>} : vector<8x32xf32>, vector<32x32xf32>, vector<8x32xf32> -> vector<8x32xf32>
    %1159 = vector.extract_strided_slice %1143 {offsets = [2, 0, 0], sizes = [1, 8, 32], strides = [1, 1, 1]} : vector<3x8x32xf32> to vector<1x8x32xf32>
    %1160 = vector.shape_cast %1159 : vector<1x8x32xf32> to vector<8x32xf32>
    %1161 = arith.addf %1158, %1160 : vector<8x32xf32>
    %1162 = arith.addf %1091, %1149 : vector<8x32xf32>
    %1163 = arith.negf %1162 : vector<8x32xf32>
    %1164 = math.exp %1163 : vector<8x32xf32>
    %cst_547 = arith.constant 1.000000e+00 : f32
    %1165 = vector.broadcast %cst_547 : f32 to vector<8x32xf32>
    %1166 = arith.addf %1165, %1164 : vector<8x32xf32>
    %1167 = arith.divf %1165, %1166 : vector<8x32xf32>
    %1168 = arith.addf %1094, %1155 : vector<8x32xf32>
    %1169 = arith.negf %1168 : vector<8x32xf32>
    %1170 = math.exp %1169 : vector<8x32xf32>
    %cst_548 = arith.constant 1.000000e+00 : f32
    %1171 = vector.broadcast %cst_548 : f32 to vector<8x32xf32>
    %1172 = arith.addf %1171, %1170 : vector<8x32xf32>
    %1173 = arith.divf %1171, %1172 : vector<8x32xf32>
    %1174 = arith.mulf %1167, %1161 : vector<8x32xf32>
    %1175 = arith.addf %1097, %1174 : vector<8x32xf32>
    %1176 = math.tanh %1175 : vector<8x32xf32>
    %cst_549 = arith.constant 1.000000e+00 : f32
    %1177 = vector.broadcast %cst_549 : f32 to vector<8x32xf32>
    %1178 = arith.subf %1177, %1173 : vector<8x32xf32>
    %1179 = arith.mulf %1178, %1176 : vector<8x32xf32>
    %1180 = arith.mulf %1173, %1074 : vector<8x32xf32>
    %1181 = arith.addf %1179, %1180 : vector<8x32xf32>
    %c1_i32_550 = arith.constant 1 : i32
    %c7_i32_551 = arith.constant 7 : i32
    %1182 = arith.subi %c7_i32_551, %c1_i32_550 : i32
    %c8_i32_552 = arith.constant 8 : i32
    %1183 = arith.muli %c1_i32_550, %c8_i32_552 : i32
    %1184 = tpu.assume_multiple %1183, 8 : i32
    %c8_i32_553 = arith.constant 8 : i32
    %1185 = arith.muli %1182, %c8_i32_553 : i32
    %1186 = tpu.assume_multiple %1185, 8 : i32
    %c0_554 = arith.constant 0 : index
    %c0_555 = arith.constant 0 : index
    %1187 = arith.index_cast %1184 : i32 to index
    %c0_556 = arith.constant 0 : index
    %1188 = vector.load %arg10[%c0_554, %c0_555, %1187, %c0_556] : memref<2x3x64x32xf32, #tpu.memory_space<vmem>>, vector<1x1x8x32xf32>
    %1189 = vector.shape_cast %1188 : vector<1x1x8x32xf32> to vector<8x32xf32>
    %c0_557 = arith.constant 0 : index
    %c1_558 = arith.constant 1 : index
    %1190 = arith.index_cast %1184 : i32 to index
    %c0_559 = arith.constant 0 : index
    %1191 = vector.load %arg10[%c0_557, %c1_558, %1190, %c0_559] : memref<2x3x64x32xf32, #tpu.memory_space<vmem>>, vector<1x1x8x32xf32>
    %1192 = vector.shape_cast %1191 : vector<1x1x8x32xf32> to vector<8x32xf32>
    %c0_560 = arith.constant 0 : index
    %c2_561 = arith.constant 2 : index
    %1193 = arith.index_cast %1184 : i32 to index
    %c0_562 = arith.constant 0 : index
    %1194 = vector.load %arg10[%c0_560, %c2_561, %1193, %c0_562] : memref<2x3x64x32xf32, #tpu.memory_space<vmem>>, vector<1x1x8x32xf32>
    %1195 = vector.shape_cast %1194 : vector<1x1x8x32xf32> to vector<8x32xf32>
    %c1_563 = arith.constant 1 : index
    %c0_564 = arith.constant 0 : index
    %1196 = arith.index_cast %1186 : i32 to index
    %c0_565 = arith.constant 0 : index
    %1197 = vector.load %arg10[%c1_563, %c0_564, %1196, %c0_565] : memref<2x3x64x32xf32, #tpu.memory_space<vmem>>, vector<1x1x8x32xf32>
    %1198 = vector.shape_cast %1197 : vector<1x1x8x32xf32> to vector<8x32xf32>
    %c1_566 = arith.constant 1 : index
    %c1_567 = arith.constant 1 : index
    %1199 = arith.index_cast %1186 : i32 to index
    %c0_568 = arith.constant 0 : index
    %1200 = vector.load %arg10[%c1_566, %c1_567, %1199, %c0_568] : memref<2x3x64x32xf32, #tpu.memory_space<vmem>>, vector<1x1x8x32xf32>
    %1201 = vector.shape_cast %1200 : vector<1x1x8x32xf32> to vector<8x32xf32>
    %c1_569 = arith.constant 1 : index
    %c2_570 = arith.constant 2 : index
    %1202 = arith.index_cast %1186 : i32 to index
    %c0_571 = arith.constant 0 : index
    %1203 = vector.load %arg10[%c1_569, %c2_570, %1202, %c0_571] : memref<2x3x64x32xf32, #tpu.memory_space<vmem>>, vector<1x1x8x32xf32>
    %1204 = vector.shape_cast %1203 : vector<1x1x8x32xf32> to vector<8x32xf32>
    %1205 = vector.extract_strided_slice %1072 {offsets = [0, 0, 0, 0], sizes = [1, 3, 32, 32], strides = [1, 1, 1, 1]} : vector<2x3x32x32xf32> to vector<1x3x32x32xf32>
    %1206 = vector.shape_cast %1205 : vector<1x3x32x32xf32> to vector<3x32x32xf32>
    %1207 = vector.extract_strided_slice %1073 {offsets = [0, 0, 0, 0], sizes = [1, 3, 8, 32], strides = [1, 1, 1, 1]} : vector<2x3x8x32xf32> to vector<1x3x8x32xf32>
    %1208 = vector.shape_cast %1207 : vector<1x3x8x32xf32> to vector<3x8x32xf32>
    %1209 = vector.extract_strided_slice %1206 {offsets = [0, 0, 0], sizes = [1, 32, 32], strides = [1, 1, 1]} : vector<3x32x32xf32> to vector<1x32x32xf32>
    %1210 = vector.shape_cast %1209 : vector<1x32x32xf32> to vector<32x32xf32>
    %cst_572 = arith.constant dense<0.000000e+00> : vector<8x32xf32>
    %1211 = tpu.matmul %1139, %1210, %cst_572 {dimension_numbers = #tpu.dot_dimension_numbers<[1], [0], [0], [1], [0, 0, 1, 1], [], []>} : vector<8x32xf32>, vector<32x32xf32>, vector<8x32xf32> -> vector<8x32xf32>
    %1212 = vector.extract_strided_slice %1208 {offsets = [0, 0, 0], sizes = [1, 8, 32], strides = [1, 1, 1]} : vector<3x8x32xf32> to vector<1x8x32xf32>
    %1213 = vector.shape_cast %1212 : vector<1x8x32xf32> to vector<8x32xf32>
    %1214 = arith.addf %1211, %1213 : vector<8x32xf32>
    %1215 = vector.extract_strided_slice %1206 {offsets = [1, 0, 0], sizes = [1, 32, 32], strides = [1, 1, 1]} : vector<3x32x32xf32> to vector<1x32x32xf32>
    %1216 = vector.shape_cast %1215 : vector<1x32x32xf32> to vector<32x32xf32>
    %cst_573 = arith.constant dense<0.000000e+00> : vector<8x32xf32>
    %1217 = tpu.matmul %1139, %1216, %cst_573 {dimension_numbers = #tpu.dot_dimension_numbers<[1], [0], [0], [1], [0, 0, 1, 1], [], []>} : vector<8x32xf32>, vector<32x32xf32>, vector<8x32xf32> -> vector<8x32xf32>
    %1218 = vector.extract_strided_slice %1208 {offsets = [1, 0, 0], sizes = [1, 8, 32], strides = [1, 1, 1]} : vector<3x8x32xf32> to vector<1x8x32xf32>
    %1219 = vector.shape_cast %1218 : vector<1x8x32xf32> to vector<8x32xf32>
    %1220 = arith.addf %1217, %1219 : vector<8x32xf32>
    %1221 = vector.extract_strided_slice %1206 {offsets = [2, 0, 0], sizes = [1, 32, 32], strides = [1, 1, 1]} : vector<3x32x32xf32> to vector<1x32x32xf32>
    %1222 = vector.shape_cast %1221 : vector<1x32x32xf32> to vector<32x32xf32>
    %cst_574 = arith.constant dense<0.000000e+00> : vector<8x32xf32>
    %1223 = tpu.matmul %1139, %1222, %cst_574 {dimension_numbers = #tpu.dot_dimension_numbers<[1], [0], [0], [1], [0, 0, 1, 1], [], []>} : vector<8x32xf32>, vector<32x32xf32>, vector<8x32xf32> -> vector<8x32xf32>
    %1224 = vector.extract_strided_slice %1208 {offsets = [2, 0, 0], sizes = [1, 8, 32], strides = [1, 1, 1]} : vector<3x8x32xf32> to vector<1x8x32xf32>
    %1225 = vector.shape_cast %1224 : vector<1x8x32xf32> to vector<8x32xf32>
    %1226 = arith.addf %1223, %1225 : vector<8x32xf32>
    %1227 = arith.addf %1189, %1214 : vector<8x32xf32>
    %1228 = arith.negf %1227 : vector<8x32xf32>
    %1229 = math.exp %1228 : vector<8x32xf32>
    %cst_575 = arith.constant 1.000000e+00 : f32
    %1230 = vector.broadcast %cst_575 : f32 to vector<8x32xf32>
    %1231 = arith.addf %1230, %1229 : vector<8x32xf32>
    %1232 = arith.divf %1230, %1231 : vector<8x32xf32>
    %1233 = arith.addf %1192, %1220 : vector<8x32xf32>
    %1234 = arith.negf %1233 : vector<8x32xf32>
    %1235 = math.exp %1234 : vector<8x32xf32>
    %cst_576 = arith.constant 1.000000e+00 : f32
    %1236 = vector.broadcast %cst_576 : f32 to vector<8x32xf32>
    %1237 = arith.addf %1236, %1235 : vector<8x32xf32>
    %1238 = arith.divf %1236, %1237 : vector<8x32xf32>
    %1239 = arith.mulf %1232, %1226 : vector<8x32xf32>
    %1240 = arith.addf %1195, %1239 : vector<8x32xf32>
    %1241 = math.tanh %1240 : vector<8x32xf32>
    %cst_577 = arith.constant 1.000000e+00 : f32
    %1242 = vector.broadcast %cst_577 : f32 to vector<8x32xf32>
    %1243 = arith.subf %1242, %1238 : vector<8x32xf32>
    %1244 = arith.mulf %1243, %1241 : vector<8x32xf32>
    %1245 = arith.mulf %1238, %1139 : vector<8x32xf32>
    %1246 = arith.addf %1244, %1245 : vector<8x32xf32>
    %1247 = vector.extract_strided_slice %1072 {offsets = [1, 0, 0, 0], sizes = [1, 3, 32, 32], strides = [1, 1, 1, 1]} : vector<2x3x32x32xf32> to vector<1x3x32x32xf32>
    %1248 = vector.shape_cast %1247 : vector<1x3x32x32xf32> to vector<3x32x32xf32>
    %1249 = vector.extract_strided_slice %1073 {offsets = [1, 0, 0, 0], sizes = [1, 3, 8, 32], strides = [1, 1, 1, 1]} : vector<2x3x8x32xf32> to vector<1x3x8x32xf32>
    %1250 = vector.shape_cast %1249 : vector<1x3x8x32xf32> to vector<3x8x32xf32>
    %1251 = vector.extract_strided_slice %1248 {offsets = [0, 0, 0], sizes = [1, 32, 32], strides = [1, 1, 1]} : vector<3x32x32xf32> to vector<1x32x32xf32>
    %1252 = vector.shape_cast %1251 : vector<1x32x32xf32> to vector<32x32xf32>
    %cst_578 = arith.constant dense<0.000000e+00> : vector<8x32xf32>
    %1253 = tpu.matmul %1181, %1252, %cst_578 {dimension_numbers = #tpu.dot_dimension_numbers<[1], [0], [0], [1], [0, 0, 1, 1], [], []>} : vector<8x32xf32>, vector<32x32xf32>, vector<8x32xf32> -> vector<8x32xf32>
    %1254 = vector.extract_strided_slice %1250 {offsets = [0, 0, 0], sizes = [1, 8, 32], strides = [1, 1, 1]} : vector<3x8x32xf32> to vector<1x8x32xf32>
    %1255 = vector.shape_cast %1254 : vector<1x8x32xf32> to vector<8x32xf32>
    %1256 = arith.addf %1253, %1255 : vector<8x32xf32>
    %1257 = vector.extract_strided_slice %1248 {offsets = [1, 0, 0], sizes = [1, 32, 32], strides = [1, 1, 1]} : vector<3x32x32xf32> to vector<1x32x32xf32>
    %1258 = vector.shape_cast %1257 : vector<1x32x32xf32> to vector<32x32xf32>
    %cst_579 = arith.constant dense<0.000000e+00> : vector<8x32xf32>
    %1259 = tpu.matmul %1181, %1258, %cst_579 {dimension_numbers = #tpu.dot_dimension_numbers<[1], [0], [0], [1], [0, 0, 1, 1], [], []>} : vector<8x32xf32>, vector<32x32xf32>, vector<8x32xf32> -> vector<8x32xf32>
    %1260 = vector.extract_strided_slice %1250 {offsets = [1, 0, 0], sizes = [1, 8, 32], strides = [1, 1, 1]} : vector<3x8x32xf32> to vector<1x8x32xf32>
    %1261 = vector.shape_cast %1260 : vector<1x8x32xf32> to vector<8x32xf32>
    %1262 = arith.addf %1259, %1261 : vector<8x32xf32>
    %1263 = vector.extract_strided_slice %1248 {offsets = [2, 0, 0], sizes = [1, 32, 32], strides = [1, 1, 1]} : vector<3x32x32xf32> to vector<1x32x32xf32>
    %1264 = vector.shape_cast %1263 : vector<1x32x32xf32> to vector<32x32xf32>
    %cst_580 = arith.constant dense<0.000000e+00> : vector<8x32xf32>
    %1265 = tpu.matmul %1181, %1264, %cst_580 {dimension_numbers = #tpu.dot_dimension_numbers<[1], [0], [0], [1], [0, 0, 1, 1], [], []>} : vector<8x32xf32>, vector<32x32xf32>, vector<8x32xf32> -> vector<8x32xf32>
    %1266 = vector.extract_strided_slice %1250 {offsets = [2, 0, 0], sizes = [1, 8, 32], strides = [1, 1, 1]} : vector<3x8x32xf32> to vector<1x8x32xf32>
    %1267 = vector.shape_cast %1266 : vector<1x8x32xf32> to vector<8x32xf32>
    %1268 = arith.addf %1265, %1267 : vector<8x32xf32>
    %1269 = arith.addf %1198, %1256 : vector<8x32xf32>
    %1270 = arith.negf %1269 : vector<8x32xf32>
    %1271 = math.exp %1270 : vector<8x32xf32>
    %cst_581 = arith.constant 1.000000e+00 : f32
    %1272 = vector.broadcast %cst_581 : f32 to vector<8x32xf32>
    %1273 = arith.addf %1272, %1271 : vector<8x32xf32>
    %1274 = arith.divf %1272, %1273 : vector<8x32xf32>
    %1275 = arith.addf %1201, %1262 : vector<8x32xf32>
    %1276 = arith.negf %1275 : vector<8x32xf32>
    %1277 = math.exp %1276 : vector<8x32xf32>
    %cst_582 = arith.constant 1.000000e+00 : f32
    %1278 = vector.broadcast %cst_582 : f32 to vector<8x32xf32>
    %1279 = arith.addf %1278, %1277 : vector<8x32xf32>
    %1280 = arith.divf %1278, %1279 : vector<8x32xf32>
    %1281 = arith.mulf %1274, %1268 : vector<8x32xf32>
    %1282 = arith.addf %1204, %1281 : vector<8x32xf32>
    %1283 = math.tanh %1282 : vector<8x32xf32>
    %cst_583 = arith.constant 1.000000e+00 : f32
    %1284 = vector.broadcast %cst_583 : f32 to vector<8x32xf32>
    %1285 = arith.subf %1284, %1280 : vector<8x32xf32>
    %1286 = arith.mulf %1285, %1283 : vector<8x32xf32>
    %1287 = arith.mulf %1280, %1181 : vector<8x32xf32>
    %1288 = arith.addf %1286, %1287 : vector<8x32xf32>
    %c2_i32_584 = arith.constant 2 : i32
    %c7_i32_585 = arith.constant 7 : i32
    %1289 = arith.subi %c7_i32_585, %c2_i32_584 : i32
    %c8_i32_586 = arith.constant 8 : i32
    %1290 = arith.muli %c2_i32_584, %c8_i32_586 : i32
    %1291 = tpu.assume_multiple %1290, 8 : i32
    %c8_i32_587 = arith.constant 8 : i32
    %1292 = arith.muli %1289, %c8_i32_587 : i32
    %1293 = tpu.assume_multiple %1292, 8 : i32
    %c0_588 = arith.constant 0 : index
    %c0_589 = arith.constant 0 : index
    %1294 = arith.index_cast %1291 : i32 to index
    %c0_590 = arith.constant 0 : index
    %1295 = vector.load %arg10[%c0_588, %c0_589, %1294, %c0_590] : memref<2x3x64x32xf32, #tpu.memory_space<vmem>>, vector<1x1x8x32xf32>
    %1296 = vector.shape_cast %1295 : vector<1x1x8x32xf32> to vector<8x32xf32>
    %c0_591 = arith.constant 0 : index
    %c1_592 = arith.constant 1 : index
    %1297 = arith.index_cast %1291 : i32 to index
    %c0_593 = arith.constant 0 : index
    %1298 = vector.load %arg10[%c0_591, %c1_592, %1297, %c0_593] : memref<2x3x64x32xf32, #tpu.memory_space<vmem>>, vector<1x1x8x32xf32>
    %1299 = vector.shape_cast %1298 : vector<1x1x8x32xf32> to vector<8x32xf32>
    %c0_594 = arith.constant 0 : index
    %c2_595 = arith.constant 2 : index
    %1300 = arith.index_cast %1291 : i32 to index
    %c0_596 = arith.constant 0 : index
    %1301 = vector.load %arg10[%c0_594, %c2_595, %1300, %c0_596] : memref<2x3x64x32xf32, #tpu.memory_space<vmem>>, vector<1x1x8x32xf32>
    %1302 = vector.shape_cast %1301 : vector<1x1x8x32xf32> to vector<8x32xf32>
    %c1_597 = arith.constant 1 : index
    %c0_598 = arith.constant 0 : index
    %1303 = arith.index_cast %1293 : i32 to index
    %c0_599 = arith.constant 0 : index
    %1304 = vector.load %arg10[%c1_597, %c0_598, %1303, %c0_599] : memref<2x3x64x32xf32, #tpu.memory_space<vmem>>, vector<1x1x8x32xf32>
    %1305 = vector.shape_cast %1304 : vector<1x1x8x32xf32> to vector<8x32xf32>
    %c1_600 = arith.constant 1 : index
    %c1_601 = arith.constant 1 : index
    %1306 = arith.index_cast %1293 : i32 to index
    %c0_602 = arith.constant 0 : index
    %1307 = vector.load %arg10[%c1_600, %c1_601, %1306, %c0_602] : memref<2x3x64x32xf32, #tpu.memory_space<vmem>>, vector<1x1x8x32xf32>
    %1308 = vector.shape_cast %1307 : vector<1x1x8x32xf32> to vector<8x32xf32>
    %c1_603 = arith.constant 1 : index
    %c2_604 = arith.constant 2 : index
    %1309 = arith.index_cast %1293 : i32 to index
    %c0_605 = arith.constant 0 : index
    %1310 = vector.load %arg10[%c1_603, %c2_604, %1309, %c0_605] : memref<2x3x64x32xf32, #tpu.memory_space<vmem>>, vector<1x1x8x32xf32>
    %1311 = vector.shape_cast %1310 : vector<1x1x8x32xf32> to vector<8x32xf32>
    %1312 = vector.extract_strided_slice %1072 {offsets = [0, 0, 0, 0], sizes = [1, 3, 32, 32], strides = [1, 1, 1, 1]} : vector<2x3x32x32xf32> to vector<1x3x32x32xf32>
    %1313 = vector.shape_cast %1312 : vector<1x3x32x32xf32> to vector<3x32x32xf32>
    %1314 = vector.extract_strided_slice %1073 {offsets = [0, 0, 0, 0], sizes = [1, 3, 8, 32], strides = [1, 1, 1, 1]} : vector<2x3x8x32xf32> to vector<1x3x8x32xf32>
    %1315 = vector.shape_cast %1314 : vector<1x3x8x32xf32> to vector<3x8x32xf32>
    %1316 = vector.extract_strided_slice %1313 {offsets = [0, 0, 0], sizes = [1, 32, 32], strides = [1, 1, 1]} : vector<3x32x32xf32> to vector<1x32x32xf32>
    %1317 = vector.shape_cast %1316 : vector<1x32x32xf32> to vector<32x32xf32>
    %cst_606 = arith.constant dense<0.000000e+00> : vector<8x32xf32>
    %1318 = tpu.matmul %1246, %1317, %cst_606 {dimension_numbers = #tpu.dot_dimension_numbers<[1], [0], [0], [1], [0, 0, 1, 1], [], []>} : vector<8x32xf32>, vector<32x32xf32>, vector<8x32xf32> -> vector<8x32xf32>
    %1319 = vector.extract_strided_slice %1315 {offsets = [0, 0, 0], sizes = [1, 8, 32], strides = [1, 1, 1]} : vector<3x8x32xf32> to vector<1x8x32xf32>
    %1320 = vector.shape_cast %1319 : vector<1x8x32xf32> to vector<8x32xf32>
    %1321 = arith.addf %1318, %1320 : vector<8x32xf32>
    %1322 = vector.extract_strided_slice %1313 {offsets = [1, 0, 0], sizes = [1, 32, 32], strides = [1, 1, 1]} : vector<3x32x32xf32> to vector<1x32x32xf32>
    %1323 = vector.shape_cast %1322 : vector<1x32x32xf32> to vector<32x32xf32>
    %cst_607 = arith.constant dense<0.000000e+00> : vector<8x32xf32>
    %1324 = tpu.matmul %1246, %1323, %cst_607 {dimension_numbers = #tpu.dot_dimension_numbers<[1], [0], [0], [1], [0, 0, 1, 1], [], []>} : vector<8x32xf32>, vector<32x32xf32>, vector<8x32xf32> -> vector<8x32xf32>
    %1325 = vector.extract_strided_slice %1315 {offsets = [1, 0, 0], sizes = [1, 8, 32], strides = [1, 1, 1]} : vector<3x8x32xf32> to vector<1x8x32xf32>
    %1326 = vector.shape_cast %1325 : vector<1x8x32xf32> to vector<8x32xf32>
    %1327 = arith.addf %1324, %1326 : vector<8x32xf32>
    %1328 = vector.extract_strided_slice %1313 {offsets = [2, 0, 0], sizes = [1, 32, 32], strides = [1, 1, 1]} : vector<3x32x32xf32> to vector<1x32x32xf32>
    %1329 = vector.shape_cast %1328 : vector<1x32x32xf32> to vector<32x32xf32>
    %cst_608 = arith.constant dense<0.000000e+00> : vector<8x32xf32>
    %1330 = tpu.matmul %1246, %1329, %cst_608 {dimension_numbers = #tpu.dot_dimension_numbers<[1], [0], [0], [1], [0, 0, 1, 1], [], []>} : vector<8x32xf32>, vector<32x32xf32>, vector<8x32xf32> -> vector<8x32xf32>
    %1331 = vector.extract_strided_slice %1315 {offsets = [2, 0, 0], sizes = [1, 8, 32], strides = [1, 1, 1]} : vector<3x8x32xf32> to vector<1x8x32xf32>
    %1332 = vector.shape_cast %1331 : vector<1x8x32xf32> to vector<8x32xf32>
    %1333 = arith.addf %1330, %1332 : vector<8x32xf32>
    %1334 = arith.addf %1296, %1321 : vector<8x32xf32>
    %1335 = arith.negf %1334 : vector<8x32xf32>
    %1336 = math.exp %1335 : vector<8x32xf32>
    %cst_609 = arith.constant 1.000000e+00 : f32
    %1337 = vector.broadcast %cst_609 : f32 to vector<8x32xf32>
    %1338 = arith.addf %1337, %1336 : vector<8x32xf32>
    %1339 = arith.divf %1337, %1338 : vector<8x32xf32>
    %1340 = arith.addf %1299, %1327 : vector<8x32xf32>
    %1341 = arith.negf %1340 : vector<8x32xf32>
    %1342 = math.exp %1341 : vector<8x32xf32>
    %cst_610 = arith.constant 1.000000e+00 : f32
    %1343 = vector.broadcast %cst_610 : f32 to vector<8x32xf32>
    %1344 = arith.addf %1343, %1342 : vector<8x32xf32>
    %1345 = arith.divf %1343, %1344 : vector<8x32xf32>
    %1346 = arith.mulf %1339, %1333 : vector<8x32xf32>
    %1347 = arith.addf %1302, %1346 : vector<8x32xf32>
    %1348 = math.tanh %1347 : vector<8x32xf32>
    %cst_611 = arith.constant 1.000000e+00 : f32
    %1349 = vector.broadcast %cst_611 : f32 to vector<8x32xf32>
    %1350 = arith.subf %1349, %1345 : vector<8x32xf32>
    %1351 = arith.mulf %1350, %1348 : vector<8x32xf32>
    %1352 = arith.mulf %1345, %1246 : vector<8x32xf32>
    %1353 = arith.addf %1351, %1352 : vector<8x32xf32>
    %1354 = vector.extract_strided_slice %1072 {offsets = [1, 0, 0, 0], sizes = [1, 3, 32, 32], strides = [1, 1, 1, 1]} : vector<2x3x32x32xf32> to vector<1x3x32x32xf32>
    %1355 = vector.shape_cast %1354 : vector<1x3x32x32xf32> to vector<3x32x32xf32>
    %1356 = vector.extract_strided_slice %1073 {offsets = [1, 0, 0, 0], sizes = [1, 3, 8, 32], strides = [1, 1, 1, 1]} : vector<2x3x8x32xf32> to vector<1x3x8x32xf32>
    %1357 = vector.shape_cast %1356 : vector<1x3x8x32xf32> to vector<3x8x32xf32>
    %1358 = vector.extract_strided_slice %1355 {offsets = [0, 0, 0], sizes = [1, 32, 32], strides = [1, 1, 1]} : vector<3x32x32xf32> to vector<1x32x32xf32>
    %1359 = vector.shape_cast %1358 : vector<1x32x32xf32> to vector<32x32xf32>
    %cst_612 = arith.constant dense<0.000000e+00> : vector<8x32xf32>
    %1360 = tpu.matmul %1288, %1359, %cst_612 {dimension_numbers = #tpu.dot_dimension_numbers<[1], [0], [0], [1], [0, 0, 1, 1], [], []>} : vector<8x32xf32>, vector<32x32xf32>, vector<8x32xf32> -> vector<8x32xf32>
    %1361 = vector.extract_strided_slice %1357 {offsets = [0, 0, 0], sizes = [1, 8, 32], strides = [1, 1, 1]} : vector<3x8x32xf32> to vector<1x8x32xf32>
    %1362 = vector.shape_cast %1361 : vector<1x8x32xf32> to vector<8x32xf32>
    %1363 = arith.addf %1360, %1362 : vector<8x32xf32>
    %1364 = vector.extract_strided_slice %1355 {offsets = [1, 0, 0], sizes = [1, 32, 32], strides = [1, 1, 1]} : vector<3x32x32xf32> to vector<1x32x32xf32>
    %1365 = vector.shape_cast %1364 : vector<1x32x32xf32> to vector<32x32xf32>
    %cst_613 = arith.constant dense<0.000000e+00> : vector<8x32xf32>
    %1366 = tpu.matmul %1288, %1365, %cst_613 {dimension_numbers = #tpu.dot_dimension_numbers<[1], [0], [0], [1], [0, 0, 1, 1], [], []>} : vector<8x32xf32>, vector<32x32xf32>, vector<8x32xf32> -> vector<8x32xf32>
    %1367 = vector.extract_strided_slice %1357 {offsets = [1, 0, 0], sizes = [1, 8, 32], strides = [1, 1, 1]} : vector<3x8x32xf32> to vector<1x8x32xf32>
    %1368 = vector.shape_cast %1367 : vector<1x8x32xf32> to vector<8x32xf32>
    %1369 = arith.addf %1366, %1368 : vector<8x32xf32>
    %1370 = vector.extract_strided_slice %1355 {offsets = [2, 0, 0], sizes = [1, 32, 32], strides = [1, 1, 1]} : vector<3x32x32xf32> to vector<1x32x32xf32>
    %1371 = vector.shape_cast %1370 : vector<1x32x32xf32> to vector<32x32xf32>
    %cst_614 = arith.constant dense<0.000000e+00> : vector<8x32xf32>
    %1372 = tpu.matmul %1288, %1371, %cst_614 {dimension_numbers = #tpu.dot_dimension_numbers<[1], [0], [0], [1], [0, 0, 1, 1], [], []>} : vector<8x32xf32>, vector<32x32xf32>, vector<8x32xf32> -> vector<8x32xf32>
    %1373 = vector.extract_strided_slice %1357 {offsets = [2, 0, 0], sizes = [1, 8, 32], strides = [1, 1, 1]} : vector<3x8x32xf32> to vector<1x8x32xf32>
    %1374 = vector.shape_cast %1373 : vector<1x8x32xf32> to vector<8x32xf32>
    %1375 = arith.addf %1372, %1374 : vector<8x32xf32>
    %1376 = arith.addf %1305, %1363 : vector<8x32xf32>
    %1377 = arith.negf %1376 : vector<8x32xf32>
    %1378 = math.exp %1377 : vector<8x32xf32>
    %cst_615 = arith.constant 1.000000e+00 : f32
    %1379 = vector.broadcast %cst_615 : f32 to vector<8x32xf32>
    %1380 = arith.addf %1379, %1378 : vector<8x32xf32>
    %1381 = arith.divf %1379, %1380 : vector<8x32xf32>
    %1382 = arith.addf %1308, %1369 : vector<8x32xf32>
    %1383 = arith.negf %1382 : vector<8x32xf32>
    %1384 = math.exp %1383 : vector<8x32xf32>
    %cst_616 = arith.constant 1.000000e+00 : f32
    %1385 = vector.broadcast %cst_616 : f32 to vector<8x32xf32>
    %1386 = arith.addf %1385, %1384 : vector<8x32xf32>
    %1387 = arith.divf %1385, %1386 : vector<8x32xf32>
    %1388 = arith.mulf %1381, %1375 : vector<8x32xf32>
    %1389 = arith.addf %1311, %1388 : vector<8x32xf32>
    %1390 = math.tanh %1389 : vector<8x32xf32>
    %cst_617 = arith.constant 1.000000e+00 : f32
    %1391 = vector.broadcast %cst_617 : f32 to vector<8x32xf32>
    %1392 = arith.subf %1391, %1387 : vector<8x32xf32>
    %1393 = arith.mulf %1392, %1390 : vector<8x32xf32>
    %1394 = arith.mulf %1387, %1288 : vector<8x32xf32>
    %1395 = arith.addf %1393, %1394 : vector<8x32xf32>
    %c3_i32_618 = arith.constant 3 : i32
    %c7_i32_619 = arith.constant 7 : i32
    %1396 = arith.subi %c7_i32_619, %c3_i32_618 : i32
    %c8_i32_620 = arith.constant 8 : i32
    %1397 = arith.muli %c3_i32_618, %c8_i32_620 : i32
    %1398 = tpu.assume_multiple %1397, 8 : i32
    %c8_i32_621 = arith.constant 8 : i32
    %1399 = arith.muli %1396, %c8_i32_621 : i32
    %1400 = tpu.assume_multiple %1399, 8 : i32
    %c0_622 = arith.constant 0 : index
    %c0_623 = arith.constant 0 : index
    %1401 = arith.index_cast %1398 : i32 to index
    %c0_624 = arith.constant 0 : index
    %1402 = vector.load %arg10[%c0_622, %c0_623, %1401, %c0_624] : memref<2x3x64x32xf32, #tpu.memory_space<vmem>>, vector<1x1x8x32xf32>
    %1403 = vector.shape_cast %1402 : vector<1x1x8x32xf32> to vector<8x32xf32>
    %c0_625 = arith.constant 0 : index
    %c1_626 = arith.constant 1 : index
    %1404 = arith.index_cast %1398 : i32 to index
    %c0_627 = arith.constant 0 : index
    %1405 = vector.load %arg10[%c0_625, %c1_626, %1404, %c0_627] : memref<2x3x64x32xf32, #tpu.memory_space<vmem>>, vector<1x1x8x32xf32>
    %1406 = vector.shape_cast %1405 : vector<1x1x8x32xf32> to vector<8x32xf32>
    %c0_628 = arith.constant 0 : index
    %c2_629 = arith.constant 2 : index
    %1407 = arith.index_cast %1398 : i32 to index
    %c0_630 = arith.constant 0 : index
    %1408 = vector.load %arg10[%c0_628, %c2_629, %1407, %c0_630] : memref<2x3x64x32xf32, #tpu.memory_space<vmem>>, vector<1x1x8x32xf32>
    %1409 = vector.shape_cast %1408 : vector<1x1x8x32xf32> to vector<8x32xf32>
    %c1_631 = arith.constant 1 : index
    %c0_632 = arith.constant 0 : index
    %1410 = arith.index_cast %1400 : i32 to index
    %c0_633 = arith.constant 0 : index
    %1411 = vector.load %arg10[%c1_631, %c0_632, %1410, %c0_633] : memref<2x3x64x32xf32, #tpu.memory_space<vmem>>, vector<1x1x8x32xf32>
    %1412 = vector.shape_cast %1411 : vector<1x1x8x32xf32> to vector<8x32xf32>
    %c1_634 = arith.constant 1 : index
    %c1_635 = arith.constant 1 : index
    %1413 = arith.index_cast %1400 : i32 to index
    %c0_636 = arith.constant 0 : index
    %1414 = vector.load %arg10[%c1_634, %c1_635, %1413, %c0_636] : memref<2x3x64x32xf32, #tpu.memory_space<vmem>>, vector<1x1x8x32xf32>
    %1415 = vector.shape_cast %1414 : vector<1x1x8x32xf32> to vector<8x32xf32>
    %c1_637 = arith.constant 1 : index
    %c2_638 = arith.constant 2 : index
    %1416 = arith.index_cast %1400 : i32 to index
    %c0_639 = arith.constant 0 : index
    %1417 = vector.load %arg10[%c1_637, %c2_638, %1416, %c0_639] : memref<2x3x64x32xf32, #tpu.memory_space<vmem>>, vector<1x1x8x32xf32>
    %1418 = vector.shape_cast %1417 : vector<1x1x8x32xf32> to vector<8x32xf32>
    %1419 = vector.extract_strided_slice %1072 {offsets = [0, 0, 0, 0], sizes = [1, 3, 32, 32], strides = [1, 1, 1, 1]} : vector<2x3x32x32xf32> to vector<1x3x32x32xf32>
    %1420 = vector.shape_cast %1419 : vector<1x3x32x32xf32> to vector<3x32x32xf32>
    %1421 = vector.extract_strided_slice %1073 {offsets = [0, 0, 0, 0], sizes = [1, 3, 8, 32], strides = [1, 1, 1, 1]} : vector<2x3x8x32xf32> to vector<1x3x8x32xf32>
    %1422 = vector.shape_cast %1421 : vector<1x3x8x32xf32> to vector<3x8x32xf32>
    %1423 = vector.extract_strided_slice %1420 {offsets = [0, 0, 0], sizes = [1, 32, 32], strides = [1, 1, 1]} : vector<3x32x32xf32> to vector<1x32x32xf32>
    %1424 = vector.shape_cast %1423 : vector<1x32x32xf32> to vector<32x32xf32>
    %cst_640 = arith.constant dense<0.000000e+00> : vector<8x32xf32>
    %1425 = tpu.matmul %1353, %1424, %cst_640 {dimension_numbers = #tpu.dot_dimension_numbers<[1], [0], [0], [1], [0, 0, 1, 1], [], []>} : vector<8x32xf32>, vector<32x32xf32>, vector<8x32xf32> -> vector<8x32xf32>
    %1426 = vector.extract_strided_slice %1422 {offsets = [0, 0, 0], sizes = [1, 8, 32], strides = [1, 1, 1]} : vector<3x8x32xf32> to vector<1x8x32xf32>
    %1427 = vector.shape_cast %1426 : vector<1x8x32xf32> to vector<8x32xf32>
    %1428 = arith.addf %1425, %1427 : vector<8x32xf32>
    %1429 = vector.extract_strided_slice %1420 {offsets = [1, 0, 0], sizes = [1, 32, 32], strides = [1, 1, 1]} : vector<3x32x32xf32> to vector<1x32x32xf32>
    %1430 = vector.shape_cast %1429 : vector<1x32x32xf32> to vector<32x32xf32>
    %cst_641 = arith.constant dense<0.000000e+00> : vector<8x32xf32>
    %1431 = tpu.matmul %1353, %1430, %cst_641 {dimension_numbers = #tpu.dot_dimension_numbers<[1], [0], [0], [1], [0, 0, 1, 1], [], []>} : vector<8x32xf32>, vector<32x32xf32>, vector<8x32xf32> -> vector<8x32xf32>
    %1432 = vector.extract_strided_slice %1422 {offsets = [1, 0, 0], sizes = [1, 8, 32], strides = [1, 1, 1]} : vector<3x8x32xf32> to vector<1x8x32xf32>
    %1433 = vector.shape_cast %1432 : vector<1x8x32xf32> to vector<8x32xf32>
    %1434 = arith.addf %1431, %1433 : vector<8x32xf32>
    %1435 = vector.extract_strided_slice %1420 {offsets = [2, 0, 0], sizes = [1, 32, 32], strides = [1, 1, 1]} : vector<3x32x32xf32> to vector<1x32x32xf32>
    %1436 = vector.shape_cast %1435 : vector<1x32x32xf32> to vector<32x32xf32>
    %cst_642 = arith.constant dense<0.000000e+00> : vector<8x32xf32>
    %1437 = tpu.matmul %1353, %1436, %cst_642 {dimension_numbers = #tpu.dot_dimension_numbers<[1], [0], [0], [1], [0, 0, 1, 1], [], []>} : vector<8x32xf32>, vector<32x32xf32>, vector<8x32xf32> -> vector<8x32xf32>
    %1438 = vector.extract_strided_slice %1422 {offsets = [2, 0, 0], sizes = [1, 8, 32], strides = [1, 1, 1]} : vector<3x8x32xf32> to vector<1x8x32xf32>
    %1439 = vector.shape_cast %1438 : vector<1x8x32xf32> to vector<8x32xf32>
    %1440 = arith.addf %1437, %1439 : vector<8x32xf32>
    %1441 = arith.addf %1403, %1428 : vector<8x32xf32>
    %1442 = arith.negf %1441 : vector<8x32xf32>
    %1443 = math.exp %1442 : vector<8x32xf32>
    %cst_643 = arith.constant 1.000000e+00 : f32
    %1444 = vector.broadcast %cst_643 : f32 to vector<8x32xf32>
    %1445 = arith.addf %1444, %1443 : vector<8x32xf32>
    %1446 = arith.divf %1444, %1445 : vector<8x32xf32>
    %1447 = arith.addf %1406, %1434 : vector<8x32xf32>
    %1448 = arith.negf %1447 : vector<8x32xf32>
    %1449 = math.exp %1448 : vector<8x32xf32>
    %cst_644 = arith.constant 1.000000e+00 : f32
    %1450 = vector.broadcast %cst_644 : f32 to vector<8x32xf32>
    %1451 = arith.addf %1450, %1449 : vector<8x32xf32>
    %1452 = arith.divf %1450, %1451 : vector<8x32xf32>
    %1453 = arith.mulf %1446, %1440 : vector<8x32xf32>
    %1454 = arith.addf %1409, %1453 : vector<8x32xf32>
    %1455 = math.tanh %1454 : vector<8x32xf32>
    %cst_645 = arith.constant 1.000000e+00 : f32
    %1456 = vector.broadcast %cst_645 : f32 to vector<8x32xf32>
    %1457 = arith.subf %1456, %1452 : vector<8x32xf32>
    %1458 = arith.mulf %1457, %1455 : vector<8x32xf32>
    %1459 = arith.mulf %1452, %1353 : vector<8x32xf32>
    %1460 = arith.addf %1458, %1459 : vector<8x32xf32>
    %1461 = vector.extract_strided_slice %1072 {offsets = [1, 0, 0, 0], sizes = [1, 3, 32, 32], strides = [1, 1, 1, 1]} : vector<2x3x32x32xf32> to vector<1x3x32x32xf32>
    %1462 = vector.shape_cast %1461 : vector<1x3x32x32xf32> to vector<3x32x32xf32>
    %1463 = vector.extract_strided_slice %1073 {offsets = [1, 0, 0, 0], sizes = [1, 3, 8, 32], strides = [1, 1, 1, 1]} : vector<2x3x8x32xf32> to vector<1x3x8x32xf32>
    %1464 = vector.shape_cast %1463 : vector<1x3x8x32xf32> to vector<3x8x32xf32>
    %1465 = vector.extract_strided_slice %1462 {offsets = [0, 0, 0], sizes = [1, 32, 32], strides = [1, 1, 1]} : vector<3x32x32xf32> to vector<1x32x32xf32>
    %1466 = vector.shape_cast %1465 : vector<1x32x32xf32> to vector<32x32xf32>
    %cst_646 = arith.constant dense<0.000000e+00> : vector<8x32xf32>
    %1467 = tpu.matmul %1395, %1466, %cst_646 {dimension_numbers = #tpu.dot_dimension_numbers<[1], [0], [0], [1], [0, 0, 1, 1], [], []>} : vector<8x32xf32>, vector<32x32xf32>, vector<8x32xf32> -> vector<8x32xf32>
    %1468 = vector.extract_strided_slice %1464 {offsets = [0, 0, 0], sizes = [1, 8, 32], strides = [1, 1, 1]} : vector<3x8x32xf32> to vector<1x8x32xf32>
    %1469 = vector.shape_cast %1468 : vector<1x8x32xf32> to vector<8x32xf32>
    %1470 = arith.addf %1467, %1469 : vector<8x32xf32>
    %1471 = vector.extract_strided_slice %1462 {offsets = [1, 0, 0], sizes = [1, 32, 32], strides = [1, 1, 1]} : vector<3x32x32xf32> to vector<1x32x32xf32>
    %1472 = vector.shape_cast %1471 : vector<1x32x32xf32> to vector<32x32xf32>
    %cst_647 = arith.constant dense<0.000000e+00> : vector<8x32xf32>
    %1473 = tpu.matmul %1395, %1472, %cst_647 {dimension_numbers = #tpu.dot_dimension_numbers<[1], [0], [0], [1], [0, 0, 1, 1], [], []>} : vector<8x32xf32>, vector<32x32xf32>, vector<8x32xf32> -> vector<8x32xf32>
    %1474 = vector.extract_strided_slice %1464 {offsets = [1, 0, 0], sizes = [1, 8, 32], strides = [1, 1, 1]} : vector<3x8x32xf32> to vector<1x8x32xf32>
    %1475 = vector.shape_cast %1474 : vector<1x8x32xf32> to vector<8x32xf32>
    %1476 = arith.addf %1473, %1475 : vector<8x32xf32>
    %1477 = vector.extract_strided_slice %1462 {offsets = [2, 0, 0], sizes = [1, 32, 32], strides = [1, 1, 1]} : vector<3x32x32xf32> to vector<1x32x32xf32>
    %1478 = vector.shape_cast %1477 : vector<1x32x32xf32> to vector<32x32xf32>
    %cst_648 = arith.constant dense<0.000000e+00> : vector<8x32xf32>
    %1479 = tpu.matmul %1395, %1478, %cst_648 {dimension_numbers = #tpu.dot_dimension_numbers<[1], [0], [0], [1], [0, 0, 1, 1], [], []>} : vector<8x32xf32>, vector<32x32xf32>, vector<8x32xf32> -> vector<8x32xf32>
    %1480 = vector.extract_strided_slice %1464 {offsets = [2, 0, 0], sizes = [1, 8, 32], strides = [1, 1, 1]} : vector<3x8x32xf32> to vector<1x8x32xf32>
    %1481 = vector.shape_cast %1480 : vector<1x8x32xf32> to vector<8x32xf32>
    %1482 = arith.addf %1479, %1481 : vector<8x32xf32>
    %1483 = arith.addf %1412, %1470 : vector<8x32xf32>
    %1484 = arith.negf %1483 : vector<8x32xf32>
    %1485 = math.exp %1484 : vector<8x32xf32>
    %cst_649 = arith.constant 1.000000e+00 : f32
    %1486 = vector.broadcast %cst_649 : f32 to vector<8x32xf32>
    %1487 = arith.addf %1486, %1485 : vector<8x32xf32>
    %1488 = arith.divf %1486, %1487 : vector<8x32xf32>
    %1489 = arith.addf %1415, %1476 : vector<8x32xf32>
    %1490 = arith.negf %1489 : vector<8x32xf32>
    %1491 = math.exp %1490 : vector<8x32xf32>
    %cst_650 = arith.constant 1.000000e+00 : f32
    %1492 = vector.broadcast %cst_650 : f32 to vector<8x32xf32>
    %1493 = arith.addf %1492, %1491 : vector<8x32xf32>
    %1494 = arith.divf %1492, %1493 : vector<8x32xf32>
    %1495 = arith.mulf %1488, %1482 : vector<8x32xf32>
    %1496 = arith.addf %1418, %1495 : vector<8x32xf32>
    %1497 = math.tanh %1496 : vector<8x32xf32>
    %cst_651 = arith.constant 1.000000e+00 : f32
    %1498 = vector.broadcast %cst_651 : f32 to vector<8x32xf32>
    %1499 = arith.subf %1498, %1494 : vector<8x32xf32>
    %1500 = arith.mulf %1499, %1497 : vector<8x32xf32>
    %1501 = arith.mulf %1494, %1395 : vector<8x32xf32>
    %1502 = arith.addf %1500, %1501 : vector<8x32xf32>
    %c4_i32_652 = arith.constant 4 : i32
    %c7_i32_653 = arith.constant 7 : i32
    %1503 = arith.subi %c7_i32_653, %c4_i32_652 : i32
    %c8_i32_654 = arith.constant 8 : i32
    %1504 = arith.muli %c4_i32_652, %c8_i32_654 : i32
    %1505 = tpu.assume_multiple %1504, 8 : i32
    %c8_i32_655 = arith.constant 8 : i32
    %1506 = arith.muli %1503, %c8_i32_655 : i32
    %1507 = tpu.assume_multiple %1506, 8 : i32
    %c0_656 = arith.constant 0 : index
    %c0_657 = arith.constant 0 : index
    %1508 = arith.index_cast %1505 : i32 to index
    %c0_658 = arith.constant 0 : index
    %1509 = vector.load %arg10[%c0_656, %c0_657, %1508, %c0_658] : memref<2x3x64x32xf32, #tpu.memory_space<vmem>>, vector<1x1x8x32xf32>
    %1510 = vector.shape_cast %1509 : vector<1x1x8x32xf32> to vector<8x32xf32>
    %c0_659 = arith.constant 0 : index
    %c1_660 = arith.constant 1 : index
    %1511 = arith.index_cast %1505 : i32 to index
    %c0_661 = arith.constant 0 : index
    %1512 = vector.load %arg10[%c0_659, %c1_660, %1511, %c0_661] : memref<2x3x64x32xf32, #tpu.memory_space<vmem>>, vector<1x1x8x32xf32>
    %1513 = vector.shape_cast %1512 : vector<1x1x8x32xf32> to vector<8x32xf32>
    %c0_662 = arith.constant 0 : index
    %c2_663 = arith.constant 2 : index
    %1514 = arith.index_cast %1505 : i32 to index
    %c0_664 = arith.constant 0 : index
    %1515 = vector.load %arg10[%c0_662, %c2_663, %1514, %c0_664] : memref<2x3x64x32xf32, #tpu.memory_space<vmem>>, vector<1x1x8x32xf32>
    %1516 = vector.shape_cast %1515 : vector<1x1x8x32xf32> to vector<8x32xf32>
    %c1_665 = arith.constant 1 : index
    %c0_666 = arith.constant 0 : index
    %1517 = arith.index_cast %1507 : i32 to index
    %c0_667 = arith.constant 0 : index
    %1518 = vector.load %arg10[%c1_665, %c0_666, %1517, %c0_667] : memref<2x3x64x32xf32, #tpu.memory_space<vmem>>, vector<1x1x8x32xf32>
    %1519 = vector.shape_cast %1518 : vector<1x1x8x32xf32> to vector<8x32xf32>
    %c1_668 = arith.constant 1 : index
    %c1_669 = arith.constant 1 : index
    %1520 = arith.index_cast %1507 : i32 to index
    %c0_670 = arith.constant 0 : index
    %1521 = vector.load %arg10[%c1_668, %c1_669, %1520, %c0_670] : memref<2x3x64x32xf32, #tpu.memory_space<vmem>>, vector<1x1x8x32xf32>
    %1522 = vector.shape_cast %1521 : vector<1x1x8x32xf32> to vector<8x32xf32>
    %c1_671 = arith.constant 1 : index
    %c2_672 = arith.constant 2 : index
    %1523 = arith.index_cast %1507 : i32 to index
    %c0_673 = arith.constant 0 : index
    %1524 = vector.load %arg10[%c1_671, %c2_672, %1523, %c0_673] : memref<2x3x64x32xf32, #tpu.memory_space<vmem>>, vector<1x1x8x32xf32>
    %1525 = vector.shape_cast %1524 : vector<1x1x8x32xf32> to vector<8x32xf32>
    %1526 = vector.extract_strided_slice %1072 {offsets = [0, 0, 0, 0], sizes = [1, 3, 32, 32], strides = [1, 1, 1, 1]} : vector<2x3x32x32xf32> to vector<1x3x32x32xf32>
    %1527 = vector.shape_cast %1526 : vector<1x3x32x32xf32> to vector<3x32x32xf32>
    %1528 = vector.extract_strided_slice %1073 {offsets = [0, 0, 0, 0], sizes = [1, 3, 8, 32], strides = [1, 1, 1, 1]} : vector<2x3x8x32xf32> to vector<1x3x8x32xf32>
    %1529 = vector.shape_cast %1528 : vector<1x3x8x32xf32> to vector<3x8x32xf32>
    %1530 = vector.extract_strided_slice %1527 {offsets = [0, 0, 0], sizes = [1, 32, 32], strides = [1, 1, 1]} : vector<3x32x32xf32> to vector<1x32x32xf32>
    %1531 = vector.shape_cast %1530 : vector<1x32x32xf32> to vector<32x32xf32>
    %cst_674 = arith.constant dense<0.000000e+00> : vector<8x32xf32>
    %1532 = tpu.matmul %1460, %1531, %cst_674 {dimension_numbers = #tpu.dot_dimension_numbers<[1], [0], [0], [1], [0, 0, 1, 1], [], []>} : vector<8x32xf32>, vector<32x32xf32>, vector<8x32xf32> -> vector<8x32xf32>
    %1533 = vector.extract_strided_slice %1529 {offsets = [0, 0, 0], sizes = [1, 8, 32], strides = [1, 1, 1]} : vector<3x8x32xf32> to vector<1x8x32xf32>
    %1534 = vector.shape_cast %1533 : vector<1x8x32xf32> to vector<8x32xf32>
    %1535 = arith.addf %1532, %1534 : vector<8x32xf32>
    %1536 = vector.extract_strided_slice %1527 {offsets = [1, 0, 0], sizes = [1, 32, 32], strides = [1, 1, 1]} : vector<3x32x32xf32> to vector<1x32x32xf32>
    %1537 = vector.shape_cast %1536 : vector<1x32x32xf32> to vector<32x32xf32>
    %cst_675 = arith.constant dense<0.000000e+00> : vector<8x32xf32>
    %1538 = tpu.matmul %1460, %1537, %cst_675 {dimension_numbers = #tpu.dot_dimension_numbers<[1], [0], [0], [1], [0, 0, 1, 1], [], []>} : vector<8x32xf32>, vector<32x32xf32>, vector<8x32xf32> -> vector<8x32xf32>
    %1539 = vector.extract_strided_slice %1529 {offsets = [1, 0, 0], sizes = [1, 8, 32], strides = [1, 1, 1]} : vector<3x8x32xf32> to vector<1x8x32xf32>
    %1540 = vector.shape_cast %1539 : vector<1x8x32xf32> to vector<8x32xf32>
    %1541 = arith.addf %1538, %1540 : vector<8x32xf32>
    %1542 = vector.extract_strided_slice %1527 {offsets = [2, 0, 0], sizes = [1, 32, 32], strides = [1, 1, 1]} : vector<3x32x32xf32> to vector<1x32x32xf32>
    %1543 = vector.shape_cast %1542 : vector<1x32x32xf32> to vector<32x32xf32>
    %cst_676 = arith.constant dense<0.000000e+00> : vector<8x32xf32>
    %1544 = tpu.matmul %1460, %1543, %cst_676 {dimension_numbers = #tpu.dot_dimension_numbers<[1], [0], [0], [1], [0, 0, 1, 1], [], []>} : vector<8x32xf32>, vector<32x32xf32>, vector<8x32xf32> -> vector<8x32xf32>
    %1545 = vector.extract_strided_slice %1529 {offsets = [2, 0, 0], sizes = [1, 8, 32], strides = [1, 1, 1]} : vector<3x8x32xf32> to vector<1x8x32xf32>
    %1546 = vector.shape_cast %1545 : vector<1x8x32xf32> to vector<8x32xf32>
    %1547 = arith.addf %1544, %1546 : vector<8x32xf32>
    %1548 = arith.addf %1510, %1535 : vector<8x32xf32>
    %1549 = arith.negf %1548 : vector<8x32xf32>
    %1550 = math.exp %1549 : vector<8x32xf32>
    %cst_677 = arith.constant 1.000000e+00 : f32
    %1551 = vector.broadcast %cst_677 : f32 to vector<8x32xf32>
    %1552 = arith.addf %1551, %1550 : vector<8x32xf32>
    %1553 = arith.divf %1551, %1552 : vector<8x32xf32>
    %1554 = arith.addf %1513, %1541 : vector<8x32xf32>
    %1555 = arith.negf %1554 : vector<8x32xf32>
    %1556 = math.exp %1555 : vector<8x32xf32>
    %cst_678 = arith.constant 1.000000e+00 : f32
    %1557 = vector.broadcast %cst_678 : f32 to vector<8x32xf32>
    %1558 = arith.addf %1557, %1556 : vector<8x32xf32>
    %1559 = arith.divf %1557, %1558 : vector<8x32xf32>
    %1560 = arith.mulf %1553, %1547 : vector<8x32xf32>
    %1561 = arith.addf %1516, %1560 : vector<8x32xf32>
    %1562 = math.tanh %1561 : vector<8x32xf32>
    %cst_679 = arith.constant 1.000000e+00 : f32
    %1563 = vector.broadcast %cst_679 : f32 to vector<8x32xf32>
    %1564 = arith.subf %1563, %1559 : vector<8x32xf32>
    %1565 = arith.mulf %1564, %1562 : vector<8x32xf32>
    %1566 = arith.mulf %1559, %1460 : vector<8x32xf32>
    %1567 = arith.addf %1565, %1566 : vector<8x32xf32>
    %1568 = vector.extract_strided_slice %1072 {offsets = [1, 0, 0, 0], sizes = [1, 3, 32, 32], strides = [1, 1, 1, 1]} : vector<2x3x32x32xf32> to vector<1x3x32x32xf32>
    %1569 = vector.shape_cast %1568 : vector<1x3x32x32xf32> to vector<3x32x32xf32>
    %1570 = vector.extract_strided_slice %1073 {offsets = [1, 0, 0, 0], sizes = [1, 3, 8, 32], strides = [1, 1, 1, 1]} : vector<2x3x8x32xf32> to vector<1x3x8x32xf32>
    %1571 = vector.shape_cast %1570 : vector<1x3x8x32xf32> to vector<3x8x32xf32>
    %1572 = vector.extract_strided_slice %1569 {offsets = [0, 0, 0], sizes = [1, 32, 32], strides = [1, 1, 1]} : vector<3x32x32xf32> to vector<1x32x32xf32>
    %1573 = vector.shape_cast %1572 : vector<1x32x32xf32> to vector<32x32xf32>
    %cst_680 = arith.constant dense<0.000000e+00> : vector<8x32xf32>
    %1574 = tpu.matmul %1502, %1573, %cst_680 {dimension_numbers = #tpu.dot_dimension_numbers<[1], [0], [0], [1], [0, 0, 1, 1], [], []>} : vector<8x32xf32>, vector<32x32xf32>, vector<8x32xf32> -> vector<8x32xf32>
    %1575 = vector.extract_strided_slice %1571 {offsets = [0, 0, 0], sizes = [1, 8, 32], strides = [1, 1, 1]} : vector<3x8x32xf32> to vector<1x8x32xf32>
    %1576 = vector.shape_cast %1575 : vector<1x8x32xf32> to vector<8x32xf32>
    %1577 = arith.addf %1574, %1576 : vector<8x32xf32>
    %1578 = vector.extract_strided_slice %1569 {offsets = [1, 0, 0], sizes = [1, 32, 32], strides = [1, 1, 1]} : vector<3x32x32xf32> to vector<1x32x32xf32>
    %1579 = vector.shape_cast %1578 : vector<1x32x32xf32> to vector<32x32xf32>
    %cst_681 = arith.constant dense<0.000000e+00> : vector<8x32xf32>
    %1580 = tpu.matmul %1502, %1579, %cst_681 {dimension_numbers = #tpu.dot_dimension_numbers<[1], [0], [0], [1], [0, 0, 1, 1], [], []>} : vector<8x32xf32>, vector<32x32xf32>, vector<8x32xf32> -> vector<8x32xf32>
    %1581 = vector.extract_strided_slice %1571 {offsets = [1, 0, 0], sizes = [1, 8, 32], strides = [1, 1, 1]} : vector<3x8x32xf32> to vector<1x8x32xf32>
    %1582 = vector.shape_cast %1581 : vector<1x8x32xf32> to vector<8x32xf32>
    %1583 = arith.addf %1580, %1582 : vector<8x32xf32>
    %1584 = vector.extract_strided_slice %1569 {offsets = [2, 0, 0], sizes = [1, 32, 32], strides = [1, 1, 1]} : vector<3x32x32xf32> to vector<1x32x32xf32>
    %1585 = vector.shape_cast %1584 : vector<1x32x32xf32> to vector<32x32xf32>
    %cst_682 = arith.constant dense<0.000000e+00> : vector<8x32xf32>
    %1586 = tpu.matmul %1502, %1585, %cst_682 {dimension_numbers = #tpu.dot_dimension_numbers<[1], [0], [0], [1], [0, 0, 1, 1], [], []>} : vector<8x32xf32>, vector<32x32xf32>, vector<8x32xf32> -> vector<8x32xf32>
    %1587 = vector.extract_strided_slice %1571 {offsets = [2, 0, 0], sizes = [1, 8, 32], strides = [1, 1, 1]} : vector<3x8x32xf32> to vector<1x8x32xf32>
    %1588 = vector.shape_cast %1587 : vector<1x8x32xf32> to vector<8x32xf32>
    %1589 = arith.addf %1586, %1588 : vector<8x32xf32>
    %1590 = arith.addf %1519, %1577 : vector<8x32xf32>
    %1591 = arith.negf %1590 : vector<8x32xf32>
    %1592 = math.exp %1591 : vector<8x32xf32>
    %cst_683 = arith.constant 1.000000e+00 : f32
    %1593 = vector.broadcast %cst_683 : f32 to vector<8x32xf32>
    %1594 = arith.addf %1593, %1592 : vector<8x32xf32>
    %1595 = arith.divf %1593, %1594 : vector<8x32xf32>
    %1596 = arith.addf %1522, %1583 : vector<8x32xf32>
    %1597 = arith.negf %1596 : vector<8x32xf32>
    %1598 = math.exp %1597 : vector<8x32xf32>
    %cst_684 = arith.constant 1.000000e+00 : f32
    %1599 = vector.broadcast %cst_684 : f32 to vector<8x32xf32>
    %1600 = arith.addf %1599, %1598 : vector<8x32xf32>
    %1601 = arith.divf %1599, %1600 : vector<8x32xf32>
    %1602 = arith.mulf %1595, %1589 : vector<8x32xf32>
    %1603 = arith.addf %1525, %1602 : vector<8x32xf32>
    %1604 = math.tanh %1603 : vector<8x32xf32>
    %cst_685 = arith.constant 1.000000e+00 : f32
    %1605 = vector.broadcast %cst_685 : f32 to vector<8x32xf32>
    %1606 = arith.subf %1605, %1601 : vector<8x32xf32>
    %1607 = arith.mulf %1606, %1604 : vector<8x32xf32>
    %1608 = arith.mulf %1601, %1502 : vector<8x32xf32>
    %1609 = arith.addf %1607, %1608 : vector<8x32xf32>
    %c5_i32_686 = arith.constant 5 : i32
    %c7_i32_687 = arith.constant 7 : i32
    %1610 = arith.subi %c7_i32_687, %c5_i32_686 : i32
    %c8_i32_688 = arith.constant 8 : i32
    %1611 = arith.muli %c5_i32_686, %c8_i32_688 : i32
    %1612 = tpu.assume_multiple %1611, 8 : i32
    %c8_i32_689 = arith.constant 8 : i32
    %1613 = arith.muli %1610, %c8_i32_689 : i32
    %1614 = tpu.assume_multiple %1613, 8 : i32
    %c0_690 = arith.constant 0 : index
    %c0_691 = arith.constant 0 : index
    %1615 = arith.index_cast %1612 : i32 to index
    %c0_692 = arith.constant 0 : index
    %1616 = vector.load %arg10[%c0_690, %c0_691, %1615, %c0_692] : memref<2x3x64x32xf32, #tpu.memory_space<vmem>>, vector<1x1x8x32xf32>
    %1617 = vector.shape_cast %1616 : vector<1x1x8x32xf32> to vector<8x32xf32>
    %c0_693 = arith.constant 0 : index
    %c1_694 = arith.constant 1 : index
    %1618 = arith.index_cast %1612 : i32 to index
    %c0_695 = arith.constant 0 : index
    %1619 = vector.load %arg10[%c0_693, %c1_694, %1618, %c0_695] : memref<2x3x64x32xf32, #tpu.memory_space<vmem>>, vector<1x1x8x32xf32>
    %1620 = vector.shape_cast %1619 : vector<1x1x8x32xf32> to vector<8x32xf32>
    %c0_696 = arith.constant 0 : index
    %c2_697 = arith.constant 2 : index
    %1621 = arith.index_cast %1612 : i32 to index
    %c0_698 = arith.constant 0 : index
    %1622 = vector.load %arg10[%c0_696, %c2_697, %1621, %c0_698] : memref<2x3x64x32xf32, #tpu.memory_space<vmem>>, vector<1x1x8x32xf32>
    %1623 = vector.shape_cast %1622 : vector<1x1x8x32xf32> to vector<8x32xf32>
    %c1_699 = arith.constant 1 : index
    %c0_700 = arith.constant 0 : index
    %1624 = arith.index_cast %1614 : i32 to index
    %c0_701 = arith.constant 0 : index
    %1625 = vector.load %arg10[%c1_699, %c0_700, %1624, %c0_701] : memref<2x3x64x32xf32, #tpu.memory_space<vmem>>, vector<1x1x8x32xf32>
    %1626 = vector.shape_cast %1625 : vector<1x1x8x32xf32> to vector<8x32xf32>
    %c1_702 = arith.constant 1 : index
    %c1_703 = arith.constant 1 : index
    %1627 = arith.index_cast %1614 : i32 to index
    %c0_704 = arith.constant 0 : index
    %1628 = vector.load %arg10[%c1_702, %c1_703, %1627, %c0_704] : memref<2x3x64x32xf32, #tpu.memory_space<vmem>>, vector<1x1x8x32xf32>
    %1629 = vector.shape_cast %1628 : vector<1x1x8x32xf32> to vector<8x32xf32>
    %c1_705 = arith.constant 1 : index
    %c2_706 = arith.constant 2 : index
    %1630 = arith.index_cast %1614 : i32 to index
    %c0_707 = arith.constant 0 : index
    %1631 = vector.load %arg10[%c1_705, %c2_706, %1630, %c0_707] : memref<2x3x64x32xf32, #tpu.memory_space<vmem>>, vector<1x1x8x32xf32>
    %1632 = vector.shape_cast %1631 : vector<1x1x8x32xf32> to vector<8x32xf32>
    %1633 = vector.extract_strided_slice %1072 {offsets = [0, 0, 0, 0], sizes = [1, 3, 32, 32], strides = [1, 1, 1, 1]} : vector<2x3x32x32xf32> to vector<1x3x32x32xf32>
    %1634 = vector.shape_cast %1633 : vector<1x3x32x32xf32> to vector<3x32x32xf32>
    %1635 = vector.extract_strided_slice %1073 {offsets = [0, 0, 0, 0], sizes = [1, 3, 8, 32], strides = [1, 1, 1, 1]} : vector<2x3x8x32xf32> to vector<1x3x8x32xf32>
    %1636 = vector.shape_cast %1635 : vector<1x3x8x32xf32> to vector<3x8x32xf32>
    %1637 = vector.extract_strided_slice %1634 {offsets = [0, 0, 0], sizes = [1, 32, 32], strides = [1, 1, 1]} : vector<3x32x32xf32> to vector<1x32x32xf32>
    %1638 = vector.shape_cast %1637 : vector<1x32x32xf32> to vector<32x32xf32>
    %cst_708 = arith.constant dense<0.000000e+00> : vector<8x32xf32>
    %1639 = tpu.matmul %1567, %1638, %cst_708 {dimension_numbers = #tpu.dot_dimension_numbers<[1], [0], [0], [1], [0, 0, 1, 1], [], []>} : vector<8x32xf32>, vector<32x32xf32>, vector<8x32xf32> -> vector<8x32xf32>
    %1640 = vector.extract_strided_slice %1636 {offsets = [0, 0, 0], sizes = [1, 8, 32], strides = [1, 1, 1]} : vector<3x8x32xf32> to vector<1x8x32xf32>
    %1641 = vector.shape_cast %1640 : vector<1x8x32xf32> to vector<8x32xf32>
    %1642 = arith.addf %1639, %1641 : vector<8x32xf32>
    %1643 = vector.extract_strided_slice %1634 {offsets = [1, 0, 0], sizes = [1, 32, 32], strides = [1, 1, 1]} : vector<3x32x32xf32> to vector<1x32x32xf32>
    %1644 = vector.shape_cast %1643 : vector<1x32x32xf32> to vector<32x32xf32>
    %cst_709 = arith.constant dense<0.000000e+00> : vector<8x32xf32>
    %1645 = tpu.matmul %1567, %1644, %cst_709 {dimension_numbers = #tpu.dot_dimension_numbers<[1], [0], [0], [1], [0, 0, 1, 1], [], []>} : vector<8x32xf32>, vector<32x32xf32>, vector<8x32xf32> -> vector<8x32xf32>
    %1646 = vector.extract_strided_slice %1636 {offsets = [1, 0, 0], sizes = [1, 8, 32], strides = [1, 1, 1]} : vector<3x8x32xf32> to vector<1x8x32xf32>
    %1647 = vector.shape_cast %1646 : vector<1x8x32xf32> to vector<8x32xf32>
    %1648 = arith.addf %1645, %1647 : vector<8x32xf32>
    %1649 = vector.extract_strided_slice %1634 {offsets = [2, 0, 0], sizes = [1, 32, 32], strides = [1, 1, 1]} : vector<3x32x32xf32> to vector<1x32x32xf32>
    %1650 = vector.shape_cast %1649 : vector<1x32x32xf32> to vector<32x32xf32>
    %cst_710 = arith.constant dense<0.000000e+00> : vector<8x32xf32>
    %1651 = tpu.matmul %1567, %1650, %cst_710 {dimension_numbers = #tpu.dot_dimension_numbers<[1], [0], [0], [1], [0, 0, 1, 1], [], []>} : vector<8x32xf32>, vector<32x32xf32>, vector<8x32xf32> -> vector<8x32xf32>
    %1652 = vector.extract_strided_slice %1636 {offsets = [2, 0, 0], sizes = [1, 8, 32], strides = [1, 1, 1]} : vector<3x8x32xf32> to vector<1x8x32xf32>
    %1653 = vector.shape_cast %1652 : vector<1x8x32xf32> to vector<8x32xf32>
    %1654 = arith.addf %1651, %1653 : vector<8x32xf32>
    %1655 = arith.addf %1617, %1642 : vector<8x32xf32>
    %1656 = arith.negf %1655 : vector<8x32xf32>
    %1657 = math.exp %1656 : vector<8x32xf32>
    %cst_711 = arith.constant 1.000000e+00 : f32
    %1658 = vector.broadcast %cst_711 : f32 to vector<8x32xf32>
    %1659 = arith.addf %1658, %1657 : vector<8x32xf32>
    %1660 = arith.divf %1658, %1659 : vector<8x32xf32>
    %1661 = arith.addf %1620, %1648 : vector<8x32xf32>
    %1662 = arith.negf %1661 : vector<8x32xf32>
    %1663 = math.exp %1662 : vector<8x32xf32>
    %cst_712 = arith.constant 1.000000e+00 : f32
    %1664 = vector.broadcast %cst_712 : f32 to vector<8x32xf32>
    %1665 = arith.addf %1664, %1663 : vector<8x32xf32>
    %1666 = arith.divf %1664, %1665 : vector<8x32xf32>
    %1667 = arith.mulf %1660, %1654 : vector<8x32xf32>
    %1668 = arith.addf %1623, %1667 : vector<8x32xf32>
    %1669 = math.tanh %1668 : vector<8x32xf32>
    %cst_713 = arith.constant 1.000000e+00 : f32
    %1670 = vector.broadcast %cst_713 : f32 to vector<8x32xf32>
    %1671 = arith.subf %1670, %1666 : vector<8x32xf32>
    %1672 = arith.mulf %1671, %1669 : vector<8x32xf32>
    %1673 = arith.mulf %1666, %1567 : vector<8x32xf32>
    %1674 = arith.addf %1672, %1673 : vector<8x32xf32>
    %1675 = vector.extract_strided_slice %1072 {offsets = [1, 0, 0, 0], sizes = [1, 3, 32, 32], strides = [1, 1, 1, 1]} : vector<2x3x32x32xf32> to vector<1x3x32x32xf32>
    %1676 = vector.shape_cast %1675 : vector<1x3x32x32xf32> to vector<3x32x32xf32>
    %1677 = vector.extract_strided_slice %1073 {offsets = [1, 0, 0, 0], sizes = [1, 3, 8, 32], strides = [1, 1, 1, 1]} : vector<2x3x8x32xf32> to vector<1x3x8x32xf32>
    %1678 = vector.shape_cast %1677 : vector<1x3x8x32xf32> to vector<3x8x32xf32>
    %1679 = vector.extract_strided_slice %1676 {offsets = [0, 0, 0], sizes = [1, 32, 32], strides = [1, 1, 1]} : vector<3x32x32xf32> to vector<1x32x32xf32>
    %1680 = vector.shape_cast %1679 : vector<1x32x32xf32> to vector<32x32xf32>
    %cst_714 = arith.constant dense<0.000000e+00> : vector<8x32xf32>
    %1681 = tpu.matmul %1609, %1680, %cst_714 {dimension_numbers = #tpu.dot_dimension_numbers<[1], [0], [0], [1], [0, 0, 1, 1], [], []>} : vector<8x32xf32>, vector<32x32xf32>, vector<8x32xf32> -> vector<8x32xf32>
    %1682 = vector.extract_strided_slice %1678 {offsets = [0, 0, 0], sizes = [1, 8, 32], strides = [1, 1, 1]} : vector<3x8x32xf32> to vector<1x8x32xf32>
    %1683 = vector.shape_cast %1682 : vector<1x8x32xf32> to vector<8x32xf32>
    %1684 = arith.addf %1681, %1683 : vector<8x32xf32>
    %1685 = vector.extract_strided_slice %1676 {offsets = [1, 0, 0], sizes = [1, 32, 32], strides = [1, 1, 1]} : vector<3x32x32xf32> to vector<1x32x32xf32>
    %1686 = vector.shape_cast %1685 : vector<1x32x32xf32> to vector<32x32xf32>
    %cst_715 = arith.constant dense<0.000000e+00> : vector<8x32xf32>
    %1687 = tpu.matmul %1609, %1686, %cst_715 {dimension_numbers = #tpu.dot_dimension_numbers<[1], [0], [0], [1], [0, 0, 1, 1], [], []>} : vector<8x32xf32>, vector<32x32xf32>, vector<8x32xf32> -> vector<8x32xf32>
    %1688 = vector.extract_strided_slice %1678 {offsets = [1, 0, 0], sizes = [1, 8, 32], strides = [1, 1, 1]} : vector<3x8x32xf32> to vector<1x8x32xf32>
    %1689 = vector.shape_cast %1688 : vector<1x8x32xf32> to vector<8x32xf32>
    %1690 = arith.addf %1687, %1689 : vector<8x32xf32>
    %1691 = vector.extract_strided_slice %1676 {offsets = [2, 0, 0], sizes = [1, 32, 32], strides = [1, 1, 1]} : vector<3x32x32xf32> to vector<1x32x32xf32>
    %1692 = vector.shape_cast %1691 : vector<1x32x32xf32> to vector<32x32xf32>
    %cst_716 = arith.constant dense<0.000000e+00> : vector<8x32xf32>
    %1693 = tpu.matmul %1609, %1692, %cst_716 {dimension_numbers = #tpu.dot_dimension_numbers<[1], [0], [0], [1], [0, 0, 1, 1], [], []>} : vector<8x32xf32>, vector<32x32xf32>, vector<8x32xf32> -> vector<8x32xf32>
    %1694 = vector.extract_strided_slice %1678 {offsets = [2, 0, 0], sizes = [1, 8, 32], strides = [1, 1, 1]} : vector<3x8x32xf32> to vector<1x8x32xf32>
    %1695 = vector.shape_cast %1694 : vector<1x8x32xf32> to vector<8x32xf32>
    %1696 = arith.addf %1693, %1695 : vector<8x32xf32>
    %1697 = arith.addf %1626, %1684 : vector<8x32xf32>
    %1698 = arith.negf %1697 : vector<8x32xf32>
    %1699 = math.exp %1698 : vector<8x32xf32>
    %cst_717 = arith.constant 1.000000e+00 : f32
    %1700 = vector.broadcast %cst_717 : f32 to vector<8x32xf32>
    %1701 = arith.addf %1700, %1699 : vector<8x32xf32>
    %1702 = arith.divf %1700, %1701 : vector<8x32xf32>
    %1703 = arith.addf %1629, %1690 : vector<8x32xf32>
    %1704 = arith.negf %1703 : vector<8x32xf32>
    %1705 = math.exp %1704 : vector<8x32xf32>
    %cst_718 = arith.constant 1.000000e+00 : f32
    %1706 = vector.broadcast %cst_718 : f32 to vector<8x32xf32>
    %1707 = arith.addf %1706, %1705 : vector<8x32xf32>
    %1708 = arith.divf %1706, %1707 : vector<8x32xf32>
    %1709 = arith.mulf %1702, %1696 : vector<8x32xf32>
    %1710 = arith.addf %1632, %1709 : vector<8x32xf32>
    %1711 = math.tanh %1710 : vector<8x32xf32>
    %cst_719 = arith.constant 1.000000e+00 : f32
    %1712 = vector.broadcast %cst_719 : f32 to vector<8x32xf32>
    %1713 = arith.subf %1712, %1708 : vector<8x32xf32>
    %1714 = arith.mulf %1713, %1711 : vector<8x32xf32>
    %1715 = arith.mulf %1708, %1609 : vector<8x32xf32>
    %1716 = arith.addf %1714, %1715 : vector<8x32xf32>
    %c6_i32_720 = arith.constant 6 : i32
    %c7_i32_721 = arith.constant 7 : i32
    %1717 = arith.subi %c7_i32_721, %c6_i32_720 : i32
    %c8_i32_722 = arith.constant 8 : i32
    %1718 = arith.muli %c6_i32_720, %c8_i32_722 : i32
    %1719 = tpu.assume_multiple %1718, 8 : i32
    %c8_i32_723 = arith.constant 8 : i32
    %1720 = arith.muli %1717, %c8_i32_723 : i32
    %1721 = tpu.assume_multiple %1720, 8 : i32
    %c0_724 = arith.constant 0 : index
    %c0_725 = arith.constant 0 : index
    %1722 = arith.index_cast %1719 : i32 to index
    %c0_726 = arith.constant 0 : index
    %1723 = vector.load %arg10[%c0_724, %c0_725, %1722, %c0_726] : memref<2x3x64x32xf32, #tpu.memory_space<vmem>>, vector<1x1x8x32xf32>
    %1724 = vector.shape_cast %1723 : vector<1x1x8x32xf32> to vector<8x32xf32>
    %c0_727 = arith.constant 0 : index
    %c1_728 = arith.constant 1 : index
    %1725 = arith.index_cast %1719 : i32 to index
    %c0_729 = arith.constant 0 : index
    %1726 = vector.load %arg10[%c0_727, %c1_728, %1725, %c0_729] : memref<2x3x64x32xf32, #tpu.memory_space<vmem>>, vector<1x1x8x32xf32>
    %1727 = vector.shape_cast %1726 : vector<1x1x8x32xf32> to vector<8x32xf32>
    %c0_730 = arith.constant 0 : index
    %c2_731 = arith.constant 2 : index
    %1728 = arith.index_cast %1719 : i32 to index
    %c0_732 = arith.constant 0 : index
    %1729 = vector.load %arg10[%c0_730, %c2_731, %1728, %c0_732] : memref<2x3x64x32xf32, #tpu.memory_space<vmem>>, vector<1x1x8x32xf32>
    %1730 = vector.shape_cast %1729 : vector<1x1x8x32xf32> to vector<8x32xf32>
    %c1_733 = arith.constant 1 : index
    %c0_734 = arith.constant 0 : index
    %1731 = arith.index_cast %1721 : i32 to index
    %c0_735 = arith.constant 0 : index
    %1732 = vector.load %arg10[%c1_733, %c0_734, %1731, %c0_735] : memref<2x3x64x32xf32, #tpu.memory_space<vmem>>, vector<1x1x8x32xf32>
    %1733 = vector.shape_cast %1732 : vector<1x1x8x32xf32> to vector<8x32xf32>
    %c1_736 = arith.constant 1 : index
    %c1_737 = arith.constant 1 : index
    %1734 = arith.index_cast %1721 : i32 to index
    %c0_738 = arith.constant 0 : index
    %1735 = vector.load %arg10[%c1_736, %c1_737, %1734, %c0_738] : memref<2x3x64x32xf32, #tpu.memory_space<vmem>>, vector<1x1x8x32xf32>
    %1736 = vector.shape_cast %1735 : vector<1x1x8x32xf32> to vector<8x32xf32>
    %c1_739 = arith.constant 1 : index
    %c2_740 = arith.constant 2 : index
    %1737 = arith.index_cast %1721 : i32 to index
    %c0_741 = arith.constant 0 : index
    %1738 = vector.load %arg10[%c1_739, %c2_740, %1737, %c0_741] : memref<2x3x64x32xf32, #tpu.memory_space<vmem>>, vector<1x1x8x32xf32>
    %1739 = vector.shape_cast %1738 : vector<1x1x8x32xf32> to vector<8x32xf32>
    %1740 = vector.extract_strided_slice %1072 {offsets = [0, 0, 0, 0], sizes = [1, 3, 32, 32], strides = [1, 1, 1, 1]} : vector<2x3x32x32xf32> to vector<1x3x32x32xf32>
    %1741 = vector.shape_cast %1740 : vector<1x3x32x32xf32> to vector<3x32x32xf32>
    %1742 = vector.extract_strided_slice %1073 {offsets = [0, 0, 0, 0], sizes = [1, 3, 8, 32], strides = [1, 1, 1, 1]} : vector<2x3x8x32xf32> to vector<1x3x8x32xf32>
    %1743 = vector.shape_cast %1742 : vector<1x3x8x32xf32> to vector<3x8x32xf32>
    %1744 = vector.extract_strided_slice %1741 {offsets = [0, 0, 0], sizes = [1, 32, 32], strides = [1, 1, 1]} : vector<3x32x32xf32> to vector<1x32x32xf32>
    %1745 = vector.shape_cast %1744 : vector<1x32x32xf32> to vector<32x32xf32>
    %cst_742 = arith.constant dense<0.000000e+00> : vector<8x32xf32>
    %1746 = tpu.matmul %1674, %1745, %cst_742 {dimension_numbers = #tpu.dot_dimension_numbers<[1], [0], [0], [1], [0, 0, 1, 1], [], []>} : vector<8x32xf32>, vector<32x32xf32>, vector<8x32xf32> -> vector<8x32xf32>
    %1747 = vector.extract_strided_slice %1743 {offsets = [0, 0, 0], sizes = [1, 8, 32], strides = [1, 1, 1]} : vector<3x8x32xf32> to vector<1x8x32xf32>
    %1748 = vector.shape_cast %1747 : vector<1x8x32xf32> to vector<8x32xf32>
    %1749 = arith.addf %1746, %1748 : vector<8x32xf32>
    %1750 = vector.extract_strided_slice %1741 {offsets = [1, 0, 0], sizes = [1, 32, 32], strides = [1, 1, 1]} : vector<3x32x32xf32> to vector<1x32x32xf32>
    %1751 = vector.shape_cast %1750 : vector<1x32x32xf32> to vector<32x32xf32>
    %cst_743 = arith.constant dense<0.000000e+00> : vector<8x32xf32>
    %1752 = tpu.matmul %1674, %1751, %cst_743 {dimension_numbers = #tpu.dot_dimension_numbers<[1], [0], [0], [1], [0, 0, 1, 1], [], []>} : vector<8x32xf32>, vector<32x32xf32>, vector<8x32xf32> -> vector<8x32xf32>
    %1753 = vector.extract_strided_slice %1743 {offsets = [1, 0, 0], sizes = [1, 8, 32], strides = [1, 1, 1]} : vector<3x8x32xf32> to vector<1x8x32xf32>
    %1754 = vector.shape_cast %1753 : vector<1x8x32xf32> to vector<8x32xf32>
    %1755 = arith.addf %1752, %1754 : vector<8x32xf32>
    %1756 = vector.extract_strided_slice %1741 {offsets = [2, 0, 0], sizes = [1, 32, 32], strides = [1, 1, 1]} : vector<3x32x32xf32> to vector<1x32x32xf32>
    %1757 = vector.shape_cast %1756 : vector<1x32x32xf32> to vector<32x32xf32>
    %cst_744 = arith.constant dense<0.000000e+00> : vector<8x32xf32>
    %1758 = tpu.matmul %1674, %1757, %cst_744 {dimension_numbers = #tpu.dot_dimension_numbers<[1], [0], [0], [1], [0, 0, 1, 1], [], []>} : vector<8x32xf32>, vector<32x32xf32>, vector<8x32xf32> -> vector<8x32xf32>
    %1759 = vector.extract_strided_slice %1743 {offsets = [2, 0, 0], sizes = [1, 8, 32], strides = [1, 1, 1]} : vector<3x8x32xf32> to vector<1x8x32xf32>
    %1760 = vector.shape_cast %1759 : vector<1x8x32xf32> to vector<8x32xf32>
    %1761 = arith.addf %1758, %1760 : vector<8x32xf32>
    %1762 = arith.addf %1724, %1749 : vector<8x32xf32>
    %1763 = arith.negf %1762 : vector<8x32xf32>
    %1764 = math.exp %1763 : vector<8x32xf32>
    %cst_745 = arith.constant 1.000000e+00 : f32
    %1765 = vector.broadcast %cst_745 : f32 to vector<8x32xf32>
    %1766 = arith.addf %1765, %1764 : vector<8x32xf32>
    %1767 = arith.divf %1765, %1766 : vector<8x32xf32>
    %1768 = arith.addf %1727, %1755 : vector<8x32xf32>
    %1769 = arith.negf %1768 : vector<8x32xf32>
    %1770 = math.exp %1769 : vector<8x32xf32>
    %cst_746 = arith.constant 1.000000e+00 : f32
    %1771 = vector.broadcast %cst_746 : f32 to vector<8x32xf32>
    %1772 = arith.addf %1771, %1770 : vector<8x32xf32>
    %1773 = arith.divf %1771, %1772 : vector<8x32xf32>
    %1774 = arith.mulf %1767, %1761 : vector<8x32xf32>
    %1775 = arith.addf %1730, %1774 : vector<8x32xf32>
    %1776 = math.tanh %1775 : vector<8x32xf32>
    %cst_747 = arith.constant 1.000000e+00 : f32
    %1777 = vector.broadcast %cst_747 : f32 to vector<8x32xf32>
    %1778 = arith.subf %1777, %1773 : vector<8x32xf32>
    %1779 = arith.mulf %1778, %1776 : vector<8x32xf32>
    %1780 = arith.mulf %1773, %1674 : vector<8x32xf32>
    %1781 = arith.addf %1779, %1780 : vector<8x32xf32>
    %1782 = vector.extract_strided_slice %1072 {offsets = [1, 0, 0, 0], sizes = [1, 3, 32, 32], strides = [1, 1, 1, 1]} : vector<2x3x32x32xf32> to vector<1x3x32x32xf32>
    %1783 = vector.shape_cast %1782 : vector<1x3x32x32xf32> to vector<3x32x32xf32>
    %1784 = vector.extract_strided_slice %1073 {offsets = [1, 0, 0, 0], sizes = [1, 3, 8, 32], strides = [1, 1, 1, 1]} : vector<2x3x8x32xf32> to vector<1x3x8x32xf32>
    %1785 = vector.shape_cast %1784 : vector<1x3x8x32xf32> to vector<3x8x32xf32>
    %1786 = vector.extract_strided_slice %1783 {offsets = [0, 0, 0], sizes = [1, 32, 32], strides = [1, 1, 1]} : vector<3x32x32xf32> to vector<1x32x32xf32>
    %1787 = vector.shape_cast %1786 : vector<1x32x32xf32> to vector<32x32xf32>
    %cst_748 = arith.constant dense<0.000000e+00> : vector<8x32xf32>
    %1788 = tpu.matmul %1716, %1787, %cst_748 {dimension_numbers = #tpu.dot_dimension_numbers<[1], [0], [0], [1], [0, 0, 1, 1], [], []>} : vector<8x32xf32>, vector<32x32xf32>, vector<8x32xf32> -> vector<8x32xf32>
    %1789 = vector.extract_strided_slice %1785 {offsets = [0, 0, 0], sizes = [1, 8, 32], strides = [1, 1, 1]} : vector<3x8x32xf32> to vector<1x8x32xf32>
    %1790 = vector.shape_cast %1789 : vector<1x8x32xf32> to vector<8x32xf32>
    %1791 = arith.addf %1788, %1790 : vector<8x32xf32>
    %1792 = vector.extract_strided_slice %1783 {offsets = [1, 0, 0], sizes = [1, 32, 32], strides = [1, 1, 1]} : vector<3x32x32xf32> to vector<1x32x32xf32>
    %1793 = vector.shape_cast %1792 : vector<1x32x32xf32> to vector<32x32xf32>
    %cst_749 = arith.constant dense<0.000000e+00> : vector<8x32xf32>
    %1794 = tpu.matmul %1716, %1793, %cst_749 {dimension_numbers = #tpu.dot_dimension_numbers<[1], [0], [0], [1], [0, 0, 1, 1], [], []>} : vector<8x32xf32>, vector<32x32xf32>, vector<8x32xf32> -> vector<8x32xf32>
    %1795 = vector.extract_strided_slice %1785 {offsets = [1, 0, 0], sizes = [1, 8, 32], strides = [1, 1, 1]} : vector<3x8x32xf32> to vector<1x8x32xf32>
    %1796 = vector.shape_cast %1795 : vector<1x8x32xf32> to vector<8x32xf32>
    %1797 = arith.addf %1794, %1796 : vector<8x32xf32>
    %1798 = vector.extract_strided_slice %1783 {offsets = [2, 0, 0], sizes = [1, 32, 32], strides = [1, 1, 1]} : vector<3x32x32xf32> to vector<1x32x32xf32>
    %1799 = vector.shape_cast %1798 : vector<1x32x32xf32> to vector<32x32xf32>
    %cst_750 = arith.constant dense<0.000000e+00> : vector<8x32xf32>
    %1800 = tpu.matmul %1716, %1799, %cst_750 {dimension_numbers = #tpu.dot_dimension_numbers<[1], [0], [0], [1], [0, 0, 1, 1], [], []>} : vector<8x32xf32>, vector<32x32xf32>, vector<8x32xf32> -> vector<8x32xf32>
    %1801 = vector.extract_strided_slice %1785 {offsets = [2, 0, 0], sizes = [1, 8, 32], strides = [1, 1, 1]} : vector<3x8x32xf32> to vector<1x8x32xf32>
    %1802 = vector.shape_cast %1801 : vector<1x8x32xf32> to vector<8x32xf32>
    %1803 = arith.addf %1800, %1802 : vector<8x32xf32>
    %1804 = arith.addf %1733, %1791 : vector<8x32xf32>
    %1805 = arith.negf %1804 : vector<8x32xf32>
    %1806 = math.exp %1805 : vector<8x32xf32>
    %cst_751 = arith.constant 1.000000e+00 : f32
    %1807 = vector.broadcast %cst_751 : f32 to vector<8x32xf32>
    %1808 = arith.addf %1807, %1806 : vector<8x32xf32>
    %1809 = arith.divf %1807, %1808 : vector<8x32xf32>
    %1810 = arith.addf %1736, %1797 : vector<8x32xf32>
    %1811 = arith.negf %1810 : vector<8x32xf32>
    %1812 = math.exp %1811 : vector<8x32xf32>
    %cst_752 = arith.constant 1.000000e+00 : f32
    %1813 = vector.broadcast %cst_752 : f32 to vector<8x32xf32>
    %1814 = arith.addf %1813, %1812 : vector<8x32xf32>
    %1815 = arith.divf %1813, %1814 : vector<8x32xf32>
    %1816 = arith.mulf %1809, %1803 : vector<8x32xf32>
    %1817 = arith.addf %1739, %1816 : vector<8x32xf32>
    %1818 = math.tanh %1817 : vector<8x32xf32>
    %cst_753 = arith.constant 1.000000e+00 : f32
    %1819 = vector.broadcast %cst_753 : f32 to vector<8x32xf32>
    %1820 = arith.subf %1819, %1815 : vector<8x32xf32>
    %1821 = arith.mulf %1820, %1818 : vector<8x32xf32>
    %1822 = arith.mulf %1815, %1716 : vector<8x32xf32>
    %1823 = arith.addf %1821, %1822 : vector<8x32xf32>
    %c7_i32_754 = arith.constant 7 : i32
    %c7_i32_755 = arith.constant 7 : i32
    %1824 = arith.subi %c7_i32_755, %c7_i32_754 : i32
    %c8_i32_756 = arith.constant 8 : i32
    %1825 = arith.muli %c7_i32_754, %c8_i32_756 : i32
    %1826 = tpu.assume_multiple %1825, 8 : i32
    %c8_i32_757 = arith.constant 8 : i32
    %1827 = arith.muli %1824, %c8_i32_757 : i32
    %1828 = tpu.assume_multiple %1827, 8 : i32
    %c0_758 = arith.constant 0 : index
    %c0_759 = arith.constant 0 : index
    %1829 = arith.index_cast %1826 : i32 to index
    %c0_760 = arith.constant 0 : index
    %1830 = vector.load %arg10[%c0_758, %c0_759, %1829, %c0_760] : memref<2x3x64x32xf32, #tpu.memory_space<vmem>>, vector<1x1x8x32xf32>
    %1831 = vector.shape_cast %1830 : vector<1x1x8x32xf32> to vector<8x32xf32>
    %c0_761 = arith.constant 0 : index
    %c1_762 = arith.constant 1 : index
    %1832 = arith.index_cast %1826 : i32 to index
    %c0_763 = arith.constant 0 : index
    %1833 = vector.load %arg10[%c0_761, %c1_762, %1832, %c0_763] : memref<2x3x64x32xf32, #tpu.memory_space<vmem>>, vector<1x1x8x32xf32>
    %1834 = vector.shape_cast %1833 : vector<1x1x8x32xf32> to vector<8x32xf32>
    %c0_764 = arith.constant 0 : index
    %c2_765 = arith.constant 2 : index
    %1835 = arith.index_cast %1826 : i32 to index
    %c0_766 = arith.constant 0 : index
    %1836 = vector.load %arg10[%c0_764, %c2_765, %1835, %c0_766] : memref<2x3x64x32xf32, #tpu.memory_space<vmem>>, vector<1x1x8x32xf32>
    %1837 = vector.shape_cast %1836 : vector<1x1x8x32xf32> to vector<8x32xf32>
    %c1_767 = arith.constant 1 : index
    %c0_768 = arith.constant 0 : index
    %1838 = arith.index_cast %1828 : i32 to index
    %c0_769 = arith.constant 0 : index
    %1839 = vector.load %arg10[%c1_767, %c0_768, %1838, %c0_769] : memref<2x3x64x32xf32, #tpu.memory_space<vmem>>, vector<1x1x8x32xf32>
    %1840 = vector.shape_cast %1839 : vector<1x1x8x32xf32> to vector<8x32xf32>
    %c1_770 = arith.constant 1 : index
    %c1_771 = arith.constant 1 : index
    %1841 = arith.index_cast %1828 : i32 to index
    %c0_772 = arith.constant 0 : index
    %1842 = vector.load %arg10[%c1_770, %c1_771, %1841, %c0_772] : memref<2x3x64x32xf32, #tpu.memory_space<vmem>>, vector<1x1x8x32xf32>
    %1843 = vector.shape_cast %1842 : vector<1x1x8x32xf32> to vector<8x32xf32>
    %c1_773 = arith.constant 1 : index
    %c2_774 = arith.constant 2 : index
    %1844 = arith.index_cast %1828 : i32 to index
    %c0_775 = arith.constant 0 : index
    %1845 = vector.load %arg10[%c1_773, %c2_774, %1844, %c0_775] : memref<2x3x64x32xf32, #tpu.memory_space<vmem>>, vector<1x1x8x32xf32>
    %1846 = vector.shape_cast %1845 : vector<1x1x8x32xf32> to vector<8x32xf32>
    %1847 = vector.extract_strided_slice %1072 {offsets = [0, 0, 0, 0], sizes = [1, 3, 32, 32], strides = [1, 1, 1, 1]} : vector<2x3x32x32xf32> to vector<1x3x32x32xf32>
    %1848 = vector.shape_cast %1847 : vector<1x3x32x32xf32> to vector<3x32x32xf32>
    %1849 = vector.extract_strided_slice %1073 {offsets = [0, 0, 0, 0], sizes = [1, 3, 8, 32], strides = [1, 1, 1, 1]} : vector<2x3x8x32xf32> to vector<1x3x8x32xf32>
    %1850 = vector.shape_cast %1849 : vector<1x3x8x32xf32> to vector<3x8x32xf32>
    %1851 = vector.extract_strided_slice %1848 {offsets = [0, 0, 0], sizes = [1, 32, 32], strides = [1, 1, 1]} : vector<3x32x32xf32> to vector<1x32x32xf32>
    %1852 = vector.shape_cast %1851 : vector<1x32x32xf32> to vector<32x32xf32>
    %cst_776 = arith.constant dense<0.000000e+00> : vector<8x32xf32>
    %1853 = tpu.matmul %1781, %1852, %cst_776 {dimension_numbers = #tpu.dot_dimension_numbers<[1], [0], [0], [1], [0, 0, 1, 1], [], []>} : vector<8x32xf32>, vector<32x32xf32>, vector<8x32xf32> -> vector<8x32xf32>
    %1854 = vector.extract_strided_slice %1850 {offsets = [0, 0, 0], sizes = [1, 8, 32], strides = [1, 1, 1]} : vector<3x8x32xf32> to vector<1x8x32xf32>
    %1855 = vector.shape_cast %1854 : vector<1x8x32xf32> to vector<8x32xf32>
    %1856 = arith.addf %1853, %1855 : vector<8x32xf32>
    %1857 = vector.extract_strided_slice %1848 {offsets = [1, 0, 0], sizes = [1, 32, 32], strides = [1, 1, 1]} : vector<3x32x32xf32> to vector<1x32x32xf32>
    %1858 = vector.shape_cast %1857 : vector<1x32x32xf32> to vector<32x32xf32>
    %cst_777 = arith.constant dense<0.000000e+00> : vector<8x32xf32>
    %1859 = tpu.matmul %1781, %1858, %cst_777 {dimension_numbers = #tpu.dot_dimension_numbers<[1], [0], [0], [1], [0, 0, 1, 1], [], []>} : vector<8x32xf32>, vector<32x32xf32>, vector<8x32xf32> -> vector<8x32xf32>
    %1860 = vector.extract_strided_slice %1850 {offsets = [1, 0, 0], sizes = [1, 8, 32], strides = [1, 1, 1]} : vector<3x8x32xf32> to vector<1x8x32xf32>
    %1861 = vector.shape_cast %1860 : vector<1x8x32xf32> to vector<8x32xf32>
    %1862 = arith.addf %1859, %1861 : vector<8x32xf32>
    %1863 = vector.extract_strided_slice %1848 {offsets = [2, 0, 0], sizes = [1, 32, 32], strides = [1, 1, 1]} : vector<3x32x32xf32> to vector<1x32x32xf32>
    %1864 = vector.shape_cast %1863 : vector<1x32x32xf32> to vector<32x32xf32>
    %cst_778 = arith.constant dense<0.000000e+00> : vector<8x32xf32>
    %1865 = tpu.matmul %1781, %1864, %cst_778 {dimension_numbers = #tpu.dot_dimension_numbers<[1], [0], [0], [1], [0, 0, 1, 1], [], []>} : vector<8x32xf32>, vector<32x32xf32>, vector<8x32xf32> -> vector<8x32xf32>
    %1866 = vector.extract_strided_slice %1850 {offsets = [2, 0, 0], sizes = [1, 8, 32], strides = [1, 1, 1]} : vector<3x8x32xf32> to vector<1x8x32xf32>
    %1867 = vector.shape_cast %1866 : vector<1x8x32xf32> to vector<8x32xf32>
    %1868 = arith.addf %1865, %1867 : vector<8x32xf32>
    %1869 = arith.addf %1831, %1856 : vector<8x32xf32>
    %1870 = arith.negf %1869 : vector<8x32xf32>
    %1871 = math.exp %1870 : vector<8x32xf32>
    %cst_779 = arith.constant 1.000000e+00 : f32
    %1872 = vector.broadcast %cst_779 : f32 to vector<8x32xf32>
    %1873 = arith.addf %1872, %1871 : vector<8x32xf32>
    %1874 = arith.divf %1872, %1873 : vector<8x32xf32>
    %1875 = arith.addf %1834, %1862 : vector<8x32xf32>
    %1876 = arith.negf %1875 : vector<8x32xf32>
    %1877 = math.exp %1876 : vector<8x32xf32>
    %cst_780 = arith.constant 1.000000e+00 : f32
    %1878 = vector.broadcast %cst_780 : f32 to vector<8x32xf32>
    %1879 = arith.addf %1878, %1877 : vector<8x32xf32>
    %1880 = arith.divf %1878, %1879 : vector<8x32xf32>
    %1881 = arith.mulf %1874, %1868 : vector<8x32xf32>
    %1882 = arith.addf %1837, %1881 : vector<8x32xf32>
    %1883 = math.tanh %1882 : vector<8x32xf32>
    %cst_781 = arith.constant 1.000000e+00 : f32
    %1884 = vector.broadcast %cst_781 : f32 to vector<8x32xf32>
    %1885 = arith.subf %1884, %1880 : vector<8x32xf32>
    %1886 = arith.mulf %1885, %1883 : vector<8x32xf32>
    %1887 = arith.mulf %1880, %1781 : vector<8x32xf32>
    %1888 = arith.addf %1886, %1887 : vector<8x32xf32>
    %1889 = vector.extract_strided_slice %1072 {offsets = [1, 0, 0, 0], sizes = [1, 3, 32, 32], strides = [1, 1, 1, 1]} : vector<2x3x32x32xf32> to vector<1x3x32x32xf32>
    %1890 = vector.shape_cast %1889 : vector<1x3x32x32xf32> to vector<3x32x32xf32>
    %1891 = vector.extract_strided_slice %1073 {offsets = [1, 0, 0, 0], sizes = [1, 3, 8, 32], strides = [1, 1, 1, 1]} : vector<2x3x8x32xf32> to vector<1x3x8x32xf32>
    %1892 = vector.shape_cast %1891 : vector<1x3x8x32xf32> to vector<3x8x32xf32>
    %1893 = vector.extract_strided_slice %1890 {offsets = [0, 0, 0], sizes = [1, 32, 32], strides = [1, 1, 1]} : vector<3x32x32xf32> to vector<1x32x32xf32>
    %1894 = vector.shape_cast %1893 : vector<1x32x32xf32> to vector<32x32xf32>
    %cst_782 = arith.constant dense<0.000000e+00> : vector<8x32xf32>
    %1895 = tpu.matmul %1823, %1894, %cst_782 {dimension_numbers = #tpu.dot_dimension_numbers<[1], [0], [0], [1], [0, 0, 1, 1], [], []>} : vector<8x32xf32>, vector<32x32xf32>, vector<8x32xf32> -> vector<8x32xf32>
    %1896 = vector.extract_strided_slice %1892 {offsets = [0, 0, 0], sizes = [1, 8, 32], strides = [1, 1, 1]} : vector<3x8x32xf32> to vector<1x8x32xf32>
    %1897 = vector.shape_cast %1896 : vector<1x8x32xf32> to vector<8x32xf32>
    %1898 = arith.addf %1895, %1897 : vector<8x32xf32>
    %1899 = vector.extract_strided_slice %1890 {offsets = [1, 0, 0], sizes = [1, 32, 32], strides = [1, 1, 1]} : vector<3x32x32xf32> to vector<1x32x32xf32>
    %1900 = vector.shape_cast %1899 : vector<1x32x32xf32> to vector<32x32xf32>
    %cst_783 = arith.constant dense<0.000000e+00> : vector<8x32xf32>
    %1901 = tpu.matmul %1823, %1900, %cst_783 {dimension_numbers = #tpu.dot_dimension_numbers<[1], [0], [0], [1], [0, 0, 1, 1], [], []>} : vector<8x32xf32>, vector<32x32xf32>, vector<8x32xf32> -> vector<8x32xf32>
    %1902 = vector.extract_strided_slice %1892 {offsets = [1, 0, 0], sizes = [1, 8, 32], strides = [1, 1, 1]} : vector<3x8x32xf32> to vector<1x8x32xf32>
    %1903 = vector.shape_cast %1902 : vector<1x8x32xf32> to vector<8x32xf32>
    %1904 = arith.addf %1901, %1903 : vector<8x32xf32>
    %1905 = vector.extract_strided_slice %1890 {offsets = [2, 0, 0], sizes = [1, 32, 32], strides = [1, 1, 1]} : vector<3x32x32xf32> to vector<1x32x32xf32>
    %1906 = vector.shape_cast %1905 : vector<1x32x32xf32> to vector<32x32xf32>
    %cst_784 = arith.constant dense<0.000000e+00> : vector<8x32xf32>
    %1907 = tpu.matmul %1823, %1906, %cst_784 {dimension_numbers = #tpu.dot_dimension_numbers<[1], [0], [0], [1], [0, 0, 1, 1], [], []>} : vector<8x32xf32>, vector<32x32xf32>, vector<8x32xf32> -> vector<8x32xf32>
    %1908 = vector.extract_strided_slice %1892 {offsets = [2, 0, 0], sizes = [1, 8, 32], strides = [1, 1, 1]} : vector<3x8x32xf32> to vector<1x8x32xf32>
    %1909 = vector.shape_cast %1908 : vector<1x8x32xf32> to vector<8x32xf32>
    %1910 = arith.addf %1907, %1909 : vector<8x32xf32>
    %1911 = arith.addf %1840, %1898 : vector<8x32xf32>
    %1912 = arith.negf %1911 : vector<8x32xf32>
    %1913 = math.exp %1912 : vector<8x32xf32>
    %cst_785 = arith.constant 1.000000e+00 : f32
    %1914 = vector.broadcast %cst_785 : f32 to vector<8x32xf32>
    %1915 = arith.addf %1914, %1913 : vector<8x32xf32>
    %1916 = arith.divf %1914, %1915 : vector<8x32xf32>
    %1917 = arith.addf %1843, %1904 : vector<8x32xf32>
    %1918 = arith.negf %1917 : vector<8x32xf32>
    %1919 = math.exp %1918 : vector<8x32xf32>
    %cst_786 = arith.constant 1.000000e+00 : f32
    %1920 = vector.broadcast %cst_786 : f32 to vector<8x32xf32>
    %1921 = arith.addf %1920, %1919 : vector<8x32xf32>
    %1922 = arith.divf %1920, %1921 : vector<8x32xf32>
    %1923 = arith.mulf %1916, %1910 : vector<8x32xf32>
    %1924 = arith.addf %1846, %1923 : vector<8x32xf32>
    %1925 = math.tanh %1924 : vector<8x32xf32>
    %cst_787 = arith.constant 1.000000e+00 : f32
    %1926 = vector.broadcast %cst_787 : f32 to vector<8x32xf32>
    %1927 = arith.subf %1926, %1922 : vector<8x32xf32>
    %1928 = arith.mulf %1927, %1925 : vector<8x32xf32>
    %1929 = arith.mulf %1922, %1823 : vector<8x32xf32>
    %1930 = arith.addf %1928, %1929 : vector<8x32xf32>
    %c8_i32_788 = arith.constant 8 : i32
    %c0_789 = arith.constant 0 : index
    %c0_790 = arith.constant 0 : index
    %c0_791 = arith.constant 0 : index
    %1931 = vector.load %arg9[%c0_789, %c0_790, %c0_791] : memref<2x8x32xf32, #tpu.memory_space<vmem>>, vector<1x8x32xf32>
    %1932 = vector.shape_cast %1931 : vector<1x8x32xf32> to vector<8x32xf32>
    %1933 = vector.shape_cast %1888 : vector<8x32xf32> to vector<1x8x32xf32>
    tpu.vector_store %arg9[%c0_789, %c0_790, %c0_791], %1933 {strides = array<i32>} : memref<2x8x32xf32, #tpu.memory_space<vmem>>, vector<1x8x32xf32>,
    %c1_792 = arith.constant 1 : index
    %c0_793 = arith.constant 0 : index
    %c0_794 = arith.constant 0 : index
    %1934 = vector.load %arg9[%c1_792, %c0_793, %c0_794] : memref<2x8x32xf32, #tpu.memory_space<vmem>>, vector<1x8x32xf32>
    %1935 = vector.shape_cast %1934 : vector<1x8x32xf32> to vector<8x32xf32>
    %1936 = vector.shape_cast %1930 : vector<8x32xf32> to vector<1x8x32xf32>
    tpu.vector_store %arg9[%c1_792, %c0_793, %c0_794], %1936 {strides = array<i32>} : memref<2x8x32xf32, #tpu.memory_space<vmem>>, vector<1x8x32xf32>,
    return
  }
}

</mosaic_0001>

<bundles_post_ra>
// kernel: tpu_custom_call.1
= control target key start
LH: loop header
LB: loop body
LE: loop exit
PB: predicated region body
PF: predicated region fallthrough
CT: control target
= control target key end

     0   :  { %14 = vsyncpa [#allocation5], 0  ;;  %s8003_s0 = inlined_call_operand.vmem [shape: f32[64,32], index: 0, kind: input, shape index: {}]   ;;  %s8004_s1 = inlined_call_operand.hbm [shape: f32[2,3,32,32], index: 1, kind: input, shape index: {}]   ;;  %s8005_s2 = inlined_call_operand.hbm [shape: f32[2,3,1,32], index: 2, kind: input, shape index: {}]   ;;  %s8006_s3 = inlined_call_operand.hbm [shape: f32[2,3,32,32], index: 3, kind: input, shape index: {}]   ;;  %s8007_s4 = inlined_call_operand.vmem [shape: f32[2,3,8,32], index: 4, kind: input, shape index: {}]   ;;  %s8008_s5 = inlined_call_operand.hbm [shape: f32[2,2,3,32,32], index: 5, kind: input, shape index: {}]   ;;  %s8009_s6 = inlined_call_operand.hbm [shape: f32[2,3,1,32], index: 6, kind: input, shape index: {}]   ;;  %s8010_s7 = inlined_call_operand.hbm [shape: f32[2,3,32,32], index: 7, kind: input, shape index: {}]   ;;  %s8011_s8 = inlined_call_operand.vmem [shape: f32[2,3,8,32], index: 8, kind: input, shape index: {}]   ;;  %s8012_s9 = inlined_call_operand.hbm [shape: f32[2,8,32], index: 9, kind: output, shape index: {}]  }
   0x1   :  { %15 = vsyncpa [#allocation8], 0 }
   0x2   :  { %16 = vsyncpa [#allocation11], 0 }
   0x3   :  { %17 = vsyncpa [#allocation14], 0  ;;  %s38_s11 = sshll.u32 %s8005_s2, 4  ;;  %s39_s11 = int_to_ptr.hbm [resolvable:$true] %s38_s11 }
   0x4   :  { %18 = vsyncpa [#allocation6], 0  ;;  %s6004_s12 = smov [#allocation7]   ;;  %s6005_s14 = smov 16  }
   0x5   :  { %s40_s13 = sshll.u32 %s6004_s12, 4  ;;  %s6006_s15 = smov 1   ;;  %s41_s13 = int_to_ptr.vmem [resolvable:$true] %s40_s13 }
   0x6   :  { %46 = dma.hbm_to_vmem [thread:$0]  %s39_s11, 96, %s41_s13, [#allocation8], %s6005_s14, %s6005_s14, %s6006_s15  }
   0x7   :  { %s66_s18 = sshll.u32 %s8008_s5, 4  ;;  %s6007_s19 = smov [#allocation10]   ;;  %s67_s18 = int_to_ptr.hbm [resolvable:$true] %s66_s18 }
   0x8   :  { %s68_s20 = sshll.u32 %s6007_s19, 4  ;;  %s25_s22 = sshll.u32 %s8004_s1, 4  ;;  %s69_s20 = int_to_ptr.vmem [resolvable:$true] %s68_s20  ;;  %s26_s22 = int_to_ptr.hbm [resolvable:$true] %s25_s22 }
   0x9   :  { %s6008_s23 = smov 128   ;;  %s6009_s24 = smov 8  }
   0xa   :  { %74 = dma.hbm_to_vmem [thread:$0]  %s67_s18, 6144, %s69_s20, [#allocation11], %s6008_s23, %s6008_s23, %s6009_s24  }
   0xb   :  { %s51_s27 = sshll.u32 %s8006_s3, 4  ;;  %s6010_s5 = smov [#allocation4]   ;;  %s52_s27 = int_to_ptr.hbm [resolvable:$true] %s51_s27 }
   0xc   :  { %s27_s28 = sshll.u32 %s6010_s5, 4  ;;  %s6011_s1 = smov [#allocation9]   ;;  %s28_s28 = int_to_ptr.vmem [resolvable:$true] %s27_s28 }
   0xd   :  { %33 = dma.hbm_to_vmem [thread:$0]  %s26_s22, 3072, %s28_s28, [#allocation5], %s6008_s23, %s6008_s23, %s6009_s24  }
   0xe   :  { %s53_s29 = sshll.u32 %s6011_s1, 4  ;;  %s79_s11 = sshll.u32 %s8009_s6, 4  ;;  %s54_s29 = int_to_ptr.vmem [resolvable:$true] %s53_s29  ;;  %s80_s11 = int_to_ptr.hbm [resolvable:$true] %s79_s11 }
   0xf   :  { %59 = dma.hbm_to_vmem [thread:$0]  %s52_s27, 3072, %s54_s29, [#allocation8], %s6008_s23, %s6008_s23, %s6009_s24  }
  0x10   :  { %s92_s13 = sshll.u32 %s8010_s7, 4  ;;  %s6012_s16 = smov [#allocation12]   ;;  %s93_s13 = int_to_ptr.hbm [resolvable:$true] %s92_s13 }
  0x11   :  { %s81_s17 = sshll.u32 %s6012_s16, 4  ;;  %s6013_s18 = smov [#allocation13]   ;;  %s82_s17 = int_to_ptr.vmem [resolvable:$true] %s81_s17 }
  0x12   :  { %87 = dma.hbm_to_vmem [thread:$0]  %s80_s11, 96, %s82_s17, [#allocation11], %s6005_s14, %s6005_s14, %s6006_s15  }
  0x13   :  { %s94_s6 = sshll.u32 %s6013_s18, 4  ;;  %s95_s6 = int_to_ptr.vmem [resolvable:$true] %s94_s6 }
  0x14   :  { %100 = dma.hbm_to_vmem [thread:$0]  %s93_s13, 3072, %s95_s6, [#allocation14], %s6008_s23, %s6008_s23, %s6009_s24  }
  0x15   :  { %5994 = dma.done.wait [#allocation5], 3072  }
  0x16   :  { %5995 = vsyncadd [#allocation5], 4294964224 }
  0x17   :  { %5996 = dma.done.wait [#allocation8], 3168  }
  0x18   :  { %5997 = vsyncadd [#allocation8], 4294964128 }
  0x19   :  { %5998 = dma.done.wait [#allocation11], 6240  }
  0x1a   :  { %5999 = vsyncadd [#allocation11], 4294961056 }
  0x1b   :  { %6000 = dma.done.wait [#allocation14], 3072  }
  0x1c   :  { %6001 = vsyncadd [#allocation14], 4294964224  ;;  %v138_v0 = vld [vmem:[#allocation4 + $0x18] sm:$0xff]  ;;  %v137_v3 = vld [vmem:[#allocation4 + $0x10] sm:$0xff]  ;;  %vm143_vm0 = vcmask 261120   ;;  %v6014_v48 = vmov 0.0  }
  0x1d   :  { %v281_v1 = vld [vmem:[#allocation4 + $0x58] sm:$0xff]  ;;  %180 = vmatpush.msra.mxu0 %v138_v0  ;;  %v280_v5 = vld [vmem:[#allocation4 + $0x50] sm:$0xff]  ;;  %v136_v7 = vld [vmem:[#allocation4 + $0x8] sm:$0xff] }
  0x1e   :  { %v341_v2 = vld [vmem:[#allocation4 + $0x78] sm:$0xff]  ;;  %299 = vmatpush.msra.mxu2 %v281_v1  ;;  %v340_v6 = vld [vmem:[#allocation4 + $0x70] sm:$0xff]  ;;  %v279_v9 = vld [vmem:[#allocation4 + $0x48] sm:$0xff] }
  0x1f   :  { %v221_v4 = vld [vmem:[#allocation4 + $0x38] sm:$0xff]  ;;  %359 = vmatpush.msra.mxu3 %v341_v2  ;;  %v220_v8 = vld [vmem:[#allocation4 + $0x30] sm:$0xff]  ;;  %181 = vmatpush.msra.mxu0 %v137_v3  ;;  %v339_v10 = vld [vmem:[#allocation4 + $0x68] sm:$0xff] }
  0x20   :  { %239 = vmatpush.msra.mxu1 %v221_v4  ;;  %300 = vmatpush.msra.mxu2 %v280_v5  ;;  %v135_v11 = vld [vmem:[#allocation4] sm:$0xff]  ;;  %v219_v12 = vld [vmem:[#allocation4 + $0x28] sm:$0xff]  ;;  %v401_v16 = vld [vmem:[#allocation4 + $0x98] sm:$0xff] }
  0x21   :  { %360 = vmatpush.msra.mxu3 %v340_v6  ;;  %v278_v13 = vld [vmem:[#allocation4 + $0x40] sm:$0xff]  ;;  %182 = vmatpush.msra.mxu0 %v136_v7  ;;  %v400_v18 = vld [vmem:[#allocation4 + $0x90] sm:$0xff]  ;;  %v461_v19 = vld [vmem:[#allocation4 + $0xb8] sm:$0xff] }
  0x22   :  { %240 = vmatpush.msra.mxu1 %v220_v8  ;;  %301 = vmatpush.msra.mxu2 %v279_v9  ;;  %v338_v14 = vld [vmem:[#allocation4 + $0x60] sm:$0xff]  ;;  %v399_v20 = vld [vmem:[#allocation4 + $0x88] sm:$0xff]  ;;  %v460_v21 = vld [vmem:[#allocation4 + $0xb0] sm:$0xff] }
  0x23   :  { %v6105_v15 = vld [vmem:[%s8003_s0] sm:$0xff]  ;;  %361 = vmatpush.msra.mxu3 %v339_v10  ;;  %183 = vmatpush.msra.mxu0 %v135_v11  ;;  %v6118_v22 = vld [vmem:[%s8003_s0 + $0x8] sm:$0xff]  ;;  %v6137_v25 = vld [vmem:[%s8003_s0 + $0x10] sm:$0xff] }
  0x24   :  { %241 = vmatpush.msra.mxu1 %v219_v12  ;;  %302 = vmatpush.msra.mxu2 %v278_v13  ;;  %v218_v17 = vld [vmem:[#allocation4 + $0x20] sm:$0xff]  ;;  %v459_v27 = vld [vmem:[#allocation4 + $0xa8] sm:$0xff]  ;;  %v6150_v28 = vld [vmem:[%s8003_s0 + $0x18] sm:$0xff] }
  0x25   :  { %362 = vmatpush.msra.mxu3 %v338_v14  ;;  %5116 = vmatmul.msk.f32.vlgmr.msra.gmra.mxu0 %vm143_vm0, %v6105_v15  ;;  %v6126_v23 = vld [vmem:[#allocation9 + $0x18] sm:$0xff]  ;;  %v6158_v29 = vld [vmem:[#allocation9 + $0x10] sm:$0xff]  ;;  %v6166_v31 = vld [vmem:[#allocation9 + $0x8] sm:$0xff] }
  0x26   :  { %5132 = vmatmul.msk.f32.vlgmr.msra.gmra.mxu2 %vm143_vm0, %v6105_v15  ;;  %5140 = vmatmul.msk.f32.vlgmr.msra.gmra.mxu3 %vm143_vm0, %v6105_v15  ;;  %v6128_v24 = vld [vmem:[#allocation9 + $0x38] sm:$0xff]  ;;  %v6160_v30 = vld [vmem:[#allocation9 + $0x30] sm:$0xff]  ;;  %v6168_v32 = vld [vmem:[#allocation9 + $0x28] sm:$0xff] }
  0x27   :  { %419 = vmatpush.msrb.mxu0 %v401_v16  ;;  %242 = vmatpush.msra.mxu1 %v218_v17  ;;  %v398_v26 = vld [vmem:[#allocation4 + $0x80] sm:$0xff]  ;;  %v6194_v37 = vld [vmem:[%s8003_s0 + $0x28] sm:$0xff]  ;;  %v6207_v38 = vld [vmem:[%s8003_s0 + $0x30] sm:$0xff] }
  0x28   :  { %5124 = vmatmul.msk.f32.vlgmr.msra.gmra.mxu1 %vm143_vm0, %v6105_v15  ;;  %580 = vmatpush.msrb.mxu2 %v6126_v23  ;;  %v6170_v33 = vld [vmem:[#allocation9] sm:$0xff]  ;;  %v6217_v39 = vld [vmem:[#allocation9 + $0x78] sm:$0xff]  ;;  %v6221_v41 = vld [vmem:[#allocation9 + $0x70] sm:$0xff] }
  0x29   :  { %420 = vmatpush.msrb.mxu0 %v400_v18  ;;  %479 = vmatpush.msrb.mxu1 %v461_v19  ;;  %v6174_v34 = vld [vmem:[#allocation9 + $0x20] sm:$0xff]  ;;  %v6219_v40 = vld [vmem:[#allocation9 + $0x58] sm:$0xff]  ;;  %v6233_v43 = vld [vmem:[#allocation9 + $0x50] sm:$0xff] }
  0x2a   :  { %600 = vmatpush.msrb.mxu3 %v6128_v24  ;;  %581 = vmatpush.msrb.mxu2 %v6158_v29  ;;  %v6179_v35 = vld [vmem:[%s8003_s0 + $0x20] sm:$0xff]  ;;  %v6228_v42 = vld [vmem:[%s8003_s0 + $0x38] sm:$0xff]  ;;  %v6235_v44 = vld [vmem:[#allocation9 + $0x68] sm:$0xff] }
  0x2b   :  { %421 = vmatpush.msrb.mxu0 %v399_v20  ;;  %480 = vmatpush.msrb.mxu1 %v460_v21  ;;  %v458_v36 = vld [vmem:[#allocation4 + $0xa0] sm:$0xff]  ;;  %v6245_v45 = vld [vmem:[#allocation9 + $0x48] sm:$0xff]  ;;  %v6274_v51 = vld [vmem:[#allocation9 + $0x90] sm:$0xff] }
  0x2c   :  { %601 = vmatpush.msrb.mxu3 %v6160_v30  ;;  %582 = vmatpush.msrb.mxu2 %v6166_v31  ;;  %v6247_v46 = vld [vmem:[#allocation9 + $0x60] sm:$0xff]  ;;  %v6270_v49 = vld [vmem:[#allocation9 + $0x98] sm:$0xff]  ;;  %v6278_v52 = vld [vmem:[#allocation9 + $0xb0] sm:$0xff] }
  0x2d   :  { %5117 = vmatmul.msk.f32.gmra.mxu0 %vm143_vm0, %v6118_v22  ;;  %481 = vmatpush.msrb.mxu1 %v459_v27  ;;  %v6249_v47 = vld [vmem:[#allocation9 + $0x40] sm:$0xff]  ;;  %v6272_v50 = vld [vmem:[#allocation9 + $0xb8] sm:$0xff]  ;;  %v6280_v53 = vld [vmem:[#allocation9 + $0x88] sm:$0xff] }
  0x2e   :  { %5133 = vmatmul.msk.f32.gmra.mxu2 %vm143_vm0, %v6118_v22  ;;  %5141 = vmatmul.msk.f32.gmra.mxu3 %vm143_vm0, %v6118_v22  ;;  %v6286_v54 = vld [vmem:[#allocation9 + $0xa8] sm:$0xff]  ;;  %v6293_v55 = vld [vmem:[#allocation9 + $0x80] sm:$0xff]  ;;  %v6346_v57 = vld [vmem:[#allocation7] ss:$0 sm:$0xff] }
  0x2f   :  { %422 = vmatpush.msrb.mxu0 %v398_v26  ;;  %602 = vmatpush.msrb.mxu3 %v6168_v32  ;;  %v6295_v56 = vld [vmem:[#allocation9 + $0xa0] sm:$0xff]  ;;  %v6350_v59 = vld [vmem:[#allocation7 + $0x1] ss:$0 sm:$0xff]  ;;  %v6355_v63 = vld [vmem:[#allocation7 + $0x2] ss:$0 sm:$0xff] }
  0x30   :  { %5125 = vmatmul.msk.f32.gmra.mxu1 %vm143_vm0, %v6118_v22  ;;  %583 = vmatpush.msrb.mxu2 %v6170_v33  ;;  %v6357_v0 = vld [vmem:[#allocation7 + $0x3] ss:$0 sm:$0xff] }
  0x31   :  { %603 = vmatpush.msrb.mxu3 %v6174_v34  ;;  %482 = vmatpush.msrb.mxu1 %v458_v36 }
  0x32   :  { %620 = vmatpush.msra.mxu2 %v6219_v40  ;;  %1192 = vmatpush.msra.mxu0 %v6270_v49 }
  0x33   :  { %687 = vmatpush.msra.mxu3 %v6217_v39  ;;  %1212 = vmatpush.msra.mxu1 %v6272_v50 }
  0x34   :  { %621 = vmatpush.msra.mxu2 %v6233_v43  ;;  %1193 = vmatpush.msra.mxu0 %v6274_v51 }
  0x35   :  { %5118 = vmatmul.msk.f32.gmra.mxu0 %vm143_vm0, %v6137_v25  ;;  %688 = vmatpush.msra.mxu3 %v6221_v41 }
  0x36   :  { %5134 = vmatmul.msk.f32.gmra.mxu2 %vm143_vm0, %v6137_v25  ;;  %5142 = vmatmul.msk.f32.gmra.mxu3 %vm143_vm0, %v6137_v25 }
  0x37   :  { %689 = vmatpush.msra.mxu3 %v6235_v44  ;;  %622 = vmatpush.msra.mxu2 %v6245_v45 }
  0x38   :  { %5126 = vmatmul.msk.f32.gmra.mxu1 %vm143_vm0, %v6137_v25  ;;  %1194 = vmatpush.msra.mxu0 %v6280_v53 }
  0x39   :  { %690 = vmatpush.msra.mxu3 %v6247_v46  ;;  %623 = vmatpush.msra.mxu2 %v6249_v47 }
  0x3a   :  { %1213 = vmatpush.msra.mxu1 %v6278_v52  ;;  %1195 = vmatpush.msra.mxu0 %v6293_v55 }
  0x3c   :  { %1214 = vmatpush.msra.mxu1 %v6286_v54 }
  0x3d   :  { %5119 = vmatmul.msk.f32.gmra.mxu0 %vm143_vm0, %v6150_v28 }
  0x3e   :  { %5135 = vmatmul.msk.f32.gmra.mxu2 %vm143_vm0, %v6150_v28  ;;  %5143 = vmatmul.msk.f32.gmra.mxu3 %vm143_vm0, %v6150_v28 }
  0x3f   :  { %1215 = vmatpush.msra.mxu1 %v6295_v56 }
  0x40   :  { %5127 = vmatmul.msk.f32.gmra.mxu1 %vm143_vm0, %v6150_v28 }
  0x45   :  { %5120 = vmatmul.msk.f32.gmra.mxu0 %vm143_vm0, %v6179_v35 }
  0x46   :  { %5136 = vmatmul.msk.f32.gmra.mxu2 %vm143_vm0, %v6179_v35  ;;  %5144 = vmatmul.msk.f32.gmra.mxu3 %vm143_vm0, %v6179_v35 }
  0x48   :  { %5128 = vmatmul.msk.f32.gmra.mxu1 %vm143_vm0, %v6179_v35 }
  0x4d   :  { %5121 = vmatmul.msk.f32.gmra.mxu0 %vm143_vm0, %v6194_v37 }
  0x4e   :  { %5137 = vmatmul.msk.f32.gmra.mxu2 %vm143_vm0, %v6194_v37  ;;  %5145 = vmatmul.msk.f32.gmra.mxu3 %vm143_vm0, %v6194_v37 }
  0x50   :  { %5129 = vmatmul.msk.f32.gmra.mxu1 %vm143_vm0, %v6194_v37 }
  0x55   :  { %5122 = vmatmul.msk.f32.gmra.mxu0 %vm143_vm0, %v6207_v38 }
  0x56   :  { %5138 = vmatmul.msk.f32.gmra.mxu2 %vm143_vm0, %v6207_v38  ;;  %5146 = vmatmul.msk.f32.gmra.mxu3 %vm143_vm0, %v6207_v38 }
  0x58   :  { %5130 = vmatmul.msk.f32.gmra.mxu1 %vm143_vm0, %v6207_v38 }
  0x5d   :  { %5123 = vmatmul.msk.f32.gmra.mxu0 %vm143_vm0, %v6228_v42 }
  0x5e   :  { %5139 = vmatmul.msk.f32.gmra.mxu2 %vm143_vm0, %v6228_v42  ;;  %5147 = vmatmul.msk.f32.gmra.mxu3 %vm143_vm0, %v6228_v42 }
  0x60   :  { %5131 = vmatmul.msk.f32.gmra.mxu1 %vm143_vm0, %v6228_v42 }
  0x65   :  { %5148 = vmatmul.msk.f32.vlgmr.msrb.gmra.mxu0 %vm143_vm0, %v6105_v15 }
  0x66   :  { %584 = vmatmul.f32.vlgmr.msrb.gmra.mxu2 %v6014_v48  ;;  %604 = vmatmul.f32.vlgmr.msrb.gmra.mxu3 %v6014_v48 }
  0x67   :  { %707 = vmatpush.msrb.mxu2 %v6270_v49  ;;  %727 = vmatpush.msrb.mxu3 %v6272_v50 }
  0x68   :  { %5156 = vmatmul.msk.f32.vlgmr.msrb.gmra.mxu1 %vm143_vm0, %v6105_v15  ;;  %1345 = vmatpush.msrb.mxu0 %v6219_v40 }
  0x69   :  { %708 = vmatpush.msrb.mxu2 %v6274_v51  ;;  %728 = vmatpush.msrb.mxu3 %v6278_v52 }
  0x6a   :  { %1415 = vmatpush.msrb.mxu1 %v6217_v39  ;;  %1346 = vmatpush.msrb.mxu0 %v6233_v43 }
  0x6b   :  { %709 = vmatpush.msrb.mxu2 %v6280_v53  ;;  %729 = vmatpush.msrb.mxu3 %v6286_v54 }
  0x6c   :  { %1416 = vmatpush.msrb.mxu1 %v6221_v41  ;;  %1347 = vmatpush.msrb.mxu0 %v6245_v45 }
  0x6d   :  { %5149 = vmatmul.msk.f32.gmra.mxu0 %vm143_vm0, %v6118_v22  ;;  %710 = vmatpush.msrb.mxu2 %v6293_v55 }
  0x6e   :  { %691 = vmatmul.f32.vlgmr.msra.gmra.mxu3 %v6014_v48  ;;  %624 = vmatmul.f32.vlgmr.msra.gmra.mxu2 %v6014_v48 }
  0x6f   :  { %730 = vmatpush.msrb.mxu3 %v6295_v56  ;;  %819 = vmatpush.msra.mxu2 %v6126_v23 }
  0x70   :  { %5157 = vmatmul.msk.f32.gmra.mxu1 %vm143_vm0, %v6118_v22  ;;  %1348 = vmatpush.msrb.mxu0 %v6249_v47 }
  0x71   :  { %839 = vmatpush.msra.mxu3 %v6128_v24  ;;  %820 = vmatpush.msra.mxu2 %v6158_v29 }
  0x72   :  { %1417 = vmatpush.msrb.mxu1 %v6235_v44 }
  0x73   :  { %840 = vmatpush.msra.mxu3 %v6160_v30  ;;  %821 = vmatpush.msra.mxu2 %v6166_v31 }
  0x74   :  { %1418 = vmatpush.msrb.mxu1 %v6247_v46 }
  0x75   :  { %5150 = vmatmul.msk.f32.gmra.mxu0 %vm143_vm0, %v6137_v25  ;;  %841 = vmatpush.msra.mxu3 %v6168_v32 }
  0x76   :  { %711 = vmatmul.f32.vlgmr.msrb.gmra.mxu2 %v6014_v48  ;;  %731 = vmatmul.f32.vlgmr.msrb.gmra.mxu3 %v6014_v48 }
  0x77   :  { %822 = vmatpush.msra.mxu2 %v6170_v33  ;;  %842 = vmatpush.msra.mxu3 %v6174_v34 }
  0x78   :  { %5158 = vmatmul.msk.f32.gmra.mxu1 %vm143_vm0, %v6137_v25 }
  0x79   :  { %859 = vmatpush.msrb.mxu2 %v6219_v40  ;;  %929 = vmatpush.msrb.mxu3 %v6217_v39 }
  0x7b   :  { %860 = vmatpush.msrb.mxu2 %v6233_v43  ;;  %930 = vmatpush.msrb.mxu3 %v6221_v41 }
  0x7d   :  { %5151 = vmatmul.msk.f32.gmra.mxu0 %vm143_vm0, %v6150_v28  ;;  %861 = vmatpush.msrb.mxu2 %v6245_v45 }
  0x7e   :  { %931 = vmatpush.msrb.mxu3 %v6235_v44 }
  0x7f   :  { %862 = vmatpush.msrb.mxu2 %v6249_v47 }
  0x80   :  { %5159 = vmatmul.msk.f32.gmra.mxu1 %vm143_vm0, %v6150_v28  ;;  %932 = vmatpush.msrb.mxu3 %v6247_v46 }
  0x85   :  { %5152 = vmatmul.msk.f32.gmra.mxu0 %vm143_vm0, %v6179_v35 }
  0x88   :  { %5160 = vmatmul.msk.f32.gmra.mxu1 %vm143_vm0, %v6179_v35 }
  0x8d   :  { %5153 = vmatmul.msk.f32.gmra.mxu0 %vm143_vm0, %v6194_v37 }
  0x90   :  { %5161 = vmatmul.msk.f32.gmra.mxu1 %vm143_vm0, %v6194_v37 }
  0x95   :  { %5154 = vmatmul.msk.f32.gmra.mxu0 %vm143_vm0, %v6207_v38 }
  0x98   :  { %5162 = vmatmul.msk.f32.gmra.mxu1 %vm143_vm0, %v6207_v38 }
  0x9d   :  { %5155 = vmatmul.msk.f32.gmra.mxu0 %vm143_vm0, %v6228_v42 }
  0xa0   :  { %5163 = vmatmul.msk.f32.gmra.mxu1 %vm143_vm0, %v6228_v42 }
  0xa2   :  { %v185_v58 = vpop.f32.mrf.mxu0 }
  0xa3   :  { %v186_v60 = vadd.f32 %v6346_v57, %v185_v58 }
  0xa5   :  { %209 = vst.msk [vmem:[#allocation2] sm:$0xff] %vm143_vm0, %v186_v60  ;;  %v244_v61 = vpop.f32.mrf.mxu1 }
  0xa6   :  { %v245_v62 = vadd.f32 %v6350_v59, %v244_v61 }
  0xa8   :  { %269 = vst.msk [vmem:[#allocation2 + $0x40] sm:$0xff] %vm143_vm0, %v245_v62 }
  0xa9   :  { %v304_v1 = vpop.f32.mrf.mxu2  ;;  %v364_v2 = vpop.f32.mrf.mxu3 }
  0xaa   :  { %v305_v3 = vadd.f32 %v6355_v63, %v304_v1  ;;  %v365_v4 = vadd.f32 %v6357_v0, %v364_v2  ;;  %v188_v5 = vpop.f32.mrf.mxu0 }
  0xab   :  { %v189_v6 = vadd.f32 %v6346_v57, %v188_v5 }
  0xac   :  { %329 = vst.msk [vmem:[#allocation2 + $0x80] sm:$0xff] %vm143_vm0, %v305_v3 }
  0xad   :  { %389 = vst.msk [vmem:[#allocation2 + $0xc0] sm:$0xff] %vm143_vm0, %v365_v4  ;;  %v247_v7 = vpop.f32.mrf.mxu1 }
  0xae   :  { %210 = vst.msk [vmem:[#allocation2 + $0x8] sm:$0xff] %vm143_vm0, %v189_v6  ;;  %v248_v8 = vadd.f32 %v6350_v59, %v247_v7 }
  0xb0   :  { %270 = vst.msk [vmem:[#allocation2 + $0x48] sm:$0xff] %vm143_vm0, %v248_v8 }
  0xb1   :  { %v307_v9 = vpop.f32.mrf.mxu2  ;;  %v367_v10 = vpop.f32.mrf.mxu3 }
  0xb2   :  { %v308_v11 = vadd.f32 %v6355_v63, %v307_v9  ;;  %v368_v12 = vadd.f32 %v6357_v0, %v367_v10  ;;  %v191_v13 = vpop.f32.mrf.mxu0 }
  0xb3   :  { %v192_v14 = vadd.f32 %v6346_v57, %v191_v13 }
  0xb4   :  { %330 = vst.msk [vmem:[#allocation2 + $0x88] sm:$0xff] %vm143_vm0, %v308_v11 }
  0xb5   :  { %390 = vst.msk [vmem:[#allocation2 + $0xc8] sm:$0xff] %vm143_vm0, %v368_v12  ;;  %v250_v15 = vpop.f32.mrf.mxu1 }
  0xb6   :  { %211 = vst.msk [vmem:[#allocation2 + $0x10] sm:$0xff] %vm143_vm0, %v192_v14  ;;  %v251_v16 = vadd.f32 %v6350_v59, %v250_v15 }
  0xb8   :  { %271 = vst.msk [vmem:[#allocation2 + $0x50] sm:$0xff] %vm143_vm0, %v251_v16 }
  0xb9   :  { %v310_v17 = vpop.f32.mrf.mxu2  ;;  %v370_v18 = vpop.f32.mrf.mxu3 }
  0xba   :  { %v311_v19 = vadd.f32 %v6355_v63, %v310_v17  ;;  %v371_v20 = vadd.f32 %v6357_v0, %v370_v18  ;;  %v194_v21 = vpop.f32.mrf.mxu0 }
  0xbb   :  { %v195_v22 = vadd.f32 %v6346_v57, %v194_v21 }
  0xbc   :  { %331 = vst.msk [vmem:[#allocation2 + $0x90] sm:$0xff] %vm143_vm0, %v311_v19 }
  0xbd   :  { %391 = vst.msk [vmem:[#allocation2 + $0xd0] sm:$0xff] %vm143_vm0, %v371_v20  ;;  %v253_v25 = vpop.f32.mrf.mxu1 }
  0xbe   :  { %212 = vst.msk [vmem:[#allocation2 + $0x18] sm:$0xff] %vm143_vm0, %v195_v22  ;;  %v254_v26 = vadd.f32 %v6350_v59, %v253_v25  ;;  %v6415_v22 = vld [vmem:[#allocation7 + $0x4] ss:$0 sm:$0xff] }
  0xc0   :  { %272 = vst.msk [vmem:[#allocation2 + $0x58] sm:$0xff] %vm143_vm0, %v254_v26 }
  0xc1   :  { %v313_v27 = vpop.f32.mrf.mxu2  ;;  %v373_v28 = vpop.f32.mrf.mxu3 }
  0xc2   :  { %v314_v35 = vadd.f32 %v6355_v63, %v313_v27  ;;  %v374_v36 = vadd.f32 %v6357_v0, %v373_v28  ;;  %v197_v37 = vpop.f32.mrf.mxu0 }
  0xc3   :  { %v198_v38 = vadd.f32 %v6346_v57, %v197_v37 }
  0xc4   :  { %332 = vst.msk [vmem:[#allocation2 + $0x98] sm:$0xff] %vm143_vm0, %v314_v35  ;;  %v6420_v35 = vld [vmem:[#allocation7 + $0x5] ss:$0 sm:$0xff] }
  0xc5   :  { %392 = vst.msk [vmem:[#allocation2 + $0xd8] sm:$0xff] %vm143_vm0, %v374_v36  ;;  %v256_v42 = vpop.f32.mrf.mxu1 }
  0xc6   :  { %213 = vst.msk [vmem:[#allocation2 + $0x20] sm:$0xff] %vm143_vm0, %v198_v38  ;;  %v257_v58 = vadd.f32 %v6350_v59, %v256_v42 }
  0xc8   :  { %273 = vst.msk [vmem:[#allocation2 + $0x60] sm:$0xff] %vm143_vm0, %v257_v58 }
  0xc9   :  { %v316_v60 = vpop.f32.mrf.mxu2  ;;  %v376_v61 = vpop.f32.mrf.mxu3 }
  0xca   :  { %v317_v62 = vadd.f32 %v6355_v63, %v316_v60  ;;  %v377_v1 = vadd.f32 %v6357_v0, %v376_v61  ;;  %v200_v2 = vpop.f32.mrf.mxu0 }
  0xcb   :  { %v201_v3 = vadd.f32 %v6346_v57, %v200_v2 }
  0xcc   :  { %333 = vst.msk [vmem:[#allocation2 + $0xa0] sm:$0xff] %vm143_vm0, %v317_v62  ;;  %v547_v62 = vld [vmem:[#allocation2] sm:$0xff] }
  0xcd   :  { %393 = vst.msk [vmem:[#allocation2 + $0xe0] sm:$0xff] %vm143_vm0, %v377_v1  ;;  %v259_v4 = vpop.f32.mrf.mxu1  ;;  %v550_v1 = vld [vmem:[#allocation2 + $0x40] sm:$0xff] }
  0xce   :  { %214 = vst.msk [vmem:[#allocation2 + $0x28] sm:$0xff] %vm143_vm0, %v201_v3  ;;  %v260_v5 = vadd.f32 %v6350_v59, %v259_v4 }
  0xd0   :  { %274 = vst.msk [vmem:[#allocation2 + $0x68] sm:$0xff] %vm143_vm0, %v260_v5 }
  0xd1   :  { %v319_v6 = vpop.f32.mrf.mxu2  ;;  %v379_v7 = vpop.f32.mrf.mxu3 }
  0xd2   :  { %v320_v8 = vadd.f32 %v6355_v63, %v319_v6  ;;  %v380_v9 = vadd.f32 %v6357_v0, %v379_v7  ;;  %v203_v10 = vpop.f32.mrf.mxu0 }
  0xd3   :  { %v204_v11 = vadd.f32 %v6346_v57, %v203_v10 }
  0xd4   :  { %334 = vst.msk [vmem:[#allocation2 + $0xa8] sm:$0xff] %vm143_vm0, %v320_v8 }
  0xd5   :  { %394 = vst.msk [vmem:[#allocation2 + $0xe8] sm:$0xff] %vm143_vm0, %v380_v9  ;;  %v262_v12 = vpop.f32.mrf.mxu1 }
  0xd6   :  { %215 = vst.msk [vmem:[#allocation2 + $0x30] sm:$0xff] %vm143_vm0, %v204_v11  ;;  %v263_v13 = vadd.f32 %v6350_v59, %v262_v12 }
  0xd8   :  { %275 = vst.msk [vmem:[#allocation2 + $0x70] sm:$0xff] %vm143_vm0, %v263_v13 }
  0xd9   :  { %v322_v14 = vpop.f32.mrf.mxu2  ;;  %v382_v15 = vpop.f32.mrf.mxu3 }
  0xda   :  { %v323_v16 = vadd.f32 %v6355_v63, %v322_v14  ;;  %v383_v17 = vadd.f32 %v6357_v0, %v382_v15  ;;  %v206_v18 = vpop.f32.mrf.mxu0 }
  0xdb   :  { %v207_v19 = vadd.f32 %v6346_v57, %v206_v18 }
  0xdc   :  { %335 = vst.msk [vmem:[#allocation2 + $0xb0] sm:$0xff] %vm143_vm0, %v323_v16 }
  0xdd   :  { %395 = vst.msk [vmem:[#allocation2 + $0xf0] sm:$0xff] %vm143_vm0, %v383_v17  ;;  %v265_v20 = vpop.f32.mrf.mxu1 }
  0xde   :  { %216 = vst.msk [vmem:[#allocation2 + $0x38] sm:$0xff] %vm143_vm0, %v207_v19  ;;  %v266_v21 = vadd.f32 %v6350_v59, %v265_v20  ;;  %v6452_v19 = vld [vmem:[%s8007_s4 + $0x18] sm:$0xff] }
  0xe0   :  { %276 = vst.msk [vmem:[#allocation2 + $0x78] sm:$0xff] %vm143_vm0, %v266_v21 }
  0xe1   :  { %v325_v25 = vpop.f32.mrf.mxu2  ;;  %v385_v26 = vpop.f32.mrf.mxu3 }
  0xe2   :  { %v326_v27 = vadd.f32 %v6355_v63, %v325_v25  ;;  %v386_v28 = vadd.f32 %v6357_v0, %v385_v26  ;;  %v424_v57 = vpop.f32.mrf.mxu0  ;;  %v6430_v63 = vld [vmem:[%s8007_s4] sm:$0xff]  ;;  %v6435_v0 = vld [vmem:[%s8007_s4 + $0x8] sm:$0xff] }
  0xe3   :  { %v425_v36 = vadd.f32 %v6415_v22, %v424_v57 }
  0xe4   :  { %336 = vst.msk [vmem:[#allocation2 + $0xb8] sm:$0xff] %vm143_vm0, %v326_v27 }
  0xe5   :  { %396 = vst.msk [vmem:[#allocation2 + $0xf8] sm:$0xff] %vm143_vm0, %v386_v28  ;;  %v484_v59 = vpop.f32.mrf.mxu1 }
  0xe6   :  { %449 = vst.msk [vmem:[#allocation2 + $0x100] sm:$0xff] %vm143_vm0, %v425_v36  ;;  %v485_v37 = vadd.f32 %v6420_v35, %v484_v59 }
  0xe8   :  { %509 = vst.msk [vmem:[#allocation2 + $0x140] sm:$0xff] %vm143_vm0, %v485_v37 }
  0xe9   :  { %v585_v38 = vpop.f32.mrf.mxu2  ;;  %v605_v42 = vpop.f32.mrf.mxu3 }
  0xea   :  { %v586_v58 = vadd.f32 %v585_v38, %v6430_v63  ;;  %v606_v60 = vadd.f32 %v605_v42, %v6435_v0  ;;  %v427_v61 = vpop.f32.mrf.mxu0  ;;  %v6461_v42 = vld [vmem:[%s8007_s4 + $0x10] sm:$0xff] }
  0xeb   :  { %v428_v2 = vadd.f32 %v6415_v22, %v427_v61 }
  0xec   :  { %v628_v3 = vadd.f32 %v586_v58, %v547_v62  ;;  %v648_v4 = vadd.f32 %v606_v60, %v550_v1  ;;  %v556_v28 = vld [vmem:[#allocation2 + $0xf8] sm:$0xff] }
  0xed   :  { %450 = vst.msk [vmem:[#allocation2 + $0x108] sm:$0xff] %vm143_vm0, %v428_v2  ;;  %v487_v5 = vpop.f32.mrf.mxu1 }
  0xee   :  { %v5164_v6 = vmul.f32 -1.442695, %v628_v3  ;;  %v5165_v7 = vmul.f32 -1.442695, %v648_v4  ;;  %v488_v8 = vadd.f32 %v6420_v35, %v487_v5 }
  0xf0   :  { %5432 = vpow2.f32 %v5164_v6  ;;  %510 = vst.msk [vmem:[#allocation2 + $0x148] sm:$0xff] %vm143_vm0, %v488_v8 }
  0xf1   :  { %5434 = vpow2.f32 %v5165_v7  ;;  %v692_v20 = vpop.f32.mrf.mxu3  ;;  %v625_v58 = vpop.f32.mrf.mxu2 }
  0xf2   :  { %v430_v9 = vpop.f32.mrf.mxu0  ;;  %v693_v26 = vadd.f32 %v692_v20, %v6452_v19  ;;  %v626_v6 = vadd.f32 %v625_v58, %v6461_v42  ;;  %v553_v20 = vld [vmem:[#allocation2 + $0x80] sm:$0xff] }
  0xf3   :  { %v431_v10 = vadd.f32 %v6415_v22, %v430_v9 }
  0xf4   :  { %v735_v38 = vadd.f32 %v693_v26, %v556_v28 }
  0xf5   :  { %451 = vst.msk [vmem:[#allocation2 + $0x110] sm:$0xff] %vm143_vm0, %v431_v10  ;;  %v490_v11 = vpop.f32.mrf.mxu1 }
  0xf6   :  { %v5433_v12 = vpop.eup %5432  ;;  %v491_v13 = vadd.f32 %v6420_v35, %v490_v11  ;;  %v5166_v8 = vmul.f32 -1.442695, %v735_v38 }
  0xf7   :  { %v5435_v14 = vpop.eup %5434  ;;  %v632_v15 = vadd.f32 1.0, %v5433_v12 }
  0xf8   :  { %v652_v16 = vadd.f32 1.0, %v5435_v14  ;;  %511 = vst.msk [vmem:[#allocation2 + $0x150] sm:$0xff] %vm143_vm0, %v491_v13 }
  0xf9   :  { %5436 = vrcp.f32 %v632_v15  ;;  %v644_v1 = vand.u32 2147483648, %v632_v15  ;;  %v642_v3 = vand.u32 2147483647, %v632_v15  ;;  %vm638_vm2 = vweird.f32 %v632_v15 }
  0xfa   :  { %5438 = vrcp.f32 %v652_v16  ;;  %v433_v17 = vpop.f32.mrf.mxu0  ;;  %v664_v14 = vand.u32 2147483648, %v652_v16  ;;  %vm658_vm6 = vweird.f32 %v652_v16 }
  0xfb   :  { %v434_v18 = vadd.f32 %v6415_v22, %v433_v17  ;;  %v645_v10 = vor.u32 1.1754944e-38, %v644_v1  ;;  %vm643_vm4 = vcmp.eq.f32.partialorder %v642_v3, 8.507059e+37  ;;  %5440 = vpow2.f32 %v5166_v8 }
  0xfd   :  { %452 = vst.msk [vmem:[#allocation2 + $0x118] sm:$0xff] %vm143_vm0, %v434_v18  ;;  %v493_v21 = vpop.f32.mrf.mxu1 }
  0xfe   :  { %v494_v25 = vadd.f32 %v6420_v35, %v493_v21  ;;  %v662_v21 = vand.u32 2147483647, %v652_v16 }
  0xff   :  { %v5437_v27 = vpop.eup %5436 }
 0x100   :  { %v5439_v57 = vpop.eup %5438  ;;  %512 = vst.msk [vmem:[#allocation2 + $0x158] sm:$0xff] %vm143_vm0, %v494_v25  ;;  %v634_v36 = vmul.f32 %v5437_v27, %v632_v15  ;;  %vm639_vm1 = vweird.f32 %v5437_v27  ;;  %vm663_vm8 = vcmp.eq.f32.partialorder %v662_v21, 8.507059e+37 }
 0x101   :  { %v654_v59 = vmul.f32 %v5439_v57, %v652_v16  ;;  %vm640_vm3 = vmor %vm638_vm2, %vm639_vm1  ;;  %vm659_vm5 = vweird.f32 %v5439_v57 }
 0x102   :  { %v436_v37 = vpop.f32.mrf.mxu0  ;;  %v635_v60 = vsub.f32 1.0, %v634_v36  ;;  %vm660_vm7 = vmor %vm658_vm6, %vm659_vm5 }
 0x103   :  { %v655_v61 = vsub.f32 1.0, %v654_v59  ;;  %v437_v62 = vadd.f32 %v6415_v22, %v436_v37  ;;  %v5441_v59 = vpop.eup %5440 }
 0x104   :  { %v636_v2 = vmul.f32 %v5437_v27, %v635_v60  ;;  %v739_v58 = vadd.f32 1.0, %v5441_v59 }
 0x105   :  { %v656_v4 = vmul.f32 %v5439_v57, %v655_v61  ;;  %453 = vst.msk [vmem:[#allocation2 + $0x120] sm:$0xff] %vm143_vm0, %v437_v62  ;;  %v496_v5 = vpop.f32.mrf.mxu1 }
 0x106   :  { %v497_v7 = vadd.f32 %v6420_v35, %v496_v5  ;;  %v637_v9 = vadd.f32 %v5437_v27, %v636_v2  ;;  %vm745_vm9 = vweird.f32 %v739_v58  ;;  %v749_v21 = vand.u32 2147483647, %v739_v58 }
 0x107   :  { %v657_v13 = vadd.f32 %v5439_v57, %v656_v4 }
 0x108   :  { %513 = vst.msk [vmem:[#allocation2 + $0x160] sm:$0xff] %vm143_vm0, %v497_v7  ;;  %v641_v11 = vsel %vm640_vm3, %v5437_v27, %v637_v9  ;;  %v665_v27 = vor.u32 1.1754944e-38, %v664_v14  ;;  %v6494_v9 = vld [vmem:[%s8007_s4 + $0x20] sm:$0xff]  ;;  %vm750_vm12 = vcmp.eq.f32.partialorder %v749_v21, 8.507059e+37 }
 0x109   :  { %v646_v12 = vsel %vm643_vm4, %v645_v10, %v641_v11  ;;  %v661_v26 = vsel %vm660_vm7, %v5439_v57, %v657_v13  ;;  %v712_v10 = vpop.f32.mrf.mxu2 }
 0x10a   :  { %v668_v17 = vmul.f32 %v646_v12, %v626_v6  ;;  %v439_v18 = vpop.f32.mrf.mxu0  ;;  %v666_v37 = vsel %vm663_vm8, %v665_v27, %v661_v26  ;;  %v732_v26 = vpop.f32.mrf.mxu3 }
 0x10b   :  { %v440_v25 = vadd.f32 %v6415_v22, %v439_v18  ;;  %v671_v16 = vsub.f32 1.0, %v666_v37  ;;  %v673_v1 = vmul.f32 0.0, %v666_v37  ;;  %v751_v18 = vand.u32 2147483648, %v739_v58 }
 0x10c   :  { %v669_v15 = vadd.f32 %v668_v17, %v553_v20 }
 0x10d   :  { %454 = vst.msk [vmem:[#allocation2 + $0x128] sm:$0xff] %vm143_vm0, %v440_v25  ;;  %v499_v28 = vpop.f32.mrf.mxu1 }
 0x10e   :  { %5442 = vtanh.f32 %v669_v15  ;;  %v500_v36 = vadd.f32 %v6420_v35, %v499_v28  ;;  %v6511_v15 = vld [vmem:[%s8007_s4 + $0x28] sm:$0xff]  ;;  %v752_v28 = vor.u32 1.1754944e-38, %v751_v18 }
 0x10f   :  { %5444 = vrcp.f32 %v739_v58  ;;  %v733_v59 = vadd.f32 %v732_v26, %v6511_v15 }
 0x110   :  { %514 = vst.msk [vmem:[#allocation2 + $0x168] sm:$0xff] %vm143_vm0, %v500_v36 }
 0x112   :  { %v442_v38 = vpop.f32.mrf.mxu0 }
 0x113   :  { %v443_v60 = vadd.f32 %v6415_v22, %v442_v38 }
 0x114   :  { %v5443_v61 = vpop.eup %5442 }
 0x115   :  { %v672_v62 = vmul.f32 %v5443_v61, %v671_v16  ;;  %455 = vst.msk [vmem:[#allocation2 + $0x130] sm:$0xff] %vm143_vm0, %v443_v60  ;;  %v502_v57 = vpop.f32.mrf.mxu1  ;;  %v5445_v6 = vpop.eup %5444 }
 0x116   :  { %v503_v2 = vadd.f32 %v6420_v35, %v502_v57  ;;  %vm746_vm10 = vweird.f32 %v5445_v6 }
 0x117   :  { %v6475_v3 = vadd.f32 %v673_v1, %v672_v62  ;;  %vm747_vm11 = vmor %vm745_vm9, %vm746_vm10 }
 0x118   :  { %515 = vst.msk [vmem:[#allocation2 + $0x170] sm:$0xff] %vm143_vm0, %v503_v2 }
 0x119   :  { %782 = vst.msk [vmem:[#allocation3] sm:$0xff] %vm143_vm0, %v6475_v3  ;;  %5168 = vmatmul.msk.f32.vlgmr.msra.gmra.mxu2 %vm143_vm0, %v6475_v3  ;;  %5169 = vmatmul.msk.f32.vlgmr.msra.gmra.mxu3 %vm143_vm0, %v6475_v3 }
 0x11a   :  { %v445_v4 = vpop.f32.mrf.mxu0  ;;  %949 = vmatpush.msra.mxu2 %v6270_v49  ;;  %969 = vmatpush.msra.mxu3 %v6272_v50 }
 0x11b   :  { %v446_v5 = vadd.f32 %v6415_v22, %v445_v4  ;;  %v741_v22 = vmul.f32 %v5445_v6, %v739_v58 }
 0x11c   :  { %950 = vmatpush.msra.mxu2 %v6274_v51  ;;  %970 = vmatpush.msra.mxu3 %v6278_v52 }
 0x11d   :  { %456 = vst.msk [vmem:[#allocation2 + $0x138] sm:$0xff] %vm143_vm0, %v446_v5  ;;  %v505_v7 = vpop.f32.mrf.mxu1  ;;  %v742_v12 = vsub.f32 1.0, %v741_v22 }
 0x11e   :  { %v506_v8 = vadd.f32 %v6420_v35, %v505_v7  ;;  %951 = vmatpush.msra.mxu2 %v6280_v53  ;;  %971 = vmatpush.msra.mxu3 %v6286_v54  ;;  %v713_v35 = vadd.f32 %v712_v10, %v6494_v9 }
 0x11f   :  { %v743_v17 = vmul.f32 %v5445_v6, %v742_v12 }
 0x120   :  { %516 = vst.msk [vmem:[#allocation2 + $0x178] sm:$0xff] %vm143_vm0, %v506_v8  ;;  %952 = vmatpush.msra.mxu2 %v6293_v55  ;;  %972 = vmatpush.msra.mxu3 %v6295_v56 }
 0x121   :  { %5170 = vmatmul.msk.f32.vlgmr.msrb.gmra.mxu2 %vm143_vm0, %v6475_v3  ;;  %v744_v20 = vadd.f32 %v5445_v6, %v743_v17 }
 0x122   :  { %1062 = vmatpush.msrb.mxu2 %v6126_v23 }
 0x123   :  { %v748_v36 = vsel %vm747_vm11, %v5445_v6, %v744_v20 }
 0x124   :  { %v560_v11 = vld [vmem:[#allocation2 + $0x138] sm:$0xff]  ;;  %1063 = vmatpush.msrb.mxu2 %v6158_v29  ;;  %v753_v37 = vsel %vm750_vm12, %v752_v28, %v748_v36 }
 0x125   :  { %v755_v13 = vadd.f32 %v713_v35, %v560_v11  ;;  %v775_v38 = vmul.f32 %v753_v37, %v733_v59 }
 0x126   :  { %1064 = vmatpush.msrb.mxu2 %v6166_v31 }
 0x127   :  { %v5167_v14 = vmul.f32 -1.442695, %v755_v13  ;;  %v564_v16 = vld [vmem:[#allocation2 + $0x178] sm:$0xff]  ;;  %v786_v13 = vld [vmem:[#allocation2 + $0x8] sm:$0xff] }
 0x128   :  { %1065 = vmatpush.msrb.mxu2 %v6170_v33  ;;  %v776_v61 = vadd.f32 %v775_v38, %v564_v16 }
 0x129   :  { %5446 = vpow2.f32 %v5167_v14  ;;  %v789_v14 = vld [vmem:[#allocation2 + $0x48] sm:$0xff] }
 0x12f   :  { %v5447_v25 = vpop.eup %5446 }
 0x130   :  { %v759_v27 = vadd.f32 1.0, %v5447_v25 }
 0x132   :  { %5448 = vrcp.f32 %v759_v27  ;;  %v771_v57 = vand.u32 2147483648, %v759_v27  ;;  %v769_v2 = vand.u32 2147483647, %v759_v27  ;;  %vm765_vm14 = vweird.f32 %v759_v27 }
 0x133   :  { %5450 = vtanh.f32 %v776_v61 }
 0x134   :  { %v772_v5 = vor.u32 1.1754944e-38, %v771_v57  ;;  %vm770_vm1 = vcmp.eq.f32.partialorder %v769_v2, 8.507059e+37 }
 0x138   :  { %v5449_v60 = vpop.eup %5448 }
 0x139   :  { %v761_v58 = vmul.f32 %v5449_v60, %v759_v27  ;;  %vm766_vm13 = vweird.f32 %v5449_v60  ;;  %v5451_v10 = vpop.eup %5450 }
 0x13a   :  { %vm767_vm15 = vmor %vm765_vm14, %vm766_vm13 }
 0x13b   :  { %v762_v62 = vsub.f32 1.0, %v761_v58 }
 0x13d   :  { %v763_v1 = vmul.f32 %v5449_v60, %v762_v62 }
 0x13f   :  { %v764_v4 = vadd.f32 %v5449_v60, %v763_v1 }
 0x141   :  { %v768_v6 = vsel %vm767_vm15, %v5449_v60, %v764_v4 }
 0x142   :  { %v773_v7 = vsel %vm770_vm1, %v772_v5, %v768_v6  ;;  %v792_v6 = vld [vmem:[#allocation2 + $0x88] sm:$0xff] }
 0x143   :  { %v778_v8 = vsub.f32 1.0, %v773_v7  ;;  %v780_v35 = vmul.f32 0.0, %v773_v7 }
 0x145   :  { %v779_v22 = vmul.f32 %v5451_v10, %v778_v8 }
 0x147   :  { %v6514_v11 = vadd.f32 %v780_v35, %v779_v22 }
 0x149   :  { %784 = vst.msk [vmem:[#allocation3 + $0x78] sm:$0xff] %vm143_vm0, %v6514_v11  ;;  %5173 = vmatmul.msk.f32.vlgmr.msrb.gmra.mxu3 %vm143_vm0, %v6514_v11  ;;  %5174 = vmatmul.msk.f32.vlgmr.msra.gmra.mxu2 %vm143_vm0, %v6514_v11 }
 0x14a   :  { %1082 = vmatpush.msrb.mxu3 %v6128_v24  ;;  %1102 = vmatpush.msra.mxu2 %v6219_v40 }
 0x14c   :  { %1083 = vmatpush.msrb.mxu3 %v6160_v30  ;;  %1103 = vmatpush.msra.mxu2 %v6233_v43 }
 0x14e   :  { %1084 = vmatpush.msrb.mxu3 %v6168_v32  ;;  %1104 = vmatpush.msra.mxu2 %v6245_v45 }
 0x150   :  { %1085 = vmatpush.msrb.mxu3 %v6174_v34  ;;  %1105 = vmatpush.msra.mxu2 %v6249_v47 }
 0x151   :  { %5175 = vmatmul.msk.f32.vlgmr.msra.gmra.mxu3 %vm143_vm0, %v6514_v11 }
 0x152   :  { %1172 = vmatpush.msra.mxu3 %v6217_v39 }
 0x154   :  { %1173 = vmatpush.msra.mxu3 %v6221_v41 }
 0x156   :  { %1174 = vmatpush.msra.mxu3 %v6235_v44 }
 0x158   :  { %1175 = vmatpush.msra.mxu3 %v6247_v46 }
 0x19c   :  { %v824_v40 = vpop.f32.mrf.mxu2  ;;  %v844_v43 = vpop.f32.mrf.mxu3 }
 0x19d   :  { %v825_v12 = vadd.f32 %v824_v40, %v6430_v63  ;;  %v845_v45 = vadd.f32 %v844_v43, %v6435_v0 }
 0x19f   :  { %v867_v47 = vadd.f32 %v825_v12, %v786_v13  ;;  %v887_v17 = vadd.f32 %v845_v45, %v789_v14 }
 0x1a1   :  { %v5171_v18 = vmul.f32 -1.442695, %v867_v47  ;;  %v5172_v20 = vmul.f32 -1.442695, %v887_v17 }
 0x1a3   :  { %5452 = vpow2.f32 %v5171_v18 }
 0x1a4   :  { %5454 = vpow2.f32 %v5172_v20  ;;  %v864_v60 = vpop.f32.mrf.mxu2  ;;  %v799_v20 = vld [vmem:[#allocation2 + $0x130] sm:$0xff] }
 0x1a5   :  { %v865_v62 = vadd.f32 %v864_v60, %v6461_v42 }
 0x1a9   :  { %v5453_v39 = vpop.eup %5452 }
 0x1aa   :  { %v5455_v41 = vpop.eup %5454  ;;  %v871_v21 = vadd.f32 1.0, %v5453_v39 }
 0x1ab   :  { %v891_v44 = vadd.f32 1.0, %v5455_v41 }
 0x1ac   :  { %5456 = vrcp.f32 %v871_v21  ;;  %v883_v59 = vand.u32 2147483648, %v871_v21  ;;  %v881_v38 = vand.u32 2147483647, %v871_v21  ;;  %vm877_vm3 = vweird.f32 %v871_v21 }
 0x1ad   :  { %5458 = vrcp.f32 %v891_v44  ;;  %v903_v4 = vand.u32 2147483648, %v891_v44  ;;  %vm897_vm7 = vweird.f32 %v891_v44  ;;  %v901_v7 = vand.u32 2147483647, %v891_v44 }
 0x1ae   :  { %v884_v61 = vor.u32 1.1754944e-38, %v883_v59  ;;  %vm882_vm5 = vcmp.eq.f32.partialorder %v881_v38, 8.507059e+37 }
 0x1af   :  { %v904_v22 = vor.u32 1.1754944e-38, %v903_v4  ;;  %vm902_vm9 = vcmp.eq.f32.partialorder %v901_v7, 8.507059e+37 }
 0x1b2   :  { %v5457_v46 = vpop.eup %5456 }
 0x1b3   :  { %v5459_v25 = vpop.eup %5458  ;;  %v873_v26 = vmul.f32 %v5457_v46, %v871_v21  ;;  %vm878_vm2 = vweird.f32 %v5457_v46 }
 0x1b4   :  { %v893_v28 = vmul.f32 %v5459_v25, %v891_v44  ;;  %vm879_vm4 = vmor %vm877_vm3, %vm878_vm2  ;;  %vm898_vm6 = vweird.f32 %v5459_v25 }
 0x1b5   :  { %v874_v27 = vsub.f32 1.0, %v873_v26  ;;  %vm899_vm8 = vmor %vm897_vm7, %vm898_vm6 }
 0x1b6   :  { %v894_v36 = vsub.f32 1.0, %v893_v28 }
 0x1b7   :  { %v875_v37 = vmul.f32 %v5457_v46, %v874_v27 }
 0x1b8   :  { %v895_v16 = vmul.f32 %v5459_v25, %v894_v36 }
 0x1b9   :  { %v876_v58 = vadd.f32 %v5457_v46, %v875_v37 }
 0x1ba   :  { %v896_v2 = vadd.f32 %v5459_v25, %v895_v16 }
 0x1bb   :  { %v880_v57 = vsel %vm879_vm4, %v5457_v46, %v876_v58  ;;  %v803_v58 = vld [vmem:[#allocation2 + $0x170] sm:$0xff] }
 0x1bc   :  { %v885_v1 = vsel %vm882_vm5, %v884_v61, %v880_v57  ;;  %v900_v10 = vsel %vm899_vm8, %v5459_v25, %v896_v2 }
 0x1bd   :  { %v907_v5 = vmul.f32 %v885_v1, %v865_v62  ;;  %v905_v35 = vsel %vm902_vm9, %v904_v22, %v900_v10  ;;  %v6577_v10 = vld [vmem:[#allocation9 + $0x18] sm:$0xff]  ;;  %v6584_v22 = vld [vmem:[#allocation9 + $0x10] sm:$0xff] }
 0x1be   :  { %v910_v40 = vsub.f32 1.0, %v905_v35  ;;  %v912_v45 = vmul.f32 %v905_v35, %v6475_v3  ;;  %v795_v3 = vld [vmem:[#allocation2 + $0xf0] sm:$0xff] }
 0x1bf   :  { %v908_v8 = vadd.f32 %v907_v5, %v792_v6  ;;  %v6587_v35 = vld [vmem:[#allocation9 + $0x30] sm:$0xff] }
 0x1c1   :  { %5460 = vtanh.f32 %v908_v8 }
 0x1c7   :  { %v5461_v43 = vpop.eup %5460 }
 0x1c8   :  { %v911_v12 = vmul.f32 %v5461_v43, %v910_v40  ;;  %v6594_v40 = vld [vmem:[#allocation9 + $0x28] sm:$0xff]  ;;  %v6601_v43 = vld [vmem:[#allocation9 + $0x20] sm:$0xff] }
 0x1ca   :  { %v6540_v13 = vadd.f32 %v912_v45, %v911_v12 }
 0x1cc   :  { %1025 = vst.msk [vmem:[#allocation3 + $0x8] sm:$0xff] %vm143_vm0, %v6540_v13  ;;  %5178 = vmatmul.msk.f32.vlgmr.msrb.gmra.mxu2 %vm143_vm0, %v6540_v13  ;;  %5179 = vmatmul.msk.f32.vlgmr.msrb.gmra.mxu3 %vm143_vm0, %v6540_v13  ;;  %v934_v14 = vpop.f32.mrf.mxu3  ;;  %v954_v47 = vpop.f32.mrf.mxu2 }
 0x1cd   :  { %v935_v17 = vadd.f32 %v934_v14, %v6452_v19  ;;  %v955_v18 = vadd.f32 %v954_v47, %v6494_v9  ;;  %1305 = vmatpush.msrb.mxu2 %v6126_v23  ;;  %1325 = vmatpush.msrb.mxu3 %v6128_v24  ;;  %v1029_v47 = vld [vmem:[#allocation2 + $0x10] sm:$0xff] }
 0x1cf   :  { %v977_v39 = vadd.f32 %v935_v17, %v795_v3  ;;  %v997_v41 = vadd.f32 %v955_v18, %v799_v20  ;;  %1306 = vmatpush.msrb.mxu2 %v6158_v29  ;;  %1326 = vmatpush.msrb.mxu3 %v6160_v30  ;;  %v1032_v17 = vld [vmem:[#allocation2 + $0x50] sm:$0xff] }
 0x1d1   :  { %v5176_v21 = vmul.f32 -1.442695, %v977_v39  ;;  %v5177_v44 = vmul.f32 -1.442695, %v997_v41  ;;  %1307 = vmatpush.msrb.mxu2 %v6166_v31  ;;  %1327 = vmatpush.msrb.mxu3 %v6168_v32 }
 0x1d3   :  { %5462 = vpow2.f32 %v5176_v21  ;;  %1308 = vmatpush.msrb.mxu2 %v6170_v33  ;;  %1328 = vmatpush.msrb.mxu3 %v6174_v34 }
 0x1d4   :  { %5464 = vpow2.f32 %v5177_v44  ;;  %5180 = vmatmul.msk.f32.vlgmr.msra.gmra.mxu2 %vm143_vm0, %v6540_v13  ;;  %v974_v27 = vpop.f32.mrf.mxu3 }
 0x1d5   :  { %1435 = vmatpush.msra.mxu2 %v6270_v49 }
 0x1d7   :  { %1436 = vmatpush.msra.mxu2 %v6274_v51 }
 0x1d9   :  { %v5463_v23 = vpop.eup %5462  ;;  %1437 = vmatpush.msra.mxu2 %v6280_v53 }
 0x1da   :  { %v5465_v24 = vpop.eup %5464  ;;  %v981_v29 = vadd.f32 1.0, %v5463_v23 }
 0x1db   :  { %v1001_v30 = vadd.f32 1.0, %v5465_v24  ;;  %1438 = vmatpush.msra.mxu2 %v6293_v55  ;;  %v975_v55 = vadd.f32 %v974_v27, %v6511_v15 }
 0x1dc   :  { %5466 = vrcp.f32 %v981_v29  ;;  %v993_v26 = vand.u32 2147483648, %v981_v29  ;;  %v991_v51 = vand.u32 2147483647, %v981_v29  ;;  %vm987_vm11 = vweird.f32 %v981_v29 }
 0x1dd   :  { %5468 = vrcp.f32 %v1001_v30  ;;  %v1013_v16 = vand.u32 2147483648, %v1001_v30  ;;  %vm1007_vm15 = vweird.f32 %v1001_v30  ;;  %v1011_v61 = vand.u32 2147483647, %v1001_v30 }
 0x1de   :  { %v994_v36 = vor.u32 1.1754944e-38, %v993_v26  ;;  %vm992_vm13 = vcmp.eq.f32.partialorder %v991_v51, 8.507059e+37 }
 0x1df   :  { %v1014_v1 = vor.u32 1.1754944e-38, %v1013_v16  ;;  %vm1012_vm2 = vcmp.eq.f32.partialorder %v1011_v61, 8.507059e+37 }
 0x1e2   :  { %v5467_v31 = vpop.eup %5466 }
 0x1e3   :  { %v5469_v32 = vpop.eup %5468  ;;  %v983_v33 = vmul.f32 %v5467_v31, %v981_v29  ;;  %vm988_vm10 = vweird.f32 %v5467_v31 }
 0x1e4   :  { %v1003_v34 = vmul.f32 %v5469_v32, %v1001_v30  ;;  %vm989_vm12 = vmor %vm987_vm11, %vm988_vm10  ;;  %vm1008_vm14 = vweird.f32 %v5469_v32 }
 0x1e5   :  { %v984_v46 = vsub.f32 1.0, %v983_v33  ;;  %vm1009_vm1 = vmor %vm1007_vm15, %vm1008_vm14 }
 0x1e6   :  { %v1004_v25 = vsub.f32 1.0, %v1003_v34 }
 0x1e7   :  { %v985_v49 = vmul.f32 %v5467_v31, %v984_v46 }
 0x1e8   :  { %v1005_v28 = vmul.f32 %v5469_v32, %v1004_v25 }
 0x1e9   :  { %v986_v53 = vadd.f32 %v5467_v31, %v985_v49 }
 0x1ea   :  { %v1006_v38 = vadd.f32 %v5469_v32, %v1005_v28 }
 0x1eb   :  { %v990_v59 = vsel %vm989_vm12, %v5467_v31, %v986_v53 }
 0x1ec   :  { %v995_v37 = vsel %vm992_vm13, %v994_v36, %v990_v59  ;;  %v1010_v57 = vsel %vm1009_vm1, %v5469_v32, %v1006_v38 }
 0x1ed   :  { %v1017_v60 = vmul.f32 %v995_v37, %v975_v55  ;;  %v1015_v2 = vsel %vm1012_vm2, %v1014_v1, %v1010_v57  ;;  %v1035_v37 = vld [vmem:[#allocation2 + $0x90] sm:$0xff] }
 0x1ee   :  { %v1020_v4 = vsub.f32 1.0, %v1015_v2  ;;  %v1022_v7 = vmul.f32 %v1015_v2, %v6514_v11  ;;  %v6580_v11 = vld [vmem:[#allocation9 + $0x38] sm:$0xff] }
 0x1ef   :  { %v1018_v62 = vadd.f32 %v1017_v60, %v803_v58 }
 0x1f1   :  { %5470 = vtanh.f32 %v1018_v62 }
 0x1f7   :  { %v5471_v5 = vpop.eup %5470 }
 0x1f8   :  { %v1021_v6 = vmul.f32 %v5471_v5, %v1020_v4  ;;  %v1042_v5 = vld [vmem:[#allocation2 + $0x128] sm:$0xff] }
 0x1fa   :  { %v6566_v8 = vadd.f32 %v1022_v7, %v1021_v6 }
 0x1fc   :  { %1027 = vst.msk [vmem:[#allocation3 + $0x70] sm:$0xff] %vm143_vm0, %v6566_v8  ;;  %5183 = vmatmul.msk.f32.vlgmr.msra.gmra.mxu3 %vm143_vm0, %v6566_v8  ;;  %5184 = vmatmul.msk.f32.vlgmr.msra.gmra.mxu0 %vm143_vm0, %v6566_v8 }
 0x1fd   :  { %5185 = vmatmul.msk.f32.vlgmr.msra.gmra.mxu1 %vm143_vm0, %v6566_v8  ;;  %1455 = vmatpush.msra.mxu3 %v6272_v50  ;;  %v6591_v50 = vld [vmem:[#allocation9 + $0x8] sm:$0xff] }
 0x1fe   :  { %1544 = vmatpush.msra.mxu0 %v6577_v10  ;;  %1564 = vmatpush.msra.mxu1 %v6580_v11 }
 0x1ff   :  { %1456 = vmatpush.msra.mxu3 %v6278_v52  ;;  %v6598_v52 = vld [vmem:[#allocation9] sm:$0xff] }
 0x200   :  { %1545 = vmatpush.msra.mxu0 %v6584_v22  ;;  %1565 = vmatpush.msra.mxu1 %v6587_v35 }
 0x201   :  { %1457 = vmatpush.msra.mxu3 %v6286_v54 }
 0x202   :  { %1546 = vmatpush.msra.mxu0 %v6591_v50  ;;  %1566 = vmatpush.msra.mxu1 %v6594_v40 }
 0x203   :  { %1458 = vmatpush.msra.mxu3 %v6295_v56 }
 0x204   :  { %1547 = vmatpush.msra.mxu0 %v6598_v52  ;;  %1567 = vmatpush.msra.mxu1 %v6601_v43 }
 0x24f   :  { %v1067_v12 = vpop.f32.mrf.mxu2  ;;  %v1087_v54 = vpop.f32.mrf.mxu3 }
 0x250   :  { %v1068_v45 = vadd.f32 %v1067_v12, %v6430_v63  ;;  %v1088_v14 = vadd.f32 %v1087_v54, %v6435_v0 }
 0x252   :  { %v1110_v18 = vadd.f32 %v1068_v45, %v1029_v47  ;;  %v1130_v3 = vadd.f32 %v1088_v14, %v1032_v17  ;;  %v6620_v14 = vld [vmem:[#allocation9 + $0x58] sm:$0xff]  ;;  %v1038_v47 = vld [vmem:[#allocation2 + $0xe8] sm:$0xff] }
 0x253   :  { %v6623_v17 = vld [vmem:[#allocation9 + $0x78] sm:$0xff] }
 0x254   :  { %v5181_v20 = vmul.f32 -1.442695, %v1110_v18  ;;  %v5182_v56 = vmul.f32 -1.442695, %v1130_v3  ;;  %v6626_v18 = vld [vmem:[#allocation9 + $0x98] sm:$0xff] }
 0x256   :  { %5472 = vpow2.f32 %v5181_v20  ;;  %v6629_v20 = vld [vmem:[#allocation9 + $0x50] sm:$0xff] }
 0x257   :  { %5474 = vpow2.f32 %v5182_v56  ;;  %v1107_v26 = vpop.f32.mrf.mxu2  ;;  %v6632_v56 = vld [vmem:[#allocation9 + $0x70] sm:$0xff] }
 0x258   :  { %v1108_v28 = vadd.f32 %v1107_v26, %v6461_v42 }
 0x25c   :  { %v5473_v39 = vpop.eup %5472 }
 0x25d   :  { %v5475_v41 = vpop.eup %5474  ;;  %v1114_v21 = vadd.f32 1.0, %v5473_v39  ;;  %v6635_v39 = vld [vmem:[#allocation9 + $0x90] sm:$0xff] }
 0x25e   :  { %v1134_v44 = vadd.f32 1.0, %v5475_v41 }
 0x25f   :  { %5476 = vrcp.f32 %v1114_v21  ;;  %v1126_v33 = vand.u32 2147483648, %v1114_v21  ;;  %v1124_v46 = vand.u32 2147483647, %v1114_v21  ;;  %vm1120_vm4 = vweird.f32 %v1114_v21 }
 0x260   :  { %5478 = vrcp.f32 %v1134_v44  ;;  %v1146_v55 = vand.u32 2147483648, %v1134_v44  ;;  %vm1140_vm8 = vweird.f32 %v1134_v44  ;;  %v1144_v38 = vand.u32 2147483647, %v1134_v44 }
 0x261   :  { %v1127_v51 = vor.u32 1.1754944e-38, %v1126_v33  ;;  %vm1125_vm6 = vcmp.eq.f32.partialorder %v1124_v46, 8.507059e+37 }
 0x262   :  { %v1147_v58 = vor.u32 1.1754944e-38, %v1146_v55  ;;  %vm1145_vm10 = vcmp.eq.f32.partialorder %v1144_v38, 8.507059e+37 }
 0x265   :  { %v5477_v23 = vpop.eup %5476 }
 0x266   :  { %v5479_v24 = vpop.eup %5478  ;;  %v1116_v29 = vmul.f32 %v5477_v23, %v1114_v21  ;;  %vm1121_vm3 = vweird.f32 %v5477_v23  ;;  %v6638_v21 = vld [vmem:[#allocation9 + $0x48] sm:$0xff] }
 0x267   :  { %v1136_v30 = vmul.f32 %v5479_v24, %v1134_v44  ;;  %vm1122_vm5 = vmor %vm1120_vm4, %vm1121_vm3  ;;  %vm1141_vm7 = vweird.f32 %v5479_v24  ;;  %v6641_v44 = vld [vmem:[#allocation9 + $0x68] sm:$0xff] }
 0x268   :  { %v1117_v31 = vsub.f32 1.0, %v1116_v29  ;;  %vm1142_vm9 = vmor %vm1140_vm8, %vm1141_vm7  ;;  %v6647_v29 = vld [vmem:[#allocation9 + $0x40] sm:$0xff] }
 0x269   :  { %v1137_v32 = vsub.f32 1.0, %v1136_v30 }
 0x26a   :  { %v1118_v34 = vmul.f32 %v5477_v23, %v1117_v31  ;;  %v6650_v31 = vld [vmem:[#allocation9 + $0x60] sm:$0xff] }
 0x26b   :  { %v1138_v25 = vmul.f32 %v5479_v24, %v1137_v32  ;;  %v6653_v32 = vld [vmem:[#allocation9 + $0x80] sm:$0xff] }
 0x26c   :  { %v1119_v49 = vadd.f32 %v5477_v23, %v1118_v34 }
 0x26d   :  { %v1139_v36 = vadd.f32 %v5479_v24, %v1138_v25 }
 0x26e   :  { %v1123_v27 = vsel %vm1122_vm5, %v5477_v23, %v1119_v49  ;;  %v6644_v23 = vld [vmem:[#allocation9 + $0x88] sm:$0xff] }
 0x26f   :  { %v1128_v53 = vsel %vm1125_vm6, %v1127_v51, %v1123_v27  ;;  %v1143_v60 = vsel %vm1142_vm9, %v5479_v24, %v1139_v36 }
 0x270   :  { %v1150_v59 = vmul.f32 %v1128_v53, %v1108_v28  ;;  %v1148_v61 = vsel %vm1145_vm10, %v1147_v58, %v1143_v60 }
 0x271   :  { %v1153_v62 = vsub.f32 1.0, %v1148_v61  ;;  %v1155_v6 = vmul.f32 %v1148_v61, %v6540_v13 }
 0x272   :  { %v1151_v16 = vadd.f32 %v1150_v59, %v1035_v37 }
 0x274   :  { %5480 = vtanh.f32 %v1151_v16 }
 0x279   :  { %v1197_v57 = vpop.f32.mrf.mxu0 }
 0x27a   :  { %v5481_v1 = vpop.eup %5480  ;;  %v1198_v2 = vadd.f32 %v1197_v57, %v6494_v9  ;;  %v1217_v59 = vpop.f32.mrf.mxu1 }
 0x27b   :  { %v1154_v4 = vmul.f32 %v5481_v1, %v1153_v62  ;;  %v1218_v16 = vadd.f32 %v1217_v59, %v6511_v15  ;;  %v1046_v1 = vld [vmem:[#allocation2 + $0x168] sm:$0xff] }
 0x27c   :  { %v1240_v7 = vadd.f32 %v1198_v2, %v1042_v5 }
 0x27d   :  { %v6609_v12 = vadd.f32 %v1155_v6, %v1154_v4 }
 0x27e   :  { %v5187_v54 = vmul.f32 -1.442695, %v1240_v7 }
 0x27f   :  { %1268 = vst.msk [vmem:[#allocation3 + $0x10] sm:$0xff] %vm143_vm0, %v6609_v12  ;;  %5188 = vmatmul.msk.f32.vlgmr.msrb.gmra.mxu2 %vm143_vm0, %v6609_v12  ;;  %5189 = vmatmul.msk.f32.vlgmr.msrb.gmra.mxu3 %vm143_vm0, %v6609_v12  ;;  %v1177_v45 = vpop.f32.mrf.mxu3 }
 0x280   :  { %5482 = vpow2.f32 %v5187_v54  ;;  %5190 = vmatmul.msk.f32.vlgmr.msrb.gmra.mxu0 %vm143_vm0, %v6609_v12  ;;  %v1178_v13 = vadd.f32 %v1177_v45, %v6452_v19  ;;  %1584 = vmatpush.msrb.mxu2 %v6620_v14 }
 0x281   :  { %1654 = vmatpush.msrb.mxu3 %v6623_v17  ;;  %1674 = vmatpush.msrb.mxu0 %v6626_v18 }
 0x282   :  { %v1220_v3 = vadd.f32 %v1178_v13, %v1038_v47  ;;  %1585 = vmatpush.msrb.mxu2 %v6629_v20 }
 0x283   :  { %1655 = vmatpush.msrb.mxu3 %v6632_v56  ;;  %1675 = vmatpush.msrb.mxu0 %v6635_v39 }
 0x284   :  { %v5186_v41 = vmul.f32 -1.442695, %v1220_v3  ;;  %1586 = vmatpush.msrb.mxu2 %v6638_v21 }
 0x285   :  { %1656 = vmatpush.msrb.mxu3 %v6641_v44  ;;  %1676 = vmatpush.msrb.mxu0 %v6644_v23 }
 0x286   :  { %v5483_v24 = vpop.eup %5482  ;;  %5484 = vpow2.f32 %v5186_v41  ;;  %1587 = vmatpush.msrb.mxu2 %v6647_v29  ;;  %v6668_v41 = vld [vmem:[#allocation9 + $0xb8] sm:$0xff] }
 0x287   :  { %v1244_v30 = vadd.f32 1.0, %v5483_v24  ;;  %1657 = vmatpush.msrb.mxu3 %v6650_v31  ;;  %1677 = vmatpush.msrb.mxu0 %v6653_v32  ;;  %v6678_v24 = vld [vmem:[#allocation9 + $0xa8] sm:$0xff] }
 0x289   :  { %5486 = vrcp.f32 %v1244_v30  ;;  %v1256_v62 = vand.u32 2147483648, %v1244_v30  ;;  %vm1250_vm1 = vweird.f32 %v1244_v30  ;;  %v1254_v2 = vand.u32 2147483647, %v1244_v30 }
 0x28b   :  { %v1257_v6 = vor.u32 1.1754944e-38, %v1256_v62  ;;  %vm1255_vm3 = vcmp.eq.f32.partialorder %v1254_v2, 8.507059e+37 }
 0x28c   :  { %v5485_v33 = vpop.eup %5484 }
 0x28d   :  { %v1224_v34 = vadd.f32 1.0, %v5485_v33 }
 0x28f   :  { %5488 = vrcp.f32 %v1224_v34  ;;  %v5487_v46 = vpop.eup %5486  ;;  %v1236_v27 = vand.u32 2147483648, %v1224_v34  ;;  %v1234_v36 = vand.u32 2147483647, %v1224_v34  ;;  %vm1230_vm12 = vweird.f32 %v1224_v34 }
 0x290   :  { %v1246_v25 = vmul.f32 %v5487_v46, %v1244_v30  ;;  %vm1251_vm15 = vweird.f32 %v5487_v46  ;;  %v6683_v30 = vld [vmem:[#allocation9 + $0xa0] sm:$0xff] }
 0x291   :  { %v1237_v38 = vor.u32 1.1754944e-38, %v1236_v27  ;;  %vm1235_vm14 = vcmp.eq.f32.partialorder %v1234_v36, 8.507059e+37  ;;  %vm1252_vm2 = vmor %vm1250_vm1, %vm1251_vm15 }
 0x292   :  { %v1247_v51 = vsub.f32 1.0, %v1246_v25 }
 0x294   :  { %v1248_v55 = vmul.f32 %v5487_v46, %v1247_v51 }
 0x295   :  { %v5489_v26 = vpop.eup %5488 }
 0x296   :  { %v1226_v49 = vmul.f32 %v5489_v26, %v1224_v34  ;;  %vm1231_vm11 = vweird.f32 %v5489_v26  ;;  %v1249_v61 = vadd.f32 %v5487_v46, %v1248_v55 }
 0x297   :  { %vm1232_vm13 = vmor %vm1230_vm12, %vm1231_vm11 }
 0x298   :  { %v1227_v28 = vsub.f32 1.0, %v1226_v49  ;;  %v1253_v5 = vsel %vm1252_vm2, %v5487_v46, %v1249_v61  ;;  %v1275_v49 = vld [vmem:[#allocation2 + $0x58] sm:$0xff] }
 0x299   :  { %v1258_v7 = vsel %vm1255_vm3, %v1257_v6, %v1253_v5 }
 0x29a   :  { %v1228_v53 = vmul.f32 %v5489_v26, %v1227_v28  ;;  %v1263_v54 = vsub.f32 1.0, %v1258_v7  ;;  %v1265_v47 = vmul.f32 %v1258_v7, %v6566_v8  ;;  %v6673_v8 = vld [vmem:[#allocation9 + $0xb0] sm:$0xff] }
 0x29c   :  { %v1229_v37 = vadd.f32 %v5489_v26, %v1228_v53 }
 0x29e   :  { %v1233_v60 = vsel %vm1232_vm13, %v5489_v26, %v1229_v37  ;;  %v1272_v26 = vld [vmem:[#allocation2 + $0x18] sm:$0xff] }
 0x29f   :  { %v1238_v58 = vsel %vm1235_vm14, %v1237_v38, %v1233_v60 }
 0x2a0   :  { %v1260_v57 = vmul.f32 %v1238_v58, %v1218_v16 }
 0x2a2   :  { %v1261_v4 = vadd.f32 %v1260_v57, %v1046_v1 }
 0x2a4   :  { %5490 = vtanh.f32 %v1261_v4 }
 0x2aa   :  { %v5491_v45 = vpop.eup %5490 }
 0x2ab   :  { %v1264_v13 = vmul.f32 %v5491_v45, %v1263_v54 }
 0x2ad   :  { %v6658_v3 = vadd.f32 %v1265_v47, %v1264_v13 }
 0x2af   :  { %1270 = vst.msk [vmem:[#allocation3 + $0x68] sm:$0xff] %vm143_vm0, %v6658_v3  ;;  %5193 = vmatmul.msk.f32.vlgmr.msrb.gmra.mxu1 %vm143_vm0, %v6658_v3  ;;  %5194 = vmatmul.msk.f32.vlgmr.msra.gmra.mxu2 %vm143_vm0, %v6658_v3 }
 0x2b0   :  { %5195 = vmatmul.msk.f32.vlgmr.msra.gmra.mxu3 %vm143_vm0, %v6658_v3  ;;  %1694 = vmatpush.msrb.mxu1 %v6668_v41 }
 0x2b1   :  { %1783 = vmatpush.msra.mxu2 %v6577_v10  ;;  %1803 = vmatpush.msra.mxu3 %v6580_v11 }
 0x2b2   :  { %1695 = vmatpush.msrb.mxu1 %v6673_v8 }
 0x2b3   :  { %1784 = vmatpush.msra.mxu2 %v6584_v22  ;;  %1804 = vmatpush.msra.mxu3 %v6587_v35 }
 0x2b4   :  { %1696 = vmatpush.msrb.mxu1 %v6678_v24 }
 0x2b5   :  { %1785 = vmatpush.msra.mxu2 %v6591_v50  ;;  %1805 = vmatpush.msra.mxu3 %v6594_v40 }
 0x2b6   :  { %1697 = vmatpush.msrb.mxu1 %v6683_v30 }
 0x2b7   :  { %1786 = vmatpush.msra.mxu2 %v6598_v52  ;;  %1806 = vmatpush.msra.mxu3 %v6601_v43 }
 0x2fd   :  { %v1350_v1 = vpop.f32.mrf.mxu0 }
 0x2fe   :  { %v1351_v6 = vadd.f32 %v1350_v1, %v6461_v42 }
 0x302   :  { %v1310_v33 = vpop.f32.mrf.mxu2  ;;  %v1330_v34 = vpop.f32.mrf.mxu3 }
 0x303   :  { %v1311_v46 = vadd.f32 %v1310_v33, %v6430_v63  ;;  %v1331_v25 = vadd.f32 %v1330_v34, %v6435_v0  ;;  %v1278_v33 = vld [vmem:[#allocation2 + $0x98] sm:$0xff] }
 0x305   :  { %v1353_v51 = vadd.f32 %v1311_v46, %v1272_v26  ;;  %v1373_v28 = vadd.f32 %v1331_v25, %v1275_v49 }
 0x307   :  { %v5191_v27 = vmul.f32 -1.442695, %v1353_v51  ;;  %v5192_v53 = vmul.f32 -1.442695, %v1373_v28 }
 0x309   :  { %5492 = vpow2.f32 %v5191_v27 }
 0x30a   :  { %5494 = vpow2.f32 %v5192_v53  ;;  %v1281_v53 = vld [vmem:[#allocation2 + $0xe0] sm:$0xff] }
 0x30f   :  { %v5493_v36 = vpop.eup %5492 }
 0x310   :  { %v5495_v55 = vpop.eup %5494  ;;  %v1357_v59 = vadd.f32 1.0, %v5493_v36 }
 0x311   :  { %v1377_v37 = vadd.f32 1.0, %v5495_v55 }
 0x312   :  { %5496 = vrcp.f32 %v1357_v59  ;;  %v1369_v0 = vand.u32 2147483648, %v1357_v59  ;;  %v1367_v57 = vand.u32 2147483647, %v1357_v59  ;;  %vm1363_vm5 = vweird.f32 %v1357_v59 }
 0x313   :  { %5498 = vrcp.f32 %v1377_v37  ;;  %v1389_v47 = vand.u32 2147483648, %v1377_v37  ;;  %vm1383_vm9 = vweird.f32 %v1377_v37  ;;  %v1387_v34 = vand.u32 2147483647, %v1377_v37 }
 0x314   :  { %v1370_v5 = vor.u32 1.1754944e-38, %v1369_v0  ;;  %vm1368_vm7 = vcmp.eq.f32.partialorder %v1367_v57, 8.507059e+37 }
 0x315   :  { %v1390_v26 = vor.u32 1.1754944e-38, %v1389_v47  ;;  %vm1388_vm11 = vcmp.eq.f32.partialorder %v1387_v34, 8.507059e+37 }
 0x318   :  { %v5497_v38 = vpop.eup %5496 }
 0x319   :  { %v5499_v16 = vpop.eup %5498  ;;  %v1359_v60 = vmul.f32 %v5497_v38, %v1357_v59  ;;  %vm1364_vm4 = vweird.f32 %v5497_v38 }
 0x31a   :  { %v1379_v63 = vmul.f32 %v5499_v16, %v1377_v37  ;;  %vm1365_vm6 = vmor %vm1363_vm5, %vm1364_vm4  ;;  %vm1384_vm8 = vweird.f32 %v5499_v16 }
 0x31b   :  { %v1360_v58 = vsub.f32 1.0, %v1359_v60  ;;  %vm1385_vm10 = vmor %vm1383_vm9, %vm1384_vm8 }
 0x31c   :  { %v1380_v61 = vsub.f32 1.0, %v1379_v63 }
 0x31d   :  { %v1361_v62 = vmul.f32 %v5497_v38, %v1360_v58 }
 0x31e   :  { %v1381_v2 = vmul.f32 %v5499_v16, %v1380_v61 }
 0x31f   :  { %v1362_v4 = vadd.f32 %v5497_v38, %v1361_v62 }
 0x320   :  { %v1382_v45 = vadd.f32 %v5499_v16, %v1381_v2 }
 0x321   :  { %v1366_v7 = vsel %vm1365_vm6, %v5497_v38, %v1362_v4 }
 0x322   :  { %v1371_v54 = vsel %vm1368_vm7, %v1370_v5, %v1366_v7  ;;  %v1386_v25 = vsel %vm1385_vm10, %v5499_v16, %v1382_v45 }
 0x323   :  { %v1393_v13 = vmul.f32 %v1371_v54, %v1351_v6  ;;  %v1391_v49 = vsel %vm1388_vm11, %v1390_v26, %v1386_v25 }
 0x324   :  { %v1396_v28 = vsub.f32 1.0, %v1391_v49  ;;  %v1398_v55 = vmul.f32 %v1391_v49, %v6609_v12  ;;  %v1285_v12 = vld [vmem:[#allocation2 + $0x120] sm:$0xff] }
 0x325   :  { %v1394_v46 = vadd.f32 %v1393_v13, %v1278_v33 }
 0x327   :  { %5500 = vtanh.f32 %v1394_v46 }
 0x32c   :  { %v1420_v51 = vpop.f32.mrf.mxu1 }
 0x32d   :  { %v5501_v42 = vpop.eup %5500  ;;  %v1421_v27 = vadd.f32 %v1420_v51, %v6452_v19  ;;  %v1289_v51 = vld [vmem:[#allocation2 + $0x160] sm:$0xff] }
 0x32e   :  { %v1397_v36 = vmul.f32 %v5501_v42, %v1396_v28 }
 0x32f   :  { %v1463_v59 = vadd.f32 %v1421_v27, %v1281_v53 }
 0x330   :  { %v6693_v38 = vadd.f32 %v1398_v55, %v1397_v36 }
 0x331   :  { %v5196_v37 = vmul.f32 -1.442695, %v1463_v59 }
 0x332   :  { %1511 = vst.msk [vmem:[#allocation3 + $0x18] sm:$0xff] %vm143_vm0, %v6693_v38  ;;  %5198 = vmatmul.msk.f32.vlgmr.msra.gmra.mxu0 %vm143_vm0, %v6693_v38  ;;  %5199 = vmatmul.msk.f32.vlgmr.msra.gmra.mxu1 %vm143_vm0, %v6693_v38  ;;  %v1440_v16 = vpop.f32.mrf.mxu2 }
 0x333   :  { %5502 = vpow2.f32 %v5196_v37  ;;  %5200 = vmatmul.msk.f32.vlgmr.msrb.gmra.mxu2 %vm143_vm0, %v6693_v38  ;;  %v1441_v19 = vadd.f32 %v1440_v16, %v6494_v9  ;;  %1823 = vmatpush.msra.mxu0 %v6620_v14  ;;  %v1460_v7 = vpop.f32.mrf.mxu3 }
 0x334   :  { %1893 = vmatpush.msra.mxu1 %v6623_v17  ;;  %1913 = vmatpush.msrb.mxu2 %v6626_v18  ;;  %v1461_v33 = vadd.f32 %v1460_v7, %v6511_v15 }
 0x335   :  { %v1483_v60 = vadd.f32 %v1441_v19, %v1285_v12  ;;  %1824 = vmatpush.msra.mxu0 %v6629_v20 }
 0x336   :  { %1894 = vmatpush.msra.mxu1 %v6632_v56  ;;  %1914 = vmatpush.msrb.mxu2 %v6635_v39 }
 0x337   :  { %v5197_v63 = vmul.f32 -1.442695, %v1483_v60  ;;  %1825 = vmatpush.msra.mxu0 %v6638_v21  ;;  %v6743_v60 = vld [vmem:[%s8007_s4] sm:$0xff] }
 0x338   :  { %1895 = vmatpush.msra.mxu1 %v6641_v44  ;;  %1915 = vmatpush.msrb.mxu2 %v6644_v23 }
 0x339   :  { %v5503_v9 = vpop.eup %5502  ;;  %5504 = vpow2.f32 %v5197_v63  ;;  %1826 = vmatpush.msra.mxu0 %v6647_v29 }
 0x33a   :  { %v1467_v58 = vadd.f32 1.0, %v5503_v9  ;;  %1896 = vmatpush.msra.mxu1 %v6650_v31  ;;  %1916 = vmatpush.msrb.mxu2 %v6653_v32  ;;  %v6749_v9 = vld [vmem:[%s8007_s4 + $0x8] sm:$0xff] }
 0x33c   :  { %5506 = vrcp.f32 %v1467_v58  ;;  %v1479_v2 = vand.u32 2147483648, %v1467_v58  ;;  %v1477_v5 = vand.u32 2147483647, %v1467_v58  ;;  %vm1473_vm13 = vweird.f32 %v1467_v58 }
 0x33e   :  { %v1480_v13 = vor.u32 1.1754944e-38, %v1479_v2  ;;  %vm1478_vm15 = vcmp.eq.f32.partialorder %v1477_v5, 8.507059e+37 }
 0x33f   :  { %v5505_v0 = vpop.eup %5504 }
 0x340   :  { %v1487_v61 = vadd.f32 1.0, %v5505_v0  ;;  %v1515_v0 = vld [vmem:[#allocation2 + $0x20] sm:$0xff] }
 0x342   :  { %v5507_v62 = vpop.eup %5506  ;;  %5508 = vrcp.f32 %v1487_v61  ;;  %v1499_v26 = vand.u32 2147483648, %v1487_v61  ;;  %v1497_v28 = vand.u32 2147483647, %v1487_v61  ;;  %vm1493_vm2 = vweird.f32 %v1487_v61 }
 0x343   :  { %v1469_v57 = vmul.f32 %v5507_v62, %v1467_v58  ;;  %vm1474_vm12 = vweird.f32 %v5507_v62 }
 0x344   :  { %vm1475_vm14 = vmor %vm1473_vm13, %vm1474_vm12  ;;  %v1500_v53 = vor.u32 1.1754944e-38, %v1499_v26  ;;  %vm1498_vm4 = vcmp.eq.f32.partialorder %v1497_v28, 8.507059e+37 }
 0x345   :  { %v1470_v1 = vsub.f32 1.0, %v1469_v57 }
 0x347   :  { %v1471_v4 = vmul.f32 %v5507_v62, %v1470_v1 }
 0x348   :  { %v5509_v6 = vpop.eup %5508 }
 0x349   :  { %v1489_v54 = vmul.f32 %v5509_v6, %v1487_v61  ;;  %v1472_v45 = vadd.f32 %v5507_v62, %v1471_v4  ;;  %vm1494_vm1 = vweird.f32 %v5509_v6  ;;  %v1517_v61 = vld [vmem:[#allocation2 + $0x60] sm:$0xff] }
 0x34a   :  { %vm1495_vm3 = vmor %vm1493_vm2, %vm1494_vm1 }
 0x34b   :  { %v1490_v47 = vsub.f32 1.0, %v1489_v54  ;;  %v1476_v34 = vsel %vm1475_vm14, %v5507_v62, %v1472_v45 }
 0x34c   :  { %v1481_v46 = vsel %vm1478_vm15, %v1480_v13, %v1476_v34 }
 0x34d   :  { %v1491_v25 = vmul.f32 %v5509_v6, %v1490_v47  ;;  %v1503_v49 = vmul.f32 %v1481_v46, %v1461_v33 }
 0x34f   :  { %v1492_v42 = vadd.f32 %v5509_v6, %v1491_v25  ;;  %v1504_v27 = vadd.f32 %v1503_v49, %v1289_v51 }
 0x351   :  { %v1496_v36 = vsel %vm1495_vm3, %v5509_v6, %v1492_v42  ;;  %5510 = vtanh.f32 %v1504_v27  ;;  %v6755_v27 = vld [vmem:[%s8007_s4 + $0x10] sm:$0xff] }
 0x352   :  { %v1501_v55 = vsel %vm1498_vm4, %v1500_v53, %v1496_v36 }
 0x353   :  { %v1506_v59 = vsub.f32 1.0, %v1501_v55  ;;  %v1508_v16 = vmul.f32 %v1501_v55, %v6658_v3 }
 0x357   :  { %v5511_v15 = vpop.eup %5510 }
 0x358   :  { %v1507_v37 = vmul.f32 %v5511_v15, %v1506_v59 }
 0x35a   :  { %v6718_v19 = vadd.f32 %v1508_v16, %v1507_v37  ;;  %v1519_v16 = vld [vmem:[#allocation2 + $0xa0] sm:$0xff] }
 0x35c   :  { %1513 = vst.msk [vmem:[#allocation3 + $0x60] sm:$0xff] %vm143_vm0, %v6718_v19  ;;  %5203 = vmatmul.msk.f32.vlgmr.msrb.gmra.mxu3 %vm143_vm0, %v6718_v19  ;;  %5204 = vmatmul.msk.f32.vlgmr.msrb.gmra.mxu0 %vm143_vm0, %v6718_v19 }
 0x35d   :  { %5205 = vmatmul.msk.f32.vlgmr.msrb.gmra.mxu1 %vm143_vm0, %v6718_v19  ;;  %1933 = vmatpush.msrb.mxu3 %v6668_v41 }
 0x35e   :  { %2022 = vmatpush.msrb.mxu0 %v6577_v10  ;;  %2042 = vmatpush.msrb.mxu1 %v6580_v11 }
 0x35f   :  { %1934 = vmatpush.msrb.mxu3 %v6673_v8 }
 0x360   :  { %2023 = vmatpush.msrb.mxu0 %v6584_v22  ;;  %2043 = vmatpush.msrb.mxu1 %v6587_v35 }
 0x361   :  { %1935 = vmatpush.msrb.mxu3 %v6678_v24 }
 0x362   :  { %2024 = vmatpush.msrb.mxu0 %v6591_v50  ;;  %2044 = vmatpush.msrb.mxu1 %v6594_v40 }
 0x363   :  { %1936 = vmatpush.msrb.mxu3 %v6683_v30 }
 0x364   :  { %2025 = vmatpush.msrb.mxu0 %v6598_v52  ;;  %2045 = vmatpush.msrb.mxu1 %v6601_v43 }
 0x3af   :  { %v1549_v3 = vpop.f32.mrf.mxu0  ;;  %v1569_v12 = vpop.f32.mrf.mxu1 }
 0x3b0   :  { %v1550_v63 = vadd.f32 %v6743_v60, %v1549_v3  ;;  %v1570_v58 = vadd.f32 %v6749_v9, %v1569_v12 }
 0x3b2   :  { %v1592_v62 = vadd.f32 %v1550_v63, %v1515_v0  ;;  %v1612_v57 = vadd.f32 %v1570_v58, %v1517_v61 }
 0x3b4   :  { %v5201_v1 = vmul.f32 -1.442695, %v1592_v62  ;;  %v5202_v2 = vmul.f32 -1.442695, %v1612_v57 }
 0x3b6   :  { %5512 = vpow2.f32 %v5201_v1  ;;  %v1589_v51 = vpop.f32.mrf.mxu2  ;;  %v6761_v1 = vld [vmem:[%s8007_s4 + $0x20] sm:$0xff] }
 0x3b7   :  { %5514 = vpow2.f32 %v5202_v2  ;;  %v1590_v53 = vadd.f32 %v6755_v27, %v1589_v51 }
 0x3bc   :  { %v5513_v4 = vpop.eup %5512 }
 0x3bd   :  { %v5515_v5 = vpop.eup %5514  ;;  %v1596_v6 = vadd.f32 1.0, %v5513_v4 }
 0x3be   :  { %v1616_v7 = vadd.f32 1.0, %v5515_v5  ;;  %v1525_v5 = vld [vmem:[#allocation2 + $0x118] sm:$0xff] }
 0x3bf   :  { %5516 = vrcp.f32 %v1596_v6  ;;  %v1608_v46 = vand.u32 2147483648, %v1596_v6  ;;  %v1606_v26 = vand.u32 2147483647, %v1596_v6  ;;  %vm1602_vm6 = vweird.f32 %v1596_v6 }
 0x3c0   :  { %5518 = vrcp.f32 %v1616_v7  ;;  %v1628_v15 = vand.u32 2147483648, %v1616_v7  ;;  %vm1622_vm10 = vweird.f32 %v1616_v7  ;;  %v1626_v3 = vand.u32 2147483647, %v1616_v7 }
 0x3c1   :  { %v1609_v42 = vor.u32 1.1754944e-38, %v1608_v46  ;;  %vm1607_vm8 = vcmp.eq.f32.partialorder %v1606_v26, 8.507059e+37 }
 0x3c2   :  { %v1629_v58 = vor.u32 1.1754944e-38, %v1628_v15  ;;  %vm1627_vm12 = vcmp.eq.f32.partialorder %v1626_v3, 8.507059e+37 }
 0x3c5   :  { %v5517_v54 = vpop.eup %5516 }
 0x3c6   :  { %v5519_v45 = vpop.eup %5518  ;;  %v1598_v13 = vmul.f32 %v5517_v54, %v1596_v6  ;;  %vm1603_vm5 = vweird.f32 %v5517_v54 }
 0x3c7   :  { %v1618_v47 = vmul.f32 %v5519_v45, %v1616_v7  ;;  %vm1604_vm7 = vmor %vm1602_vm6, %vm1603_vm5  ;;  %vm1623_vm9 = vweird.f32 %v5519_v45 }
 0x3c8   :  { %v1599_v33 = vsub.f32 1.0, %v1598_v13  ;;  %vm1624_vm11 = vmor %vm1622_vm10, %vm1623_vm9 }
 0x3c9   :  { %v1619_v34 = vsub.f32 1.0, %v1618_v47 }
 0x3ca   :  { %v1600_v25 = vmul.f32 %v5517_v54, %v1599_v33  ;;  %v1522_v33 = vld [vmem:[#allocation2 + $0xd8] sm:$0xff] }
 0x3cb   :  { %v1620_v49 = vmul.f32 %v5519_v45, %v1619_v34 }
 0x3cc   :  { %v1601_v28 = vadd.f32 %v5517_v54, %v1600_v25 }
 0x3cd   :  { %v1621_v59 = vadd.f32 %v5519_v45, %v1620_v49 }
 0x3ce   :  { %v1605_v36 = vsel %vm1604_vm7, %v5517_v54, %v1601_v28 }
 0x3cf   :  { %v1610_v55 = vsel %vm1607_vm8, %v1609_v42, %v1605_v36  ;;  %v1625_v63 = vsel %vm1624_vm11, %v5519_v45, %v1621_v59 }
 0x3d0   :  { %v1632_v37 = vmul.f32 %v1610_v55, %v1590_v53  ;;  %v1630_v0 = vsel %vm1627_vm12, %v1629_v58, %v1625_v63 }
 0x3d1   :  { %v1635_v61 = vsub.f32 1.0, %v1630_v0  ;;  %v1637_v6 = vmul.f32 %v1630_v0, %v6693_v38  ;;  %v6778_v38 = vld [vmem:[%s8007_s4 + $0x18] sm:$0xff]  ;;  %v6796_v0 = vld [vmem:[%s8007_s4 + $0x28] sm:$0xff]  ;;  %s5052_s4 = sshll.u32 %s8012_s9, 4  ;;  %s5053_s4 = int_to_ptr.hbm [resolvable:$true] %s5052_s4 }
 0x3d2   :  { %v1633_v12 = vadd.f32 %v1632_v37, %v1519_v16 }
 0x3d4   :  { %5520 = vtanh.f32 %v1633_v12 }
 0x3d9   :  { %v1679_v62 = vpop.f32.mrf.mxu0 }
 0x3da   :  { %v5521_v57 = vpop.eup %5520  ;;  %v1680_v2 = vadd.f32 %v6761_v1, %v1679_v62  ;;  %v1699_v12 = vpop.f32.mrf.mxu1 }
 0x3db   :  { %v1636_v4 = vmul.f32 %v5521_v57, %v1635_v61  ;;  %v1700_v61 = vadd.f32 %v6796_v0, %v1699_v12 }
 0x3dc   :  { %v1722_v7 = vadd.f32 %v1680_v2, %v1525_v5 }
 0x3dd   :  { %v6765_v54 = vadd.f32 %v1637_v6, %v1636_v4  ;;  %v1528_v6 = vld [vmem:[#allocation2 + $0x158] sm:$0xff] }
 0x3de   :  { %v5207_v45 = vmul.f32 -1.442695, %v1722_v7 }
 0x3df   :  { %1750 = vst.msk [vmem:[#allocation3 + $0x20] sm:$0xff] %vm143_vm0, %v6765_v54  ;;  %5208 = vmatmul.msk.f32.vlgmr.msra.gmra.mxu2 %vm143_vm0, %v6765_v54  ;;  %5209 = vmatmul.msk.f32.vlgmr.msra.gmra.mxu3 %vm143_vm0, %v6765_v54  ;;  %v1659_v13 = vpop.f32.mrf.mxu3 }
 0x3e0   :  { %5522 = vpow2.f32 %v5207_v45  ;;  %5210 = vmatmul.msk.f32.vlgmr.msra.gmra.mxu0 %vm143_vm0, %v6765_v54  ;;  %v1660_v47 = vadd.f32 %v6778_v38, %v1659_v13  ;;  %2062 = vmatpush.msra.mxu2 %v6620_v14 }
 0x3e1   :  { %2132 = vmatpush.msra.mxu3 %v6623_v17  ;;  %2152 = vmatpush.msra.mxu0 %v6626_v18 }
 0x3e2   :  { %v1702_v34 = vadd.f32 %v1660_v47, %v1522_v33  ;;  %2063 = vmatpush.msra.mxu2 %v6629_v20 }
 0x3e3   :  { %2133 = vmatpush.msra.mxu3 %v6632_v56  ;;  %2153 = vmatpush.msra.mxu0 %v6635_v39 }
 0x3e4   :  { %v5206_v46 = vmul.f32 -1.442695, %v1702_v34  ;;  %2064 = vmatpush.msra.mxu2 %v6638_v21 }
 0x3e5   :  { %2134 = vmatpush.msra.mxu3 %v6641_v44  ;;  %2154 = vmatpush.msra.mxu0 %v6644_v23 }
 0x3e6   :  { %v5523_v25 = vpop.eup %5522  ;;  %5524 = vpow2.f32 %v5206_v46  ;;  %2065 = vmatpush.msra.mxu2 %v6647_v29 }
 0x3e7   :  { %v1726_v26 = vadd.f32 1.0, %v5523_v25  ;;  %2135 = vmatpush.msra.mxu3 %v6650_v31  ;;  %2155 = vmatpush.msra.mxu0 %v6653_v32 }
 0x3e9   :  { %5526 = vrcp.f32 %v1726_v26  ;;  %v1738_v4 = vand.u32 2147483648, %v1726_v26  ;;  %vm1732_vm3 = vweird.f32 %v1726_v26  ;;  %v1736_v7 = vand.u32 2147483647, %v1726_v26 }
 0x3eb   :  { %v1739_v47 = vor.u32 1.1754944e-38, %v1738_v4  ;;  %vm1737_vm5 = vcmp.eq.f32.partialorder %v1736_v7, 8.507059e+37 }
 0x3ec   :  { %v5525_v49 = vpop.eup %5524 }
 0x3ed   :  { %v1706_v51 = vadd.f32 1.0, %v5525_v49 }
 0x3ef   :  { %5528 = vrcp.f32 %v1706_v51  ;;  %v5527_v28 = vpop.eup %5526  ;;  %v1718_v15 = vand.u32 2147483648, %v1706_v51  ;;  %v1716_v16 = vand.u32 2147483647, %v1706_v51  ;;  %vm1712_vm14 = vweird.f32 %v1706_v51 }
 0x3f0   :  { %v1728_v42 = vmul.f32 %v5527_v28, %v1726_v26  ;;  %vm1733_vm2 = vweird.f32 %v5527_v28  ;;  %v1754_v26 = vld [vmem:[#allocation2 + $0x28] sm:$0xff] }
 0x3f1   :  { %v1719_v58 = vor.u32 1.1754944e-38, %v1718_v15  ;;  %vm1717_vm1 = vcmp.eq.f32.partialorder %v1716_v16, 8.507059e+37  ;;  %vm1734_vm4 = vmor %vm1732_vm3, %vm1733_vm2 }
 0x3f2   :  { %v1729_v55 = vsub.f32 1.0, %v1728_v42 }
 0x3f4   :  { %v1730_v3 = vmul.f32 %v5527_v28, %v1729_v55 }
 0x3f5   :  { %v5529_v53 = vpop.eup %5528 }
 0x3f6   :  { %v1708_v36 = vmul.f32 %v5529_v53, %v1706_v51  ;;  %vm1713_vm13 = vweird.f32 %v5529_v53  ;;  %v1731_v2 = vadd.f32 %v5527_v28, %v1730_v3 }
 0x3f7   :  { %vm1714_vm15 = vmor %vm1712_vm14, %vm1713_vm13 }
 0x3f8   :  { %v1709_v59 = vsub.f32 1.0, %v1708_v36  ;;  %v1735_v13 = vsel %vm1734_vm4, %v5527_v28, %v1731_v2 }
 0x3f9   :  { %v1740_v33 = vsel %vm1737_vm5, %v1739_v47, %v1735_v13  ;;  %v1758_v47 = vld [vmem:[#allocation2 + $0xa8] sm:$0xff] }
 0x3fa   :  { %v1710_v37 = vmul.f32 %v5529_v53, %v1709_v59  ;;  %v1745_v34 = vsub.f32 1.0, %v1740_v33  ;;  %v1747_v49 = vmul.f32 %v1740_v33, %v6718_v19 }
 0x3fc   :  { %v1711_v63 = vadd.f32 %v5529_v53, %v1710_v37 }
 0x3fe   :  { %v1715_v62 = vsel %vm1714_vm15, %v5529_v53, %v1711_v63 }
 0x3ff   :  { %v1720_v57 = vsel %vm1717_vm1, %v1719_v58, %v1715_v62 }
 0x400   :  { %v1742_v5 = vmul.f32 %v1720_v57, %v1700_v61 }
 0x402   :  { %v1743_v45 = vadd.f32 %v1742_v5, %v1528_v6 }
 0x404   :  { %5530 = vtanh.f32 %v1743_v45 }
 0x40a   :  { %v5531_v46 = vpop.eup %5530 }
 0x40b   :  { %v1746_v25 = vmul.f32 %v5531_v46, %v1745_v34 }
 0x40d   :  { %v6800_v51 = vadd.f32 %v1747_v49, %v1746_v25 }
 0x40f   :  { %1752 = vst.msk [vmem:[#allocation3 + $0x58] sm:$0xff] %vm143_vm0, %v6800_v51  ;;  %5213 = vmatmul.msk.f32.vlgmr.msra.gmra.mxu1 %vm143_vm0, %v6800_v51  ;;  %5214 = vmatmul.msk.f32.vlgmr.msrb.gmra.mxu2 %vm143_vm0, %v6800_v51 }
 0x410   :  { %5215 = vmatmul.msk.f32.vlgmr.msrb.gmra.mxu3 %vm143_vm0, %v6800_v51  ;;  %2172 = vmatpush.msra.mxu1 %v6668_v41 }
 0x411   :  { %2261 = vmatpush.msrb.mxu2 %v6577_v10  ;;  %2281 = vmatpush.msrb.mxu3 %v6580_v11 }
 0x412   :  { %2173 = vmatpush.msra.mxu1 %v6673_v8 }
 0x413   :  { %2262 = vmatpush.msrb.mxu2 %v6584_v22  ;;  %2282 = vmatpush.msrb.mxu3 %v6587_v35  ;;  %v1756_v35 = vld [vmem:[#allocation2 + $0x68] sm:$0xff] }
 0x414   :  { %2174 = vmatpush.msra.mxu1 %v6678_v24 }
 0x415   :  { %2263 = vmatpush.msrb.mxu2 %v6591_v50  ;;  %2283 = vmatpush.msrb.mxu3 %v6594_v40 }
 0x416   :  { %2175 = vmatpush.msra.mxu1 %v6683_v30 }
 0x417   :  { %2264 = vmatpush.msrb.mxu2 %v6598_v52  ;;  %2284 = vmatpush.msrb.mxu3 %v6601_v43 }
 0x45d   :  { %v1828_v61 = vpop.f32.mrf.mxu0 }
 0x45e   :  { %v1829_v4 = vadd.f32 %v6755_v27, %v1828_v61 }
 0x462   :  { %v1788_v10 = vpop.f32.mrf.mxu2  ;;  %v1808_v11 = vpop.f32.mrf.mxu3 }
 0x463   :  { %v1789_v19 = vadd.f32 %v6743_v60, %v1788_v10  ;;  %v1809_v22 = vadd.f32 %v6749_v9, %v1808_v11 }
 0x465   :  { %v1831_v28 = vadd.f32 %v1789_v19, %v1754_v26  ;;  %v1851_v42 = vadd.f32 %v1809_v22, %v1756_v35  ;;  %v1761_v26 = vld [vmem:[#allocation2 + $0xd0] sm:$0xff] }
 0x467   :  { %v5211_v53 = vmul.f32 -1.442695, %v1831_v28  ;;  %v5212_v50 = vmul.f32 -1.442695, %v1851_v42 }
 0x469   :  { %5532 = vpow2.f32 %v5211_v53 }
 0x46a   :  { %5534 = vpow2.f32 %v5212_v50 }
 0x46f   :  { %v5533_v40 = vpop.eup %5532 }
 0x470   :  { %v5535_v36 = vpop.eup %5534  ;;  %v1835_v55 = vadd.f32 1.0, %v5533_v40 }
 0x471   :  { %v1855_v52 = vadd.f32 1.0, %v5535_v36  ;;  %v1764_v36 = vld [vmem:[#allocation2 + $0x110] sm:$0xff] }
 0x472   :  { %5536 = vrcp.f32 %v1835_v55  ;;  %v1847_v3 = vand.u32 2147483648, %v1835_v55  ;;  %v1845_v58 = vand.u32 2147483647, %v1835_v55  ;;  %vm1841_vm7 = vweird.f32 %v1835_v55 }
 0x473   :  { %5538 = vrcp.f32 %v1855_v52  ;;  %v1867_v13 = vand.u32 2147483648, %v1855_v52  ;;  %vm1861_vm11 = vweird.f32 %v1855_v52  ;;  %v1865_v33 = vand.u32 2147483647, %v1855_v52 }
 0x474   :  { %v1848_v2 = vor.u32 1.1754944e-38, %v1847_v3  ;;  %vm1846_vm9 = vcmp.eq.f32.partialorder %v1845_v58, 8.507059e+37 }
 0x475   :  { %v1868_v25 = vor.u32 1.1754944e-38, %v1867_v13  ;;  %vm1866_vm13 = vcmp.eq.f32.partialorder %v1865_v33, 8.507059e+37 }
 0x478   :  { %v5537_v43 = vpop.eup %5536 }
 0x479   :  { %v5539_v59 = vpop.eup %5538  ;;  %v1837_v15 = vmul.f32 %v5537_v43, %v1835_v55  ;;  %vm1842_vm6 = vweird.f32 %v5537_v43 }
 0x47a   :  { %v1857_v37 = vmul.f32 %v5539_v59, %v1855_v52  ;;  %vm1843_vm8 = vmor %vm1841_vm7, %vm1842_vm6  ;;  %vm1862_vm10 = vweird.f32 %v5539_v59 }
 0x47b   :  { %v1838_v16 = vsub.f32 1.0, %v1837_v15  ;;  %vm1863_vm12 = vmor %vm1861_vm11, %vm1862_vm10 }
 0x47c   :  { %v1858_v12 = vsub.f32 1.0, %v1857_v37 }
 0x47d   :  { %v1839_v63 = vmul.f32 %v5537_v43, %v1838_v16 }
 0x47e   :  { %v1859_v62 = vmul.f32 %v5539_v59, %v1858_v12 }
 0x47f   :  { %v1840_v57 = vadd.f32 %v5537_v43, %v1839_v63 }
 0x480   :  { %v1860_v7 = vadd.f32 %v5539_v59, %v1859_v62  ;;  %v1767_v62 = vld [vmem:[#allocation2 + $0x150] sm:$0xff] }
 0x481   :  { %v1844_v5 = vsel %vm1843_vm8, %v5537_v43, %v1840_v57 }
 0x482   :  { %v1849_v6 = vsel %vm1846_vm9, %v1848_v2, %v1844_v5  ;;  %v1864_v46 = vsel %vm1863_vm12, %v5539_v59, %v1860_v7 }
 0x483   :  { %v1871_v45 = vmul.f32 %v1849_v6, %v1829_v4  ;;  %v1869_v49 = vsel %vm1866_vm13, %v1868_v25, %v1864_v46 }
 0x484   :  { %v1874_v11 = vsub.f32 1.0, %v1869_v49  ;;  %v1876_v28 = vmul.f32 %v1869_v49, %v6765_v54 }
 0x485   :  { %v1872_v34 = vadd.f32 %v1871_v45, %v1758_v47 }
 0x487   :  { %5540 = vtanh.f32 %v1872_v34 }
 0x48c   :  { %v1898_v10 = vpop.f32.mrf.mxu1 }
 0x48d   :  { %v5541_v19 = vpop.eup %5540  ;;  %v1899_v22 = vadd.f32 %v6778_v38, %v1898_v10  ;;  %v1993_v10 = vld [vmem:[#allocation2 + $0x30] sm:$0xff] }
 0x48e   :  { %v1875_v35 = vmul.f32 %v5541_v19, %v1874_v11  ;;  %v1995_v11 = vld [vmem:[#allocation2 + $0x70] sm:$0xff] }
 0x48f   :  { %v1941_v42 = vadd.f32 %v1899_v22, %v1761_v26 }
 0x490   :  { %v6827_v53 = vadd.f32 %v1876_v28, %v1875_v35 }
 0x491   :  { %v5216_v50 = vmul.f32 -1.442695, %v1941_v42 }
 0x492   :  { %1989 = vst.msk [vmem:[#allocation3 + $0x28] sm:$0xff] %vm143_vm0, %v6827_v53  ;;  %5218 = vmatmul.msk.f32.vlgmr.msrb.gmra.mxu0 %vm143_vm0, %v6827_v53  ;;  %5219 = vmatmul.msk.f32.vlgmr.msrb.gmra.mxu1 %vm143_vm0, %v6827_v53  ;;  %v1918_v40 = vpop.f32.mrf.mxu2 }
 0x493   :  { %5542 = vpow2.f32 %v5216_v50  ;;  %5220 = vmatmul.msk.f32.vlgmr.msra.gmra.mxu2 %vm143_vm0, %v6827_v53  ;;  %v1919_v54 = vadd.f32 %v6761_v1, %v1918_v40  ;;  %2301 = vmatpush.msrb.mxu0 %v6620_v14  ;;  %v1938_v15 = vpop.f32.mrf.mxu3 }
 0x494   :  { %2371 = vmatpush.msrb.mxu1 %v6623_v17  ;;  %2391 = vmatpush.msra.mxu2 %v6626_v18 }
 0x495   :  { %v1961_v55 = vadd.f32 %v1919_v54, %v1764_v36  ;;  %2302 = vmatpush.msrb.mxu0 %v6629_v20 }
 0x496   :  { %2372 = vmatpush.msrb.mxu1 %v6632_v56  ;;  %2392 = vmatpush.msra.mxu2 %v6635_v39 }
 0x497   :  { %v5217_v52 = vmul.f32 -1.442695, %v1961_v55  ;;  %2303 = vmatpush.msrb.mxu0 %v6638_v21 }
 0x498   :  { %2373 = vmatpush.msrb.mxu1 %v6641_v44  ;;  %2393 = vmatpush.msra.mxu2 %v6644_v23 }
 0x499   :  { %v5543_v14 = vpop.eup %5542  ;;  %5544 = vpow2.f32 %v5217_v52  ;;  %2304 = vmatpush.msrb.mxu0 %v6647_v29 }
 0x49a   :  { %v1945_v17 = vadd.f32 1.0, %v5543_v14  ;;  %2374 = vmatpush.msrb.mxu1 %v6650_v31  ;;  %2394 = vmatpush.msra.mxu2 %v6653_v32  ;;  %v1939_v32 = vadd.f32 %v6796_v0, %v1938_v15  ;;  %v1997_v15 = vld [vmem:[#allocation2 + $0xb0] sm:$0xff] }
 0x49c   :  { %5546 = vrcp.f32 %v1945_v17  ;;  %v1957_v43 = vand.u32 2147483648, %v1945_v17  ;;  %v1955_v23 = vand.u32 2147483647, %v1945_v17  ;;  %vm1951_vm15 = vweird.f32 %v1945_v17 }
 0x49e   :  { %v1958_v31 = vor.u32 1.1754944e-38, %v1957_v43  ;;  %vm1956_vm2 = vcmp.eq.f32.partialorder %v1955_v23, 8.507059e+37 }
 0x49f   :  { %v5545_v18 = vpop.eup %5544 }
 0x4a0   :  { %v1965_v20 = vadd.f32 1.0, %v5545_v18 }
 0x4a2   :  { %v5547_v56 = vpop.eup %5546  ;;  %5548 = vrcp.f32 %v1965_v20  ;;  %v1977_v58 = vand.u32 2147483648, %v1965_v20  ;;  %v1975_v57 = vand.u32 2147483647, %v1965_v20  ;;  %vm1971_vm4 = vweird.f32 %v1965_v20 }
 0x4a3   :  { %v1947_v39 = vmul.f32 %v5547_v56, %v1945_v17  ;;  %vm1952_vm14 = vweird.f32 %v5547_v56 }
 0x4a4   :  { %vm1953_vm1 = vmor %vm1951_vm15, %vm1952_vm14  ;;  %v1978_v5 = vor.u32 1.1754944e-38, %v1977_v58  ;;  %vm1976_vm6 = vcmp.eq.f32.partialorder %v1975_v57, 8.507059e+37 }
 0x4a5   :  { %v1948_v21 = vsub.f32 1.0, %v1947_v39 }
 0x4a7   :  { %v1949_v44 = vmul.f32 %v5547_v56, %v1948_v21 }
 0x4a8   :  { %v5549_v59 = vpop.eup %5548 }
 0x4a9   :  { %v1967_v37 = vmul.f32 %v5549_v59, %v1965_v20  ;;  %v1950_v29 = vadd.f32 %v5547_v56, %v1949_v44  ;;  %vm1972_vm3 = vweird.f32 %v5549_v59 }
 0x4aa   :  { %vm1973_vm5 = vmor %vm1971_vm4, %vm1972_vm3 }
 0x4ab   :  { %v1968_v16 = vsub.f32 1.0, %v1967_v37  ;;  %v1954_v3 = vsel %vm1953_vm1, %v5547_v56, %v1950_v29 }
 0x4ac   :  { %v1959_v12 = vsel %vm1956_vm2, %v1958_v31, %v1954_v3 }
 0x4ad   :  { %v1969_v63 = vmul.f32 %v5549_v59, %v1968_v16  ;;  %v1981_v61 = vmul.f32 %v1959_v12, %v1939_v32 }
 0x4af   :  { %v1970_v2 = vadd.f32 %v5549_v59, %v1969_v63  ;;  %v1982_v4 = vadd.f32 %v1981_v61, %v1767_v62  ;;  %v2003_v62 = vld [vmem:[#allocation2 + $0x108] sm:$0xff] }
 0x4b1   :  { %v1974_v6 = vsel %vm1973_vm5, %v5549_v59, %v1970_v2  ;;  %5550 = vtanh.f32 %v1982_v4 }
 0x4b2   :  { %v1979_v7 = vsel %vm1976_vm6, %v1978_v5, %v1974_v6 }
 0x4b3   :  { %v1984_v45 = vsub.f32 1.0, %v1979_v7  ;;  %v1986_v33 = vmul.f32 %v1979_v7, %v6800_v51  ;;  %v2000_v7 = vld [vmem:[#allocation2 + $0xc8] sm:$0xff] }
 0x4b7   :  { %v5551_v13 = vpop.eup %5550 }
 0x4b8   :  { %v1985_v47 = vmul.f32 %v5551_v13, %v1984_v45 }
 0x4ba   :  { %v6852_v34 = vadd.f32 %v1986_v33, %v1985_v47 }
 0x4bc   :  { %1991 = vst.msk [vmem:[#allocation3 + $0x50] sm:$0xff] %vm143_vm0, %v6852_v34  ;;  %5223 = vmatmul.msk.f32.vlgmr.msra.gmra.mxu3 %vm143_vm0, %v6852_v34  ;;  %5224 = vmatmul.msk.f32.vlgmr.msra.gmra.mxu0 %vm143_vm0, %v6852_v34 }
 0x4bd   :  { %5225 = vmatmul.msk.f32.vlgmr.msra.gmra.mxu1 %vm143_vm0, %v6852_v34  ;;  %2411 = vmatpush.msra.mxu3 %v6668_v41 }
 0x4bf   :  { %2412 = vmatpush.msra.mxu3 %v6673_v8 }
 0x4c1   :  { %2413 = vmatpush.msra.mxu3 %v6678_v24 }
 0x4c3   :  { %2414 = vmatpush.msra.mxu3 %v6683_v30 }
 0x50f   :  { %v2027_v51 = vpop.f32.mrf.mxu0  ;;  %v2047_v46 = vpop.f32.mrf.mxu1 }
 0x510   :  { %v2028_v25 = vadd.f32 %v6743_v60, %v2027_v51  ;;  %v2048_v49 = vadd.f32 %v6749_v9, %v2047_v46 }
 0x512   :  { %v2070_v19 = vadd.f32 %v2028_v25, %v1993_v10  ;;  %v2090_v22 = vadd.f32 %v2048_v49, %v1995_v11  ;;  %v2490_v49 = vld [vmem:[#allocation10 + $0x18] sm:$0xff]  ;;  %v2489_v11 = vld [vmem:[#allocation10 + $0x10] sm:$0xff] }
 0x513   :  { %v2650_v10 = vld [vmem:[#allocation10 + $0x38] sm:$0xff]  ;;  %2597 = vmatpush.msra.mxu1 %v2490_v49 }
 0x514   :  { %v5221_v26 = vmul.f32 -1.442695, %v2070_v19  ;;  %v5222_v35 = vmul.f32 -1.442695, %v2090_v22  ;;  %v2649_v19 = vld [vmem:[#allocation10 + $0x30] sm:$0xff]  ;;  %v2488_v22 = vld [vmem:[#allocation10 + $0x8] sm:$0xff] }
 0x515   :  { %2598 = vmatpush.msra.mxu1 %v2489_v11 }
 0x516   :  { %5552 = vpow2.f32 %v5221_v26  ;;  %v2067_v18 = vpop.f32.mrf.mxu2  ;;  %v2648_v26 = vld [vmem:[#allocation10 + $0x28] sm:$0xff] }
 0x517   :  { %5554 = vpow2.f32 %v5222_v35  ;;  %v2068_v39 = vadd.f32 %v6755_v27, %v2067_v18  ;;  %2599 = vmatpush.msra.mxu1 %v2488_v22 }
 0x51c   :  { %v5553_v41 = vpop.eup %5552 }
 0x51d   :  { %v5555_v8 = vpop.eup %5554  ;;  %v2074_v28 = vadd.f32 1.0, %v5553_v41  ;;  %v2487_v41 = vld [vmem:[#allocation10] sm:$0xff] }
 0x51e   :  { %v2094_v24 = vadd.f32 1.0, %v5555_v8  ;;  %v2647_v8 = vld [vmem:[#allocation10 + $0x20] sm:$0xff]  ;;  %2600 = vmatpush.msra.mxu1 %v2487_v41 }
 0x51f   :  { %5556 = vrcp.f32 %v2074_v28  ;;  %v2086_v55 = vand.u32 2147483648, %v2074_v28  ;;  %v2084_v14 = vand.u32 2147483647, %v2074_v28  ;;  %vm2080_vm8 = vweird.f32 %v2074_v28 }
 0x520   :  { %5558 = vrcp.f32 %v2094_v24  ;;  %v2106_v23 = vand.u32 2147483648, %v2094_v24  ;;  %vm2100_vm12 = vweird.f32 %v2094_v24  ;;  %v2104_v37 = vand.u32 2147483647, %v2094_v24 }
 0x521   :  { %v2087_v56 = vor.u32 1.1754944e-38, %v2086_v55  ;;  %vm2085_vm10 = vcmp.eq.f32.partialorder %v2084_v14, 8.507059e+37 }
 0x522   :  { %v2107_v16 = vor.u32 1.1754944e-38, %v2106_v23  ;;  %vm2105_vm14 = vcmp.eq.f32.partialorder %v2104_v37, 8.507059e+37 }
 0x525   :  { %v5557_v30 = vpop.eup %5556 }
 0x526   :  { %v5559_v42 = vpop.eup %5558  ;;  %v2076_v50 = vmul.f32 %v5557_v30, %v2074_v28  ;;  %vm2081_vm7 = vweird.f32 %v5557_v30 }
 0x527   :  { %v2096_v40 = vmul.f32 %v5559_v42, %v2094_v24  ;;  %vm2082_vm9 = vmor %vm2080_vm8, %vm2081_vm7  ;;  %vm2101_vm11 = vweird.f32 %v5559_v42 }
 0x528   :  { %v2077_v54 = vsub.f32 1.0, %v2076_v50  ;;  %vm2102_vm13 = vmor %vm2100_vm12, %vm2101_vm11 }
 0x529   :  { %v2097_v36 = vsub.f32 1.0, %v2096_v40 }
 0x52a   :  { %v2078_v52 = vmul.f32 %v5557_v30, %v2077_v54 }
 0x52b   :  { %v2098_v17 = vmul.f32 %v5559_v42, %v2097_v36 }
 0x52c   :  { %v2079_v20 = vadd.f32 %v5557_v30, %v2078_v52 }
 0x52d   :  { %v2099_v44 = vadd.f32 %v5559_v42, %v2098_v17 }
 0x52e   :  { %v2083_v21 = vsel %vm2082_vm9, %v5557_v30, %v2079_v20 }
 0x52f   :  { %v2088_v43 = vsel %vm2085_vm10, %v2087_v56, %v2083_v21  ;;  %v2103_v31 = vsel %vm2102_vm13, %v5559_v42, %v2099_v44 }
 0x530   :  { %v2110_v59 = vmul.f32 %v2088_v43, %v2068_v39  ;;  %v2108_v32 = vsel %vm2105_vm14, %v2107_v16, %v2103_v31  ;;  %v2006_v43 = vld [vmem:[#allocation2 + $0x148] sm:$0xff] }
 0x531   :  { %v2113_v3 = vsub.f32 1.0, %v2108_v32  ;;  %v2115_v57 = vmul.f32 %v2108_v32, %v6827_v53 }
 0x532   :  { %v2111_v29 = vadd.f32 %v2110_v59, %v1997_v15 }
 0x534   :  { %5560 = vtanh.f32 %v2111_v29 }
 0x539   :  { %v2157_v12 = vpop.f32.mrf.mxu0 }
 0x53a   :  { %v5561_v63 = vpop.eup %5560  ;;  %v2158_v58 = vadd.f32 %v6761_v1, %v2157_v12  ;;  %v2177_v55 = vpop.f32.mrf.mxu1  ;;  %v6894_v12 = vld [vmem:[#allocation3] sm:$0xff] }
 0x53b   :  { %v2114_v61 = vmul.f32 %v5561_v63, %v2113_v3  ;;  %v2178_v17 = vadd.f32 %v6796_v0, %v2177_v55  ;;  %v6906_v63 = vld [vmem:[#allocation3 + $0x10] sm:$0xff] }
 0x53c   :  { %v2200_v2 = vadd.f32 %v2158_v58, %v2003_v62  ;;  %v6912_v58 = vld [vmem:[#allocation3 + $0x18] sm:$0xff]  ;;  %v6924_v62 = vld [vmem:[#allocation3 + $0x28] sm:$0xff] }
 0x53d   :  { %v6871_v4 = vadd.f32 %v2115_v57, %v2114_v61  ;;  %v6918_v61 = vld [vmem:[#allocation3 + $0x20] sm:$0xff]  ;;  %v2874_v55 = vld [vmem:[#allocation10 + $0x68] sm:$0xff] }
 0x53e   :  { %v5227_v5 = vmul.f32 -1.442695, %v2200_v2 }
 0x53f   :  { %2228 = vst.msk [vmem:[#allocation3 + $0x30] sm:$0xff] %vm143_vm0, %v6871_v4  ;;  %5228 = vmatmul.msk.f32.vlgmr.msrb.gmra.mxu2 %vm143_vm0, %v6871_v4  ;;  %5229 = vmatmul.msk.f32.vlgmr.msrb.gmra.mxu3 %vm143_vm0, %v6871_v4  ;;  %v2137_v6 = vpop.f32.mrf.mxu3 }
 0x540   :  { %5562 = vpow2.f32 %v5227_v5  ;;  %5230 = vmatmul.msk.f32.vlgmr.msrb.gmra.mxu0 %vm143_vm0, %v6871_v4  ;;  %v2138_v53 = vadd.f32 %v6778_v38, %v2137_v6  ;;  %2709 = vmatpush.msrb.mxu3 %v2650_v10 }
 0x542   :  { %v2180_v45 = vadd.f32 %v2138_v53, %v2000_v7  ;;  %2710 = vmatpush.msrb.mxu3 %v2649_v19  ;;  %v2232_v7 = vld [vmem:[#allocation2 + $0x38] sm:$0xff] }
 0x544   :  { %v5226_v13 = vmul.f32 -1.442695, %v2180_v45  ;;  %2711 = vmatpush.msrb.mxu3 %v2648_v26  ;;  %v2234_v45 = vld [vmem:[#allocation2 + $0x78] sm:$0xff] }
 0x546   :  { %v5563_v47 = vpop.eup %5562  ;;  %5564 = vpow2.f32 %v5226_v13  ;;  %2712 = vmatpush.msrb.mxu3 %v2647_v8  ;;  %v6930_v57 = vld [vmem:[#allocation3 + $0x30] sm:$0xff] }
 0x547   :  { %v2204_v33 = vadd.f32 1.0, %v5563_v47 }
 0x549   :  { %5566 = vrcp.f32 %v2204_v33  ;;  %v2216_v39 = vand.u32 2147483648, %v2204_v33  ;;  %vm2210_vm5 = vweird.f32 %v2204_v33  ;;  %v2214_v44 = vand.u32 2147483647, %v2204_v33 }
 0x54b   :  { %v2217_v15 = vor.u32 1.1754944e-38, %v2216_v39  ;;  %vm2215_vm7 = vcmp.eq.f32.partialorder %v2214_v44, 8.507059e+37  ;;  %v2236_v44 = vld [vmem:[#allocation2 + $0xb8] sm:$0xff] }
 0x54c   :  { %v5565_v51 = vpop.eup %5564 }
 0x54d   :  { %v2184_v46 = vadd.f32 1.0, %v5565_v51 }
 0x54f   :  { %5568 = vrcp.f32 %v2184_v46  ;;  %v5567_v25 = vpop.eup %5566  ;;  %v2196_v50 = vand.u32 2147483648, %v2184_v46  ;;  %v2194_v54 = vand.u32 2147483647, %v2184_v46  ;;  %vm2190_vm1 = vweird.f32 %v2184_v46 }
 0x550   :  { %v2206_v35 = vmul.f32 %v5567_v25, %v2204_v33  ;;  %vm2211_vm4 = vweird.f32 %v5567_v25 }
 0x551   :  { %v2197_v14 = vor.u32 1.1754944e-38, %v2196_v50  ;;  %vm2195_vm3 = vcmp.eq.f32.partialorder %v2194_v54, 8.507059e+37  ;;  %vm2212_vm6 = vmor %vm2210_vm5, %vm2211_vm4 }
 0x552   :  { %v2207_v30 = vsub.f32 1.0, %v2206_v35  ;;  %v2876_v35 = vld [vmem:[#allocation10 + $0x78] sm:$0xff] }
 0x554   :  { %v2208_v36 = vmul.f32 %v5567_v25, %v2207_v30  ;;  %v2762_v30 = vld [vmem:[#allocation10 + $0x50] sm:$0xff] }
 0x555   :  { %v5569_v28 = vpop.eup %5568 }
 0x556   :  { %v2186_v24 = vmul.f32 %v5569_v28, %v2184_v46  ;;  %vm2191_vm15 = vweird.f32 %v5569_v28  ;;  %v2209_v56 = vadd.f32 %v5567_v25, %v2208_v36  ;;  %v2761_v36 = vld [vmem:[#allocation10 + $0x48] sm:$0xff] }
 0x557   :  { %vm2192_vm2 = vmor %vm2190_vm1, %vm2191_vm15 }
 0x558   :  { %v2187_v42 = vsub.f32 1.0, %v2186_v24  ;;  %v2213_v59 = vsel %vm2212_vm6, %v5567_v25, %v2209_v56 }
 0x559   :  { %v2218_v37 = vsel %vm2215_vm7, %v2217_v15, %v2213_v59 }
 0x55a   :  { %v2188_v40 = vmul.f32 %v5569_v28, %v2187_v42  ;;  %v2223_v29 = vsub.f32 1.0, %v2218_v37  ;;  %v2225_v32 = vmul.f32 %v2218_v37, %v6852_v34  ;;  %v6900_v34 = vld [vmem:[#allocation3 + $0x8] sm:$0xff]  ;;  %v2875_v42 = vld [vmem:[#allocation10 + $0x70] sm:$0xff] }
 0x55c   :  { %v2189_v52 = vadd.f32 %v5569_v28, %v2188_v40 }
 0x55e   :  { %v2193_v18 = vsel %vm2192_vm2, %v5569_v28, %v2189_v52 }
 0x55f   :  { %v2198_v20 = vsel %vm2195_vm3, %v2197_v14, %v2193_v18  ;;  %v2760_v18 = vld [vmem:[#allocation10 + $0x40] sm:$0xff] }
 0x560   :  { %v2220_v21 = vmul.f32 %v2198_v20, %v2178_v17  ;;  %v2873_v20 = vld [vmem:[#allocation10 + $0x60] sm:$0xff] }
 0x562   :  { %v2221_v23 = vadd.f32 %v2220_v21, %v2006_v43 }
 0x564   :  { %5570 = vtanh.f32 %v2221_v23 }
 0x56a   :  { %v5571_v31 = vpop.eup %5570 }
 0x56b   :  { %v2224_v16 = vmul.f32 %v5571_v31, %v2223_v29 }
 0x56d   :  { %v6884_v3 = vadd.f32 %v2225_v32, %v2224_v16 }
 0x56f   :  { %2230 = vst.msk [vmem:[#allocation3 + $0x48] sm:$0xff] %vm143_vm0, %v6884_v3  ;;  %5233 = vmatmul.msk.f32.vlgmr.msrb.gmra.mxu1 %vm143_vm0, %v6884_v3  ;;  %5234 = vmatmul.msk.f32.vlgmr.msra.gmra.mxu2 %vm143_vm0, %v6884_v3 }
 0x570   :  { %5235 = vmatmul.msk.f32.vlgmr.msra.gmra.mxu3 %vm143_vm0, %v6884_v3 }
 0x571   :  { %2935 = vmatpush.msra.mxu3 %v2876_v35  ;;  %v2492_v35 = vld [vmem:[#allocation10 + $0xc0] sm:$0xff] }
 0x573   :  { %2936 = vmatpush.msra.mxu3 %v2875_v42 }
 0x575   :  { %2937 = vmatpush.msra.mxu3 %v2874_v55 }
 0x577   :  { %5246 = vmatmul.msk.f32.vlgmr.msra.gmra.mxu1 %vm143_vm0, %v6894_v12  ;;  %2938 = vmatpush.msra.mxu3 %v2873_v20 }
 0x578   :  { %5262 = vmatmul.msk.f32.vlgmr.msrb.gmra.mxu3 %vm143_vm0, %v6894_v12 }
 0x57f   :  { %5247 = vmatmul.msk.f32.gmra.mxu1 %vm143_vm0, %v6900_v34 }
 0x580   :  { %5263 = vmatmul.msk.f32.gmra.mxu3 %vm143_vm0, %v6900_v34 }
 0x587   :  { %5248 = vmatmul.msk.f32.gmra.mxu1 %vm143_vm0, %v6906_v63 }
 0x588   :  { %5264 = vmatmul.msk.f32.gmra.mxu3 %vm143_vm0, %v6906_v63 }
 0x58f   :  { %5249 = vmatmul.msk.f32.gmra.mxu1 %vm143_vm0, %v6912_v58 }
 0x590   :  { %5265 = vmatmul.msk.f32.gmra.mxu3 %vm143_vm0, %v6912_v58 }
 0x597   :  { %5250 = vmatmul.msk.f32.gmra.mxu1 %vm143_vm0, %v6918_v61 }
 0x598   :  { %5266 = vmatmul.msk.f32.gmra.mxu3 %vm143_vm0, %v6918_v61 }
 0x59f   :  { %5251 = vmatmul.msk.f32.gmra.mxu1 %vm143_vm0, %v6924_v62 }
 0x5a0   :  { %5267 = vmatmul.msk.f32.gmra.mxu3 %vm143_vm0, %v6924_v62 }
 0x5a7   :  { %5252 = vmatmul.msk.f32.gmra.mxu1 %vm143_vm0, %v6930_v57 }
 0x5a8   :  { %5268 = vmatmul.msk.f32.gmra.mxu3 %vm143_vm0, %v6930_v57 }
 0x5bd   :  { %v2306_v50 = vpop.f32.mrf.mxu0 }
 0x5be   :  { %v2307_v14 = vadd.f32 %v6755_v27, %v2306_v50 }
 0x5c2   :  { %v2266_v2 = vpop.f32.mrf.mxu2  ;;  %v2286_v5 = vpop.f32.mrf.mxu3 }
 0x5c3   :  { %v2267_v6 = vadd.f32 %v6743_v60, %v2266_v2  ;;  %v2287_v53 = vadd.f32 %v6749_v9, %v2286_v5  ;;  %v2763_v9 = vld [vmem:[#allocation10 + $0x58] sm:$0xff] }
 0x5c4   :  { %2822 = vmatpush.msrb.mxu1 %v2763_v9 }
 0x5c5   :  { %v2309_v13 = vadd.f32 %v2267_v6, %v2232_v7  ;;  %v2329_v47 = vadd.f32 %v2287_v53, %v2234_v45  ;;  %v2239_v6 = vld [vmem:[#allocation2 + $0xc0] sm:$0xff] }
 0x5c6   :  { %2823 = vmatpush.msrb.mxu1 %v2762_v30 }
 0x5c7   :  { %v5231_v33 = vmul.f32 -1.442695, %v2309_v13  ;;  %v5232_v51 = vmul.f32 -1.442695, %v2329_v47 }
 0x5c8   :  { %2824 = vmatpush.msrb.mxu1 %v2761_v36 }
 0x5c9   :  { %5572 = vpow2.f32 %v5231_v33  ;;  %v2242_v33 = vld [vmem:[#allocation2 + $0x100] sm:$0xff] }
 0x5ca   :  { %5574 = vpow2.f32 %v5232_v51  ;;  %2825 = vmatpush.msrb.mxu1 %v2760_v18 }
 0x5cf   :  { %v5573_v46 = vpop.eup %5572 }
 0x5d0   :  { %v5575_v25 = vpop.eup %5574  ;;  %v2313_v49 = vadd.f32 1.0, %v5573_v46 }
 0x5d1   :  { %v2333_v10 = vadd.f32 1.0, %v5575_v25 }
 0x5d2   :  { %5576 = vrcp.f32 %v2313_v49  ;;  %v2325_v41 = vand.u32 2147483648, %v2313_v49  ;;  %v2323_v24 = vand.u32 2147483647, %v2313_v49  ;;  %vm2319_vm9 = vweird.f32 %v2313_v49 }
 0x5d3   :  { %5578 = vrcp.f32 %v2333_v10  ;;  %v2345_v43 = vand.u32 2147483648, %v2333_v10  ;;  %vm2339_vm13 = vweird.f32 %v2333_v10  ;;  %v2343_v23 = vand.u32 2147483647, %v2333_v10 }
 0x5d4   :  { %v2326_v52 = vor.u32 1.1754944e-38, %v2325_v41  ;;  %vm2324_vm11 = vcmp.eq.f32.partialorder %v2323_v24, 8.507059e+37 }
 0x5d5   :  { %v2346_v37 = vor.u32 1.1754944e-38, %v2345_v43  ;;  %vm2344_vm15 = vcmp.eq.f32.partialorder %v2343_v23, 8.507059e+37  ;;  %v2245_v43 = vld [vmem:[#allocation2 + $0x140] sm:$0xff] }
 0x5d8   :  { %v5577_v11 = vpop.eup %5576 }
 0x5d9   :  { %v5579_v19 = vpop.eup %5578  ;;  %v2315_v22 = vmul.f32 %v5577_v11, %v2313_v49  ;;  %vm2320_vm8 = vweird.f32 %v5577_v11 }
 0x5da   :  { %v2335_v60 = vmul.f32 %v5579_v19, %v2333_v10  ;;  %vm2321_vm10 = vmor %vm2319_vm9, %vm2320_vm8  ;;  %vm2340_vm12 = vweird.f32 %v5579_v19  ;;  %v2655_v10 = vld [vmem:[#allocation10 + $0xf8] sm:$0xff] }
 0x5db   :  { %v2316_v26 = vsub.f32 1.0, %v2315_v22  ;;  %vm2341_vm14 = vmor %vm2339_vm13, %vm2340_vm12  ;;  %2668 = vmatpush.msrb.mxu2 %v2655_v10  ;;  %v2653_v22 = vld [vmem:[#allocation10 + $0xe8] sm:$0xff]  ;;  %v2765_v10 = vld [vmem:[#allocation10 + $0x100] sm:$0xff] }
 0x5dc   :  { %v2336_v8 = vsub.f32 1.0, %v2335_v60 }
 0x5dd   :  { %v2317_v28 = vmul.f32 %v5577_v11, %v2316_v26 }
 0x5de   :  { %v2337_v40 = vmul.f32 %v5579_v19, %v2336_v8  ;;  %v2652_v8 = vld [vmem:[#allocation10 + $0xe0] sm:$0xff] }
 0x5df   :  { %v2318_v54 = vadd.f32 %v5577_v11, %v2317_v28  ;;  %v2768_v28 = vld [vmem:[#allocation10 + $0x118] sm:$0xff] }
 0x5e0   :  { %v2338_v39 = vadd.f32 %v5579_v19, %v2337_v40 }
 0x5e1   :  { %v2322_v17 = vsel %vm2321_vm10, %v5577_v11, %v2318_v54  ;;  %v2494_v11 = vld [vmem:[#allocation10 + $0xd0] sm:$0xff] }
 0x5e2   :  { %v2327_v56 = vsel %vm2324_vm11, %v2326_v52, %v2322_v17  ;;  %v2342_v15 = vsel %vm2341_vm14, %v5579_v19, %v2338_v39  ;;  %v2493_v19 = vld [vmem:[#allocation10 + $0xc8] sm:$0xff] }
 0x5e3   :  { %v2349_v21 = vmul.f32 %v2327_v56, %v2307_v14  ;;  %v2347_v27 = vsel %vm2344_vm15, %v2346_v37, %v2342_v15 }
 0x5e4   :  { %v2352_v29 = vsub.f32 1.0, %v2347_v27  ;;  %v2354_v5 = vmul.f32 %v2347_v27, %v6871_v4  ;;  %v2495_v4 = vld [vmem:[#allocation10 + $0xd8] sm:$0xff]  ;;  %v2767_v27 = vld [vmem:[#allocation10 + $0x110] sm:$0xff] }
 0x5e5   :  { %v2350_v59 = vadd.f32 %v2349_v21, %v2236_v44  ;;  %2532 = vmatpush.msra.mxu0 %v2495_v4  ;;  %v6992_v4 = vld [vmem:[#allocation3 + $0x50] sm:$0xff] }
 0x5e7   :  { %5580 = vtanh.f32 %v2350_v59  ;;  %2533 = vmatpush.msra.mxu0 %v2494_v11  ;;  %v7002_v11 = vld [vmem:[#allocation3 + $0x58] sm:$0xff] }
 0x5e9   :  { %2534 = vmatpush.msra.mxu0 %v2493_v19  ;;  %v2878_v19 = vld [vmem:[#allocation10 + $0x120] sm:$0xff] }
 0x5eb   :  { %2535 = vmatpush.msra.mxu0 %v2492_v35  ;;  %v7044_v35 = vld [vmem:[#allocation13 + $0x38] sm:$0xff] }
 0x5ec   :  { %v2376_v31 = vpop.f32.mrf.mxu1 }
 0x5ed   :  { %v5581_v16 = vpop.eup %5580  ;;  %v2377_v32 = vadd.f32 %v6778_v38, %v2376_v31  ;;  %2781 = vmatpush.msrb.mxu0 %v2768_v28  ;;  %v7056_v28 = vld [vmem:[#allocation13 + $0x28] sm:$0xff] }
 0x5ee   :  { %v2353_v2 = vmul.f32 %v5581_v16, %v2352_v29 }
 0x5ef   :  { %v2419_v53 = vadd.f32 %v2377_v32, %v2239_v6  ;;  %2782 = vmatpush.msrb.mxu0 %v2767_v27  ;;  %v3102_v6 = vld [vmem:[#allocation10 + $0xb8] sm:$0xff] }
 0x5f0   :  { %v2355_v7 = vadd.f32 %v2354_v5, %v2353_v2  ;;  %v2989_v5 = vld [vmem:[#allocation10 + $0x98] sm:$0xff]  ;;  %3161 = vmatpush.msrb.mxu3 %v3102_v6  ;;  %v7184_v6 = vld [vmem:[#allocation13 + $0x8] sm:$0xff] }
 0x5f1   :  { %v5236_v45 = vmul.f32 -1.442695, %v2419_v53  ;;  %3048 = vmatpush.msra.mxu1 %v2989_v5  ;;  %v2881_v53 = vld [vmem:[#allocation10 + $0x138] sm:$0xff]  ;;  %v7182_v5 = vld [vmem:[#allocation12 + $0x1] ss:$0 sm:$0xff] }
 0x5f2   :  { %2467 = vst.msk [vmem:[#allocation3 + $0x38] sm:$0xff] %vm143_vm0, %v2355_v7  ;;  %v2396_v13 = vpop.f32.mrf.mxu2  ;;  %v2988_v7 = vld [vmem:[#allocation10 + $0x90] sm:$0xff] }
 0x5f3   :  { %5582 = vpow2.f32 %v5236_v45  ;;  %v2397_v47 = vadd.f32 %v6761_v1, %v2396_v13  ;;  %v2654_v1 = vld [vmem:[#allocation10 + $0xf0] sm:$0xff]  ;;  %v2416_v54 = vpop.f32.mrf.mxu3  ;;  %3049 = vmatpush.msra.mxu1 %v2988_v7  ;;  %v2987_v13 = vld [vmem:[#allocation10 + $0x88] sm:$0xff] }
 0x5f4   :  { %2669 = vmatpush.msrb.mxu2 %v2654_v1  ;;  %v2417_v17 = vadd.f32 %v6796_v0, %v2416_v54  ;;  %v3101_v45 = vld [vmem:[#allocation10 + $0xb0] sm:$0xff]  ;;  %v2879_v1 = vld [vmem:[#allocation10 + $0x128] sm:$0xff] }
 0x5f5   :  { %v2439_v51 = vadd.f32 %v2397_v47, %v2242_v33  ;;  %3162 = vmatpush.msrb.mxu3 %v3101_v45  ;;  %v2986_v47 = vld [vmem:[#allocation10 + $0x80] sm:$0xff]  ;;  %3050 = vmatpush.msra.mxu1 %v2987_v13  ;;  %v7191_v13 = vld [vmem:[#allocation13 + $0xa8] sm:$0xff] }
 0x5f6   :  { %2670 = vmatpush.msrb.mxu2 %v2653_v22  ;;  %v3099_v33 = vld [vmem:[#allocation10 + $0xa0] sm:$0xff] }
 0x5f7   :  { %v5237_v46 = vmul.f32 -1.442695, %v2439_v51  ;;  %3051 = vmatpush.msra.mxu1 %v2986_v47  ;;  %v7012_v22 = vld [vmem:[#allocation3 + $0x60] sm:$0xff] }
 0x5f8   :  { %2671 = vmatpush.msrb.mxu2 %v2652_v8  ;;  %v7053_v8 = vld [vmem:[#allocation13 + $0x30] sm:$0xff] }
 0x5f9   :  { %v5583_v25 = vpop.eup %5582  ;;  %5584 = vpow2.f32 %v5237_v46  ;;  %v6943_v49 = vld [vmem:[#allocation3 + $0x38] sm:$0xff]  ;;  %v2766_v46 = vld [vmem:[#allocation10 + $0x108] sm:$0xff] }
 0x5fa   :  { %v2423_v38 = vadd.f32 1.0, %v5583_v25  ;;  %5253 = vmatmul.msk.f32.gmra.mxu1 %vm143_vm0, %v6943_v49  ;;  %5269 = vmatmul.msk.f32.gmra.mxu3 %vm143_vm0, %v6943_v49  ;;  %v6982_v25 = vld [vmem:[#allocation3 + $0x48] sm:$0xff] }
 0x5fb   :  { %2894 = vmatpush.msra.mxu2 %v2881_v53  ;;  %2783 = vmatpush.msrb.mxu0 %v2766_v46  ;;  %v7186_v53 = vld [vmem:[#allocation13 + $0xb0] sm:$0xff] }
 0x5fc   :  { %5586 = vrcp.f32 %v2423_v38  ;;  %v2435_v30 = vand.u32 2147483648, %v2423_v38  ;;  %v2433_v50 = vand.u32 2147483647, %v2423_v38  ;;  %vm2429_vm2 = vweird.f32 %v2423_v38 }
 0x5fd   :  { %2784 = vmatpush.msrb.mxu0 %v2765_v10 }
 0x5fe   :  { %v2436_v52 = vor.u32 1.1754944e-38, %v2435_v30  ;;  %vm2434_vm4 = vcmp.eq.f32.partialorder %v2433_v50, 8.507059e+37 }
 0x5ff   :  { %v5585_v60 = vpop.eup %5584 }
 0x600   :  { %v2443_v26 = vadd.f32 1.0, %v5585_v60  ;;  %v2994_v60 = vld [vmem:[#allocation10 + $0x158] sm:$0xff] }
 0x602   :  { %v5587_v9 = vpop.eup %5586  ;;  %5588 = vrcp.f32 %v2443_v26  ;;  %5278 = vmatmul.msk.f32.vlgmr.msrb.gmra.mxu1 %vm143_vm0, %v6894_v12  ;;  %5294 = vmatmul.msk.f32.vlgmr.msra.gmra.mxu3 %vm143_vm0, %v6894_v12  ;;  %v2455_v39 = vand.u32 2147483648, %v2443_v26  ;;  %v2453_v44 = vand.u32 2147483647, %v2443_v26  ;;  %vm2449_vm6 = vweird.f32 %v2443_v26 }
 0x603   :  { %v2425_v41 = vmul.f32 %v5587_v9, %v2423_v38  ;;  %vm2430_vm1 = vweird.f32 %v5587_v9  ;;  %v2880_v38 = vld [vmem:[#allocation10 + $0x130] sm:$0xff]  ;;  %3279 = vmatpush.msrb.mxu1 %v7044_v35 }
 0x604   :  { %vm2431_vm3 = vmor %vm2429_vm2, %vm2430_vm1  ;;  %v2456_v15 = vor.u32 1.1754944e-38, %v2455_v39  ;;  %vm2454_vm8 = vcmp.eq.f32.partialorder %v2453_v44, 8.507059e+37  ;;  %2895 = vmatpush.msra.mxu2 %v2880_v38  ;;  %v7210_v38 = vld [vmem:[#allocation13 + $0x50] sm:$0xff] }
 0x605   :  { %v2426_v24 = vsub.f32 1.0, %v2425_v41  ;;  %v3107_v41 = vld [vmem:[#allocation10 + $0x178] sm:$0xff]  ;;  %3280 = vmatpush.msrb.mxu1 %v7053_v8 }
 0x606   :  { %2896 = vmatpush.msra.mxu2 %v2879_v1 }
 0x607   :  { %v2427_v42 = vmul.f32 %v5587_v9, %v2426_v24  ;;  %3281 = vmatpush.msrb.mxu1 %v7056_v28  ;;  %v7061_v24 = vpop.f32.mrf.mxu1 }
 0x608   :  { %v5589_v40 = vpop.eup %5588  ;;  %2897 = vmatpush.msra.mxu2 %v2878_v19 }
 0x609   :  { %v2445_v36 = vmul.f32 %v5589_v40, %v2443_v26  ;;  %v2428_v55 = vadd.f32 %v5587_v9, %v2427_v42  ;;  %vm2450_vm5 = vweird.f32 %v5589_v40  ;;  %v7022_v26 = vld [vmem:[#allocation3 + $0x68] sm:$0xff] }
 0x60a   :  { %5279 = vmatmul.msk.f32.gmra.mxu1 %vm143_vm0, %v6900_v34  ;;  %5295 = vmatmul.msk.f32.gmra.mxu3 %vm143_vm0, %v6900_v34  ;;  %vm2451_vm7 = vmor %vm2449_vm6, %vm2450_vm5  ;;  %v2992_v42 = vld [vmem:[#allocation10 + $0x148] sm:$0xff] }
 0x60b   :  { %v2446_v14 = vsub.f32 1.0, %v2445_v36  ;;  %v2432_v18 = vsel %vm2431_vm3, %v5587_v9, %v2428_v55  ;;  %v7038_v9 = vpop.f32.mrf.mxu3  ;;  %v7106_v55 = vld [vmem:[#allocation13 + $0x78] sm:$0xff] }
 0x60c   :  { %v2437_v20 = vsel %vm2434_vm4, %v2436_v52, %v2432_v18  ;;  %v7121_v18 = vld [vmem:[#allocation13 + $0x68] sm:$0xff] }
 0x60d   :  { %v2447_v56 = vmul.f32 %v5589_v40, %v2446_v14  ;;  %v2459_v21 = vmul.f32 %v2437_v20, %v2417_v17  ;;  %v7114_v17 = vld [vmem:[#allocation13 + $0x70] sm:$0xff]  ;;  %v7124_v20 = vld [vmem:[#allocation13 + $0x18] sm:$0xff] }
 0x60f   :  { %v2448_v23 = vadd.f32 %v5589_v40, %v2447_v56  ;;  %v2460_v59 = vadd.f32 %v2459_v21, %v2245_v43  ;;  %v7078_v50 = vpop.f32.mrf.mxu1  ;;  %v7126_v56 = vld [vmem:[#allocation13 + $0x60] sm:$0xff] }
 0x611   :  { %v2452_v37 = vsel %vm2451_vm7, %v5589_v40, %v2448_v23  ;;  %5590 = vtanh.f32 %v2460_v59  ;;  %v7151_v23 = vld [vmem:[#allocation13 + $0x10] sm:$0xff] }
 0x612   :  { %5280 = vmatmul.msk.f32.gmra.mxu1 %vm143_vm0, %v6906_v63  ;;  %5296 = vmatmul.msk.f32.gmra.mxu3 %vm143_vm0, %v6906_v63  ;;  %v2457_v0 = vsel %vm2454_vm8, %v2456_v15, %v2452_v37  ;;  %v7162_v37 = vld [vmem:[#allocation13 + $0x58] sm:$0xff] }
 0x613   :  { %v2462_v29 = vsub.f32 1.0, %v2457_v0  ;;  %v2464_v32 = vmul.f32 %v2457_v0, %v6884_v3  ;;  %v3100_v3 = vld [vmem:[#allocation10 + $0xa8] sm:$0xff]  ;;  %v7063_v30 = vpop.f32.mrf.mxu3  ;;  %v7165_v0 = vld [vmem:[#allocation12] ss:$0 sm:$0xff] }
 0x614   :  { %3163 = vmatpush.msrb.mxu3 %v3100_v3 }
 0x616   :  { %3164 = vmatpush.msrb.mxu3 %v3099_v33 }
 0x617   :  { %v5591_v31 = vpop.eup %5590  ;;  %v7094_v54 = vpop.f32.mrf.mxu1 }
 0x618   :  { %v2463_v16 = vmul.f32 %v5591_v31, %v2462_v29  ;;  %3366 = vmatpush.msra.mxu3 %v7106_v55 }
 0x61a   :  { %v2465_v2 = vadd.f32 %v2464_v32, %v2463_v16  ;;  %5281 = vmatmul.msk.f32.gmra.mxu1 %vm143_vm0, %v6912_v58  ;;  %5297 = vmatmul.msk.f32.gmra.mxu3 %vm143_vm0, %v6912_v58  ;;  %v7173_v16 = vld [vmem:[#allocation13 + $0xb8] sm:$0xff] }
 0x61b   :  { %v7080_v40 = vpop.f32.mrf.mxu3  ;;  %3367 = vmatpush.msra.mxu3 %v7114_v17 }
 0x61c   :  { %2469 = vst.msk [vmem:[#allocation3 + $0x40] sm:$0xff] %vm143_vm0, %v2465_v2 }
 0x61d   :  { %3368 = vmatpush.msra.mxu3 %v7121_v18 }
 0x61f   :  { %v7108_v52 = vpop.f32.mrf.mxu1  ;;  %3369 = vmatpush.msra.mxu3 %v7126_v56 }
 0x622   :  { %5282 = vmatmul.msk.f32.gmra.mxu1 %vm143_vm0, %v6918_v61  ;;  %5298 = vmatmul.msk.f32.gmra.mxu3 %vm143_vm0, %v6918_v61 }
 0x623   :  { %v6972_v51 = vld [vmem:[#allocation3 + $0x40] sm:$0xff]  ;;  %v7096_v36 = vpop.f32.mrf.mxu3 }
 0x624   :  { %5238 = vmatmul.msk.f32.vlgmr.msra.gmra.mxu0 %vm143_vm0, %v6972_v51  ;;  %5254 = vmatmul.msk.f32.vlgmr.msrb.gmra.mxu2 %vm143_vm0, %v6972_v51 }
 0x625   :  { %3007 = vmatpush.msra.mxu0 %v2994_v60  ;;  %3120 = vmatpush.msrb.mxu2 %v3107_v41 }
 0x627   :  { %v7132_v39 = vpop.f32.mrf.mxu1 }
 0x62a   :  { %5283 = vmatmul.msk.f32.gmra.mxu1 %vm143_vm0, %v6924_v62  ;;  %5299 = vmatmul.msk.f32.gmra.mxu3 %vm143_vm0, %v6924_v62 }
 0x62b   :  { %v7110_v14 = vpop.f32.mrf.mxu3 }
 0x62c   :  { %5239 = vmatmul.msk.f32.gmra.mxu0 %vm143_vm0, %v6982_v25  ;;  %5255 = vmatmul.msk.f32.gmra.mxu2 %vm143_vm0, %v6982_v25 }
 0x62f   :  { %v7143_v43 = vpop.f32.mrf.mxu1 }
 0x632   :  { %5284 = vmatmul.msk.f32.gmra.mxu1 %vm143_vm0, %v6930_v57  ;;  %5300 = vmatmul.msk.f32.gmra.mxu3 %vm143_vm0, %v6930_v57 }
 0x633   :  { %v7134_v21 = vpop.f32.mrf.mxu3 }
 0x634   :  { %5240 = vmatmul.msk.f32.gmra.mxu0 %vm143_vm0, %v6992_v4  ;;  %5256 = vmatmul.msk.f32.gmra.mxu2 %vm143_vm0, %v6992_v4 }
 0x637   :  { %v7160_v15 = vpop.f32.mrf.mxu1 }
 0x63a   :  { %5285 = vmatmul.msk.f32.gmra.mxu1 %vm143_vm0, %v6943_v49  ;;  %5301 = vmatmul.msk.f32.gmra.mxu3 %vm143_vm0, %v6943_v49 }
 0x63b   :  { %v7145_v44 = vpop.f32.mrf.mxu3 }
 0x63c   :  { %5241 = vmatmul.msk.f32.gmra.mxu0 %vm143_vm0, %v7002_v11  ;;  %5257 = vmatmul.msk.f32.gmra.mxu2 %vm143_vm0, %v7002_v11 }
 0x642   :  { %5310 = vmatmul.msk.f32.vlgmr.msra.gmra.mxu1 %vm143_vm0, %v6894_v12  ;;  %5326 = vmatmul.msk.f32.vlgmr.msrb.gmra.mxu3 %vm143_vm0, %v6894_v12  ;;  %v7032_v12 = vld [vmem:[#allocation3 + $0x70] sm:$0xff] }
 0x643   :  { %3502 = vmatpush.msrb.mxu3 %v7044_v35 }
 0x644   :  { %5242 = vmatmul.msk.f32.gmra.mxu0 %vm143_vm0, %v7012_v22  ;;  %5258 = vmatmul.msk.f32.gmra.mxu2 %vm143_vm0, %v7012_v22 }
 0x645   :  { %3503 = vmatpush.msrb.mxu3 %v7053_v8 }
 0x647   :  { %3504 = vmatpush.msrb.mxu3 %v7056_v28 }
 0x64a   :  { %5311 = vmatmul.msk.f32.gmra.mxu1 %vm143_vm0, %v6900_v34  ;;  %5327 = vmatmul.msk.f32.gmra.mxu3 %vm143_vm0, %v6900_v34  ;;  %v2993_v34 = vld [vmem:[#allocation10 + $0x150] sm:$0xff] }
 0x64b   :  { %3008 = vmatpush.msra.mxu0 %v2993_v34 }
 0x64c   :  { %5243 = vmatmul.msk.f32.gmra.mxu0 %vm143_vm0, %v7022_v26  ;;  %5259 = vmatmul.msk.f32.gmra.mxu2 %vm143_vm0, %v7022_v26 }
 0x64d   :  { %3009 = vmatpush.msra.mxu0 %v2992_v42 }
 0x652   :  { %5312 = vmatmul.msk.f32.gmra.mxu1 %vm143_vm0, %v6906_v63  ;;  %5328 = vmatmul.msk.f32.gmra.mxu3 %vm143_vm0, %v6906_v63  ;;  %v7046_v63 = vld [vmem:[#allocation3 + $0x78] sm:$0xff] }
 0x654   :  { %5244 = vmatmul.msk.f32.gmra.mxu0 %vm143_vm0, %v7032_v12  ;;  %5260 = vmatmul.msk.f32.gmra.mxu2 %vm143_vm0, %v7032_v12 }
 0x65a   :  { %5313 = vmatmul.msk.f32.gmra.mxu1 %vm143_vm0, %v6912_v58  ;;  %5329 = vmatmul.msk.f32.gmra.mxu3 %vm143_vm0, %v6912_v58  ;;  %v7059_v58 = vld [vmem:[#allocation13 + $0x20] sm:$0xff] }
 0x65b   :  { %3282 = vmatpush.msrb.mxu1 %v7059_v58  ;;  %3505 = vmatpush.msrb.mxu3 %v7059_v58 }
 0x65c   :  { %5245 = vmatmul.msk.f32.gmra.mxu0 %vm143_vm0, %v7046_v63  ;;  %5261 = vmatmul.msk.f32.gmra.mxu2 %vm143_vm0, %v7046_v63 }
 0x65d   :  { %3406 = vmatpush.msra.mxu1 %v7173_v16 }
 0x65f   :  { %3407 = vmatpush.msra.mxu1 %v7186_v53 }
 0x661   :  { %3408 = vmatpush.msra.mxu1 %v7191_v13 }
 0x662   :  { %5314 = vmatmul.msk.f32.gmra.mxu1 %vm143_vm0, %v6918_v61  ;;  %5330 = vmatmul.msk.f32.gmra.mxu3 %vm143_vm0, %v6918_v61  ;;  %v3106_v61 = vld [vmem:[#allocation10 + $0x170] sm:$0xff] }
 0x663   :  { %3121 = vmatpush.msrb.mxu2 %v3106_v61 }
 0x664   :  { %5270 = vmatmul.msk.f32.vlgmr.msrb.gmra.mxu0 %vm143_vm0, %v6972_v51  ;;  %5286 = vmatmul.msk.f32.vlgmr.msra.gmra.mxu2 %vm143_vm0, %v6972_v51 }
 0x66a   :  { %5315 = vmatmul.msk.f32.gmra.mxu1 %vm143_vm0, %v6924_v62  ;;  %5331 = vmatmul.msk.f32.gmra.mxu3 %vm143_vm0, %v6924_v62  ;;  %v2991_v62 = vld [vmem:[#allocation10 + $0x140] sm:$0xff] }
 0x66b   :  { %3010 = vmatpush.msra.mxu0 %v2991_v62 }
 0x66c   :  { %5271 = vmatmul.msk.f32.gmra.mxu0 %vm143_vm0, %v6982_v25  ;;  %5287 = vmatmul.msk.f32.gmra.mxu2 %vm143_vm0, %v6982_v25 }
 0x66d   :  { %3259 = vmatpush.msrb.mxu0 %v7124_v20 }
 0x66f   :  { %3260 = vmatpush.msrb.mxu0 %v7151_v23 }
 0x671   :  { %3261 = vmatpush.msrb.mxu0 %v7184_v6 }
 0x672   :  { %5316 = vmatmul.msk.f32.gmra.mxu1 %vm143_vm0, %v6930_v57  ;;  %5332 = vmatmul.msk.f32.gmra.mxu3 %vm143_vm0, %v6930_v57  ;;  %v3105_v57 = vld [vmem:[#allocation10 + $0x168] sm:$0xff] }
 0x673   :  { %3122 = vmatpush.msrb.mxu2 %v3105_v57 }
 0x674   :  { %5272 = vmatmul.msk.f32.gmra.mxu0 %vm143_vm0, %v6992_v4  ;;  %5288 = vmatmul.msk.f32.gmra.mxu2 %vm143_vm0, %v6992_v4 }
 0x677   :  { %v7177_v32 = vpop.f32.mrf.mxu1 }
 0x67a   :  { %5317 = vmatmul.msk.f32.gmra.mxu1 %vm143_vm0, %v6943_v49  ;;  %5333 = vmatmul.msk.f32.gmra.mxu3 %vm143_vm0, %v6943_v49  ;;  %v3104_v49 = vld [vmem:[#allocation10 + $0x160] sm:$0xff] }
 0x67b   :  { %3123 = vmatpush.msrb.mxu2 %v3104_v49 }
 0x67c   :  { %5273 = vmatmul.msk.f32.gmra.mxu0 %vm143_vm0, %v7002_v11  ;;  %5289 = vmatmul.msk.f32.gmra.mxu2 %vm143_vm0, %v7002_v11 }
 0x67d   :  { %v7154_v59 = vpop.f32.mrf.mxu3  ;;  %3299 = vmatpush.msra.mxu2 %v7162_v37 }
 0x67f   :  { %3300 = vmatpush.msra.mxu2 %v7210_v38  ;;  %v7214_v1 = vpop.f32.mrf.mxu1 }
 0x682   :  { %3283 = vmatmul.f32.vlgmr.msrb.gmra.mxu1 %v6014_v48  ;;  %3370 = vmatmul.f32.vlgmr.msra.gmra.mxu3 %v6014_v48 }
 0x683   :  { %3632 = vmatpush.msra.mxu3 %v7173_v16 }
 0x684   :  { %5274 = vmatmul.msk.f32.gmra.mxu0 %vm143_vm0, %v7012_v22  ;;  %5290 = vmatmul.msk.f32.gmra.mxu2 %vm143_vm0, %v7012_v22 }
 0x685   :  { %v7179_v2 = vpop.f32.mrf.mxu3  ;;  %3633 = vmatpush.msra.mxu3 %v7186_v53 }
 0x687   :  { %3634 = vmatpush.msra.mxu3 %v7191_v13  ;;  %v7237_v61 = vpop.f32.mrf.mxu1 }
 0x68c   :  { %5275 = vmatmul.msk.f32.gmra.mxu0 %vm143_vm0, %v7022_v26  ;;  %5291 = vmatmul.msk.f32.gmra.mxu2 %vm143_vm0, %v7022_v26 }
 0x68d   :  { %v7216_v19 = vpop.f32.mrf.mxu3 }
 0x694   :  { %5276 = vmatmul.msk.f32.gmra.mxu0 %vm143_vm0, %v7032_v12  ;;  %5292 = vmatmul.msk.f32.gmra.mxu2 %vm143_vm0, %v7032_v12 }
 0x695   :  { %v7239_v62 = vpop.f32.mrf.mxu3 }
 0x69c   :  { %5277 = vmatmul.msk.f32.gmra.mxu0 %vm143_vm0, %v7046_v63  ;;  %5293 = vmatmul.msk.f32.gmra.mxu2 %vm143_vm0, %v7046_v63 }
 0x6a1   :  { %v2537_v27 = vpop.f32.mrf.mxu0 }
 0x6a2   :  { %v2603_v29 = vadd.f32 %v7061_v24, %v2537_v27  ;;  %v7231_v24 = vld [vmem:[#allocation13] sm:$0xff]  ;;  %v7258_v27 = vpop.f32.mrf.mxu1 }
 0x6a3   :  { %3262 = vmatpush.msrb.mxu0 %v7231_v24 }
 0x6a4   :  { %v2630_v31 = vadd.f32 %v7165_v0, %v2603_v29  ;;  %5302 = vmatmul.msk.f32.vlgmr.msra.gmra.mxu0 %vm143_vm0, %v6972_v51  ;;  %5318 = vmatmul.msk.f32.vlgmr.msrb.gmra.mxu2 %vm143_vm0, %v6972_v51  ;;  %v7197_v51 = vld [vmem:[#allocation13 + $0xa0] sm:$0xff]  ;;  %v7260_v29 = vpop.f32.mrf.mxu3 }
 0x6a5   :  { %3409 = vmatpush.msra.mxu1 %v7197_v51  ;;  %3635 = vmatpush.msra.mxu3 %v7197_v51 }
 0x6a6   :  { %2638 = vst.msk [vmem:[#allocation2] sm:$0xff] %vm143_vm0, %v2630_v31  ;;  %3410 = vmatmul.f32.vlgmr.msra.gmra.mxu1 %v6014_v48  ;;  %v7273_v31 = vld [vmem:[#allocation13 + $0x90] sm:$0xff] }
 0x6a7   :  { %v2673_v7 = vpop.f32.mrf.mxu2  ;;  %3592 = vmatpush.msrb.mxu1 %v7106_v55 }
 0x6a8   :  { %v2715_v45 = vadd.f32 %v7038_v9, %v2673_v7 }
 0x6a9   :  { %v2540_v3 = vpop.f32.mrf.mxu0  ;;  %3593 = vmatpush.msrb.mxu1 %v7114_v17 }
 0x6aa   :  { %v2743_v47 = vadd.f32 %v7182_v5, %v2715_v45  ;;  %v2606_v33 = vadd.f32 %v7078_v50, %v2540_v3 }
 0x6ab   :  { %3594 = vmatpush.msrb.mxu1 %v7121_v18 }
 0x6ac   :  { %2751 = vst.msk [vmem:[#allocation2 + $0x40] sm:$0xff] %vm143_vm0, %v2743_v47  ;;  %v2631_v46 = vadd.f32 %v7165_v0, %v2606_v33  ;;  %5303 = vmatmul.msk.f32.gmra.mxu0 %vm143_vm0, %v6982_v25  ;;  %5319 = vmatmul.msk.f32.gmra.mxu2 %vm143_vm0, %v6982_v25  ;;  %v7278_v47 = vld [vmem:[#allocation13 + $0x88] sm:$0xff]  ;;  %v7290_v33 = vpop.f32.mrf.mxu1 }
 0x6ad   :  { %3595 = vmatpush.msrb.mxu1 %v7126_v56 }
 0x6ae   :  { %2639 = vst.msk [vmem:[#allocation2 + $0x8] sm:$0xff] %vm143_vm0, %v2631_v46  ;;  %v7295_v46 = vld [vmem:[#allocation13 + $0x40] sm:$0xff] }
 0x6af   :  { %v2676_v10 = vpop.f32.mrf.mxu2  ;;  %3728 = vmatpush.msra.mxu1 %v7044_v35 }
 0x6b0   :  { %v2718_v60 = vadd.f32 %v7063_v30, %v2676_v10 }
 0x6b1   :  { %v2543_v25 = vpop.f32.mrf.mxu0  ;;  %3729 = vmatpush.msra.mxu1 %v7053_v8  ;;  %v7252_v8 = vld [vmem:[#allocation13 + $0x48] sm:$0xff] }
 0x6b2   :  { %v2744_v34 = vadd.f32 %v7182_v5, %v2718_v60  ;;  %v2609_v9 = vadd.f32 %v7094_v54, %v2543_v25  ;;  %3301 = vmatpush.msra.mxu2 %v7252_v8 }
 0x6b3   :  { %3730 = vmatpush.msra.mxu1 %v7056_v28 }
 0x6b4   :  { %2752 = vst.msk [vmem:[#allocation2 + $0x48] sm:$0xff] %vm143_vm0, %v2744_v34  ;;  %v2632_v41 = vadd.f32 %v7165_v0, %v2609_v9  ;;  %5304 = vmatmul.msk.f32.gmra.mxu0 %vm143_vm0, %v6992_v4  ;;  %5320 = vmatmul.msk.f32.gmra.mxu2 %vm143_vm0, %v6992_v4 }
 0x6b5   :  { %3731 = vmatpush.msra.mxu1 %v7059_v58  ;;  %v7269_v58 = vld [vmem:[#allocation13 + $0x98] sm:$0xff]  ;;  %3302 = vmatpush.msra.mxu2 %v7295_v46 }
 0x6b6   :  { %2640 = vst.msk [vmem:[#allocation2 + $0x10] sm:$0xff] %vm143_vm0, %v2632_v41  ;;  %3386 = vmatpush.msra.mxu0 %v7269_v58 }
 0x6b7   :  { %v2679_v30 = vpop.f32.mrf.mxu2  ;;  %3482 = vmatpush.msrb.mxu2 %v7124_v20 }
 0x6b8   :  { %v2721_v42 = vadd.f32 %v7080_v40, %v2679_v30  ;;  %3387 = vmatpush.msra.mxu0 %v7273_v31 }
 0x6b9   :  { %v2546_v50 = vpop.f32.mrf.mxu0  ;;  %3483 = vmatpush.msrb.mxu2 %v7151_v23 }
 0x6ba   :  { %v2745_v4 = vadd.f32 %v7182_v5, %v2721_v42  ;;  %v2612_v54 = vadd.f32 %v7108_v52, %v2546_v50  ;;  %3388 = vmatpush.msra.mxu0 %v7278_v47 }
 0x6bb   :  { %3484 = vmatpush.msrb.mxu2 %v7184_v6 }
 0x6bc   :  { %2753 = vst.msk [vmem:[#allocation2 + $0x50] sm:$0xff] %vm143_vm0, %v2745_v4  ;;  %v2633_v35 = vadd.f32 %v7165_v0, %v2612_v54  ;;  %5305 = vmatmul.msk.f32.gmra.mxu0 %vm143_vm0, %v7002_v11  ;;  %5321 = vmatmul.msk.f32.gmra.mxu2 %vm143_vm0, %v7002_v11 }
 0x6bd   :  { %3485 = vmatpush.msrb.mxu2 %v7231_v24 }
 0x6be   :  { %2641 = vst.msk [vmem:[#allocation2 + $0x18] sm:$0xff] %vm143_vm0, %v2633_v35  ;;  %v7327_v35 = vld [vmem:[#allocation12 + $0x2] ss:$0 sm:$0xff] }
 0x6bf   :  { %v2682_v40 = vpop.f32.mrf.mxu2 }
 0x6c0   :  { %v2724_v28 = vadd.f32 %v7096_v36, %v2682_v40 }
 0x6c1   :  { %v2549_v57 = vpop.f32.mrf.mxu0 }
 0x6c2   :  { %v2746_v52 = vadd.f32 %v7182_v5, %v2724_v28  ;;  %v2615_v49 = vadd.f32 %v7132_v39, %v2549_v57 }
 0x6c4   :  { %2754 = vst.msk [vmem:[#allocation2 + $0x58] sm:$0xff] %vm143_vm0, %v2746_v52  ;;  %v2634_v11 = vadd.f32 %v7165_v0, %v2615_v49  ;;  %5306 = vmatmul.msk.f32.gmra.mxu0 %vm143_vm0, %v7012_v22  ;;  %5322 = vmatmul.msk.f32.gmra.mxu2 %vm143_vm0, %v7012_v22 }
 0x6c6   :  { %2642 = vst.msk [vmem:[#allocation2 + $0x20] sm:$0xff] %vm143_vm0, %v2634_v11 }
 0x6c7   :  { %v2685_v36 = vpop.f32.mrf.mxu2 }
 0x6c8   :  { %v2727_v39 = vadd.f32 %v7110_v14, %v2685_v36  ;;  %v7287_v14 = vld [vmem:[#allocation13 + $0x80] sm:$0xff] }
 0x6c9   :  { %v2552_v7 = vpop.f32.mrf.mxu0  ;;  %3389 = vmatpush.msra.mxu0 %v7287_v14 }
 0x6ca   :  { %v2747_v45 = vadd.f32 %v7182_v5, %v2727_v39  ;;  %v2618_v3 = vadd.f32 %v7143_v43, %v2552_v7  ;;  %v7292_v43 = vpop.f32.mrf.mxu3 }
 0x6cc   :  { %2755 = vst.msk [vmem:[#allocation2 + $0x60] sm:$0xff] %vm143_vm0, %v2747_v45  ;;  %v2635_v22 = vadd.f32 %v7165_v0, %v2618_v3  ;;  %5307 = vmatmul.msk.f32.gmra.mxu0 %vm143_vm0, %v7022_v26  ;;  %5323 = vmatmul.msk.f32.gmra.mxu2 %vm143_vm0, %v7022_v26 }
 0x6ce   :  { %2643 = vst.msk [vmem:[#allocation2 + $0x28] sm:$0xff] %vm143_vm0, %v2635_v22 }
 0x6cf   :  { %v2688_v10 = vpop.f32.mrf.mxu2 }
 0x6d0   :  { %v2730_v60 = vadd.f32 %v7134_v21, %v2688_v10 }
 0x6d1   :  { %v2555_v26 = vpop.f32.mrf.mxu0 }
 0x6d2   :  { %v2748_v25 = vadd.f32 %v7182_v5, %v2730_v60  ;;  %v2621_v34 = vadd.f32 %v7160_v15, %v2555_v26  ;;  %v7312_v15 = vpop.f32.mrf.mxu1  ;;  %v7314_v41 = vpop.f32.mrf.mxu3 }
 0x6d4   :  { %2756 = vst.msk [vmem:[#allocation2 + $0x68] sm:$0xff] %vm143_vm0, %v2748_v25  ;;  %v2636_v9 = vadd.f32 %v7165_v0, %v2621_v34  ;;  %5308 = vmatmul.msk.f32.gmra.mxu0 %vm143_vm0, %v7032_v12  ;;  %5324 = vmatmul.msk.f32.gmra.mxu2 %vm143_vm0, %v7032_v12 }
 0x6d6   :  { %2644 = vst.msk [vmem:[#allocation2 + $0x30] sm:$0xff] %vm143_vm0, %v2636_v9 }
 0x6d7   :  { %v2691_v21 = vpop.f32.mrf.mxu2 }
 0x6d8   :  { %v2733_v30 = vadd.f32 %v7145_v44, %v2691_v21 }
 0x6d9   :  { %v2558_v42 = vpop.f32.mrf.mxu0 }
 0x6da   :  { %v2749_v50 = vadd.f32 %v7182_v5, %v2733_v30  ;;  %v2624_v4 = vadd.f32 %v7177_v32, %v2558_v42  ;;  %v7329_v28 = vpop.f32.mrf.mxu1  ;;  %v7331_v32 = vpop.f32.mrf.mxu3 }
 0x6dc   :  { %2757 = vst.msk [vmem:[#allocation2 + $0x70] sm:$0xff] %vm143_vm0, %v2749_v50  ;;  %v2637_v12 = vadd.f32 %v7165_v0, %v2624_v4  ;;  %5309 = vmatmul.msk.f32.gmra.mxu0 %vm143_vm0, %v7046_v63  ;;  %5325 = vmatmul.msk.f32.gmra.mxu2 %vm143_vm0, %v7046_v63 }
 0x6de   :  { %2645 = vst.msk [vmem:[#allocation2 + $0x38] sm:$0xff] %vm143_vm0, %v2637_v12 }
 0x6df   :  { %v2694_v54 = vpop.f32.mrf.mxu2 }
 0x6e0   :  { %v2736_v44 = vadd.f32 %v7154_v59, %v2694_v54  ;;  %v7342_v59 = vld [vmem:[#allocation12 + $0x3] ss:$0 sm:$0xff] }
 0x6e1   :  { %v2786_v40 = vpop.f32.mrf.mxu0 }
 0x6e2   :  { %v2750_v0 = vadd.f32 %v7182_v5, %v2736_v44  ;;  %v2828_v57 = vadd.f32 %v7214_v1, %v2786_v40  ;;  %v2845_v36 = vpop.f32.mrf.mxu1  ;;  %v7353_v39 = vpop.f32.mrf.mxu3 }
 0x6e4   :  { %2758 = vst.msk [vmem:[#allocation2 + $0x78] sm:$0xff] %vm143_vm0, %v2750_v0  ;;  %v2856_v63 = vadd.f32 %v7327_v35, %v2828_v57  ;;  %3263 = vmatmul.f32.vlgmr.msrb.gmra.mxu0 %v6014_v48  ;;  %3303 = vmatmul.f32.vlgmr.msra.gmra.mxu2 %v6014_v48 }
 0x6e5   :  { %3522 = vmatpush.msrb.mxu0 %v7162_v37  ;;  %3612 = vmatpush.msra.mxu2 %v7269_v58 }
 0x6e6   :  { %2864 = vst.msk [vmem:[#allocation2 + $0x80] sm:$0xff] %vm143_vm0, %v2856_v63 }
 0x6e7   :  { %v2899_v52 = vpop.f32.mrf.mxu2  ;;  %3523 = vmatpush.msrb.mxu0 %v7210_v38  ;;  %3613 = vmatpush.msra.mxu2 %v7273_v31 }
 0x6e8   :  { %v2941_v5 = vadd.f32 %v7179_v2, %v2899_v52 }
 0x6e9   :  { %v2789_v1 = vpop.f32.mrf.mxu0  ;;  %3524 = vmatpush.msrb.mxu0 %v7252_v8  ;;  %3614 = vmatpush.msra.mxu2 %v7278_v47 }
 0x6ea   :  { %v2969_v49 = vadd.f32 %v7342_v59, %v2941_v5  ;;  %v2831_v11 = vadd.f32 %v7237_v61, %v2789_v1  ;;  %v2848_v10 = vpop.f32.mrf.mxu1  ;;  %v7368_v60 = vpop.f32.mrf.mxu3 }
 0x6eb   :  { %3525 = vmatpush.msrb.mxu0 %v7295_v46  ;;  %3615 = vmatpush.msra.mxu2 %v7287_v14 }
 0x6ec   :  { %2977 = vst.msk [vmem:[#allocation2 + $0xc0] sm:$0xff] %vm143_vm0, %v2969_v49  ;;  %v2857_v2 = vadd.f32 %v7327_v35, %v2831_v11  ;;  %3390 = vmatmul.f32.vlgmr.msra.gmra.mxu0 %v6014_v48 }
 0x6ed   :  { %3708 = vmatpush.msra.mxu0 %v7124_v20 }
 0x6ee   :  { %2865 = vst.msk [vmem:[#allocation2 + $0x88] sm:$0xff] %vm143_vm0, %v2857_v2 }
 0x6ef   :  { %v2902_v7 = vpop.f32.mrf.mxu2  ;;  %3709 = vmatpush.msra.mxu0 %v7151_v23 }
 0x6f0   :  { %v2944_v61 = vadd.f32 %v7216_v19, %v2902_v7 }
 0x6f1   :  { %v2792_v45 = vpop.f32.mrf.mxu0  ;;  %3710 = vmatpush.msra.mxu0 %v7184_v6 }
 0x6f2   :  { %v2970_v3 = vadd.f32 %v7342_v59, %v2944_v61  ;;  %v2834_v22 = vadd.f32 %v7258_v27, %v2792_v45  ;;  %v3053_v30 = vpop.f32.mrf.mxu1  ;;  %v3169_v42 = vpop.f32.mrf.mxu3 }
 0x6f3   :  { %3711 = vmatpush.msra.mxu0 %v7231_v24 }
 0x6f4   :  { %2978 = vst.msk [vmem:[#allocation2 + $0xc8] sm:$0xff] %vm143_vm0, %v2970_v3  ;;  %v2858_v48 = vadd.f32 %v7327_v35, %v2834_v22 }
 0x6f6   :  { %2866 = vst.msk [vmem:[#allocation2 + $0x90] sm:$0xff] %vm143_vm0, %v2858_v48 }
 0x6f7   :  { %v2905_v26 = vpop.f32.mrf.mxu2 }
 0x6f8   :  { %v2947_v19 = vadd.f32 %v7239_v62, %v2905_v26 }
 0x6f9   :  { %v2795_v25 = vpop.f32.mrf.mxu0 }
 0x6fa   :  { %v2971_v34 = vadd.f32 %v7342_v59, %v2947_v19  ;;  %v2837_v9 = vadd.f32 %v7290_v33, %v2795_v25  ;;  %v3056_v0 = vpop.f32.mrf.mxu1  ;;  %v3172_v57 = vpop.f32.mrf.mxu3  ;;  %v7400_v25 = vld [vmem:[#allocation12 + $0x4] ss:$0 sm:$0xff] }
 0x6fc   :  { %2979 = vst.msk [vmem:[#allocation2 + $0xd0] sm:$0xff] %vm143_vm0, %v2971_v34  ;;  %v2859_v27 = vadd.f32 %v7327_v35, %v2837_v9 }
 0x6fe   :  { %2867 = vst.msk [vmem:[#allocation2 + $0x98] sm:$0xff] %vm143_vm0, %v2859_v27 }
 0x6ff   :  { %v2908_v21 = vpop.f32.mrf.mxu2 }
 0x700   :  { %v2950_v50 = vadd.f32 %v7260_v29, %v2908_v21 }
 0x701   :  { %v2798_v4 = vpop.f32.mrf.mxu0 }
 0x702   :  { %v2972_v12 = vadd.f32 %v7342_v59, %v2950_v50  ;;  %v2840_v62 = vadd.f32 %v7312_v15, %v2798_v4  ;;  %v3059_v11 = vpop.f32.mrf.mxu1  ;;  %v3175_v2 = vpop.f32.mrf.mxu3 }
 0x704   :  { %2980 = vst.msk [vmem:[#allocation2 + $0xd8] sm:$0xff] %vm143_vm0, %v2972_v12  ;;  %v2860_v33 = vadd.f32 %v7327_v35, %v2840_v62 }
 0x706   :  { %2868 = vst.msk [vmem:[#allocation2 + $0xa0] sm:$0xff] %vm143_vm0, %v2860_v33 }
 0x707   :  { %v2911_v54 = vpop.f32.mrf.mxu2 }
 0x708   :  { %v2953_v44 = vadd.f32 %v7292_v43, %v2911_v54 }
 0x709   :  { %v2801_v40 = vpop.f32.mrf.mxu0 }
 0x70a   :  { %v2973_v63 = vadd.f32 %v7342_v59, %v2953_v44  ;;  %v2843_v29 = vadd.f32 %v7329_v28, %v2801_v40  ;;  %v3178_v48 = vpop.f32.mrf.mxu3 }
 0x70c   :  { %2981 = vst.msk [vmem:[#allocation2 + $0xe0] sm:$0xff] %vm143_vm0, %v2973_v63  ;;  %v2861_v15 = vadd.f32 %v7327_v35, %v2843_v29 }
 0x70e   :  { %2869 = vst.msk [vmem:[#allocation2 + $0xa8] sm:$0xff] %vm143_vm0, %v2861_v15 }
 0x70f   :  { %v2914_v52 = vpop.f32.mrf.mxu2 }
 0x710   :  { %v2956_v5 = vadd.f32 %v7314_v41, %v2914_v52 }
 0x711   :  { %v2804_v1 = vpop.f32.mrf.mxu0 }
 0x712   :  { %v2974_v49 = vadd.f32 %v7342_v59, %v2956_v5  ;;  %v2846_v43 = vadd.f32 %v2845_v36, %v2804_v1  ;;  %v3062_v36 = vpop.f32.mrf.mxu1  ;;  %v3181_v50 = vpop.f32.mrf.mxu3 }
 0x714   :  { %2982 = vst.msk [vmem:[#allocation2 + $0xe8] sm:$0xff] %vm143_vm0, %v2974_v49  ;;  %v2862_v7 = vadd.f32 %v7327_v35, %v2846_v43 }
 0x716   :  { %2870 = vst.msk [vmem:[#allocation2 + $0xb0] sm:$0xff] %vm143_vm0, %v2862_v7 }
 0x717   :  { %v2917_v28 = vpop.f32.mrf.mxu2 }
 0x718   :  { %v2959_v61 = vadd.f32 %v7331_v32, %v2917_v28 }
 0x719   :  { %v2807_v45 = vpop.f32.mrf.mxu0 }
 0x71a   :  { %v2975_v3 = vadd.f32 %v7342_v59, %v2959_v61  ;;  %v2849_v22 = vadd.f32 %v2848_v10, %v2807_v45  ;;  %v3065_v21 = vpop.f32.mrf.mxu1  ;;  %v3184_v40 = vpop.f32.mrf.mxu3 }
 0x71c   :  { %2983 = vst.msk [vmem:[#allocation2 + $0xf0] sm:$0xff] %vm143_vm0, %v2975_v3  ;;  %v2863_v41 = vadd.f32 %v7327_v35, %v2849_v22  ;;  %v7406_v35 = vld [vmem:[#allocation12 + $0x5] ss:$0 sm:$0xff] }
 0x71e   :  { %2871 = vst.msk [vmem:[#allocation2 + $0xb8] sm:$0xff] %vm143_vm0, %v2863_v41 }
 0x71f   :  { %v2920_v26 = vpop.f32.mrf.mxu2 }
 0x720   :  { %v2962_v19 = vadd.f32 %v7353_v39, %v2920_v26 }
 0x721   :  { %v3012_v34 = vpop.f32.mrf.mxu0 }
 0x722   :  { %v2976_v32 = vadd.f32 %v7342_v59, %v2962_v19  ;;  %v3054_v9 = vadd.f32 %v3053_v30, %v3012_v34  ;;  %v3068_v44 = vpop.f32.mrf.mxu1 }
 0x724   :  { %2984 = vst.msk [vmem:[#allocation2 + $0xf8] sm:$0xff] %vm143_vm0, %v2976_v32  ;;  %v3082_v10 = vadd.f32 %v7400_v25, %v3054_v9 }
 0x726   :  { %3090 = vst.msk [vmem:[#allocation2 + $0x100] sm:$0xff] %vm143_vm0, %v3082_v10 }
 0x727   :  { %v3125_v27 = vpop.f32.mrf.mxu2 }
 0x728   :  { %v3167_v4 = vadd.f32 %v7368_v60, %v3125_v27 }
 0x729   :  { %v3015_v39 = vpop.f32.mrf.mxu0 }
 0x72a   :  { %v3195_v12 = vadd.f32 %v7406_v35, %v3167_v4  ;;  %v3057_v62 = vadd.f32 %v3056_v0, %v3015_v39  ;;  %v3071_v49 = vpop.f32.mrf.mxu1  ;;  %v7438_v39 = vld [vmem:[%s8011_s8 + $0x8] sm:$0xff] }
 0x72b   :  { %v3244_v26 = vld [vmem:[#allocation2 + $0xf8] sm:$0xff] }
 0x72c   :  { %3203 = vst.msk [vmem:[#allocation2 + $0x140] sm:$0xff] %vm143_vm0, %v3195_v12  ;;  %v3083_v59 = vadd.f32 %v7400_v25, %v3057_v62 }
 0x72e   :  { %3091 = vst.msk [vmem:[#allocation2 + $0x108] sm:$0xff] %vm143_vm0, %v3083_v59 }
 0x72f   :  { %v3128_v30 = vpop.f32.mrf.mxu2 }
 0x730   :  { %v3170_v33 = vadd.f32 %v3169_v42, %v3128_v30  ;;  %v3187_v42 = vpop.f32.mrf.mxu3 }
 0x731   :  { %v3018_v54 = vpop.f32.mrf.mxu0 }
 0x732   :  { %v3196_v63 = vadd.f32 %v7406_v35, %v3170_v33  ;;  %v3060_v29 = vadd.f32 %v3059_v11, %v3018_v54  ;;  %v3074_v41 = vpop.f32.mrf.mxu1 }
 0x734   :  { %3204 = vst.msk [vmem:[#allocation2 + $0x148] sm:$0xff] %vm143_vm0, %v3196_v63  ;;  %v3084_v60 = vadd.f32 %v7400_v25, %v3060_v29 }
 0x736   :  { %3092 = vst.msk [vmem:[#allocation2 + $0x110] sm:$0xff] %vm143_vm0, %v3084_v60 }
 0x737   :  { %v3131_v0 = vpop.f32.mrf.mxu2 }
 0x738   :  { %v3173_v15 = vadd.f32 %v3172_v57, %v3131_v0  ;;  %v7425_v57 = vld [vmem:[%s8011_s8 + $0x18] sm:$0xff]  ;;  %v3371_v3 = vpop.f32.mrf.mxu3 }
 0x739   :  { %v3021_v52 = vpop.f32.mrf.mxu0 }
 0x73a   :  { %v3197_v5 = vadd.f32 %v7406_v35, %v3173_v15  ;;  %v3063_v1 = vadd.f32 %v3062_v36, %v3021_v52  ;;  %v3372_v36 = vadd.f32 %v3371_v3, %v7425_v57  ;;  %v3284_v12 = vpop.f32.mrf.mxu1 }
 0x73b   :  { %v3285_v33 = vadd.f32 %v3284_v12, %v7438_v39 }
 0x73c   :  { %3205 = vst.msk [vmem:[#allocation2 + $0x150] sm:$0xff] %vm143_vm0, %v3197_v5  ;;  %v3085_v43 = vadd.f32 %v7400_v25, %v3063_v1  ;;  %v3414_v10 = vadd.f32 %v3372_v36, %v3244_v26  ;;  %v7460_v36 = vld [vmem:[%s8011_s8 + $0x20] sm:$0xff] }
 0x73e   :  { %3093 = vst.msk [vmem:[#allocation2 + $0x118] sm:$0xff] %vm143_vm0, %v3085_v43 }
 0x73f   :  { %v3134_v11 = vpop.f32.mrf.mxu2 }
 0x740   :  { %v3176_v7 = vadd.f32 %v3175_v2, %v3134_v11  ;;  %v7452_v11 = vld [vmem:[%s8011_s8] sm:$0xff] }
 0x741   :  { %v3024_v28 = vpop.f32.mrf.mxu0 }
 0x742   :  { %v3198_v61 = vadd.f32 %v7406_v35, %v3176_v7  ;;  %v3066_v45 = vadd.f32 %v3065_v21, %v3024_v28  ;;  %v5336_v21 = vmul.f32 -1.442695, %v3414_v10 }
 0x744   :  { %3206 = vst.msk [vmem:[#allocation2 + $0x158] sm:$0xff] %vm143_vm0, %v3198_v61  ;;  %v3086_v22 = vadd.f32 %v7400_v25, %v3066_v45  ;;  %5592 = vpow2.f32 %v5336_v21  ;;  %v3241_v45 = vld [vmem:[#allocation2] sm:$0xff] }
 0x746   :  { %3094 = vst.msk [vmem:[#allocation2 + $0x120] sm:$0xff] %vm143_vm0, %v3086_v22 }
 0x747   :  { %v3137_v2 = vpop.f32.mrf.mxu2 }
 0x748   :  { %v3179_v19 = vadd.f32 %v3178_v48, %v3137_v2 }
 0x749   :  { %v3027_v34 = vpop.f32.mrf.mxu0 }
 0x74a   :  { %v3199_v32 = vadd.f32 %v7406_v35, %v3179_v19  ;;  %v3069_v9 = vadd.f32 %v3068_v44, %v3027_v34  ;;  %v3242_v44 = vld [vmem:[#allocation2 + $0x40] sm:$0xff]  ;;  %v5593_v0 = vpop.eup %5592 }
 0x74b   :  { %v3327_v63 = vadd.f32 %v3285_v33, %v3242_v44  ;;  %v3418_v1 = vadd.f32 1.0, %v5593_v0  ;;  %v7473_v44 = vld [vmem:[%s8011_s8 + $0x28] sm:$0xff] }
 0x74c   :  { %3207 = vst.msk [vmem:[#allocation2 + $0x160] sm:$0xff] %vm143_vm0, %v3199_v32  ;;  %v3087_v27 = vadd.f32 %v7400_v25, %v3069_v9 }
 0x74d   :  { %v5335_v5 = vmul.f32 -1.442695, %v3327_v63  ;;  %vm3424_vm10 = vweird.f32 %v3418_v1  ;;  %v3428_v33 = vand.u32 2147483647, %v3418_v1  ;;  %v3411_v63 = vpop.f32.mrf.mxu1 }
 0x74e   :  { %3095 = vst.msk [vmem:[#allocation2 + $0x128] sm:$0xff] %vm143_vm0, %v3087_v27 }
 0x74f   :  { %v3140_v4 = vpop.f32.mrf.mxu2  ;;  %5594 = vpow2.f32 %v5335_v5  ;;  %vm3429_vm12 = vcmp.eq.f32.partialorder %v3428_v33, 8.507059e+37  ;;  %v7479_v5 = vld [vmem:[%s8011_s8 + $0x10] sm:$0xff] }
 0x750   :  { %v3182_v48 = vadd.f32 %v3181_v50, %v3140_v4  ;;  %5596 = vrcp.f32 %v3418_v1 }
 0x751   :  { %v3030_v62 = vpop.f32.mrf.mxu0 }
 0x752   :  { %v3200_v59 = vadd.f32 %v7406_v35, %v3182_v48  ;;  %v3072_v30 = vadd.f32 %v3071_v49, %v3030_v62 }
 0x754   :  { %3208 = vst.msk [vmem:[#allocation2 + $0x168] sm:$0xff] %vm143_vm0, %v3200_v59  ;;  %v3088_v54 = vadd.f32 %v7400_v25, %v3072_v30  ;;  %v3430_v59 = vand.u32 2147483648, %v3418_v1 }
 0x755   :  { %v5595_v3 = vpop.eup %5594 }
 0x756   :  { %3096 = vst.msk [vmem:[#allocation2 + $0x130] sm:$0xff] %vm143_vm0, %v3088_v54  ;;  %v5597_v22 = vpop.eup %5596  ;;  %v7462_v2 = vadd.f32 1.0, %v5595_v3 }
 0x757   :  { %v3143_v29 = vpop.f32.mrf.mxu2  ;;  %vm3425_vm9 = vweird.f32 %v5597_v22 }
 0x758   :  { %v3185_v60 = vadd.f32 %v3184_v40, %v3143_v29  ;;  %vm3426_vm11 = vmor %vm3424_vm10, %vm3425_vm9  ;;  %vm3337_vm3 = vweird.f32 %v7462_v2 }
 0x759   :  { %v3033_v15 = vpop.f32.mrf.mxu0 }
 0x75a   :  { %v3201_v50 = vadd.f32 %v7406_v35, %v3185_v60  ;;  %v3075_v52 = vadd.f32 %v3074_v41, %v3033_v15  ;;  %v3431_v15 = vor.u32 1.1754944e-38, %v3430_v59 }
 0x75c   :  { %3209 = vst.msk [vmem:[#allocation2 + $0x170] sm:$0xff] %vm143_vm0, %v3201_v50  ;;  %v3089_v49 = vadd.f32 %v7400_v25, %v3075_v52  ;;  %v3412_v52 = vadd.f32 %v3411_v63, %v7473_v44 }
 0x75e   :  { %3097 = vst.msk [vmem:[#allocation2 + $0x138] sm:$0xff] %vm143_vm0, %v3089_v49 }
 0x75f   :  { %v3146_v43 = vpop.f32.mrf.mxu2 }
 0x760   :  { %v3188_v40 = vadd.f32 %v3187_v42, %v3146_v43  ;;  %v3420_v42 = vmul.f32 %v5597_v22, %v3418_v1 }
 0x761   :  { %v3264_v7 = vpop.f32.mrf.mxu0 }
 0x762   :  { %v3202_v28 = vadd.f32 %v7406_v35, %v3188_v40  ;;  %v3265_v61 = vadd.f32 %v3264_v7, %v7452_v11  ;;  %v3421_v32 = vsub.f32 1.0, %v3420_v42 }
 0x764   :  { %3210 = vst.msk [vmem:[#allocation2 + $0x178] sm:$0xff] %vm143_vm0, %v3202_v28  ;;  %v3307_v25 = vadd.f32 %v3265_v61, %v3241_v45  ;;  %v3422_v21 = vmul.f32 %v5597_v22, %v3421_v32  ;;  %v3343_v32 = vand.u32 2147483648, %v7462_v2 }
 0x765   :  { %v3245_v19 = vld [vmem:[#allocation2 + $0x138] sm:$0xff] }
 0x766   :  { %v5334_v41 = vmul.f32 -1.442695, %v3307_v25  ;;  %v3423_v48 = vadd.f32 %v5597_v22, %v3422_v21  ;;  %v3243_v21 = vld [vmem:[#allocation2 + $0x80] sm:$0xff]  ;;  %v3344_v63 = vor.u32 1.1754944e-38, %v3343_v32 }
 0x767   :  { %v3304_v1 = vpop.f32.mrf.mxu2 }
 0x768   :  { %5598 = vpow2.f32 %v5334_v41  ;;  %v3427_v0 = vsel %vm3426_vm11, %v5597_v22, %v3423_v48  ;;  %v3305_v61 = vadd.f32 %v3304_v1, %v7479_v5 }
 0x769   :  { %v3391_v26 = vpop.f32.mrf.mxu0  ;;  %5600 = vrcp.f32 %v7462_v2  ;;  %v3432_v43 = vsel %vm3429_vm12, %v3431_v15, %v3427_v0 }
 0x76a   :  { %v3392_v35 = vadd.f32 %v3391_v26, %v7460_v36  ;;  %v3454_v22 = vmul.f32 %v3432_v43, %v3412_v52 }
 0x76b   :  { %v3246_v25 = vld [vmem:[#allocation2 + $0x178] sm:$0xff] }
 0x76c   :  { %v3434_v34 = vadd.f32 %v3392_v35, %v3245_v19 }
 0x76e   :  { %v5599_v9 = vpop.eup %5598  ;;  %v5337_v10 = vmul.f32 -1.442695, %v3434_v34  ;;  %v3455_v34 = vadd.f32 %v3454_v22, %v3246_v25 }
 0x76f   :  { %v3311_v27 = vadd.f32 1.0, %v5599_v9  ;;  %v7466_v4 = vpop.eup %5600 }
 0x770   :  { %5602 = vpow2.f32 %v5337_v10  ;;  %v3333_v12 = vmul.f32 %v7466_v4, %v7462_v2  ;;  %vm3338_vm2 = vweird.f32 %v7466_v4 }
 0x771   :  { %5604 = vrcp.f32 %v3311_v27  ;;  %v3323_v49 = vand.u32 2147483648, %v3311_v27  ;;  %v3321_v7 = vand.u32 2147483647, %v3311_v27  ;;  %vm3317_vm14 = vweird.f32 %v3311_v27  ;;  %vm7488_vm4 = vmor %vm3337_vm3, %vm3338_vm2 }
 0x772   :  { %v3334_v60 = vsub.f32 1.0, %v3333_v12  ;;  %v3341_v12 = vand.u32 2147483647, %v7462_v2 }
 0x773   :  { %v3324_v41 = vor.u32 1.1754944e-38, %v3323_v49  ;;  %vm3322_vm1 = vcmp.eq.f32.partialorder %v3321_v7, 8.507059e+37 }
 0x774   :  { %v3335_v28 = vmul.f32 %v7466_v4, %v3334_v60  ;;  %vm3342_vm8 = vcmp.eq.f32.partialorder %v3341_v12, 8.507059e+37 }
 0x776   :  { %v5603_v62 = vpop.eup %5602  ;;  %v3336_v19 = vadd.f32 %v7466_v4, %v3335_v28 }
 0x777   :  { %v5605_v30 = vpop.eup %5604  ;;  %v3438_v54 = vadd.f32 1.0, %v5603_v62 }
 0x778   :  { %v3313_v29 = vmul.f32 %v5605_v30, %v3311_v27  ;;  %vm3318_vm13 = vweird.f32 %v5605_v30  ;;  %v3340_v33 = vsel %vm7488_vm4, %v7466_v4, %v3336_v19  ;;  %v3465_v19 = vld [vmem:[#allocation2 + $0x130] sm:$0xff] }
 0x779   :  { %5606 = vrcp.f32 %v3438_v54  ;;  %vm3319_vm15 = vmor %vm3317_vm14, %vm3318_vm13  ;;  %v3450_v27 = vand.u32 2147483648, %v3438_v54  ;;  %v3448_v59 = vand.u32 2147483647, %v3438_v54  ;;  %vm3444_vm6 = vweird.f32 %v3438_v54 }
 0x77a   :  { %v3314_v50 = vsub.f32 1.0, %v3313_v29  ;;  %5608 = vtanh.f32 %v3455_v34  ;;  %v3345_v0 = vsel %vm3342_vm8, %v3344_v63, %v3340_v33 }
 0x77b   :  { %v3451_v60 = vor.u32 1.1754944e-38, %v3450_v27  ;;  %vm3449_vm9 = vcmp.eq.f32.partialorder %v3448_v59, 8.507059e+37  ;;  %v3350_v1 = vsub.f32 1.0, %v3345_v0  ;;  %v3352_v4 = vmul.f32 0.0, %v3345_v0 }
 0x77c   :  { %v3315_v40 = vmul.f32 %v5605_v30, %v3314_v50 }
 0x77e   :  { %v3316_v45 = vadd.f32 %v5605_v30, %v3315_v40 }
 0x77f   :  { %v5607_v3 = vpop.eup %5606 }
 0x780   :  { %v3440_v42 = vmul.f32 %v5607_v3, %v3438_v54  ;;  %v3320_v26 = vsel %vm3319_vm15, %v5605_v30, %v3316_v45  ;;  %vm3445_vm5 = vweird.f32 %v5607_v3  ;;  %v5609_v52 = vpop.eup %5608  ;;  %v3461_v54 = vld [vmem:[#allocation2 + $0x8] sm:$0xff] }
 0x781   :  { %v3325_v35 = vsel %vm3322_vm1, %v3324_v41, %v3320_v26  ;;  %vm3446_vm7 = vmor %vm3444_vm6, %vm3445_vm5  ;;  %v3462_v45 = vld [vmem:[#allocation2 + $0x48] sm:$0xff] }
 0x782   :  { %v3441_v9 = vsub.f32 1.0, %v3440_v42  ;;  %v3347_v10 = vmul.f32 %v3325_v35, %v3305_v61 }
 0x784   :  { %v3442_v62 = vmul.f32 %v5607_v3, %v3441_v9  ;;  %v3348_v30 = vadd.f32 %v3347_v10, %v3243_v21 }
 0x786   :  { %v3443_v29 = vadd.f32 %v5607_v3, %v3442_v62  ;;  %5610 = vtanh.f32 %v3348_v30 }
 0x788   :  { %v3447_v2 = vsel %vm3446_vm7, %v5607_v3, %v3443_v29 }
 0x789   :  { %v3452_v15 = vsel %vm3449_vm9, %v3451_v60, %v3447_v2 }
 0x78a   :  { %v3457_v50 = vsub.f32 1.0, %v3452_v15  ;;  %v3459_v40 = vmul.f32 0.0, %v3452_v15 }
 0x78c   :  { %v5611_v49 = vpop.eup %5610  ;;  %v3458_v43 = vmul.f32 %v5609_v52, %v3457_v50 }
 0x78d   :  { %v3351_v7 = vmul.f32 %v5611_v49, %v3350_v1 }
 0x78e   :  { %v7495_v28 = vadd.f32 %v3459_v40, %v3458_v43 }
 0x78f   :  { %v7497_v61 = vadd.f32 %v3352_v4, %v3351_v7 }
 0x790   :  { %5343 = vmatmul.msk.f32.vlgmr.msrb.gmra.mxu1 %vm143_vm0, %v7495_v28 }
 0x791   :  { %5338 = vmatmul.msk.f32.vlgmr.msrb.gmra.mxu2 %vm143_vm0, %v7497_v61  ;;  %5339 = vmatmul.msk.f32.vlgmr.msrb.gmra.mxu3 %vm143_vm0, %v7497_v61 }
 0x792   :  { %5340 = vmatmul.msk.f32.vlgmr.msrb.gmra.mxu0 %vm143_vm0, %v7497_v61  ;;  %3818 = vmatpush.msrb.mxu3 %v7106_v55  ;;  %v7528_v55 = vld [vmem:[#allocation13 + $0x38] sm:$0xff] }
 0x793   :  { %3748 = vmatpush.msrb.mxu2 %v7162_v37  ;;  %3838 = vmatpush.msrb.mxu0 %v7269_v58 }
 0x794   :  { %3819 = vmatpush.msrb.mxu3 %v7114_v17  ;;  %3858 = vmatpush.msrb.mxu1 %v7173_v16  ;;  %v7532_v17 = vld [vmem:[#allocation13 + $0x30] sm:$0xff] }
 0x795   :  { %3749 = vmatpush.msrb.mxu2 %v7210_v38  ;;  %3839 = vmatpush.msrb.mxu0 %v7273_v31 }
 0x796   :  { %3820 = vmatpush.msrb.mxu3 %v7121_v18  ;;  %3859 = vmatpush.msrb.mxu1 %v7186_v53  ;;  %v7536_v18 = vld [vmem:[#allocation13 + $0x28] sm:$0xff] }
 0x797   :  { %3750 = vmatpush.msrb.mxu2 %v7252_v8  ;;  %3840 = vmatpush.msrb.mxu0 %v7278_v47 }
 0x798   :  { %3821 = vmatpush.msrb.mxu3 %v7126_v56  ;;  %3860 = vmatpush.msrb.mxu1 %v7191_v13  ;;  %v7540_v56 = vld [vmem:[#allocation13 + $0x20] sm:$0xff] }
 0x799   :  { %5344 = vmatmul.msk.f32.vlgmr.msra.gmra.mxu2 %vm143_vm0, %v7495_v28  ;;  %5345 = vmatmul.msk.f32.vlgmr.msra.gmra.mxu3 %vm143_vm0, %v7495_v28 }
 0x79a   :  { %3751 = vmatpush.msrb.mxu2 %v7295_v46  ;;  %3841 = vmatpush.msrb.mxu0 %v7287_v14 }
 0x79b   :  { %3861 = vmatpush.msrb.mxu1 %v7197_v51  ;;  %3954 = vmatpush.msra.mxu3 %v7528_v55 }
 0x79c   :  { %3934 = vmatpush.msra.mxu2 %v7124_v20 }
 0x79d   :  { %3955 = vmatpush.msra.mxu3 %v7532_v17 }
 0x79e   :  { %3935 = vmatpush.msra.mxu2 %v7151_v23  ;;  %v3464_v23 = vld [vmem:[#allocation2 + $0xf0] sm:$0xff] }
 0x79f   :  { %3956 = vmatpush.msra.mxu3 %v7536_v18 }
 0x7a0   :  { %3936 = vmatpush.msra.mxu2 %v7184_v6 }
 0x7a1   :  { %3957 = vmatpush.msra.mxu3 %v7540_v56 }
 0x7a2   :  { %3937 = vmatpush.msra.mxu2 %v7231_v24 }
 0x80d   :  { %v3597_v20 = vpop.f32.mrf.mxu1 }
 0x80e   :  { %v3598_v37 = vadd.f32 %v3597_v20, %v7425_v57 }
 0x810   :  { %v3640_v16 = vadd.f32 %v3598_v37, %v3464_v23  ;;  %v3527_v23 = vpop.f32.mrf.mxu0 }
 0x812   :  { %v5346_v53 = vmul.f32 -1.442695, %v3640_v16 }
 0x814   :  { %5612 = vpow2.f32 %v5346_v53  ;;  %v3487_v13 = vpop.f32.mrf.mxu2  ;;  %v3507_v51 = vpop.f32.mrf.mxu3 }
 0x815   :  { %v3488_v6 = vadd.f32 %v3487_v13, %v7452_v11  ;;  %v3508_v38 = vadd.f32 %v3507_v51, %v7438_v39 }
 0x817   :  { %v3530_v24 = vadd.f32 %v3488_v6, %v3461_v54  ;;  %v3550_v25 = vadd.f32 %v3508_v38, %v3462_v45  ;;  %v3528_v54 = vadd.f32 %v3527_v23, %v7479_v5  ;;  %v7631_v23 = vld [vmem:[#allocation13 + $0x8] sm:$0xff] }
 0x819   :  { %v5341_v3 = vmul.f32 -1.442695, %v3530_v24  ;;  %v5342_v22 = vmul.f32 -1.442695, %v3550_v25  ;;  %v3466_v25 = vld [vmem:[#allocation2 + $0x170] sm:$0xff] }
 0x81a   :  { %v5613_v41 = vpop.eup %5612 }
 0x81b   :  { %v3644_v42 = vadd.f32 1.0, %v5613_v41  ;;  %5614 = vpow2.f32 %v5341_v3 }
 0x81c   :  { %5616 = vpow2.f32 %v5342_v22  ;;  %v3617_v26 = vpop.f32.mrf.mxu2  ;;  %v3637_v63 = vpop.f32.mrf.mxu3 }
 0x81d   :  { %5618 = vrcp.f32 %v3644_v42  ;;  %v3618_v35 = vadd.f32 %v3617_v26, %v7460_v36  ;;  %v3654_v60 = vand.u32 2147483647, %v3644_v42  ;;  %v3656_v2 = vand.u32 2147483648, %v3644_v42 }
 0x81e   :  { %v3638_v1 = vadd.f32 %v3637_v63, %v7473_v44  ;;  %vm3650_vm11 = vweird.f32 %v3644_v42 }
 0x81f   :  { %v3660_v34 = vadd.f32 %v3618_v35, %v3465_v19  ;;  %vm3655_vm13 = vcmp.eq.f32.partialorder %v3654_v60, 8.507059e+37  ;;  %v3657_v7 = vor.u32 1.1754944e-38, %v3656_v2  ;;  %v3463_v19 = vld [vmem:[#allocation2 + $0x88] sm:$0xff] }
 0x821   :  { %v5615_v32 = vpop.eup %5614  ;;  %v5347_v9 = vmul.f32 -1.442695, %v3660_v34 }
 0x822   :  { %v5617_v10 = vpop.eup %5616  ;;  %v3534_v27 = vadd.f32 1.0, %v5615_v32 }
 0x823   :  { %v5619_v21 = vpop.eup %5618  ;;  %v7547_v12 = vadd.f32 1.0, %v5617_v10  ;;  %5620 = vpow2.f32 %v5347_v9 }
 0x824   :  { %5622 = vrcp.f32 %v3534_v27  ;;  %v3646_v48 = vmul.f32 %v5619_v21, %v3644_v42  ;;  %vm3651_vm10 = vweird.f32 %v5619_v21  ;;  %v3546_v43 = vand.u32 2147483648, %v3534_v27 }
 0x825   :  { %5624 = vrcp.f32 %v7547_v12  ;;  %vm3652_vm12 = vmor %vm3650_vm11, %vm3651_vm10  ;;  %v3544_v20 = vand.u32 2147483647, %v3534_v27  ;;  %vm3540_vm15 = vweird.f32 %v3534_v27  ;;  %v3566_v26 = vand.u32 2147483648, %v7547_v12 }
 0x826   :  { %v3647_v62 = vsub.f32 1.0, %v3646_v48  ;;  %v3547_v38 = vor.u32 1.1754944e-38, %v3546_v43  ;;  %vm3560_vm4 = vweird.f32 %v7547_v12  ;;  %v3564_v34 = vand.u32 2147483647, %v7547_v12 }
 0x827   :  { %vm3545_vm2 = vcmp.eq.f32.partialorder %v3544_v20, 8.507059e+37  ;;  %v7601_v20 = vld [vmem:[#allocation13 + $0xb0] sm:$0xff] }
 0x828   :  { %v3648_v29 = vmul.f32 %v5619_v21, %v3647_v62  ;;  %v3567_v62 = vor.u32 1.1754944e-38, %v3566_v26  ;;  %vm3565_vm8 = vcmp.eq.f32.partialorder %v3564_v34, 8.507059e+37  ;;  %v3691_v34 = vld [vmem:[#allocation2 + $0x128] sm:$0xff] }
 0x829   :  { %v5621_v59 = vpop.eup %5620 }
 0x82a   :  { %v5623_v30 = vpop.eup %5622  ;;  %v7550_v33 = vadd.f32 1.0, %v5621_v59  ;;  %v3649_v49 = vadd.f32 %v5619_v21, %v3648_v29 }
 0x82b   :  { %v5625_v0 = vpop.eup %5624  ;;  %v3536_v15 = vmul.f32 %v5623_v30, %v3534_v27  ;;  %vm3541_vm14 = vweird.f32 %v5623_v30 }
 0x82c   :  { %v3556_v50 = vmul.f32 %v5625_v0, %v7547_v12  ;;  %5626 = vrcp.f32 %v7550_v33  ;;  %v3653_v37 = vsel %vm3652_vm12, %v5619_v21, %v3649_v49  ;;  %vm3542_vm1 = vmor %vm3540_vm15, %vm3541_vm14  ;;  %vm3561_vm3 = vweird.f32 %v5625_v0 }
 0x82d   :  { %v3537_v52 = vsub.f32 1.0, %v3536_v15  ;;  %v3658_v53 = vsel %vm3655_vm13, %v3657_v7, %v3653_v37  ;;  %v3676_v32 = vand.u32 2147483648, %v7550_v33  ;;  %vm7561_vm5 = vmor %vm3560_vm4, %vm3561_vm3  ;;  %v3674_v21 = vand.u32 2147483647, %v7550_v33  ;;  %v7593_v7 = vld [vmem:[#allocation13 + $0xb8] sm:$0xff]  ;;  %v7609_v37 = vld [vmem:[#allocation13 + $0xa8] sm:$0xff] }
 0x82e   :  { %v3557_v40 = vsub.f32 1.0, %v3556_v50  ;;  %v3680_v51 = vmul.f32 %v3658_v53, %v3638_v1  ;;  %vm3670_vm7 = vweird.f32 %v7550_v33 }
 0x82f   :  { %v3538_v4 = vmul.f32 %v5623_v30, %v3537_v52  ;;  %v3677_v59 = vor.u32 1.1754944e-38, %v3676_v32  ;;  %vm3675_vm10 = vcmp.eq.f32.partialorder %v3674_v21, 8.507059e+37 }
 0x830   :  { %v3558_v16 = vmul.f32 %v5625_v0, %v3557_v40  ;;  %v3681_v41 = vadd.f32 %v3680_v51, %v3466_v25  ;;  %v7590_v40 = vld [vmem:[#allocation13 + $0x50] sm:$0xff] }
 0x831   :  { %v3539_v13 = vadd.f32 %v5623_v30, %v3538_v4  ;;  %v7596_v4 = vld [vmem:[#allocation13 + $0x70] sm:$0xff] }
 0x832   :  { %v5627_v6 = vpop.eup %5626  ;;  %v3559_v22 = vadd.f32 %v5625_v0, %v3558_v16  ;;  %5628 = vtanh.f32 %v3681_v41  ;;  %v3690_v41 = vld [vmem:[#allocation2 + $0xe8] sm:$0xff] }
 0x833   :  { %v3543_v45 = vsel %vm3542_vm1, %v5623_v30, %v3539_v13  ;;  %v3666_v24 = vmul.f32 %v5627_v6, %v7550_v33  ;;  %vm3671_vm6 = vweird.f32 %v5627_v6 }
 0x834   :  { %v3548_v3 = vsel %vm3545_vm2, %v3547_v38, %v3543_v45  ;;  %v3563_v48 = vsel %vm7561_vm5, %v5625_v0, %v3559_v22  ;;  %vm3672_vm9 = vmor %vm3670_vm7, %vm3671_vm6  ;;  %v3688_v38 = vld [vmem:[#allocation2 + $0x50] sm:$0xff] }
 0x835   :  { %v3570_v42 = vmul.f32 %v3548_v3, %v3528_v54  ;;  %v3667_v35 = vsub.f32 1.0, %v3666_v24  ;;  %v3568_v63 = vsel %vm3565_vm8, %v3567_v62, %v3563_v48 }
 0x836   :  { %v3573_v15 = vsub.f32 1.0, %v3568_v63  ;;  %v3575_v49 = vmul.f32 %v3568_v63, %v7497_v61  ;;  %v7586_v61 = vld [vmem:[#allocation13 + $0x78] sm:$0xff] }
 0x837   :  { %v3571_v9 = vadd.f32 %v3570_v42, %v3463_v19  ;;  %v3668_v27 = vmul.f32 %v5627_v6, %v3667_v35 }
 0x838   :  { %v5629_v2 = vpop.eup %5628 }
 0x839   :  { %5630 = vtanh.f32 %v3571_v9  ;;  %v3669_v12 = vadd.f32 %v5627_v6, %v3668_v27 }
 0x83b   :  { %v3673_v30 = vsel %vm3672_vm9, %v5627_v6, %v3669_v12  ;;  %v3687_v6 = vld [vmem:[#allocation2 + $0x10] sm:$0xff] }
 0x83c   :  { %v3678_v29 = vsel %vm3675_vm10, %v3677_v59, %v3673_v30 }
 0x83d   :  { %v3683_v60 = vsub.f32 1.0, %v3678_v29  ;;  %v3685_v0 = vmul.f32 %v3678_v29, %v7495_v28  ;;  %v7583_v28 = vld [vmem:[#allocation13 + $0x58] sm:$0xff] }
 0x83f   :  { %v5631_v50 = vpop.eup %5630  ;;  %v3684_v52 = vmul.f32 %v5629_v2, %v3683_v60 }
 0x840   :  { %v3574_v1 = vmul.f32 %v5631_v50, %v3573_v15 }
 0x841   :  { %v7571_v43 = vadd.f32 %v3685_v0, %v3684_v52 }
 0x842   :  { %v7573_v33 = vadd.f32 %v3575_v49, %v3574_v1 }
 0x843   :  { %5353 = vmatmul.msk.f32.vlgmr.msrb.gmra.mxu3 %vm143_vm0, %v7571_v43 }
 0x844   :  { %5348 = vmatmul.msk.f32.vlgmr.msra.gmra.mxu0 %vm143_vm0, %v7573_v33  ;;  %5349 = vmatmul.msk.f32.vlgmr.msra.gmra.mxu1 %vm143_vm0, %v7573_v33 }
 0x845   :  { %5350 = vmatmul.msk.f32.vlgmr.msrb.gmra.mxu2 %vm143_vm0, %v7573_v33  ;;  %3974 = vmatpush.msra.mxu0 %v7583_v28 }
 0x846   :  { %4044 = vmatpush.msra.mxu1 %v7586_v61  ;;  %4064 = vmatpush.msrb.mxu2 %v7269_v58  ;;  %v7604_v58 = vld [vmem:[#allocation13 + $0x68] sm:$0xff] }
 0x847   :  { %3975 = vmatpush.msra.mxu0 %v7590_v40  ;;  %4084 = vmatpush.msrb.mxu3 %v7593_v7 }
 0x848   :  { %4045 = vmatpush.msra.mxu1 %v7596_v4  ;;  %4065 = vmatpush.msrb.mxu2 %v7273_v31  ;;  %v7620_v31 = vld [vmem:[#allocation13 + $0xa0] sm:$0xff] }
 0x849   :  { %3976 = vmatpush.msra.mxu0 %v7252_v8  ;;  %4085 = vmatpush.msrb.mxu3 %v7601_v20  ;;  %v7616_v8 = vld [vmem:[#allocation13 + $0x60] sm:$0xff] }
 0x84a   :  { %4046 = vmatpush.msra.mxu1 %v7604_v58  ;;  %4066 = vmatpush.msrb.mxu2 %v7278_v47  ;;  %v7623_v47 = vld [vmem:[#allocation13 + $0x18] sm:$0xff] }
 0x84b   :  { %3977 = vmatpush.msra.mxu0 %v7295_v46  ;;  %4086 = vmatpush.msrb.mxu3 %v7609_v37  ;;  %v7627_v46 = vld [vmem:[#allocation13 + $0x10] sm:$0xff] }
 0x84c   :  { %5354 = vmatmul.msk.f32.vlgmr.msrb.gmra.mxu0 %vm143_vm0, %v7571_v43  ;;  %5355 = vmatmul.msk.f32.vlgmr.msrb.gmra.mxu1 %vm143_vm0, %v7571_v43 }
 0x84d   :  { %4047 = vmatpush.msra.mxu1 %v7616_v8  ;;  %4067 = vmatpush.msrb.mxu2 %v7287_v14  ;;  %v7635_v14 = vld [vmem:[#allocation13] sm:$0xff] }
 0x84e   :  { %4087 = vmatpush.msrb.mxu3 %v7620_v31  ;;  %4160 = vmatpush.msrb.mxu0 %v7623_v47 }
 0x84f   :  { %4180 = vmatpush.msrb.mxu1 %v7528_v55 }
 0x850   :  { %4161 = vmatpush.msrb.mxu0 %v7627_v46 }
 0x851   :  { %4181 = vmatpush.msrb.mxu1 %v7532_v17 }
 0x852   :  { %4162 = vmatpush.msrb.mxu0 %v7631_v23 }
 0x853   :  { %4182 = vmatpush.msrb.mxu1 %v7536_v18 }
 0x854   :  { %4163 = vmatpush.msrb.mxu0 %v7635_v14 }
 0x855   :  { %4183 = vmatpush.msrb.mxu1 %v7540_v56 }
 0x8c1   :  { %v3713_v16 = vpop.f32.mrf.mxu0  ;;  %v3733_v53 = vpop.f32.mrf.mxu1 }
 0x8c2   :  { %v3714_v13 = vadd.f32 %v3713_v16, %v7452_v11  ;;  %v3734_v51 = vadd.f32 %v3733_v53, %v7438_v39 }
 0x8c4   :  { %v3756_v54 = vadd.f32 %v3714_v13, %v3687_v6  ;;  %v3776_v45 = vadd.f32 %v3734_v51, %v3688_v38 }
 0x8c6   :  { %v5351_v24 = vmul.f32 -1.442695, %v3756_v54  ;;  %v5352_v25 = vmul.f32 -1.442695, %v3776_v45  ;;  %v3823_v3 = vpop.f32.mrf.mxu3 }
 0x8c7   :  { %v3824_v22 = vadd.f32 %v3823_v3, %v7425_v57 }
 0x8c8   :  { %5632 = vpow2.f32 %v5351_v24  ;;  %v3753_v52 = vpop.f32.mrf.mxu2 }
 0x8c9   :  { %5634 = vpow2.f32 %v5352_v25  ;;  %v3866_v42 = vadd.f32 %v3824_v22, %v3690_v41  ;;  %v3843_v26 = vpop.f32.mrf.mxu0  ;;  %v3754_v6 = vadd.f32 %v3753_v52, %v7479_v5 }
 0x8ca   :  { %v3844_v35 = vadd.f32 %v3843_v26, %v7460_v36 }
 0x8cb   :  { %v5356_v19 = vmul.f32 -1.442695, %v3866_v42 }
 0x8cc   :  { %v3886_v32 = vadd.f32 %v3844_v35, %v3691_v34  ;;  %v3863_v35 = vpop.f32.mrf.mxu1 }
 0x8cd   :  { %5636 = vpow2.f32 %v5356_v19 }
 0x8ce   :  { %v5633_v9 = vpop.eup %5632  ;;  %v5357_v10 = vmul.f32 -1.442695, %v3886_v32 }
 0x8cf   :  { %v5635_v27 = vpop.eup %5634  ;;  %v3760_v21 = vadd.f32 1.0, %v5633_v9 }
 0x8d0   :  { %v7643_v48 = vadd.f32 1.0, %v5635_v27  ;;  %5638 = vpow2.f32 %v5357_v10  ;;  %v3689_v10 = vld [vmem:[#allocation2 + $0x90] sm:$0xff] }
 0x8d1   :  { %5640 = vrcp.f32 %v3760_v21  ;;  %v3770_v0 = vand.u32 2147483647, %v3760_v21  ;;  %v3772_v1 = vand.u32 2147483648, %v3760_v21  ;;  %vm3766_vm12 = vweird.f32 %v3760_v21 }
 0x8d2   :  { %5642 = vrcp.f32 %v7643_v48  ;;  %v3792_v51 = vand.u32 2147483648, %v7643_v48  ;;  %vm3786_vm2 = vweird.f32 %v7643_v48  ;;  %v3790_v27 = vand.u32 2147483647, %v7643_v48 }
 0x8d3   :  { %v5637_v62 = vpop.eup %5636  ;;  %vm3771_vm14 = vcmp.eq.f32.partialorder %v3770_v0, 8.507059e+37  ;;  %v3773_v45 = vor.u32 1.1754944e-38, %v3772_v1 }
 0x8d4   :  { %v3870_v12 = vadd.f32 1.0, %v5637_v62  ;;  %vm3791_vm8 = vcmp.eq.f32.partialorder %v3790_v27, 8.507059e+37  ;;  %v3916_v27 = vld [vmem:[#allocation2 + $0xe0] sm:$0xff] }
 0x8d6   :  { %v5639_v59 = vpop.eup %5638  ;;  %5644 = vrcp.f32 %v3870_v12  ;;  %v3880_v25 = vand.u32 2147483647, %v3870_v12  ;;  %v3882_v41 = vand.u32 2147483648, %v3870_v12  ;;  %vm3876_vm4 = vweird.f32 %v3870_v12 }
 0x8d7   :  { %v5641_v30 = vpop.eup %5640  ;;  %v7646_v63 = vadd.f32 1.0, %v5639_v59 }
 0x8d8   :  { %v5643_v29 = vpop.eup %5642  ;;  %v3762_v60 = vmul.f32 %v5641_v30, %v3760_v21  ;;  %vm3767_vm11 = vweird.f32 %v5641_v30  ;;  %vm3881_vm6 = vcmp.eq.f32.partialorder %v3880_v25, 8.507059e+37 }
 0x8d9   :  { %v3782_v2 = vmul.f32 %v5643_v29, %v7643_v48  ;;  %5646 = vrcp.f32 %v7646_v63  ;;  %vm3768_vm13 = vmor %vm3766_vm12, %vm3767_vm11  ;;  %vm3787_vm15 = vweird.f32 %v5643_v29  ;;  %v3902_v48 = vand.u32 2147483648, %v7646_v63 }
 0x8da   :  { %v3763_v15 = vsub.f32 1.0, %v3762_v60  ;;  %vm7654_vm3 = vmor %vm3786_vm2, %vm3787_vm15  ;;  %v3883_v60 = vor.u32 1.1754944e-38, %v3882_v41  ;;  %vm3896_vm9 = vweird.f32 %v7646_v63 }
 0x8db   :  { %v3783_v50 = vsub.f32 1.0, %v3782_v2  ;;  %v3793_v2 = vor.u32 1.1754944e-38, %v3792_v51 }
 0x8dc   :  { %v5645_v49 = vpop.eup %5644  ;;  %v3764_v16 = vmul.f32 %v5641_v30, %v3763_v15 }
 0x8dd   :  { %v3784_v53 = vmul.f32 %v5643_v29, %v3783_v50  ;;  %v3872_v13 = vmul.f32 %v5645_v49, %v3870_v12  ;;  %vm3877_vm1 = vweird.f32 %v5645_v49 }
 0x8de   :  { %v3765_v38 = vadd.f32 %v5641_v30, %v3764_v16  ;;  %vm3878_vm5 = vmor %vm3876_vm4, %vm3877_vm1  ;;  %v3692_v16 = vld [vmem:[#allocation2 + $0x168] sm:$0xff] }
 0x8df   :  { %v5647_v54 = vpop.eup %5646  ;;  %v3873_v24 = vsub.f32 1.0, %v3872_v13  ;;  %v3785_v26 = vadd.f32 %v5643_v29, %v3784_v53  ;;  %v3900_v53 = vand.u32 2147483647, %v7646_v63 }
 0x8e0   :  { %v3769_v3 = vsel %vm3768_vm13, %v5641_v30, %v3765_v38  ;;  %v3892_v22 = vmul.f32 %v5647_v54, %v7646_v63  ;;  %v3864_v30 = vadd.f32 %v3863_v35, %v7473_v44  ;;  %vm3897_vm7 = vweird.f32 %v5647_v54  ;;  %v7702_v35 = vld [vmem:[#allocation13 + $0x40] sm:$0xff] }
 0x8e1   :  { %v3774_v42 = vsel %vm3771_vm14, %v3773_v45, %v3769_v3  ;;  %v3874_v19 = vmul.f32 %v5645_v49, %v3873_v24  ;;  %v3789_v15 = vsel %vm7654_vm3, %v5643_v29, %v3785_v26  ;;  %vm3898_vm10 = vmor %vm3896_vm9, %vm3897_vm7  ;;  %vm3901_vm11 = vcmp.eq.f32.partialorder %v3900_v53, 8.507059e+37  ;;  %v7695_v26 = vld [vmem:[#allocation13 + $0x88] sm:$0xff] }
 0x8e2   :  { %v3796_v34 = vmul.f32 %v3774_v42, %v3754_v6  ;;  %v3893_v32 = vsub.f32 1.0, %v3892_v22  ;;  %v3794_v1 = vsel %vm3791_vm8, %v3793_v2, %v3789_v15  ;;  %v7684_v42 = vld [vmem:[#allocation13 + $0x90] sm:$0xff] }
 0x8e3   :  { %v3875_v21 = vadd.f32 %v5645_v49, %v3874_v19  ;;  %v3799_v29 = vsub.f32 1.0, %v3794_v1  ;;  %v3801_v45 = vmul.f32 %v3794_v1, %v7573_v33  ;;  %v7677_v33 = vld [vmem:[#allocation13 + $0x98] sm:$0xff]  ;;  %v7706_v19 = vld [vmem:[#allocation13 + $0x80] sm:$0xff] }
 0x8e4   :  { %v3797_v62 = vadd.f32 %v3796_v34, %v3689_v10  ;;  %v3894_v59 = vmul.f32 %v5647_v54, %v3893_v32 }
 0x8e5   :  { %v3879_v50 = vsel %vm3878_vm5, %v5645_v49, %v3875_v21  ;;  %v3903_v49 = vor.u32 1.1754944e-38, %v3902_v48 }
 0x8e6   :  { %5648 = vtanh.f32 %v3797_v62  ;;  %v3884_v52 = vsel %vm3881_vm6, %v3883_v60, %v3879_v50  ;;  %v3895_v0 = vadd.f32 %v5647_v54, %v3894_v59  ;;  %v3914_v60 = vld [vmem:[#allocation2 + $0x58] sm:$0xff] }
 0x8e7   :  { %v3906_v12 = vmul.f32 %v3884_v52, %v3864_v30  ;;  %v3913_v30 = vld [vmem:[#allocation2 + $0x18] sm:$0xff] }
 0x8e8   :  { %v3899_v51 = vsel %vm3898_vm10, %v5647_v54, %v3895_v0 }
 0x8e9   :  { %v3907_v13 = vadd.f32 %v3906_v12, %v3692_v16  ;;  %v3904_v24 = vsel %vm3901_vm11, %v3903_v49, %v3899_v51  ;;  %v3917_v12 = vld [vmem:[#allocation2 + $0x120] sm:$0xff] }
 0x8ea   :  { %v3909_v3 = vsub.f32 1.0, %v3904_v24  ;;  %v3911_v54 = vmul.f32 %v3904_v24, %v7571_v43  ;;  %v7690_v43 = vld [vmem:[#allocation13 + $0x48] sm:$0xff] }
 0x8eb   :  { %5650 = vtanh.f32 %v3907_v13 }
 0x8ec   :  { %v5649_v6 = vpop.eup %5648 }
 0x8ed   :  { %v3800_v38 = vmul.f32 %v5649_v6, %v3799_v29 }
 0x8ef   :  { %v7666_v25 = vadd.f32 %v3801_v45, %v3800_v38 }
 0x8f1   :  { %v5651_v22 = vpop.eup %5650  ;;  %5358 = vmatmul.msk.f32.vlgmr.msra.gmra.mxu2 %vm143_vm0, %v7666_v25  ;;  %5359 = vmatmul.msk.f32.vlgmr.msra.gmra.mxu3 %vm143_vm0, %v7666_v25 }
 0x8f2   :  { %v3910_v63 = vmul.f32 %v5651_v22, %v3909_v3  ;;  %5360 = vmatmul.msk.f32.vlgmr.msra.gmra.mxu0 %vm143_vm0, %v7666_v25  ;;  %4270 = vmatpush.msra.mxu3 %v7586_v61 }
 0x8f3   :  { %4200 = vmatpush.msra.mxu2 %v7583_v28  ;;  %4290 = vmatpush.msra.mxu0 %v7677_v33 }
 0x8f4   :  { %v7680_v41 = vadd.f32 %v3911_v54, %v3910_v63  ;;  %4271 = vmatpush.msra.mxu3 %v7596_v4 }
 0x8f5   :  { %4201 = vmatpush.msra.mxu2 %v7590_v40  ;;  %4291 = vmatpush.msra.mxu0 %v7684_v42 }
 0x8f6   :  { %5363 = vmatmul.msk.f32.vlgmr.msra.gmra.mxu1 %vm143_vm0, %v7680_v41  ;;  %4272 = vmatpush.msra.mxu3 %v7604_v58 }
 0x8f7   :  { %4202 = vmatpush.msra.mxu2 %v7690_v43  ;;  %4310 = vmatpush.msra.mxu1 %v7593_v7 }
 0x8f8   :  { %4273 = vmatpush.msra.mxu3 %v7616_v8  ;;  %4292 = vmatpush.msra.mxu0 %v7695_v26 }
 0x8f9   :  { %5364 = vmatmul.msk.f32.vlgmr.msrb.gmra.mxu2 %vm143_vm0, %v7680_v41  ;;  %5365 = vmatmul.msk.f32.vlgmr.msrb.gmra.mxu3 %vm143_vm0, %v7680_v41 }
 0x8fa   :  { %4203 = vmatpush.msra.mxu2 %v7702_v35  ;;  %4311 = vmatpush.msra.mxu1 %v7601_v20 }
 0x8fb   :  { %4293 = vmatpush.msra.mxu0 %v7706_v19  ;;  %4406 = vmatpush.msrb.mxu3 %v7528_v55 }
 0x8fc   :  { %4386 = vmatpush.msrb.mxu2 %v7623_v47  ;;  %4312 = vmatpush.msra.mxu1 %v7609_v37 }
 0x8fd   :  { %4407 = vmatpush.msrb.mxu3 %v7532_v17 }
 0x8fe   :  { %4387 = vmatpush.msrb.mxu2 %v7627_v46  ;;  %4313 = vmatpush.msra.mxu1 %v7620_v31 }
 0x8ff   :  { %4408 = vmatpush.msrb.mxu3 %v7536_v18 }
 0x900   :  { %4388 = vmatpush.msrb.mxu2 %v7631_v23 }
 0x901   :  { %4409 = vmatpush.msrb.mxu3 %v7540_v56 }
 0x902   :  { %4389 = vmatpush.msrb.mxu2 %v7635_v14 }
 0x973   :  { %v4049_v34 = vpop.f32.mrf.mxu1 }
 0x974   :  { %v4050_v32 = vadd.f32 %v4049_v34, %v7425_v57  ;;  %v3939_v9 = vpop.f32.mrf.mxu2  ;;  %v3959_v10 = vpop.f32.mrf.mxu3 }
 0x975   :  { %v3940_v21 = vadd.f32 %v3939_v9, %v7452_v11  ;;  %v3960_v62 = vadd.f32 %v3959_v10, %v7438_v39 }
 0x976   :  { %v4092_v59 = vadd.f32 %v4050_v32, %v3916_v27 }
 0x977   :  { %v3982_v2 = vadd.f32 %v3940_v21, %v3913_v30  ;;  %v4002_v15 = vadd.f32 %v3960_v62, %v3914_v60  ;;  %v3979_v30 = vpop.f32.mrf.mxu0 }
 0x978   :  { %v5366_v50 = vmul.f32 -1.442695, %v4092_v59 }
 0x979   :  { %v5361_v52 = vmul.f32 -1.442695, %v3982_v2  ;;  %v5362_v0 = vmul.f32 -1.442695, %v4002_v15 }
 0x97a   :  { %5652 = vpow2.f32 %v5366_v50 }
 0x97b   :  { %5654 = vpow2.f32 %v5361_v52 }
 0x97c   :  { %5656 = vpow2.f32 %v5362_v0  ;;  %v4069_v48 = vpop.f32.mrf.mxu2  ;;  %v4089_v59 = vpop.f32.mrf.mxu3 }
 0x97d   :  { %v4070_v57 = vadd.f32 %v4069_v48, %v7460_v36  ;;  %v4090_v0 = vadd.f32 %v4089_v59, %v7473_v44 }
 0x97f   :  { %v4112_v1 = vadd.f32 %v4070_v57, %v3917_v12  ;;  %v3980_v57 = vadd.f32 %v3979_v30, %v7479_v5 }
 0x980   :  { %v5653_v16 = vpop.eup %5652 }
 0x981   :  { %v5655_v11 = vpop.eup %5654  ;;  %v4096_v53 = vadd.f32 1.0, %v5653_v16  ;;  %v5367_v51 = vmul.f32 -1.442695, %v4112_v1 }
 0x982   :  { %v5657_v39 = vpop.eup %5656  ;;  %v3986_v13 = vadd.f32 1.0, %v5655_v11 }
 0x983   :  { %5658 = vrcp.f32 %v4096_v53  ;;  %v7723_v29 = vadd.f32 1.0, %v5657_v39  ;;  %v4106_v34 = vand.u32 2147483647, %v4096_v53  ;;  %v4108_v32 = vand.u32 2147483648, %v4096_v53 }
 0x984   :  { %5660 = vrcp.f32 %v3986_v13  ;;  %v3998_v9 = vand.u32 2147483648, %v3986_v13  ;;  %v3996_v62 = vand.u32 2147483647, %v3986_v13  ;;  %vm4102_vm14 = vweird.f32 %v4096_v53 }
 0x985   :  { %5662 = vrcp.f32 %v7723_v29  ;;  %vm3992_vm15 = vweird.f32 %v3986_v13  ;;  %v4109_v50 = vor.u32 1.1754944e-38, %v4108_v32  ;;  %vm4107_vm3 = vcmp.eq.f32.partialorder %v4106_v34, 8.507059e+37 }
 0x986   :  { %5664 = vpow2.f32 %v5367_v51  ;;  %v3999_v52 = vor.u32 1.1754944e-38, %v3998_v9  ;;  %vm3997_vm4 = vcmp.eq.f32.partialorder %v3996_v62, 8.507059e+37  ;;  %vm4012_vm6 = vweird.f32 %v7723_v29 }
 0x987   :  { %v4016_v44 = vand.u32 2147483647, %v7723_v29 }
 0x989   :  { %v5659_v49 = vpop.eup %5658  ;;  %vm4017_vm8 = vcmp.eq.f32.partialorder %v4016_v44, 8.507059e+37  ;;  %v4143_v44 = vld [vmem:[#allocation2 + $0x118] sm:$0xff] }
 0x98a   :  { %v5661_v6 = vpop.eup %5660  ;;  %v4098_v38 = vmul.f32 %v5659_v49, %v4096_v53  ;;  %vm4103_vm12 = vweird.f32 %v5659_v49 }
 0x98b   :  { %v5663_v45 = vpop.eup %5662  ;;  %v3988_v36 = vmul.f32 %v5661_v6, %v3986_v13  ;;  %vm3993_vm13 = vweird.f32 %v5661_v6  ;;  %vm4104_vm1 = vmor %vm4102_vm14, %vm4103_vm12  ;;  %v4018_v13 = vand.u32 2147483648, %v7723_v29 }
 0x98c   :  { %v5665_v24 = vpop.eup %5664  ;;  %v4008_v3 = vmul.f32 %v5663_v45, %v7723_v29  ;;  %v4099_v22 = vsub.f32 1.0, %v4098_v38  ;;  %vm3994_vm2 = vmor %vm3992_vm15, %vm3993_vm13  ;;  %vm4013_vm5 = vweird.f32 %v5663_v45  ;;  %v3918_v38 = vld [vmem:[#allocation2 + $0x160] sm:$0xff] }
 0x98d   :  { %v3989_v63 = vsub.f32 1.0, %v3988_v36  ;;  %v4116_v54 = vadd.f32 1.0, %v5665_v24  ;;  %v3915_v36 = vld [vmem:[#allocation2 + $0x98] sm:$0xff]  ;;  %vm4014_vm7 = vmor %vm4012_vm6, %vm4013_vm5 }
 0x98e   :  { %v4009_v10 = vsub.f32 1.0, %v4008_v3  ;;  %v4100_v27 = vmul.f32 %v5659_v49, %v4099_v22  ;;  %v4019_v22 = vor.u32 1.1754944e-38, %v4018_v13  ;;  %v7795_v13 = vld [vmem:[%s8011_s8 + $0x20] sm:$0xff] }
 0x98f   :  { %v3990_v21 = vmul.f32 %v5661_v6, %v3989_v63  ;;  %5666 = vrcp.f32 %v4116_v54  ;;  %v4128_v63 = vand.u32 2147483648, %v4116_v54  ;;  %v4126_v32 = vand.u32 2147483647, %v4116_v54 }
 0x990   :  { %v4010_v60 = vmul.f32 %v5663_v45, %v4009_v10  ;;  %v4101_v2 = vadd.f32 %v5659_v49, %v4100_v27  ;;  %vm4122_vm10 = vweird.f32 %v4116_v54 }
 0x991   :  { %v3991_v15 = vadd.f32 %v5661_v6, %v3990_v21  ;;  %v4129_v27 = vor.u32 1.1754944e-38, %v4128_v63  ;;  %vm4127_vm12 = vcmp.eq.f32.partialorder %v4126_v32, 8.507059e+37 }
 0x992   :  { %v4105_v48 = vsel %vm4104_vm1, %v5659_v49, %v4101_v2  ;;  %v4011_v11 = vadd.f32 %v5663_v45, %v4010_v60 }
 0x993   :  { %v3995_v12 = vsel %vm3994_vm2, %v5661_v6, %v3991_v15  ;;  %v4110_v1 = vsel %vm4107_vm3, %v4109_v50, %v4105_v48  ;;  %v4139_v48 = vld [vmem:[#allocation2 + $0x20] sm:$0xff] }
 0x994   :  { %v4000_v16 = vsel %vm3997_vm4, %v3999_v52, %v3995_v12  ;;  %v4132_v39 = vmul.f32 %v4110_v1, %v4090_v0  ;;  %v4015_v6 = vsel %vm4014_vm7, %v5663_v45, %v4011_v11 }
 0x995   :  { %v5667_v53 = vpop.eup %5666  ;;  %v4022_v51 = vmul.f32 %v4000_v16, %v3980_v57  ;;  %v4020_v9 = vsel %vm4017_vm8, %v4019_v22, %v4015_v6  ;;  %v4140_v57 = vld [vmem:[#allocation2 + $0x60] sm:$0xff] }
 0x996   :  { %v4118_v49 = vmul.f32 %v5667_v53, %v4116_v54  ;;  %v4133_v24 = vadd.f32 %v4132_v39, %v3918_v38  ;;  %vm4123_vm9 = vweird.f32 %v5667_v53  ;;  %v4025_v62 = vsub.f32 1.0, %v4020_v9  ;;  %v7777_v54 = vld [vmem:[%s8011_s8] sm:$0xff] }
 0x997   :  { %v4023_v5 = vadd.f32 %v4022_v51, %v3915_v36  ;;  %vm4124_vm11 = vmor %vm4122_vm10, %vm4123_vm9  ;;  %v4027_v2 = vmul.f32 %v4020_v9, %v7666_v25  ;;  %v4142_v36 = vld [vmem:[#allocation2 + $0xd8] sm:$0xff] }
 0x998   :  { %v4119_v3 = vsub.f32 1.0, %v4118_v49  ;;  %5668 = vtanh.f32 %v4133_v24 }
 0x999   :  { %5670 = vtanh.f32 %v4023_v5 }
 0x99a   :  { %v4120_v34 = vmul.f32 %v5667_v53, %v4119_v3 }
 0x99c   :  { %v4121_v10 = vadd.f32 %v5667_v53, %v4120_v34 }
 0x99e   :  { %v5669_v29 = vpop.eup %5668  ;;  %v4125_v21 = vsel %vm4124_vm11, %v5667_v53, %v4121_v10  ;;  %v7789_v53 = vld [vmem:[%s8011_s8 + $0x18] sm:$0xff] }
 0x99f   :  { %v5671_v59 = vpop.eup %5670  ;;  %v4130_v45 = vsel %vm4127_vm12, %v4129_v27, %v4125_v21 }
 0x9a0   :  { %v4135_v30 = vsub.f32 1.0, %v4130_v45  ;;  %v4026_v60 = vmul.f32 %v5671_v59, %v4025_v62  ;;  %v4137_v50 = vmul.f32 %v4130_v45, %v7680_v41 }
 0x9a2   :  { %v4136_v15 = vmul.f32 %v5669_v29, %v4135_v30  ;;  %v7734_v52 = vadd.f32 %v4027_v2, %v4026_v60 }
 0x9a4   :  { %v7736_v0 = vadd.f32 %v4137_v50, %v4136_v15  ;;  %5368 = vmatmul.msk.f32.vlgmr.msrb.gmra.mxu0 %vm143_vm0, %v7734_v52  ;;  %5369 = vmatmul.msk.f32.vlgmr.msrb.gmra.mxu1 %vm143_vm0, %v7734_v52 }
 0x9a5   :  { %5370 = vmatmul.msk.f32.vlgmr.msra.gmra.mxu2 %vm143_vm0, %v7734_v52  ;;  %4426 = vmatpush.msrb.mxu0 %v7583_v28 }
 0x9a6   :  { %5373 = vmatmul.msk.f32.vlgmr.msra.gmra.mxu3 %vm143_vm0, %v7736_v0  ;;  %4496 = vmatpush.msrb.mxu1 %v7586_v61 }
 0x9a7   :  { %4427 = vmatpush.msrb.mxu0 %v7590_v40  ;;  %4516 = vmatpush.msra.mxu2 %v7677_v33 }
 0x9a8   :  { %4497 = vmatpush.msrb.mxu1 %v7596_v4  ;;  %4536 = vmatpush.msra.mxu3 %v7593_v7 }
 0x9a9   :  { %4428 = vmatpush.msrb.mxu0 %v7690_v43  ;;  %4517 = vmatpush.msra.mxu2 %v7684_v42 }
 0x9aa   :  { %4498 = vmatpush.msrb.mxu1 %v7604_v58  ;;  %4537 = vmatpush.msra.mxu3 %v7601_v20 }
 0x9ab   :  { %4429 = vmatpush.msrb.mxu0 %v7702_v35  ;;  %4518 = vmatpush.msra.mxu2 %v7695_v26 }
 0x9ac   :  { %5374 = vmatmul.msk.f32.vlgmr.msra.gmra.mxu0 %vm143_vm0, %v7736_v0  ;;  %5375 = vmatmul.msk.f32.vlgmr.msra.gmra.mxu1 %vm143_vm0, %v7736_v0 }
 0x9ad   :  { %4499 = vmatpush.msrb.mxu1 %v7616_v8  ;;  %4538 = vmatpush.msra.mxu3 %v7609_v37 }
 0x9ae   :  { %4519 = vmatpush.msra.mxu2 %v7706_v19  ;;  %4612 = vmatpush.msra.mxu0 %v7623_v47 }
 0x9af   :  { %4539 = vmatpush.msra.mxu3 %v7620_v31  ;;  %4632 = vmatpush.msra.mxu1 %v7528_v55 }
 0x9b0   :  { %4613 = vmatpush.msra.mxu0 %v7627_v46 }
 0x9b1   :  { %4633 = vmatpush.msra.mxu1 %v7532_v17  ;;  %v7783_v17 = vld [vmem:[%s8011_s8 + $0x8] sm:$0xff] }
 0x9b2   :  { %4614 = vmatpush.msra.mxu0 %v7631_v23 }
 0x9b3   :  { %4634 = vmatpush.msra.mxu1 %v7536_v18 }
 0x9b4   :  { %4615 = vmatpush.msra.mxu0 %v7635_v14 }
 0x9b5   :  { %4635 = vmatpush.msra.mxu1 %v7540_v56 }
 0xa21   :  { %v4165_v25 = vpop.f32.mrf.mxu0  ;;  %v4185_v41 = vpop.f32.mrf.mxu1 }
 0xa22   :  { %v4166_v55 = vadd.f32 %v7777_v54, %v4165_v25  ;;  %v4186_v18 = vadd.f32 %v7783_v17, %v4185_v41 }
 0xa24   :  { %v4208_v12 = vadd.f32 %v4166_v55, %v4139_v48  ;;  %v4228_v56 = vadd.f32 %v4186_v18, %v4140_v57  ;;  %v7804_v48 = vld [vmem:[%s8011_s8 + $0x10] sm:$0xff] }
 0xa26   :  { %v5371_v1 = vmul.f32 -1.442695, %v4208_v12  ;;  %v5372_v16 = vmul.f32 -1.442695, %v4228_v56 }
 0xa28   :  { %5672 = vpow2.f32 %v5371_v1  ;;  %v4205_v25 = vpop.f32.mrf.mxu2 }
 0xa29   :  { %5674 = vpow2.f32 %v5372_v16  ;;  %v4275_v11 = vpop.f32.mrf.mxu3  ;;  %v4295_v39 = vpop.f32.mrf.mxu0  ;;  %v4206_v57 = vadd.f32 %v7804_v48, %v4205_v25 }
 0xa2a   :  { %v4276_v51 = vadd.f32 %v7789_v53, %v4275_v11  ;;  %v4296_v38 = vadd.f32 %v7795_v13, %v4295_v39 }
 0xa2c   :  { %v4318_v49 = vadd.f32 %v4276_v51, %v4142_v36  ;;  %v4338_v24 = vadd.f32 %v4296_v38, %v4143_v44  ;;  %v4141_v36 = vld [vmem:[#allocation2 + $0xa0] sm:$0xff] }
 0xa2e   :  { %v5673_v5 = vpop.eup %5672  ;;  %v5376_v6 = vmul.f32 -1.442695, %v4318_v49  ;;  %v5377_v63 = vmul.f32 -1.442695, %v4338_v24 }
 0xa2f   :  { %v5675_v3 = vpop.eup %5674  ;;  %v4212_v22 = vadd.f32 1.0, %v5673_v5 }
 0xa30   :  { %v4232_v34 = vadd.f32 1.0, %v5675_v3  ;;  %5676 = vpow2.f32 %v5376_v6 }
 0xa31   :  { %5678 = vrcp.f32 %v4212_v22  ;;  %v4224_v60 = vand.u32 2147483648, %v4212_v22  ;;  %v4222_v15 = vand.u32 2147483647, %v4212_v22  ;;  %vm4218_vm14 = vweird.f32 %v4212_v22 }
 0xa32   :  { %5680 = vrcp.f32 %v4232_v34  ;;  %v4244_v39 = vand.u32 2147483648, %v4232_v34  ;;  %vm4238_vm3 = vweird.f32 %v4232_v34  ;;  %v4242_v44 = vand.u32 2147483647, %v4232_v34 }
 0xa33   :  { %5682 = vpow2.f32 %v5377_v63  ;;  %v4225_v18 = vor.u32 1.1754944e-38, %v4224_v60  ;;  %vm4223_vm1 = vcmp.eq.f32.partialorder %v4222_v15, 8.507059e+37 }
 0xa34   :  { %vm4243_vm7 = vcmp.eq.f32.partialorder %v4242_v44, 8.507059e+37 }
 0xa36   :  { %v5677_v32 = vpop.eup %5676 }
 0xa37   :  { %v5679_v9 = vpop.eup %5678  ;;  %v4322_v10 = vadd.f32 1.0, %v5677_v32 }
 0xa38   :  { %v5681_v27 = vpop.eup %5680  ;;  %v4214_v29 = vmul.f32 %v5679_v9, %v4212_v22  ;;  %vm4219_vm13 = vweird.f32 %v5679_v9 }
 0xa39   :  { %v5683_v21 = vpop.eup %5682  ;;  %v4234_v62 = vmul.f32 %v5681_v27, %v4232_v34  ;;  %5684 = vrcp.f32 %v4322_v10  ;;  %vm4220_vm15 = vmor %vm4218_vm14, %vm4219_vm13  ;;  %vm4239_vm2 = vweird.f32 %v5681_v27  ;;  %v4334_v24 = vand.u32 2147483648, %v4322_v10 }
 0xa3a   :  { %v4215_v59 = vsub.f32 1.0, %v4214_v29  ;;  %v7798_v45 = vadd.f32 1.0, %v5683_v21  ;;  %vm7808_vm4 = vmor %vm4238_vm3, %vm4239_vm2  ;;  %v4332_v22 = vand.u32 2147483647, %v4322_v10  ;;  %v4245_v29 = vor.u32 1.1754944e-38, %v4244_v39 }
 0xa3b   :  { %v4235_v30 = vsub.f32 1.0, %v4234_v62  ;;  %vm4328_vm6 = vweird.f32 %v4322_v10  ;;  %v4335_v62 = vor.u32 1.1754944e-38, %v4334_v24 }
 0xa3c   :  { %v4216_v2 = vmul.f32 %v5679_v9, %v4215_v59  ;;  %5686 = vrcp.f32 %v7798_v45  ;;  %vm4333_vm9 = vcmp.eq.f32.partialorder %v4332_v22, 8.507059e+37  ;;  %vm4348_vm11 = vweird.f32 %v7798_v45  ;;  %v4369_v22 = vld [vmem:[#allocation2 + $0x110] sm:$0xff] }
 0xa3d   :  { %v4236_v50 = vmul.f32 %v5681_v27, %v4235_v30  ;;  %v7817_v30 = vld [vmem:[%s8011_s8 + $0x28] sm:$0xff]  ;;  %s6015_s8 = smov [#allocation15]  }
 0xa3e   :  { %v4217_v41 = vadd.f32 %v5679_v9, %v4216_v2  ;;  %s5050_s5 = sshll.u32 %s6015_s8, 4  ;;  %s5051_s5 = int_to_ptr.vmem [resolvable:$true] %s5050_s5 }
 0xa3f   :  { %v5685_v55 = vpop.eup %5684  ;;  %v4237_v16 = vadd.f32 %v5681_v27, %v4236_v50  ;;  %v4354_v50 = vand.u32 2147483648, %v7798_v45 }
 0xa40   :  { %v4221_v12 = vsel %vm4220_vm15, %v5679_v9, %v4217_v41  ;;  %v4324_v56 = vmul.f32 %v5685_v55, %v4322_v10  ;;  %vm4329_vm5 = vweird.f32 %v5685_v55  ;;  %v4315_v9 = vpop.f32.mrf.mxu1  ;;  %v4144_v41 = vld [vmem:[#allocation2 + $0x158] sm:$0xff] }
 0xa41   :  { %v4226_v1 = vsel %vm4223_vm1, %v4225_v18, %v4221_v12  ;;  %v4241_v63 = vsel %vm7808_vm4, %v5681_v27, %v4237_v16  ;;  %vm4330_vm8 = vmor %vm4328_vm6, %vm4329_vm5  ;;  %v4316_v60 = vadd.f32 %v7817_v30, %v4315_v9  ;;  %v4352_v18 = vand.u32 2147483647, %v7798_v45 }
 0xa42   :  { %v5687_v11 = vpop.eup %5686  ;;  %v4248_v51 = vmul.f32 %v4226_v1, %v4206_v57  ;;  %v4325_v38 = vsub.f32 1.0, %v4324_v56  ;;  %v4246_v59 = vsel %vm4243_vm7, %v4245_v29, %v4241_v63  ;;  %v4355_v16 = vor.u32 1.1754944e-38, %v4354_v50 }
 0xa43   :  { %v4344_v49 = vmul.f32 %v5687_v11, %v7798_v45  ;;  %vm4349_vm10 = vweird.f32 %v5687_v11  ;;  %v4251_v25 = vsub.f32 1.0, %v4246_v59  ;;  %v4253_v1 = vmul.f32 %v4246_v59, %v7734_v52 }
 0xa44   :  { %v4249_v6 = vadd.f32 %v4248_v51, %v4141_v36  ;;  %v4326_v3 = vmul.f32 %v5685_v55, %v4325_v38  ;;  %vm4350_vm12 = vmor %vm4348_vm11, %vm4349_vm10  ;;  %vm4353_vm13 = vcmp.eq.f32.partialorder %v4352_v18, 8.507059e+37 }
 0xa45   :  { %v4345_v32 = vsub.f32 1.0, %v4344_v49  ;;  %v4368_v49 = vld [vmem:[#allocation2 + $0xd0] sm:$0xff] }
 0xa46   :  { %5688 = vtanh.f32 %v4249_v6  ;;  %v4327_v21 = vadd.f32 %v5685_v55, %v4326_v3 }
 0xa47   :  { %v4346_v34 = vmul.f32 %v5687_v11, %v4345_v32 }
 0xa48   :  { %v4331_v2 = vsel %vm4330_vm8, %v5685_v55, %v4327_v21 }
 0xa49   :  { %v4336_v27 = vsel %vm4333_vm9, %v4335_v62, %v4331_v2  ;;  %v4347_v15 = vadd.f32 %v5687_v11, %v4346_v34 }
 0xa4a   :  { %v4358_v10 = vmul.f32 %v4336_v27, %v4316_v60 }
 0xa4b   :  { %v4351_v55 = vsel %vm4350_vm12, %v5687_v11, %v4347_v15 }
 0xa4c   :  { %v5689_v57 = vpop.eup %5688  ;;  %v4359_v12 = vadd.f32 %v4358_v10, %v4144_v41  ;;  %v4356_v51 = vsel %vm4353_vm13, %v4355_v16, %v4351_v55 }
 0xa4d   :  { %v4252_v56 = vmul.f32 %v5689_v57, %v4251_v25  ;;  %v4361_v45 = vsub.f32 1.0, %v4356_v51  ;;  %v4363_v38 = vmul.f32 %v4356_v51, %v7736_v0  ;;  %v4366_v0 = vld [vmem:[#allocation2 + $0x68] sm:$0xff] }
 0xa4e   :  { %5690 = vtanh.f32 %v4359_v12 }
 0xa4f   :  { %v7824_v39 = vadd.f32 %v4253_v1, %v4252_v56 }
 0xa51   :  { %5378 = vmatmul.msk.f32.vlgmr.msrb.gmra.mxu2 %vm143_vm0, %v7824_v39  ;;  %5379 = vmatmul.msk.f32.vlgmr.msrb.gmra.mxu3 %vm143_vm0, %v7824_v39 }
 0xa52   :  { %5380 = vmatmul.msk.f32.vlgmr.msrb.gmra.mxu0 %vm143_vm0, %v7824_v39  ;;  %4722 = vmatpush.msrb.mxu3 %v7586_v61  ;;  %v5813_v61 = vld [vmem:[#allocation13 + $0x30] sm:$0xff] }
 0xa53   :  { %4652 = vmatpush.msrb.mxu2 %v7583_v28  ;;  %4742 = vmatpush.msrb.mxu0 %v7677_v33  ;;  %v5812_v28 = vld [vmem:[#allocation13 + $0x38] sm:$0xff] }
 0xa54   :  { %v5691_v52 = vpop.eup %5690  ;;  %4723 = vmatpush.msrb.mxu3 %v7596_v4 }
 0xa55   :  { %v4362_v11 = vmul.f32 %v5691_v52, %v4361_v45  ;;  %4653 = vmatpush.msrb.mxu2 %v7590_v40  ;;  %4743 = vmatpush.msrb.mxu0 %v7684_v42  ;;  %v5814_v40 = vld [vmem:[#allocation13 + $0x28] sm:$0xff] }
 0xa56   :  { %4724 = vmatpush.msrb.mxu3 %v7604_v58 }
 0xa57   :  { %v7840_v36 = vadd.f32 %v4363_v38, %v4362_v11  ;;  %4654 = vmatpush.msrb.mxu2 %v7690_v43  ;;  %4744 = vmatpush.msrb.mxu0 %v7695_v26 }
 0xa58   :  { %4725 = vmatpush.msrb.mxu3 %v7616_v8 }
 0xa59   :  { %5383 = vmatmul.msk.f32.vlgmr.msrb.gmra.mxu1 %vm143_vm0, %v7840_v36  ;;  %5384 = vmatmul.msk.f32.vlgmr.msra.gmra.mxu2 %vm143_vm0, %v7840_v36 }
 0xa5a   :  { %5385 = vmatmul.msk.f32.vlgmr.msra.gmra.mxu3 %vm143_vm0, %v7840_v36  ;;  %4655 = vmatpush.msrb.mxu2 %v7702_v35 }
 0xa5b   :  { %4762 = vmatpush.msrb.mxu1 %v7593_v7  ;;  %4745 = vmatpush.msrb.mxu0 %v7706_v19  ;;  %v5815_v7 = vld [vmem:[#allocation13 + $0x20] sm:$0xff] }
 0xa5c   :  { %4838 = vmatpush.msra.mxu2 %v7623_v47  ;;  %4858 = vmatpush.msra.mxu3 %v5812_v28 }
 0xa5d   :  { %4763 = vmatpush.msrb.mxu1 %v7601_v20 }
 0xa5e   :  { %4839 = vmatpush.msra.mxu2 %v7627_v46  ;;  %4859 = vmatpush.msra.mxu3 %v5813_v61  ;;  %v4365_v46 = vld [vmem:[#allocation2 + $0x28] sm:$0xff] }
 0xa5f   :  { %4764 = vmatpush.msrb.mxu1 %v7609_v37 }
 0xa60   :  { %4840 = vmatpush.msra.mxu2 %v7631_v23  ;;  %4860 = vmatpush.msra.mxu3 %v5814_v40 }
 0xa61   :  { %4765 = vmatpush.msrb.mxu1 %v7620_v31 }
 0xa62   :  { %4841 = vmatpush.msra.mxu2 %v7635_v14  ;;  %4861 = vmatpush.msra.mxu3 %v5815_v7 }
 0xacf   :  { %v4431_v25 = vpop.f32.mrf.mxu0 }
 0xad0   :  { %v4432_v16 = vadd.f32 %v7804_v48, %v4431_v25 }
 0xad4   :  { %v4391_v4 = vpop.f32.mrf.mxu2  ;;  %v4411_v58 = vpop.f32.mrf.mxu3 }
 0xad5   :  { %v4392_v20 = vadd.f32 %v7777_v54, %v4391_v4  ;;  %v4412_v8 = vadd.f32 %v7783_v17, %v4411_v58 }
 0xad6   :  { %v4501_v47 = vpop.f32.mrf.mxu1 }
 0xad7   :  { %v4502_v37 = vadd.f32 %v7789_v53, %v4501_v47  ;;  %v4434_v23 = vadd.f32 %v4392_v20, %v4365_v46  ;;  %v4454_v44 = vadd.f32 %v4412_v8, %v4366_v0 }
 0xad9   :  { %v4544_v24 = vadd.f32 %v4502_v37, %v4368_v49  ;;  %v5381_v31 = vmul.f32 -1.442695, %v4434_v23  ;;  %v5382_v5 = vmul.f32 -1.442695, %v4454_v44 }
 0xadb   :  { %v5386_v14 = vmul.f32 -1.442695, %v4544_v24  ;;  %5692 = vpow2.f32 %v5381_v31  ;;  %v4367_v24 = vld [vmem:[#allocation2 + $0xa8] sm:$0xff] }
 0xadc   :  { %5694 = vpow2.f32 %v5382_v5  ;;  %v4521_v6 = vpop.f32.mrf.mxu2 }
 0xadd   :  { %5696 = vpow2.f32 %v5386_v14  ;;  %v4522_v3 = vadd.f32 %v7795_v13, %v4521_v6  ;;  %v4541_v57 = vpop.f32.mrf.mxu3 }
 0xade   :  { %v4542_v11 = vadd.f32 %v7817_v30, %v4541_v57 }
 0xadf   :  { %v4564_v63 = vadd.f32 %v4522_v3, %v4369_v22 }
 0xae1   :  { %v5693_v32 = vpop.eup %5692  ;;  %v5387_v9 = vmul.f32 -1.442695, %v4564_v63 }
 0xae2   :  { %v5695_v29 = vpop.eup %5694  ;;  %v4438_v21 = vadd.f32 1.0, %v5693_v32 }
 0xae3   :  { %v5697_v34 = vpop.eup %5696  ;;  %v7865_v62 = vadd.f32 1.0, %v5695_v29  ;;  %5698 = vpow2.f32 %v5387_v9 }
 0xae4   :  { %v4548_v59 = vadd.f32 1.0, %v5697_v34  ;;  %5700 = vrcp.f32 %v4438_v21  ;;  %v4448_v56 = vand.u32 2147483647, %v4438_v21  ;;  %v4450_v1 = vand.u32 2147483648, %v4438_v21 }
 0xae5   :  { %5702 = vrcp.f32 %v7865_v62  ;;  %vm4444_vm15 = vweird.f32 %v4438_v21  ;;  %vm4464_vm4 = vweird.f32 %v7865_v62  ;;  %v4470_v58 = vand.u32 2147483648, %v7865_v62 }
 0xae6   :  { %5704 = vrcp.f32 %v4548_v59  ;;  %v4560_v38 = vand.u32 2147483648, %v4548_v59  ;;  %v4558_v40 = vand.u32 2147483647, %v4548_v59  ;;  %vm4449_vm3 = vcmp.eq.f32.partialorder %v4448_v56, 8.507059e+37 }
 0xae7   :  { %v4451_v4 = vor.u32 1.1754944e-38, %v4450_v1  ;;  %vm4554_vm5 = vweird.f32 %v4548_v59  ;;  %v4468_v31 = vand.u32 2147483647, %v7865_v62  ;;  %v4471_v29 = vor.u32 1.1754944e-38, %v4470_v58 }
 0xae8   :  { %v4561_v37 = vor.u32 1.1754944e-38, %v4560_v38  ;;  %vm4559_vm8 = vcmp.eq.f32.partialorder %v4558_v40, 8.507059e+37 }
 0xae9   :  { %v5699_v60 = vpop.eup %5698  ;;  %vm4469_vm12 = vcmp.eq.f32.partialorder %v4468_v31, 8.507059e+37 }
 0xaea   :  { %v5701_v2 = vpop.eup %5700  ;;  %v7868_v27 = vadd.f32 1.0, %v5699_v60 }
 0xaeb   :  { %v7870_v15 = vpop.eup %5702  ;;  %v4440_v50 = vmul.f32 %v5701_v2, %v4438_v21  ;;  %vm4445_vm14 = vweird.f32 %v5701_v2  ;;  %v4370_v21 = vld [vmem:[#allocation2 + $0x150] sm:$0xff] }
 0xaec   :  { %v5705_v10 = vpop.eup %5704  ;;  %v4460_v41 = vmul.f32 %v7870_v15, %v7865_v62  ;;  %5706 = vrcp.f32 %v7868_v27  ;;  %vm4446_vm2 = vmor %vm4444_vm15, %vm4445_vm14  ;;  %vm4465_vm6 = vweird.f32 %v7870_v15  ;;  %v4580_v5 = vand.u32 2147483648, %v7868_v27 }
 0xaed   :  { %v4441_v18 = vsub.f32 1.0, %v4440_v50  ;;  %v4550_v12 = vmul.f32 %v5705_v10, %v4548_v59  ;;  %vm4555_vm1 = vweird.f32 %v5705_v10  ;;  %v4578_v6 = vand.u32 2147483647, %v7868_v27  ;;  %vm7889_vm9 = vmor %vm4464_vm4, %vm4465_vm6 }
 0xaee   :  { %v4461_v55 = vsub.f32 1.0, %v4460_v41  ;;  %vm4556_vm7 = vmor %vm4554_vm5, %vm4555_vm1  ;;  %vm4574_vm11 = vweird.f32 %v7868_v27  ;;  %v4581_v62 = vor.u32 1.1754944e-38, %v4580_v5 }
 0xaef   :  { %v4442_v51 = vmul.f32 %v5701_v2, %v4441_v18  ;;  %v4551_v45 = vsub.f32 1.0, %v4550_v12  ;;  %vm4579_vm14 = vcmp.eq.f32.partialorder %v4578_v6, 8.507059e+37 }
 0xaf0   :  { %v4462_v52 = vmul.f32 %v7870_v15, %v4461_v55  ;;  %v5816_v55 = vld [vmem:[#allocation13 + $0x58] sm:$0xff] }
 0xaf1   :  { %v4443_v28 = vadd.f32 %v5701_v2, %v4442_v51  ;;  %v4552_v61 = vmul.f32 %v5705_v10, %v4551_v45  ;;  %v5820_v51 = vld [vmem:[#allocation13 + $0xb8] sm:$0xff]  ;;  %v5821_v45 = vld [vmem:[#allocation13 + $0x68] sm:$0xff] }
 0xaf2   :  { %v5707_v7 = vpop.eup %5706  ;;  %v4463_v0 = vadd.f32 %v7870_v15, %v4462_v52  ;;  %v5822_v52 = vld [vmem:[#allocation13 + $0xb0] sm:$0xff] }
 0xaf3   :  { %v4447_v20 = vsel %vm4446_vm2, %v5701_v2, %v4443_v28  ;;  %v4570_v8 = vmul.f32 %v5707_v7, %v7868_v27  ;;  %v4553_v47 = vadd.f32 %v5705_v10, %v4552_v61  ;;  %vm4575_vm10 = vweird.f32 %v5707_v7  ;;  %v4591_v28 = vld [vmem:[#allocation2 + $0x30] sm:$0xff] }
 0xaf4   :  { %v4452_v46 = vsel %vm4449_vm3, %v4451_v4, %v4447_v20  ;;  %v4467_v9 = vsel %vm7889_vm9, %v7870_v15, %v4463_v0  ;;  %vm4576_vm13 = vmor %vm4574_vm11, %vm4575_vm10  ;;  %v4592_v61 = vld [vmem:[#allocation2 + $0x70] sm:$0xff]  ;;  %v4595_v0 = vld [vmem:[#allocation2 + $0x108] sm:$0xff] }
 0xaf5   :  { %v4474_v23 = vmul.f32 %v4452_v46, %v4432_v16  ;;  %v4571_v44 = vsub.f32 1.0, %v4570_v8  ;;  %v4557_v49 = vsel %vm4556_vm7, %v5705_v10, %v4553_v47  ;;  %v4472_v2 = vsel %vm4469_vm12, %v4471_v29, %v4467_v9  ;;  %v5819_v16 = vld [vmem:[#allocation13 + $0x70] sm:$0xff]  ;;  %v4594_v46 = vld [vmem:[#allocation2 + $0xc8] sm:$0xff] }
 0xaf6   :  { %v4562_v14 = vsel %vm4559_vm8, %v4561_v37, %v4557_v49  ;;  %v4477_v25 = vsub.f32 1.0, %v4472_v2  ;;  %v4479_v15 = vmul.f32 %v4472_v2, %v7824_v39  ;;  %v5817_v39 = vld [vmem:[#allocation13 + $0x78] sm:$0xff] }
 0xaf7   :  { %v4475_v3 = vadd.f32 %v4474_v23, %v4367_v24  ;;  %v4572_v63 = vmul.f32 %v5707_v7, %v4571_v44  ;;  %v4584_v32 = vmul.f32 %v4562_v14, %v4542_v11  ;;  %v5824_v11 = vld [vmem:[#allocation13 + $0xa8] sm:$0xff] }
 0xaf9   :  { %5708 = vtanh.f32 %v4475_v3  ;;  %v4573_v34 = vadd.f32 %v5707_v7, %v4572_v63  ;;  %v4585_v59 = vadd.f32 %v4584_v32, %v4370_v21 }
 0xafb   :  { %v4577_v60 = vsel %vm4576_vm13, %v5707_v7, %v4573_v34  ;;  %5710 = vtanh.f32 %v4585_v59 }
 0xafc   :  { %v4582_v50 = vsel %vm4579_vm14, %v4581_v62, %v4577_v60 }
 0xafd   :  { %v4587_v10 = vsub.f32 1.0, %v4582_v50  ;;  %v4589_v27 = vmul.f32 %v4582_v50, %v7840_v36  ;;  %v5818_v36 = vld [vmem:[#allocation13 + $0x50] sm:$0xff] }
 0xaff   :  { %v5709_v41 = vpop.eup %5708 }
 0xb00   :  { %v4478_v18 = vmul.f32 %v5709_v41, %v4477_v25 }
 0xb01   :  { %v5711_v57 = vpop.eup %5710 }
 0xb02   :  { %v4588_v12 = vmul.f32 %v5711_v57, %v4587_v10  ;;  %v7899_v56 = vadd.f32 %v4479_v15, %v4478_v18 }
 0xb04   :  { %v7901_v1 = vadd.f32 %v4589_v27, %v4588_v12  ;;  %5388 = vmatmul.msk.f32.vlgmr.msra.gmra.mxu0 %vm143_vm0, %v7899_v56  ;;  %5389 = vmatmul.msk.f32.vlgmr.msra.gmra.mxu1 %vm143_vm0, %v7899_v56 }
 0xb05   :  { %5390 = vmatmul.msk.f32.vlgmr.msrb.gmra.mxu2 %vm143_vm0, %v7899_v56  ;;  %4878 = vmatpush.msra.mxu0 %v5816_v55 }
 0xb06   :  { %5393 = vmatmul.msk.f32.vlgmr.msrb.gmra.mxu3 %vm143_vm0, %v7901_v1  ;;  %4948 = vmatpush.msra.mxu1 %v5817_v39 }
 0xb07   :  { %4879 = vmatpush.msra.mxu0 %v5818_v36  ;;  %4968 = vmatpush.msrb.mxu2 %v7677_v33  ;;  %v5823_v33 = vld [vmem:[#allocation13 + $0x60] sm:$0xff] }
 0xb08   :  { %4949 = vmatpush.msra.mxu1 %v5819_v16  ;;  %4988 = vmatpush.msrb.mxu3 %v5820_v51 }
 0xb09   :  { %4880 = vmatpush.msra.mxu0 %v7690_v43  ;;  %4969 = vmatpush.msrb.mxu2 %v7684_v42  ;;  %v5825_v42 = vld [vmem:[#allocation13 + $0xa0] sm:$0xff] }
 0xb0a   :  { %4950 = vmatpush.msra.mxu1 %v5821_v45  ;;  %4989 = vmatpush.msrb.mxu3 %v5822_v52  ;;  %v4593_v45 = vld [vmem:[#allocation2 + $0xb0] sm:$0xff] }
 0xb0b   :  { %4881 = vmatpush.msra.mxu0 %v7702_v35  ;;  %4970 = vmatpush.msrb.mxu2 %v7695_v26 }
 0xb0c   :  { %5394 = vmatmul.msk.f32.vlgmr.msrb.gmra.mxu0 %vm143_vm0, %v7901_v1  ;;  %5395 = vmatmul.msk.f32.vlgmr.msrb.gmra.mxu1 %vm143_vm0, %v7901_v1 }
 0xb0d   :  { %4951 = vmatpush.msra.mxu1 %v5823_v33  ;;  %4990 = vmatpush.msrb.mxu3 %v5824_v11 }
 0xb0e   :  { %4971 = vmatpush.msrb.mxu2 %v7706_v19 }
 0xb0f   :  { %4991 = vmatpush.msrb.mxu3 %v5825_v42 }
 0xb81   :  { %v4617_v43 = vpop.f32.mrf.mxu0  ;;  %v4637_v38 = vpop.f32.mrf.mxu1 }
 0xb82   :  { %v4618_v35 = vadd.f32 %v7777_v54, %v4617_v43  ;;  %v4638_v26 = vadd.f32 %v7783_v17, %v4637_v38 }
 0xb84   :  { %v4660_v40 = vadd.f32 %v4618_v35, %v4591_v28  ;;  %v4680_v7 = vadd.f32 %v4638_v26, %v4592_v61 }
 0xb86   :  { %v5391_v4 = vmul.f32 -1.442695, %v4660_v40  ;;  %v5392_v58 = vmul.f32 -1.442695, %v4680_v7 }
 0xb88   :  { %5712 = vpow2.f32 %v5391_v4  ;;  %v4657_v10 = vpop.f32.mrf.mxu2 }
 0xb89   :  { %5714 = vpow2.f32 %v5392_v58  ;;  %v4727_v20 = vpop.f32.mrf.mxu3  ;;  %v4747_v8 = vpop.f32.mrf.mxu0  ;;  %v4658_v15 = vadd.f32 %v7804_v48, %v4657_v10 }
 0xb8a   :  { %v4728_v19 = vadd.f32 %v7789_v53, %v4727_v20  ;;  %v4748_v47 = vadd.f32 %v7795_v13, %v4747_v8  ;;  %v4767_v61 = vpop.f32.mrf.mxu1 }
 0xb8b   :  { %v4768_v8 = vadd.f32 %v7817_v30, %v4767_v61 }
 0xb8c   :  { %v4770_v37 = vadd.f32 %v4728_v19, %v4594_v46  ;;  %v4790_v23 = vadd.f32 %v4748_v47, %v4595_v0 }
 0xb8e   :  { %v5713_v44 = vpop.eup %5712  ;;  %v5396_v49 = vmul.f32 -1.442695, %v4770_v37  ;;  %v5397_v5 = vmul.f32 -1.442695, %v4790_v23 }
 0xb8f   :  { %v5715_v24 = vpop.eup %5714  ;;  %v4664_v31 = vadd.f32 1.0, %v5713_v44  ;;  %v4596_v44 = vld [vmem:[#allocation2 + $0x148] sm:$0xff] }
 0xb90   :  { %v4684_v14 = vadd.f32 1.0, %v5715_v24  ;;  %5716 = vpow2.f32 %v5396_v49 }
 0xb91   :  { %5718 = vrcp.f32 %v4664_v31  ;;  %v4676_v62 = vand.u32 2147483648, %v4664_v31  ;;  %v4674_v2 = vand.u32 2147483647, %v4664_v31  ;;  %vm4670_vm1 = vweird.f32 %v4664_v31 }
 0xb92   :  { %5720 = vrcp.f32 %v4684_v14  ;;  %v4696_v36 = vand.u32 2147483648, %v4684_v14  ;;  %vm4690_vm5 = vweird.f32 %v4684_v14  ;;  %v4694_v52 = vand.u32 2147483647, %v4684_v14 }
 0xb93   :  { %5722 = vpow2.f32 %v5397_v5  ;;  %v4677_v18 = vor.u32 1.1754944e-38, %v4676_v62  ;;  %vm4675_vm3 = vcmp.eq.f32.partialorder %v4674_v2, 8.507059e+37 }
 0xb94   :  { %v4697_v40 = vor.u32 1.1754944e-38, %v4696_v36  ;;  %vm4695_vm9 = vcmp.eq.f32.partialorder %v4694_v52, 8.507059e+37 }
 0xb96   :  { %v5717_v6 = vpop.eup %5716 }
 0xb97   :  { %v5719_v3 = vpop.eup %5718  ;;  %v4774_v22 = vadd.f32 1.0, %v5717_v6 }
 0xb98   :  { %v5721_v63 = vpop.eup %5720  ;;  %v4666_v32 = vmul.f32 %v5719_v3, %v4664_v31  ;;  %vm4671_vm15 = vweird.f32 %v5719_v3 }
 0xb99   :  { %v5723_v9 = vpop.eup %5722  ;;  %v4686_v29 = vmul.f32 %v5721_v63, %v4684_v14  ;;  %5724 = vrcp.f32 %v4774_v22  ;;  %vm4672_vm2 = vmor %vm4670_vm1, %vm4671_vm15  ;;  %vm4691_vm4 = vweird.f32 %v5721_v63  ;;  %v4786_v11 = vand.u32 2147483648, %v4774_v22 }
 0xb9a   :  { %v4667_v21 = vsub.f32 1.0, %v4666_v32  ;;  %v7925_v34 = vadd.f32 1.0, %v5723_v9  ;;  %vm7930_vm6 = vmor %vm4690_vm5, %vm4691_vm4  ;;  %v4784_v35 = vand.u32 2147483647, %v4774_v22  ;;  %vm4780_vm8 = vweird.f32 %v4774_v22 }
 0xb9b   :  { %v4687_v59 = vsub.f32 1.0, %v4686_v29  ;;  %v4787_v58 = vor.u32 1.1754944e-38, %v4786_v11 }
 0xb9c   :  { %v4668_v60 = vmul.f32 %v5719_v3, %v4667_v21  ;;  %5726 = vrcp.f32 %v7925_v34  ;;  %vm4785_vm11 = vcmp.eq.f32.partialorder %v4784_v35, 8.507059e+37  ;;  %v4806_v0 = vand.u32 2147483648, %v7925_v34 }
 0xb9d   :  { %v4688_v50 = vmul.f32 %v5721_v63, %v4687_v59  ;;  %vm4800_vm13 = vweird.f32 %v7925_v34  ;;  %v4804_v49 = vand.u32 2147483647, %v7925_v34 }
 0xb9e   :  { %v4669_v25 = vadd.f32 %v5719_v3, %v4668_v60 }
 0xb9f   :  { %v5725_v41 = vpop.eup %5724  ;;  %v4689_v55 = vadd.f32 %v5721_v63, %v4688_v50  ;;  %vm4805_vm15 = vcmp.eq.f32.partialorder %v4804_v49, 8.507059e+37  ;;  %v4817_v50 = vld [vmem:[#allocation2 + $0x38] sm:$0xff] }
 0xba0   :  { %v4673_v57 = vsel %vm4672_vm2, %v5719_v3, %v4669_v25  ;;  %v4776_v12 = vmul.f32 %v5725_v41, %v4774_v22  ;;  %vm4781_vm7 = vweird.f32 %v5725_v41  ;;  %v4807_v3 = vor.u32 1.1754944e-38, %v4806_v0 }
 0xba1   :  { %v4678_v27 = vsel %vm4675_vm3, %v4677_v18, %v4673_v57  ;;  %v4693_v26 = vsel %vm7930_vm6, %v5721_v63, %v4689_v55  ;;  %vm4782_vm10 = vmor %vm4780_vm8, %vm4781_vm7  ;;  %v4820_v18 = vld [vmem:[#allocation2 + $0xc0] sm:$0xff] }
 0xba2   :  { %v5727_v39 = vpop.eup %5726  ;;  %v4700_v16 = vmul.f32 %v4678_v27, %v4658_v15  ;;  %v4777_v51 = vsub.f32 1.0, %v4776_v12  ;;  %v4698_v20 = vsel %vm4695_vm9, %v4697_v40, %v4693_v26 }
 0xba3   :  { %v4796_v33 = vmul.f32 %v5727_v39, %v7925_v34  ;;  %vm4801_vm12 = vweird.f32 %v5727_v39  ;;  %v4703_v23 = vsub.f32 1.0, %v4698_v20  ;;  %v4705_v14 = vmul.f32 %v4698_v20, %v7899_v56 }
 0xba4   :  { %v4701_v43 = vadd.f32 %v4700_v16, %v4593_v45  ;;  %v4778_v38 = vmul.f32 %v5725_v41, %v4777_v51  ;;  %vm4802_vm14 = vmor %vm4800_vm13, %vm4801_vm12 }
 0xba5   :  { %v4797_v28 = vsub.f32 1.0, %v4796_v33 }
 0xba6   :  { %5728 = vtanh.f32 %v4701_v43  ;;  %v4779_v7 = vadd.f32 %v5725_v41, %v4778_v38 }
 0xba7   :  { %v4798_v4 = vmul.f32 %v5727_v39, %v4797_v28 }
 0xba8   :  { %v4783_v19 = vsel %vm4782_vm10, %v5725_v41, %v4779_v7 }
 0xba9   :  { %v4788_v47 = vsel %vm4785_vm11, %v4787_v58, %v4783_v19  ;;  %v4799_v46 = vadd.f32 %v5727_v39, %v4798_v4 }
 0xbaa   :  { %v4810_v37 = vmul.f32 %v4788_v47, %v4768_v8 }
 0xbab   :  { %v4803_v6 = vsel %vm4802_vm14, %v5727_v39, %v4799_v46  ;;  %v4821_v39 = vld [vmem:[#allocation2 + $0x100] sm:$0xff] }
 0xbac   :  { %v5729_v24 = vpop.eup %5728  ;;  %v4811_v31 = vadd.f32 %v4810_v37, %v4596_v44  ;;  %v4808_v63 = vsel %vm4805_vm15, %v4807_v3, %v4803_v6 }
 0xbad   :  { %v4704_v5 = vmul.f32 %v5729_v24, %v4703_v23  ;;  %v4813_v32 = vsub.f32 1.0, %v4808_v63  ;;  %v4815_v56 = vmul.f32 %v4808_v63, %v7901_v1  ;;  %v4818_v1 = vld [vmem:[#allocation2 + $0x78] sm:$0xff] }
 0xbae   :  { %5730 = vtanh.f32 %v4811_v31 }
 0xbaf   :  { %v7941_v22 = vadd.f32 %v4705_v14, %v4704_v5 }
 0xbb1   :  { %5398 = vmatmul.msk.f32.vlgmr.msra.gmra.mxu2 %vm143_vm0, %v7941_v22  ;;  %5399 = vmatmul.msk.f32.vlgmr.msra.gmra.mxu3 %vm143_vm0, %v7941_v22 }
 0xbb2   :  { %5400 = vmatmul.msk.f32.vlgmr.msra.gmra.mxu0 %vm143_vm0, %v7941_v22 }
 0xbb4   :  { %v5731_v9 = vpop.eup %5730 }
 0xbb5   :  { %v4814_v29 = vmul.f32 %v5731_v9, %v4813_v32 }
 0xbb7   :  { %v7950_v21 = vadd.f32 %v4815_v56, %v4814_v29 }
 0xbb9   :  { %5403 = vmatmul.msk.f32.vlgmr.msra.gmra.mxu1 %vm143_vm0, %v7950_v21  ;;  %5404 = vmatmul.msk.f32.vlgmr.msrb.gmra.mxu2 %vm143_vm0, %v7950_v21 }
 0xbba   :  { %5405 = vmatmul.msk.f32.vlgmr.msrb.gmra.mxu3 %vm143_vm0, %v7950_v21 }
 0xc2f   :  { %v4883_v26 = vpop.f32.mrf.mxu0 }
 0xc30   :  { %v4884_v8 = vadd.f32 %v7804_v48, %v4883_v26 }
 0xc34   :  { %v4843_v34 = vpop.f32.mrf.mxu2  ;;  %v4863_v59 = vpop.f32.mrf.mxu3 }
 0xc35   :  { %v4844_v62 = vadd.f32 %v7777_v54, %v4843_v34  ;;  %v4864_v60 = vadd.f32 %v7783_v17, %v4863_v59 }
 0xc36   :  { %v4953_v2 = vpop.f32.mrf.mxu1 }
 0xc37   :  { %v4954_v10 = vadd.f32 %v7789_v53, %v4953_v2  ;;  %v4886_v25 = vadd.f32 %v4844_v62, %v4817_v50  ;;  %v4906_v41 = vadd.f32 %v4864_v60, %v4818_v1  ;;  %v4819_v62 = vld [vmem:[#allocation2 + $0xb8] sm:$0xff] }
 0xc39   :  { %v4996_v15 = vadd.f32 %v4954_v10, %v4820_v18  ;;  %v5401_v57 = vmul.f32 -1.442695, %v4886_v25  ;;  %v5402_v12 = vmul.f32 -1.442695, %v4906_v41  ;;  %v4822_v25 = vld [vmem:[#allocation2 + $0x140] sm:$0xff] }
 0xc3b   :  { %v5406_v27 = vmul.f32 -1.442695, %v4996_v15  ;;  %5732 = vpow2.f32 %v5401_v57 }
 0xc3c   :  { %5734 = vpow2.f32 %v5402_v12  ;;  %v4973_v55 = vpop.f32.mrf.mxu2 }
 0xc3d   :  { %5736 = vpow2.f32 %v5406_v27  ;;  %v4974_v54 = vadd.f32 %v7795_v13, %v4973_v55  ;;  %v4993_v40 = vpop.f32.mrf.mxu3 }
 0xc3e   :  { %v4994_v0 = vadd.f32 %v7817_v30, %v4993_v40 }
 0xc3f   :  { %v5016_v17 = vadd.f32 %v4974_v54, %v4821_v39 }
 0xc41   :  { %v5733_v36 = vpop.eup %5732  ;;  %v5407_v16 = vmul.f32 -1.442695, %v5016_v17 }
 0xc42   :  { %v5735_v51 = vpop.eup %5734  ;;  %v4890_v45 = vadd.f32 1.0, %v5733_v36 }
 0xc43   :  { %v5737_v53 = vpop.eup %5736  ;;  %v7962_v52 = vadd.f32 1.0, %v5735_v51  ;;  %5738 = vpow2.f32 %v5407_v16 }
 0xc44   :  { %v5000_v33 = vadd.f32 1.0, %v5737_v53  ;;  %5740 = vrcp.f32 %v4890_v45  ;;  %v4900_v4 = vand.u32 2147483647, %v4890_v45  ;;  %v4902_v58 = vand.u32 2147483648, %v4890_v45 }
 0xc45   :  { %5742 = vrcp.f32 %v7962_v52  ;;  %vm4896_vm2 = vweird.f32 %v4890_v45  ;;  %vm4916_vm6 = vweird.f32 %v7962_v52  ;;  %v4922_v48 = vand.u32 2147483648, %v7962_v52 }
 0xc46   :  { %5744 = vrcp.f32 %v5000_v33  ;;  %v5012_v37 = vand.u32 2147483648, %v5000_v33  ;;  %v5010_v49 = vand.u32 2147483647, %v5000_v33  ;;  %vm4901_vm5 = vcmp.eq.f32.partialorder %v4900_v4, 8.507059e+37 }
 0xc47   :  { %v4903_v31 = vor.u32 1.1754944e-38, %v4902_v58  ;;  %vm5006_vm7 = vweird.f32 %v5000_v33  ;;  %v4920_v60 = vand.u32 2147483647, %v7962_v52  ;;  %v4923_v18 = vor.u32 1.1754944e-38, %v4922_v48 }
 0xc48   :  { %v5013_v30 = vor.u32 1.1754944e-38, %v5012_v37  ;;  %vm5011_vm10 = vcmp.eq.f32.partialorder %v5010_v49, 8.507059e+37 }
 0xc49   :  { %v5739_v11 = vpop.eup %5738  ;;  %vm4921_vm15 = vcmp.eq.f32.partialorder %v4920_v60, 8.507059e+37 }
 0xc4a   :  { %v5741_v42 = vpop.eup %5740  ;;  %v7965_v43 = vadd.f32 1.0, %v5739_v11 }
 0xc4b   :  { %v7967_v13 = vpop.eup %5742  ;;  %v4892_v38 = vmul.f32 %v5741_v42, %v4890_v45  ;;  %vm4897_vm1 = vweird.f32 %v5741_v42 }
 0xc4c   :  { %v5745_v35 = vpop.eup %5744  ;;  %v4912_v28 = vmul.f32 %v7967_v13, %v7962_v52  ;;  %5746 = vrcp.f32 %v7965_v43  ;;  %vm4898_vm4 = vmor %vm4896_vm2, %vm4897_vm1  ;;  %vm4917_vm9 = vweird.f32 %v7967_v13  ;;  %v5032_v56 = vand.u32 2147483648, %v7965_v43 }
 0xc4d   :  { %v4893_v61 = vsub.f32 1.0, %v4892_v38  ;;  %v5002_v7 = vmul.f32 %v5745_v35, %v5000_v33  ;;  %vm5007_vm3 = vweird.f32 %v5745_v35  ;;  %v5030_v59 = vand.u32 2147483647, %v7965_v43  ;;  %vm7985_vm12 = vmor %vm4916_vm6, %vm4917_vm9 }
 0xc4e   :  { %v4913_v20 = vsub.f32 1.0, %v4912_v28  ;;  %vm5008_vm8 = vmor %vm5006_vm7, %vm5007_vm3  ;;  %vm5026_vm13 = vweird.f32 %v7965_v43  ;;  %v5033_v12 = vor.u32 1.1754944e-38, %v5032_v56 }
 0xc4f   :  { %v4894_v19 = vmul.f32 %v5741_v42, %v4893_v61  ;;  %v5003_v47 = vsub.f32 1.0, %v5002_v7  ;;  %vm5031_vm1 = vcmp.eq.f32.partialorder %v5030_v59, 8.507059e+37 }
 0xc50   :  { %v4914_v46 = vmul.f32 %v7967_v13, %v4913_v20 }
 0xc51   :  { %v4895_v23 = vadd.f32 %v5741_v42, %v4894_v19  ;;  %v5004_v44 = vmul.f32 %v5745_v35, %v5003_v47 }
 0xc52   :  { %v5747_v24 = vpop.eup %5746  ;;  %v4915_v63 = vadd.f32 %v7967_v13, %v4914_v46 }
 0xc53   :  { %v4899_v5 = vsel %vm4898_vm4, %v5741_v42, %v4895_v23  ;;  %v5022_v14 = vmul.f32 %v5747_v24, %v7965_v43  ;;  %v5005_v6 = vadd.f32 %v5745_v35, %v5004_v44  ;;  %vm5027_vm11 = vweird.f32 %v5747_v24 }
 0xc54   :  { %v4904_v3 = vsel %vm4901_vm5, %v4903_v31, %v4899_v5  ;;  %v4919_v41 = vsel %vm7985_vm12, %v7967_v13, %v4915_v63  ;;  %vm5028_vm14 = vmor %vm5026_vm13, %vm5027_vm11 }
 0xc55   :  { %v4926_v32 = vmul.f32 %v4904_v3, %v4884_v8  ;;  %v5023_v9 = vsub.f32 1.0, %v5022_v14  ;;  %v5009_v29 = vsel %vm5008_vm8, %v5745_v35, %v5005_v6  ;;  %v4924_v55 = vsel %vm4921_vm15, %v4923_v18, %v4919_v41 }
 0xc56   :  { %v5014_v34 = vsel %vm5011_vm10, %v5013_v30, %v5009_v29  ;;  %v4929_v17 = vsub.f32 1.0, %v4924_v55  ;;  %v4931_v51 = vmul.f32 %v4924_v55, %v7941_v22 }
 0xc57   :  { %v5024_v2 = vmul.f32 %v5747_v24, %v5023_v9  ;;  %v5036_v50 = vmul.f32 %v5014_v34, %v4994_v0  ;;  %v4927_v10 = vadd.f32 %v4926_v32, %v4819_v62 }
 0xc59   :  { %v5025_v15 = vadd.f32 %v5747_v24, %v5024_v2  ;;  %v5037_v57 = vadd.f32 %v5036_v50, %v4822_v25  ;;  %5748 = vtanh.f32 %v4927_v10 }
 0xc5b   :  { %v5029_v27 = vsel %vm5028_vm14, %v5747_v24, %v5025_v15  ;;  %5750 = vtanh.f32 %v5037_v57 }
 0xc5c   :  { %v5034_v54 = vsel %vm5031_vm1, %v5033_v12, %v5029_v27 }
 0xc5d   :  { %v5039_v39 = vsub.f32 1.0, %v5034_v54  ;;  %v5041_v33 = vmul.f32 %v5034_v54, %v7950_v21 }
 0xc5f   :  { %v5749_v36 = vpop.eup %5748 }
 0xc60   :  { %v4930_v16 = vmul.f32 %v5749_v36, %v4929_v17 }
 0xc61   :  { %v5751_v45 = vpop.eup %5750 }
 0xc62   :  { %v5040_v53 = vmul.f32 %v5751_v45, %v5039_v39  ;;  %v4932_v52 = vadd.f32 %v4931_v51, %v4930_v16 }
 0xc64   :  { %v5042_v11 = vadd.f32 %v5041_v33, %v5040_v53  ;;  %5043 = vst.msk [vmem:[#allocation15] sm:$0xff] %vm143_vm0, %v4932_v52 }
 0xc66   :  { %5045 = vst.msk [vmem:[#allocation15 + $0x8] sm:$0xff] %vm143_vm0, %v5042_v11 }
 0xc67   :  { %5058 = dma.vmem_to_hbm [thread:$0]  %s5051_s5, 256, %s5053_s4, [#allocation6], %s6008_s23, %s6008_s23, %s6009_s24  }
 0xc68   :  { %6002 = dma.done.wait [#allocation6], 256  }
 0xc69   :  { %6003 = vsyncadd [#allocation6], 4294967040 }
 0xc6a   :  { %5063 = vsyncpa [#allocation5], 1 }
 0xc6b   :  { %5064 = vsyncpa [#allocation8], 1 }
 0xc6c   :  { %5065 = vsyncpa [#allocation11], 1 }
 0xc6d   :  { %5066 = vsyncpa [#allocation14], 1 }
 0xc6e   :  { %5067 = vsyncpa [#allocation6], 1 }

</bundles_post_ra>
